<compile_context>
chip_gen: v5e
topology: v5e:2x2
jax: 0.10.0
libtpu: 0.0.40
codegen_flags: <defaults>
</compile_context>

<pallas_src>
import numpy as np
import jax
import jax.numpy as jnp
from jax.experimental import pallas as pl
from jax.experimental.pallas import tpu as pltpu

# ------------------------- model hyper-parameters (synthetic) ----------------
HIDDEN_DIM = 32
H2 = HIDDEN_DIM // 2
VOC_EDGES_IN = 3
NUM_LAYERS = 3
NODE_FEAT = 8           # raw x_nodes_np feature dim (code indexes up to [..,7])
POSTMAN_FEAT = 8        # raw postman_np feature dim (code indexes up to [..,7])
NODE_IN_DIM = NODE_FEAT + 6 + 3       # x_nodes ++ node_emb_all(6) ++ nearest3nodes(3)
POSTMAN_IN_DIM = POSTMAN_FEAT + 3     # postman_np ++ postman_emb(3)
FIN = NODE_IN_DIM + 1 + POSTMAN_IN_DIM + 1   # + constant-1 bias cols for node / postman

_VMEM = pltpu.MemorySpace.VMEM


# ------------------------------ parameters -----------------------------------
def _lin_init(key, fan_in, fan_out, bias=True):
    k1, k2 = jax.random.split(key)
    bound = 1.0 / np.sqrt(fan_in)
    w = jax.random.uniform(k1, (fan_in, fan_out), jnp.float32, -bound, bound)
    b = (jax.random.uniform(k2, (1, fan_out), jnp.float32, -bound, bound)
         if bias else jnp.zeros((1, fan_out), jnp.float32))
    return w, b


def init_params(key, pn_total):
    H, Hh = HIDDEN_DIM, HIDDEN_DIM // 2
    keys = iter(jax.random.split(key, 7 + 5 * NUM_LAYERS))
    p = {}
    p["embedding"] = np.asarray(
        jax.random.normal(next(keys), (pn_total, 3), jnp.float32))          # nn.Embedding(PN, 3)
    w, b = _lin_init(next(keys), 1, Hh)                                     # Linear(edge_dim=1, H/2)
    p["edges_vals_w"], p["edges_vals_b"] = np.asarray(w).reshape(1, Hh), np.asarray(b)
    p["edges_emb"] = np.asarray(
        jax.random.normal(next(keys), (VOC_EDGES_IN, Hh), jnp.float32))     # Embedding(voc_edges_in, H/2)
    w, b = _lin_init(next(keys), NODE_IN_DIM, H)                            # nodes_coord_embedding
    p["nodes_w"], p["nodes_b"] = np.asarray(w), np.asarray(b)
    w, b = _lin_init(next(keys), POSTMAN_IN_DIM, H)                         # postman_conversion
    p["post_w"], p["post_b"] = np.asarray(w), np.asarray(b)
    w, b = _lin_init(next(keys), 2 * H, H)                                  # selfass
    p["selfass_w"], p["selfass_b"] = np.asarray(w), np.asarray(b)
    w, _ = _lin_init(next(keys), H, 1, bias=False)                          # to_num (no bias)
    p["to_num_w"] = np.asarray(w).reshape(1, H)
    for name in ("u", "v1", "v2", "a", "b"):
        p[f"gcn_{name}_w"], p[f"gcn_{name}_b"] = [], []
    for _ in range(NUM_LAYERS):
        for name in ("u", "v1", "v2", "a", "b"):
            w_, b_ = _lin_init(next(keys), H, H)
            p[f"gcn_{name}_w"].append(np.asarray(w_))
            p[f"gcn_{name}_b"].append(np.asarray(b_))
    return p


def build_weight_slab(params):
    """Pack every weight/bias into one lane-dense (rows, 128) f32 slab."""
    H, Hh, L = HIDDEN_DIM, HIDDEN_DIM // 2, NUM_LAYERS
    blocks, offs = [], {}
    cursor = [0]

    def add(name, arr):
        arr = np.asarray(arr, np.float32)
        if arr.ndim == 1:
            arr = arr[None, :]
        rows = ((arr.shape[0] + 7) // 8) * 8          # 8-sublane aligned blocks
        offs[name] = (cursor[0], arr.shape[0], arr.shape[1])
        blocks.append((cursor[0], arr))
        cursor[0] += rows

    # fused edge embedding (scale 1/4 and bias folded) + adjacency expansion
    we = np.zeros((20, 128), np.float32)
    be = np.zeros((1, 128), np.float32)
    radj = np.zeros((20, 128), np.float32)
    evw = np.asarray(params["edges_vals_w"]).reshape(Hh) * 0.25
    evb = np.asarray(params["edges_vals_b"]).reshape(Hh) * 0.25
    eemb = np.asarray(params["edges_emb"]) * 0.25
    for c in range(4):
        we[5 * c + 0, 32 * c: 32 * c + Hh] = evw
        for t in range(VOC_EDGES_IN):
            we[5 * c + 1 + t, 32 * c + Hh: 32 * c + 2 * Hh] = eemb[t]
        be[0, 32 * c: 32 * c + Hh] = evb
        radj[5 * c + 4, 32 * c: 32 * c + 32] = 1.0
    add("w_edge", we)
    add("b_edge", be)
    add("r_adj", radj)

    # node / postman input projection, biases folded as extra rows
    w_in = np.zeros((FIN, H), np.float32)
    w_in[0:NODE_IN_DIM] = params["nodes_w"]
    w_in[NODE_IN_DIM] = np.asarray(params["nodes_b"]).reshape(-1)
    w_in[NODE_IN_DIM + 1:FIN - 1] = params["post_w"]
    w_in[FIN - 1] = np.asarray(params["post_b"]).reshape(-1)
    add("w_in", w_in)

    # scoring head
    sw = np.asarray(params["selfass_w"])
    add("ws_b", sw[:H])
    add("ws_a", sw[H:])
    add("b_self", params["selfass_b"])
    add("w_tonum", params["to_num_w"])

    # GCN layers: U/V2/B as 4-way block-diagonal, V1 lane-tiled, biases tiled
    def blockdiag(w):
        out = np.zeros((128, 128), np.float32)
        for c in range(4):
            out[32 * c:32 * c + 32, 32 * c:32 * c + 32] = w
        return out

    for l in range(L):
        add(f"u_bd{l}", blockdiag(params["gcn_u_w"][l]))
        add(f"u_b{l}", np.tile(np.asarray(params["gcn_u_b"][l]).reshape(1, H), (1, 4)))
        add(f"v1_t{l}", np.tile(np.asarray(params["gcn_v1_w"][l]), (1, 4)))
        add(f"v1_b{l}", np.tile(np.asarray(params["gcn_v1_b"][l]).reshape(1, H), (1, 4)))
        add(f"v2_bd{l}", blockdiag(params["gcn_v2_w"][l]))
        add(f"v2_b{l}", np.tile(np.asarray(params["gcn_v2_b"][l]).reshape(1, H), (1, 4)))
        add(f"b_bd{l}", blockdiag(params["gcn_b_w"][l]))
        add(f"b_b{l}", np.tile(np.asarray(params["gcn_b_b"][l]).reshape(1, H), (1, 4)))
        add(f"a_w{l}", params["gcn_a_w"][l])
        add(f"a_b{l}", params["gcn_a_b"][l])

    rows = ((cursor[0] + 7) // 8) * 8
    slab = np.zeros((rows, 128), np.float32)
    for start, arr in blocks:
        slab[start:start + arr.shape[0], :arr.shape[1]] = arr
    return jnp.asarray(slab), offs


# ------------------------------ host-side glue --------------------------------
def build_node_emb_all(emb_table, nn_total, pn_total, nodepostman,
                       if_postman_unassigned, initialnode):
    """Replicates the x_emb / node_emb1 / node_emb2 construction (host logic)."""
    emb_np = np.asarray(emb_table)
    x_emb = np.zeros((nn_total, 2), dtype=np.int64)
    alreadylisted, embindex1, embindex2 = [], [], []
    for i in range(nn_total):
        if nodepostman[i]:
            x_emb[i, 0] = int(nodepostman[i][0])
            alreadylisted.append(i)
            embindex1.append(i)
            if len(nodepostman[i]) > 1:
                x_emb[i, 1] = int(nodepostman[i][1])
                alreadylisted.append(i)
                embindex2.append(i)
    for i in range(pn_total):
        if if_postman_unassigned[i]:
            n = int(initialnode[i])
            if n in alreadylisted:
                x_emb[n, 1] = i
                embindex2.append(n)
            else:
                x_emb[n, 0] = i
                alreadylisted.append(n)
                embindex1.append(n)
    node_emb1 = np.zeros((nn_total, 3), dtype=np.float32)
    node_emb2 = np.zeros((nn_total, 3), dtype=np.float32)
    for i in sorted(embindex1):
        node_emb1[i] = emb_np[x_emb[i, 0]]
    for i in sorted(embindex2):
        node_emb2[i] = emb_np[x_emb[i, 1]]
    return np.concatenate([node_emb1, node_emb2], axis=1)   # (NN, 6)


# ------------------------------ fused Pallas kernel ---------------------------
def make_kernel(offs, V, VJB, P, L):
    H = HIDDEN_DIM
    f32 = jnp.float32

    def kernel(xe_ref, xin_ref, sel_ref, w_ref, att_ref, att2_ref, x1_ref):
        def getw(name):
            r, n, c = offs[name]
            return w_ref[r:r + n, 0:c]

        def mm(a, b):
            return jnp.dot(a, b, preferred_element_type=f32)

        # ---- fused edge embedding + adjacency mask, lane-dense (4H = 128) ----
        xe2 = xe_ref[...].reshape(V * VJB, 20)
        e = (mm(xe2, getw("w_edge")) + getw("b_edge")).reshape(V, VJB, 128)
        adjp = mm(xe2, getw("r_adj")).reshape(V, VJB, 128)

        # ---- node / postman input embeddings (biases folded into x_in) -------
        x1 = mm(xin_ref[...], getw("w_in"))                          # (V, H)

        # j -> (group, slot) interleave selectors; rows for padded j stay zero
        r_i = jax.lax.broadcasted_iota(jnp.int32, (VJB, V), 0)
        c_i = jax.lax.broadcasted_iota(jnp.int32, (VJB, V), 1)
        sel4 = [(c_i == 4 * r_i + c).astype(f32) for c in range(4)]

        # ---- residual gated GCN stack (x1 / e stay on-chip across layers) ----
        for l in range(NUM_LAYERS):
            e2 = e.reshape(V * VJB, 128)
            ue = (mm(e2, getw(f"u_bd{l}")) + getw(f"u_b{l}")).reshape(V, VJB, 128)
            vx1 = (mm(x1, getw(f"v1_t{l}")) + getw(f"v1_b{l}"))[:, None, :]    # (V,1,128)
            x1g = jnp.concatenate([mm(s, x1) for s in sel4], axis=1)           # (VJB,128)
            vx2 = (mm(x1g, getw(f"v2_bd{l}")) + getw(f"v2_b{l}"))[None, :, :]  # (1,VJB,128)
            bx = (mm(x1g, getw(f"b_bd{l}")) + getw(f"b_b{l}"))[None, :, :]     # (1,VJB,128)
            ax = mm(x1, getw(f"a_w{l}")) + getw(f"a_b{l}")                     # (V,H)

            e_new = ue + vx1 + vx2                                   # (V,VJB,128)
            gate = jax.nn.sigmoid(e_new) * adjp                      # adjacency gate mask
            numf = jnp.sum(gate * bx, axis=1)                        # (V,128)
            denf = jnp.sum(gate, axis=1)                             # (V,128)
            num = numf[:, 0:H] + numf[:, H:2 * H] + numf[:, 2 * H:3 * H] + numf[:, 3 * H:4 * H]
            den = (denf[:, 0:H] + denf[:, H:2 * H] + denf[:, 2 * H:3 * H]
                   + denf[:, 3 * H:4 * H]) + 1e-20
            x_new = ax + num / den                                   # exact divide (tiny)
            x1 = x1 + jnp.maximum(x_new, 0.0)
            e = e + jnp.maximum(e_new, 0.0)

        # ---- pairwise postman / location scoring head -------------------------
        # selfass(cat(b, a)) = b @ Ws[:H] + a @ Ws[H:] + bias  (exact decomposition)
        ws_b, ws_a = getw("ws_b"), getw("ws_a")
        bs = getw("b_self")                                          # (1,H)
        wt = getw("w_tonum")                                         # (1,H)
        sp = sel_ref[0:P, :]                                         # (P,V) postmen
        sl = sel_ref[P:P + L, :]                                     # (L,V) locations
        sc = sel_ref[P + L:P + L + P, :]                             # (P,V) current nodes
        bproj = mm(mm(sp, x1), ws_b)                                 # (P,H)
        aloc = mm(mm(sl, x1), ws_a)                                  # (L,H)
        acur = mm(mm(sc, x1), ws_a)                                  # (P,H)
        h_loc = bproj[:, None, :] + aloc[None, :, :] + bs[None, :, :]   # (P,L,H)
        h_cur = bproj + acur + bs                                    # (P,H)
        h_loc = jnp.where(h_loc > 0, h_loc, 0.01 * h_loc)            # LeakyReLU(0.01)
        h_cur = jnp.where(h_cur > 0, h_cur, 0.01 * h_cur)
        s_loc = jnp.sum(h_loc * wt[None, :, :], axis=-1)             # (P,L)
        s_cur = jnp.sum(h_cur * wt, axis=-1, keepdims=True)          # (P,1)
        att2 = jnp.concatenate([s_loc, s_cur], axis=-1)              # (P,L+1)
        att2_ref[...] = att2

        # attention = softmax(10 * tanh(attention2)) over all P*(L+1) actions
        a3 = 10.0 * jnp.tanh(att2)
        m = jnp.max(jnp.max(a3, axis=1, keepdims=True), axis=0, keepdims=True)
        ex = jnp.exp(a3 - m)
        ssum = jnp.sum(jnp.sum(ex, axis=1, keepdims=True), axis=0, keepdims=True)
        att_ref[...] = ex / ssum                                     # exact normaliser
        x1_ref[...] = x1

    return kernel


# --------------------------------- forward ------------------------------------
def forward(params, all_adjacency_np, allOD_np, x_nodes_np, postman_np,
            if_assignment_required, if_postman_unassigned, initialnode,
            nodepostman, nearest3nodes_np):
    """NN part of ResidualGatedGCNModel.forward (single batch element), one kernel."""
    NN = x_nodes_np.shape[1]
    PN = postman_np.shape[1]
    V = NN + PN
    VJB = ((V + 31) // 32) * 8          # number of 4-neighbour lane groups

    # ----- packed edge features: OD, tag one-hot and adjacency mask, 1 input --
    od = np.asarray(allOD_np[0], np.float32)
    tags = np.asarray(all_adjacency_np[0], np.int64)
    adjmask = tags.astype(np.float32) - 2.0 * np.eye(V, dtype=np.float32)
    xe = np.zeros((V, VJB, 20), np.float32)
    for c in range(4):
        j_idx = 4 * np.arange(VJB) + c
        valid = j_idx < V
        jv = j_idx[valid]
        xe[:, valid, 5 * c + 0] = od[:, jv]
        for t in range(VOC_EDGES_IN):
            xe[:, valid, 5 * c + 1 + t] = (tags[:, jv] == t).astype(np.float32)
        xe[:, valid, 5 * c + 4] = adjmask[:, jv]

    # ----- node / postman input features (host bookkeeping of emb scatter) ----
    node_emb_all = build_node_emb_all(params["embedding"], NN, PN, nodepostman,
                                      if_postman_unassigned, initialnode)
    postman_emb = np.asarray(params["embedding"], np.float32)   # embedding(arange(PN))
    x_in = np.zeros((V, FIN), np.float32)
    x_in[:NN, 0:NODE_FEAT] = x_nodes_np[0]
    x_in[:NN, NODE_FEAT:NODE_FEAT + 6] = node_emb_all
    x_in[:NN, NODE_FEAT + 6:NODE_IN_DIM] = nearest3nodes_np
    x_in[:NN, NODE_IN_DIM] = 1.0                                # node bias flag
    x_in[NN:, NODE_IN_DIM + 1:NODE_IN_DIM + 1 + POSTMAN_FEAT] = postman_np[0]
    x_in[NN:, NODE_IN_DIM + 1 + POSTMAN_FEAT:FIN - 1] = postman_emb
    x_in[NN:, FIN - 1] = 1.0                                    # postman bias flag

    # ----- scoring-head index sets -> stacked one-hot gather matrix -----------
    postman_indices = [i for i in range(PN) if if_postman_unassigned[i]]
    locationindices = [i for i, j in enumerate(if_assignment_required) if j]
    currentnode = [int(initialnode[i]) for i in postman_indices]
    postman_indices1 = [NN + i for i in postman_indices]
    P, L = len(postman_indices), len(locationindices)
    sel = np.zeros((2 * P + L, V), np.float32)
    sel[np.arange(P), postman_indices1] = 1.0
    sel[P + np.arange(L), locationindices] = 1.0
    sel[P + L + np.arange(P), currentnode] = 1.0

    wslab, offs = build_weight_slab(params)
    kernel = make_kernel(offs, V=V, VJB=VJB, P=P, L=L)

    att, att2, x1 = pl.pallas_call(
        kernel,
        out_shape=(jax.ShapeDtypeStruct((P, L + 1), jnp.float32),   # attention (softmax)
                   jax.ShapeDtypeStruct((P, L + 1), jnp.float32),   # attention2 (raw)
                   jax.ShapeDtypeStruct((V, HIDDEN_DIM), jnp.float32)),  # x1
        in_specs=[pl.BlockSpec(memory_space=_VMEM)] * 4,
        out_specs=(pl.BlockSpec(memory_space=_VMEM),) * 3,
    )(jnp.asarray(xe), jnp.asarray(x_in), jnp.asarray(sel), wslab)

    M = P * (L + 1)
    return (att.reshape(1, M),                 # softmax over all actions
            att2.reshape(1, P, L + 1, 1),      # raw scores (pre tanh*10)
            x1)


# ------------------------------------ main ------------------------------------
if __name__ == "__main__":
    key = jax.random.PRNGKey(0)
    NN_TOTAL, PN_TOTAL = 8, 4
    V = NN_TOTAL + PN_TOTAL

    params = init_params(key, PN_TOTAL)

    k1, k2, k3, k4 = jax.random.split(jax.random.PRNGKey(0), 4)
    # adjacency: ring connections (1) + self loops (2), convention {0,1,2}
    adj = np.zeros((V, V), dtype=np.int64)
    for i in range(V):
        adj[i, (i + 1) % V] = 1
        adj[(i + 1) % V, i] = 1
        adj[i, i] = 2
    all_adjacency_np = adj[None]                                         # (1, V, V)
    allOD_np = np.abs(np.asarray(jax.random.normal(k1, (1, V, V)))).astype(np.float32)
    x_nodes_np = np.asarray(jax.random.normal(k2, (1, NN_TOTAL, NODE_FEAT)),
                            dtype=np.float32)
    postman_np = np.asarray(jax.random.normal(k3, (1, PN_TOTAL, POSTMAN_FEAT)),
                            dtype=np.float32)
    nearest3nodes_np = np.asarray(
        jax.random.randint(k4, (NN_TOTAL, 3), 0, NN_TOTAL), dtype=np.float32)

    if_postman_unassigned = [1, 0, 1, 1]
    if_assignment_required = [1, 0, 1, 1, 0, 0, 1, 0]
    initialnode = [1, 7, 4, 5]                 # unassigned postmen sit on non-required nodes
    nodepostman = [[] for _ in range(NN_TOTAL)]
    nodepostman[3] = [1]                       # node 3 already served by postman 1

    attention, attention2, x1 = forward(
        params, all_adjacency_np, allOD_np, x_nodes_np, postman_np,
        if_assignment_required, if_postman_unassigned, initialnode,
        nodepostman, nearest3nodes_np)

    jax.block_until_ready((attention, attention2, x1))
    assert attention.shape == (1, 3 * (4 + 1))
    assert attention2.shape == (1, 3, 5, 1)
    assert x1.shape == (V, HIDDEN_DIM)
    assert bool(jnp.all(jnp.isfinite(attention)))
    assert bool(jnp.all(jnp.isfinite(x1)))
    assert abs(float(jnp.sum(attention)) - 1.0) < 1e-4     # exact softmax divide
    print("KERNEL_OK")
</pallas_src>

<mosaic_0001>
module attributes {stable_mosaic.version = 11 : i64} {
  func.func @kernel(%arg0: memref<12x8x20xf32, #tpu.memory_space<vmem>>, %arg1: memref<12x30xf32, #tpu.memory_space<vmem>>, %arg2: memref<10x12xf32, #tpu.memory_space<vmem>>, %arg3: memref<1632x128xf32, #tpu.memory_space<vmem>>, %arg4: memref<3x5xf32, #tpu.memory_space<vmem>>, %arg5: memref<3x5xf32, #tpu.memory_space<vmem>>, %arg6: memref<12x32xf32, #tpu.memory_space<vmem>>) attributes {dimension_semantics = [], scalar_prefetch = 0 : i64, scratch_operands = 0 : i64, tpu.core_type = #tpu.core_type<tc>} {
    %c0 = arith.constant 0 : index
    %c0_0 = arith.constant 0 : index
    %c0_1 = arith.constant 0 : index
    %0 = vector.load %arg0[%c0, %c0_0, %c0_1] : memref<12x8x20xf32, #tpu.memory_space<vmem>>, vector<12x8x20xf32>
    %1 = vector.shape_cast %0 : vector<12x8x20xf32> to vector<96x20xf32>
    %c0_2 = arith.constant 0 : index
    %c0_3 = arith.constant 0 : index
    %2 = vector.load %arg3[%c0_2, %c0_3] : memref<1632x128xf32, #tpu.memory_space<vmem>>, vector<20x128xf32>
    %cst = arith.constant dense<0.000000e+00> : vector<96x128xf32>
    %3 = tpu.matmul %1, %2, %cst {dimension_numbers = #tpu.dot_dimension_numbers<[1], [0], [0], [1], [0, 0, 1, 1], [], []>} : vector<96x20xf32>, vector<20x128xf32>, vector<96x128xf32> -> vector<96x128xf32>
    %c24 = arith.constant 24 : index
    %c0_4 = arith.constant 0 : index
    %4 = vector.load %arg3[%c24, %c0_4] : memref<1632x128xf32, #tpu.memory_space<vmem>>, vector<1x128xf32>
    %5 = vector.broadcast %4 : vector<1x128xf32> to vector<96x128xf32>
    %6 = arith.addf %3, %5 : vector<96x128xf32>
    %7 = vector.shape_cast %6 : vector<96x128xf32> to vector<12x8x128xf32>
    %c32 = arith.constant 32 : index
    %c0_5 = arith.constant 0 : index
    %8 = vector.load %arg3[%c32, %c0_5] : memref<1632x128xf32, #tpu.memory_space<vmem>>, vector<20x128xf32>
    %cst_6 = arith.constant dense<0.000000e+00> : vector<96x128xf32>
    %9 = tpu.matmul %1, %8, %cst_6 {dimension_numbers = #tpu.dot_dimension_numbers<[1], [0], [0], [1], [0, 0, 1, 1], [], []>} : vector<96x20xf32>, vector<20x128xf32>, vector<96x128xf32> -> vector<96x128xf32>
    %10 = vector.shape_cast %9 : vector<96x128xf32> to vector<12x8x128xf32>
    %c0_7 = arith.constant 0 : index
    %c0_8 = arith.constant 0 : index
    %11 = vector.load %arg1[%c0_7, %c0_8] : memref<12x30xf32, #tpu.memory_space<vmem>>, vector<12x30xf32>
    %c56 = arith.constant 56 : index
    %c0_9 = arith.constant 0 : index
    %12 = vector.load %arg3[%c56, %c0_9] : memref<1632x128xf32, #tpu.memory_space<vmem>>, vector<30x32xf32>
    %cst_10 = arith.constant dense<0.000000e+00> : vector<12x32xf32>
    %13 = tpu.matmul %11, %12, %cst_10 {dimension_numbers = #tpu.dot_dimension_numbers<[1], [0], [0], [1], [0, 0, 1, 1], [], []>} : vector<12x30xf32>, vector<30x32xf32>, vector<12x32xf32> -> vector<12x32xf32>
    %14 = tpu.iota {dimensions = array<i32: 0>} : vector<8x12xi32>
    %15 = tpu.iota {dimensions = array<i32: 1>} : vector<8x12xi32>
    %c4_i32 = arith.constant 4 : i32
    %16 = vector.broadcast %c4_i32 : i32 to vector<8x12xi32>
    %17 = arith.muli %16, %14 : vector<8x12xi32>
    %c0_i32 = arith.constant 0 : i32
    %18 = vector.broadcast %c0_i32 : i32 to vector<8x12xi32>
    %19 = arith.addi %17, %18 : vector<8x12xi32>
    %20 = arith.cmpi eq, %15, %19 : vector<8x12xi32>
    %21 = arith.extui %20 : vector<8x12xi1> to vector<8x12xi32>
    %22 = arith.sitofp %21 : vector<8x12xi32> to vector<8x12xf32>
    %c4_i32_11 = arith.constant 4 : i32
    %23 = vector.broadcast %c4_i32_11 : i32 to vector<8x12xi32>
    %24 = arith.muli %23, %14 : vector<8x12xi32>
    %c1_i32 = arith.constant 1 : i32
    %25 = vector.broadcast %c1_i32 : i32 to vector<8x12xi32>
    %26 = arith.addi %24, %25 : vector<8x12xi32>
    %27 = arith.cmpi eq, %15, %26 : vector<8x12xi32>
    %28 = arith.extui %27 : vector<8x12xi1> to vector<8x12xi32>
    %29 = arith.sitofp %28 : vector<8x12xi32> to vector<8x12xf32>
    %c4_i32_12 = arith.constant 4 : i32
    %30 = vector.broadcast %c4_i32_12 : i32 to vector<8x12xi32>
    %31 = arith.muli %30, %14 : vector<8x12xi32>
    %c2_i32 = arith.constant 2 : i32
    %32 = vector.broadcast %c2_i32 : i32 to vector<8x12xi32>
    %33 = arith.addi %31, %32 : vector<8x12xi32>
    %34 = arith.cmpi eq, %15, %33 : vector<8x12xi32>
    %35 = arith.extui %34 : vector<8x12xi1> to vector<8x12xi32>
    %36 = arith.sitofp %35 : vector<8x12xi32> to vector<8x12xf32>
    %c4_i32_13 = arith.constant 4 : i32
    %37 = vector.broadcast %c4_i32_13 : i32 to vector<8x12xi32>
    %38 = arith.muli %37, %14 : vector<8x12xi32>
    %c3_i32 = arith.constant 3 : i32
    %39 = vector.broadcast %c3_i32 : i32 to vector<8x12xi32>
    %40 = arith.addi %38, %39 : vector<8x12xi32>
    %41 = arith.cmpi eq, %15, %40 : vector<8x12xi32>
    %42 = arith.extui %41 : vector<8x12xi1> to vector<8x12xi32>
    %43 = arith.sitofp %42 : vector<8x12xi32> to vector<8x12xf32>
    %44 = vector.shape_cast %7 : vector<12x8x128xf32> to vector<96x128xf32>
    %c168 = arith.constant 168 : index
    %c0_14 = arith.constant 0 : index
    %45 = vector.load %arg3[%c168, %c0_14] : memref<1632x128xf32, #tpu.memory_space<vmem>>, vector<128x128xf32>
    %cst_15 = arith.constant dense<0.000000e+00> : vector<96x128xf32>
    %46 = tpu.matmul %44, %45, %cst_15 {dimension_numbers = #tpu.dot_dimension_numbers<[1], [0], [0], [1], [0, 0, 1, 1], [], []>} : vector<96x128xf32>, vector<128x128xf32>, vector<96x128xf32> -> vector<96x128xf32>
    %c296 = arith.constant 296 : index
    %c0_16 = arith.constant 0 : index
    %47 = vector.load %arg3[%c296, %c0_16] : memref<1632x128xf32, #tpu.memory_space<vmem>>, vector<1x128xf32>
    %48 = vector.broadcast %47 : vector<1x128xf32> to vector<96x128xf32>
    %49 = arith.addf %46, %48 : vector<96x128xf32>
    %50 = vector.shape_cast %49 : vector<96x128xf32> to vector<12x8x128xf32>
    %c304 = arith.constant 304 : index
    %c0_17 = arith.constant 0 : index
    %51 = vector.load %arg3[%c304, %c0_17] : memref<1632x128xf32, #tpu.memory_space<vmem>>, vector<32x128xf32>
    %cst_18 = arith.constant dense<0.000000e+00> : vector<12x128xf32>
    %52 = tpu.matmul %13, %51, %cst_18 {dimension_numbers = #tpu.dot_dimension_numbers<[1], [0], [0], [1], [0, 0, 1, 1], [], []>} : vector<12x32xf32>, vector<32x128xf32>, vector<12x128xf32> -> vector<12x128xf32>
    %c336 = arith.constant 336 : index
    %c0_19 = arith.constant 0 : index
    %53 = vector.load %arg3[%c336, %c0_19] : memref<1632x128xf32, #tpu.memory_space<vmem>>, vector<1x128xf32>
    %54 = vector.broadcast %53 : vector<1x128xf32> to vector<12x128xf32>
    %55 = arith.addf %52, %54 : vector<12x128xf32>
    %56 = vector.shape_cast %55 : vector<12x128xf32> to vector<12x1x128xf32>
    %cst_20 = arith.constant dense<0.000000e+00> : vector<8x32xf32>
    %57 = tpu.matmul %22, %13, %cst_20 {dimension_numbers = #tpu.dot_dimension_numbers<[1], [0], [0], [1], [0, 0, 1, 1], [], []>} : vector<8x12xf32>, vector<12x32xf32>, vector<8x32xf32> -> vector<8x32xf32>
    %cst_21 = arith.constant dense<0.000000e+00> : vector<8x32xf32>
    %58 = tpu.matmul %29, %13, %cst_21 {dimension_numbers = #tpu.dot_dimension_numbers<[1], [0], [0], [1], [0, 0, 1, 1], [], []>} : vector<8x12xf32>, vector<12x32xf32>, vector<8x32xf32> -> vector<8x32xf32>
    %cst_22 = arith.constant dense<0.000000e+00> : vector<8x32xf32>
    %59 = tpu.matmul %36, %13, %cst_22 {dimension_numbers = #tpu.dot_dimension_numbers<[1], [0], [0], [1], [0, 0, 1, 1], [], []>} : vector<8x12xf32>, vector<12x32xf32>, vector<8x32xf32> -> vector<8x32xf32>
    %cst_23 = arith.constant dense<0.000000e+00> : vector<8x32xf32>
    %60 = tpu.matmul %43, %13, %cst_23 {dimension_numbers = #tpu.dot_dimension_numbers<[1], [0], [0], [1], [0, 0, 1, 1], [], []>} : vector<8x12xf32>, vector<12x32xf32>, vector<8x32xf32> -> vector<8x32xf32>
    %61 = tpu.concatenate %57, %58, %59, %60 in 1 : vector<8x32xf32>, vector<8x32xf32>, vector<8x32xf32>, vector<8x32xf32> -> vector<8x128xf32>
    %c344 = arith.constant 344 : index
    %c0_24 = arith.constant 0 : index
    %62 = vector.load %arg3[%c344, %c0_24] : memref<1632x128xf32, #tpu.memory_space<vmem>>, vector<128x128xf32>
    %cst_25 = arith.constant dense<0.000000e+00> : vector<8x128xf32>
    %63 = tpu.matmul %61, %62, %cst_25 {dimension_numbers = #tpu.dot_dimension_numbers<[1], [0], [0], [1], [0, 0, 1, 1], [], []>} : vector<8x128xf32>, vector<128x128xf32>, vector<8x128xf32> -> vector<8x128xf32>
    %c472 = arith.constant 472 : index
    %c0_26 = arith.constant 0 : index
    %64 = vector.load %arg3[%c472, %c0_26] : memref<1632x128xf32, #tpu.memory_space<vmem>>, vector<1x128xf32>
    %65 = vector.broadcast %64 : vector<1x128xf32> to vector<8x128xf32>
    %66 = arith.addf %63, %65 : vector<8x128xf32>
    %67 = vector.shape_cast %66 : vector<8x128xf32> to vector<1x8x128xf32>
    %c480 = arith.constant 480 : index
    %c0_27 = arith.constant 0 : index
    %68 = vector.load %arg3[%c480, %c0_27] : memref<1632x128xf32, #tpu.memory_space<vmem>>, vector<128x128xf32>
    %cst_28 = arith.constant dense<0.000000e+00> : vector<8x128xf32>
    %69 = tpu.matmul %61, %68, %cst_28 {dimension_numbers = #tpu.dot_dimension_numbers<[1], [0], [0], [1], [0, 0, 1, 1], [], []>} : vector<8x128xf32>, vector<128x128xf32>, vector<8x128xf32> -> vector<8x128xf32>
    %c608 = arith.constant 608 : index
    %c0_29 = arith.constant 0 : index
    %70 = vector.load %arg3[%c608, %c0_29] : memref<1632x128xf32, #tpu.memory_space<vmem>>, vector<1x128xf32>
    %71 = vector.broadcast %70 : vector<1x128xf32> to vector<8x128xf32>
    %72 = arith.addf %69, %71 : vector<8x128xf32>
    %73 = vector.shape_cast %72 : vector<8x128xf32> to vector<1x8x128xf32>
    %c616 = arith.constant 616 : index
    %c0_30 = arith.constant 0 : index
    %74 = vector.load %arg3[%c616, %c0_30] : memref<1632x128xf32, #tpu.memory_space<vmem>>, vector<32x32xf32>
    %cst_31 = arith.constant dense<0.000000e+00> : vector<12x32xf32>
    %75 = tpu.matmul %13, %74, %cst_31 {dimension_numbers = #tpu.dot_dimension_numbers<[1], [0], [0], [1], [0, 0, 1, 1], [], []>} : vector<12x32xf32>, vector<32x32xf32>, vector<12x32xf32> -> vector<12x32xf32>
    %c648 = arith.constant 648 : index
    %c0_32 = arith.constant 0 : index
    %76 = vector.load %arg3[%c648, %c0_32] : memref<1632x128xf32, #tpu.memory_space<vmem>>, vector<1x32xf32>
    %77 = vector.broadcast %76 : vector<1x32xf32> to vector<12x32xf32>
    %78 = arith.addf %75, %77 : vector<12x32xf32>
    %79 = vector.broadcast %56 : vector<12x1x128xf32> to vector<12x8x128xf32>
    %80 = arith.addf %50, %79 : vector<12x8x128xf32>
    %81 = vector.broadcast %67 : vector<1x8x128xf32> to vector<12x8x128xf32>
    %82 = arith.addf %80, %81 : vector<12x8x128xf32>
    %83 = arith.negf %82 : vector<12x8x128xf32>
    %84 = math.exp %83 : vector<12x8x128xf32>
    %cst_33 = arith.constant 1.000000e+00 : f32
    %85 = vector.broadcast %cst_33 : f32 to vector<12x8x128xf32>
    %86 = arith.addf %85, %84 : vector<12x8x128xf32>
    %87 = arith.divf %85, %86 : vector<12x8x128xf32>
    %88 = arith.mulf %87, %10 : vector<12x8x128xf32>
    %89 = vector.broadcast %73 : vector<1x8x128xf32> to vector<12x8x128xf32>
    %90 = arith.mulf %88, %89 : vector<12x8x128xf32>
    %cst_34 = arith.constant dense<0.000000e+00> : vector<12x128xf32>
    %91 = vector.multi_reduction <add>, %90, %cst_34 [1] : vector<12x8x128xf32> to vector<12x128xf32>
    %cst_35 = arith.constant dense<0.000000e+00> : vector<12x128xf32>
    %92 = vector.multi_reduction <add>, %88, %cst_35 [1] : vector<12x8x128xf32> to vector<12x128xf32>
    %93 = vector.extract_strided_slice %91 {offsets = [0, 0], sizes = [12, 32], strides = [1, 1]} : vector<12x128xf32> to vector<12x32xf32>
    %94 = vector.extract_strided_slice %91 {offsets = [0, 32], sizes = [12, 32], strides = [1, 1]} : vector<12x128xf32> to vector<12x32xf32>
    %95 = arith.addf %93, %94 : vector<12x32xf32>
    %96 = vector.extract_strided_slice %91 {offsets = [0, 64], sizes = [12, 32], strides = [1, 1]} : vector<12x128xf32> to vector<12x32xf32>
    %97 = arith.addf %95, %96 : vector<12x32xf32>
    %98 = vector.extract_strided_slice %91 {offsets = [0, 96], sizes = [12, 32], strides = [1, 1]} : vector<12x128xf32> to vector<12x32xf32>
    %99 = arith.addf %97, %98 : vector<12x32xf32>
    %100 = vector.extract_strided_slice %92 {offsets = [0, 0], sizes = [12, 32], strides = [1, 1]} : vector<12x128xf32> to vector<12x32xf32>
    %101 = vector.extract_strided_slice %92 {offsets = [0, 32], sizes = [12, 32], strides = [1, 1]} : vector<12x128xf32> to vector<12x32xf32>
    %102 = arith.addf %100, %101 : vector<12x32xf32>
    %103 = vector.extract_strided_slice %92 {offsets = [0, 64], sizes = [12, 32], strides = [1, 1]} : vector<12x128xf32> to vector<12x32xf32>
    %104 = arith.addf %102, %103 : vector<12x32xf32>
    %105 = vector.extract_strided_slice %92 {offsets = [0, 96], sizes = [12, 32], strides = [1, 1]} : vector<12x128xf32> to vector<12x32xf32>
    %106 = arith.addf %104, %105 : vector<12x32xf32>
    %cst_36 = arith.constant 9.99999968E-21 : f32
    %107 = vector.broadcast %cst_36 : f32 to vector<12x32xf32>
    %108 = arith.addf %106, %107 : vector<12x32xf32>
    %109 = arith.divf %99, %108 : vector<12x32xf32>
    %110 = arith.addf %78, %109 : vector<12x32xf32>
    %cst_37 = arith.constant 0.000000e+00 : f32
    %111 = vector.broadcast %cst_37 : f32 to vector<12x32xf32>
    %112 = arith.maximumf %110, %111 : vector<12x32xf32>
    %113 = arith.addf %13, %112 : vector<12x32xf32>
    %cst_38 = arith.constant 0.000000e+00 : f32
    %114 = vector.broadcast %cst_38 : f32 to vector<12x8x128xf32>
    %115 = arith.maximumf %82, %114 : vector<12x8x128xf32>
    %116 = arith.addf %7, %115 : vector<12x8x128xf32>
    %117 = vector.shape_cast %116 : vector<12x8x128xf32> to vector<96x128xf32>
    %c656 = arith.constant 656 : index
    %c0_39 = arith.constant 0 : index
    %118 = vector.load %arg3[%c656, %c0_39] : memref<1632x128xf32, #tpu.memory_space<vmem>>, vector<128x128xf32>
    %cst_40 = arith.constant dense<0.000000e+00> : vector<96x128xf32>
    %119 = tpu.matmul %117, %118, %cst_40 {dimension_numbers = #tpu.dot_dimension_numbers<[1], [0], [0], [1], [0, 0, 1, 1], [], []>} : vector<96x128xf32>, vector<128x128xf32>, vector<96x128xf32> -> vector<96x128xf32>
    %c784 = arith.constant 784 : index
    %c0_41 = arith.constant 0 : index
    %120 = vector.load %arg3[%c784, %c0_41] : memref<1632x128xf32, #tpu.memory_space<vmem>>, vector<1x128xf32>
    %121 = vector.broadcast %120 : vector<1x128xf32> to vector<96x128xf32>
    %122 = arith.addf %119, %121 : vector<96x128xf32>
    %123 = vector.shape_cast %122 : vector<96x128xf32> to vector<12x8x128xf32>
    %c792 = arith.constant 792 : index
    %c0_42 = arith.constant 0 : index
    %124 = vector.load %arg3[%c792, %c0_42] : memref<1632x128xf32, #tpu.memory_space<vmem>>, vector<32x128xf32>
    %cst_43 = arith.constant dense<0.000000e+00> : vector<12x128xf32>
    %125 = tpu.matmul %113, %124, %cst_43 {dimension_numbers = #tpu.dot_dimension_numbers<[1], [0], [0], [1], [0, 0, 1, 1], [], []>} : vector<12x32xf32>, vector<32x128xf32>, vector<12x128xf32> -> vector<12x128xf32>
    %c824 = arith.constant 824 : index
    %c0_44 = arith.constant 0 : index
    %126 = vector.load %arg3[%c824, %c0_44] : memref<1632x128xf32, #tpu.memory_space<vmem>>, vector<1x128xf32>
    %127 = vector.broadcast %126 : vector<1x128xf32> to vector<12x128xf32>
    %128 = arith.addf %125, %127 : vector<12x128xf32>
    %129 = vector.shape_cast %128 : vector<12x128xf32> to vector<12x1x128xf32>
    %cst_45 = arith.constant dense<0.000000e+00> : vector<8x32xf32>
    %130 = tpu.matmul %22, %113, %cst_45 {dimension_numbers = #tpu.dot_dimension_numbers<[1], [0], [0], [1], [0, 0, 1, 1], [], []>} : vector<8x12xf32>, vector<12x32xf32>, vector<8x32xf32> -> vector<8x32xf32>
    %cst_46 = arith.constant dense<0.000000e+00> : vector<8x32xf32>
    %131 = tpu.matmul %29, %113, %cst_46 {dimension_numbers = #tpu.dot_dimension_numbers<[1], [0], [0], [1], [0, 0, 1, 1], [], []>} : vector<8x12xf32>, vector<12x32xf32>, vector<8x32xf32> -> vector<8x32xf32>
    %cst_47 = arith.constant dense<0.000000e+00> : vector<8x32xf32>
    %132 = tpu.matmul %36, %113, %cst_47 {dimension_numbers = #tpu.dot_dimension_numbers<[1], [0], [0], [1], [0, 0, 1, 1], [], []>} : vector<8x12xf32>, vector<12x32xf32>, vector<8x32xf32> -> vector<8x32xf32>
    %cst_48 = arith.constant dense<0.000000e+00> : vector<8x32xf32>
    %133 = tpu.matmul %43, %113, %cst_48 {dimension_numbers = #tpu.dot_dimension_numbers<[1], [0], [0], [1], [0, 0, 1, 1], [], []>} : vector<8x12xf32>, vector<12x32xf32>, vector<8x32xf32> -> vector<8x32xf32>
    %134 = tpu.concatenate %130, %131, %132, %133 in 1 : vector<8x32xf32>, vector<8x32xf32>, vector<8x32xf32>, vector<8x32xf32> -> vector<8x128xf32>
    %c832 = arith.constant 832 : index
    %c0_49 = arith.constant 0 : index
    %135 = vector.load %arg3[%c832, %c0_49] : memref<1632x128xf32, #tpu.memory_space<vmem>>, vector<128x128xf32>
    %cst_50 = arith.constant dense<0.000000e+00> : vector<8x128xf32>
    %136 = tpu.matmul %134, %135, %cst_50 {dimension_numbers = #tpu.dot_dimension_numbers<[1], [0], [0], [1], [0, 0, 1, 1], [], []>} : vector<8x128xf32>, vector<128x128xf32>, vector<8x128xf32> -> vector<8x128xf32>
    %c960 = arith.constant 960 : index
    %c0_51 = arith.constant 0 : index
    %137 = vector.load %arg3[%c960, %c0_51] : memref<1632x128xf32, #tpu.memory_space<vmem>>, vector<1x128xf32>
    %138 = vector.broadcast %137 : vector<1x128xf32> to vector<8x128xf32>
    %139 = arith.addf %136, %138 : vector<8x128xf32>
    %140 = vector.shape_cast %139 : vector<8x128xf32> to vector<1x8x128xf32>
    %c968 = arith.constant 968 : index
    %c0_52 = arith.constant 0 : index
    %141 = vector.load %arg3[%c968, %c0_52] : memref<1632x128xf32, #tpu.memory_space<vmem>>, vector<128x128xf32>
    %cst_53 = arith.constant dense<0.000000e+00> : vector<8x128xf32>
    %142 = tpu.matmul %134, %141, %cst_53 {dimension_numbers = #tpu.dot_dimension_numbers<[1], [0], [0], [1], [0, 0, 1, 1], [], []>} : vector<8x128xf32>, vector<128x128xf32>, vector<8x128xf32> -> vector<8x128xf32>
    %c1096 = arith.constant 1096 : index
    %c0_54 = arith.constant 0 : index
    %143 = vector.load %arg3[%c1096, %c0_54] : memref<1632x128xf32, #tpu.memory_space<vmem>>, vector<1x128xf32>
    %144 = vector.broadcast %143 : vector<1x128xf32> to vector<8x128xf32>
    %145 = arith.addf %142, %144 : vector<8x128xf32>
    %146 = vector.shape_cast %145 : vector<8x128xf32> to vector<1x8x128xf32>
    %c1104 = arith.constant 1104 : index
    %c0_55 = arith.constant 0 : index
    %147 = vector.load %arg3[%c1104, %c0_55] : memref<1632x128xf32, #tpu.memory_space<vmem>>, vector<32x32xf32>
    %cst_56 = arith.constant dense<0.000000e+00> : vector<12x32xf32>
    %148 = tpu.matmul %113, %147, %cst_56 {dimension_numbers = #tpu.dot_dimension_numbers<[1], [0], [0], [1], [0, 0, 1, 1], [], []>} : vector<12x32xf32>, vector<32x32xf32>, vector<12x32xf32> -> vector<12x32xf32>
    %c1136 = arith.constant 1136 : index
    %c0_57 = arith.constant 0 : index
    %149 = vector.load %arg3[%c1136, %c0_57] : memref<1632x128xf32, #tpu.memory_space<vmem>>, vector<1x32xf32>
    %150 = vector.broadcast %149 : vector<1x32xf32> to vector<12x32xf32>
    %151 = arith.addf %148, %150 : vector<12x32xf32>
    %152 = vector.broadcast %129 : vector<12x1x128xf32> to vector<12x8x128xf32>
    %153 = arith.addf %123, %152 : vector<12x8x128xf32>
    %154 = vector.broadcast %140 : vector<1x8x128xf32> to vector<12x8x128xf32>
    %155 = arith.addf %153, %154 : vector<12x8x128xf32>
    %156 = arith.negf %155 : vector<12x8x128xf32>
    %157 = math.exp %156 : vector<12x8x128xf32>
    %cst_58 = arith.constant 1.000000e+00 : f32
    %158 = vector.broadcast %cst_58 : f32 to vector<12x8x128xf32>
    %159 = arith.addf %158, %157 : vector<12x8x128xf32>
    %160 = arith.divf %158, %159 : vector<12x8x128xf32>
    %161 = arith.mulf %160, %10 : vector<12x8x128xf32>
    %162 = vector.broadcast %146 : vector<1x8x128xf32> to vector<12x8x128xf32>
    %163 = arith.mulf %161, %162 : vector<12x8x128xf32>
    %cst_59 = arith.constant dense<0.000000e+00> : vector<12x128xf32>
    %164 = vector.multi_reduction <add>, %163, %cst_59 [1] : vector<12x8x128xf32> to vector<12x128xf32>
    %cst_60 = arith.constant dense<0.000000e+00> : vector<12x128xf32>
    %165 = vector.multi_reduction <add>, %161, %cst_60 [1] : vector<12x8x128xf32> to vector<12x128xf32>
    %166 = vector.extract_strided_slice %164 {offsets = [0, 0], sizes = [12, 32], strides = [1, 1]} : vector<12x128xf32> to vector<12x32xf32>
    %167 = vector.extract_strided_slice %164 {offsets = [0, 32], sizes = [12, 32], strides = [1, 1]} : vector<12x128xf32> to vector<12x32xf32>
    %168 = arith.addf %166, %167 : vector<12x32xf32>
    %169 = vector.extract_strided_slice %164 {offsets = [0, 64], sizes = [12, 32], strides = [1, 1]} : vector<12x128xf32> to vector<12x32xf32>
    %170 = arith.addf %168, %169 : vector<12x32xf32>
    %171 = vector.extract_strided_slice %164 {offsets = [0, 96], sizes = [12, 32], strides = [1, 1]} : vector<12x128xf32> to vector<12x32xf32>
    %172 = arith.addf %170, %171 : vector<12x32xf32>
    %173 = vector.extract_strided_slice %165 {offsets = [0, 0], sizes = [12, 32], strides = [1, 1]} : vector<12x128xf32> to vector<12x32xf32>
    %174 = vector.extract_strided_slice %165 {offsets = [0, 32], sizes = [12, 32], strides = [1, 1]} : vector<12x128xf32> to vector<12x32xf32>
    %175 = arith.addf %173, %174 : vector<12x32xf32>
    %176 = vector.extract_strided_slice %165 {offsets = [0, 64], sizes = [12, 32], strides = [1, 1]} : vector<12x128xf32> to vector<12x32xf32>
    %177 = arith.addf %175, %176 : vector<12x32xf32>
    %178 = vector.extract_strided_slice %165 {offsets = [0, 96], sizes = [12, 32], strides = [1, 1]} : vector<12x128xf32> to vector<12x32xf32>
    %179 = arith.addf %177, %178 : vector<12x32xf32>
    %cst_61 = arith.constant 9.99999968E-21 : f32
    %180 = vector.broadcast %cst_61 : f32 to vector<12x32xf32>
    %181 = arith.addf %179, %180 : vector<12x32xf32>
    %182 = arith.divf %172, %181 : vector<12x32xf32>
    %183 = arith.addf %151, %182 : vector<12x32xf32>
    %cst_62 = arith.constant 0.000000e+00 : f32
    %184 = vector.broadcast %cst_62 : f32 to vector<12x32xf32>
    %185 = arith.maximumf %183, %184 : vector<12x32xf32>
    %186 = arith.addf %113, %185 : vector<12x32xf32>
    %cst_63 = arith.constant 0.000000e+00 : f32
    %187 = vector.broadcast %cst_63 : f32 to vector<12x8x128xf32>
    %188 = arith.maximumf %155, %187 : vector<12x8x128xf32>
    %189 = arith.addf %116, %188 : vector<12x8x128xf32>
    %190 = vector.shape_cast %189 : vector<12x8x128xf32> to vector<96x128xf32>
    %c1144 = arith.constant 1144 : index
    %c0_64 = arith.constant 0 : index
    %191 = vector.load %arg3[%c1144, %c0_64] : memref<1632x128xf32, #tpu.memory_space<vmem>>, vector<128x128xf32>
    %cst_65 = arith.constant dense<0.000000e+00> : vector<96x128xf32>
    %192 = tpu.matmul %190, %191, %cst_65 {dimension_numbers = #tpu.dot_dimension_numbers<[1], [0], [0], [1], [0, 0, 1, 1], [], []>} : vector<96x128xf32>, vector<128x128xf32>, vector<96x128xf32> -> vector<96x128xf32>
    %c1272 = arith.constant 1272 : index
    %c0_66 = arith.constant 0 : index
    %193 = vector.load %arg3[%c1272, %c0_66] : memref<1632x128xf32, #tpu.memory_space<vmem>>, vector<1x128xf32>
    %194 = vector.broadcast %193 : vector<1x128xf32> to vector<96x128xf32>
    %195 = arith.addf %192, %194 : vector<96x128xf32>
    %196 = vector.shape_cast %195 : vector<96x128xf32> to vector<12x8x128xf32>
    %c1280 = arith.constant 1280 : index
    %c0_67 = arith.constant 0 : index
    %197 = vector.load %arg3[%c1280, %c0_67] : memref<1632x128xf32, #tpu.memory_space<vmem>>, vector<32x128xf32>
    %cst_68 = arith.constant dense<0.000000e+00> : vector<12x128xf32>
    %198 = tpu.matmul %186, %197, %cst_68 {dimension_numbers = #tpu.dot_dimension_numbers<[1], [0], [0], [1], [0, 0, 1, 1], [], []>} : vector<12x32xf32>, vector<32x128xf32>, vector<12x128xf32> -> vector<12x128xf32>
    %c1312 = arith.constant 1312 : index
    %c0_69 = arith.constant 0 : index
    %199 = vector.load %arg3[%c1312, %c0_69] : memref<1632x128xf32, #tpu.memory_space<vmem>>, vector<1x128xf32>
    %200 = vector.broadcast %199 : vector<1x128xf32> to vector<12x128xf32>
    %201 = arith.addf %198, %200 : vector<12x128xf32>
    %202 = vector.shape_cast %201 : vector<12x128xf32> to vector<12x1x128xf32>
    %cst_70 = arith.constant dense<0.000000e+00> : vector<8x32xf32>
    %203 = tpu.matmul %22, %186, %cst_70 {dimension_numbers = #tpu.dot_dimension_numbers<[1], [0], [0], [1], [0, 0, 1, 1], [], []>} : vector<8x12xf32>, vector<12x32xf32>, vector<8x32xf32> -> vector<8x32xf32>
    %cst_71 = arith.constant dense<0.000000e+00> : vector<8x32xf32>
    %204 = tpu.matmul %29, %186, %cst_71 {dimension_numbers = #tpu.dot_dimension_numbers<[1], [0], [0], [1], [0, 0, 1, 1], [], []>} : vector<8x12xf32>, vector<12x32xf32>, vector<8x32xf32> -> vector<8x32xf32>
    %cst_72 = arith.constant dense<0.000000e+00> : vector<8x32xf32>
    %205 = tpu.matmul %36, %186, %cst_72 {dimension_numbers = #tpu.dot_dimension_numbers<[1], [0], [0], [1], [0, 0, 1, 1], [], []>} : vector<8x12xf32>, vector<12x32xf32>, vector<8x32xf32> -> vector<8x32xf32>
    %cst_73 = arith.constant dense<0.000000e+00> : vector<8x32xf32>
    %206 = tpu.matmul %43, %186, %cst_73 {dimension_numbers = #tpu.dot_dimension_numbers<[1], [0], [0], [1], [0, 0, 1, 1], [], []>} : vector<8x12xf32>, vector<12x32xf32>, vector<8x32xf32> -> vector<8x32xf32>
    %207 = tpu.concatenate %203, %204, %205, %206 in 1 : vector<8x32xf32>, vector<8x32xf32>, vector<8x32xf32>, vector<8x32xf32> -> vector<8x128xf32>
    %c1320 = arith.constant 1320 : index
    %c0_74 = arith.constant 0 : index
    %208 = vector.load %arg3[%c1320, %c0_74] : memref<1632x128xf32, #tpu.memory_space<vmem>>, vector<128x128xf32>
    %cst_75 = arith.constant dense<0.000000e+00> : vector<8x128xf32>
    %209 = tpu.matmul %207, %208, %cst_75 {dimension_numbers = #tpu.dot_dimension_numbers<[1], [0], [0], [1], [0, 0, 1, 1], [], []>} : vector<8x128xf32>, vector<128x128xf32>, vector<8x128xf32> -> vector<8x128xf32>
    %c1448 = arith.constant 1448 : index
    %c0_76 = arith.constant 0 : index
    %210 = vector.load %arg3[%c1448, %c0_76] : memref<1632x128xf32, #tpu.memory_space<vmem>>, vector<1x128xf32>
    %211 = vector.broadcast %210 : vector<1x128xf32> to vector<8x128xf32>
    %212 = arith.addf %209, %211 : vector<8x128xf32>
    %213 = vector.shape_cast %212 : vector<8x128xf32> to vector<1x8x128xf32>
    %c1456 = arith.constant 1456 : index
    %c0_77 = arith.constant 0 : index
    %214 = vector.load %arg3[%c1456, %c0_77] : memref<1632x128xf32, #tpu.memory_space<vmem>>, vector<128x128xf32>
    %cst_78 = arith.constant dense<0.000000e+00> : vector<8x128xf32>
    %215 = tpu.matmul %207, %214, %cst_78 {dimension_numbers = #tpu.dot_dimension_numbers<[1], [0], [0], [1], [0, 0, 1, 1], [], []>} : vector<8x128xf32>, vector<128x128xf32>, vector<8x128xf32> -> vector<8x128xf32>
    %c1584 = arith.constant 1584 : index
    %c0_79 = arith.constant 0 : index
    %216 = vector.load %arg3[%c1584, %c0_79] : memref<1632x128xf32, #tpu.memory_space<vmem>>, vector<1x128xf32>
    %217 = vector.broadcast %216 : vector<1x128xf32> to vector<8x128xf32>
    %218 = arith.addf %215, %217 : vector<8x128xf32>
    %219 = vector.shape_cast %218 : vector<8x128xf32> to vector<1x8x128xf32>
    %c1592 = arith.constant 1592 : index
    %c0_80 = arith.constant 0 : index
    %220 = vector.load %arg3[%c1592, %c0_80] : memref<1632x128xf32, #tpu.memory_space<vmem>>, vector<32x32xf32>
    %cst_81 = arith.constant dense<0.000000e+00> : vector<12x32xf32>
    %221 = tpu.matmul %186, %220, %cst_81 {dimension_numbers = #tpu.dot_dimension_numbers<[1], [0], [0], [1], [0, 0, 1, 1], [], []>} : vector<12x32xf32>, vector<32x32xf32>, vector<12x32xf32> -> vector<12x32xf32>
    %c1624 = arith.constant 1624 : index
    %c0_82 = arith.constant 0 : index
    %222 = vector.load %arg3[%c1624, %c0_82] : memref<1632x128xf32, #tpu.memory_space<vmem>>, vector<1x32xf32>
    %223 = vector.broadcast %222 : vector<1x32xf32> to vector<12x32xf32>
    %224 = arith.addf %221, %223 : vector<12x32xf32>
    %225 = vector.broadcast %202 : vector<12x1x128xf32> to vector<12x8x128xf32>
    %226 = arith.addf %196, %225 : vector<12x8x128xf32>
    %227 = vector.broadcast %213 : vector<1x8x128xf32> to vector<12x8x128xf32>
    %228 = arith.addf %226, %227 : vector<12x8x128xf32>
    %229 = arith.negf %228 : vector<12x8x128xf32>
    %230 = math.exp %229 : vector<12x8x128xf32>
    %cst_83 = arith.constant 1.000000e+00 : f32
    %231 = vector.broadcast %cst_83 : f32 to vector<12x8x128xf32>
    %232 = arith.addf %231, %230 : vector<12x8x128xf32>
    %233 = arith.divf %231, %232 : vector<12x8x128xf32>
    %234 = arith.mulf %233, %10 : vector<12x8x128xf32>
    %235 = vector.broadcast %219 : vector<1x8x128xf32> to vector<12x8x128xf32>
    %236 = arith.mulf %234, %235 : vector<12x8x128xf32>
    %cst_84 = arith.constant dense<0.000000e+00> : vector<12x128xf32>
    %237 = vector.multi_reduction <add>, %236, %cst_84 [1] : vector<12x8x128xf32> to vector<12x128xf32>
    %cst_85 = arith.constant dense<0.000000e+00> : vector<12x128xf32>
    %238 = vector.multi_reduction <add>, %234, %cst_85 [1] : vector<12x8x128xf32> to vector<12x128xf32>
    %239 = vector.extract_strided_slice %237 {offsets = [0, 0], sizes = [12, 32], strides = [1, 1]} : vector<12x128xf32> to vector<12x32xf32>
    %240 = vector.extract_strided_slice %237 {offsets = [0, 32], sizes = [12, 32], strides = [1, 1]} : vector<12x128xf32> to vector<12x32xf32>
    %241 = arith.addf %239, %240 : vector<12x32xf32>
    %242 = vector.extract_strided_slice %237 {offsets = [0, 64], sizes = [12, 32], strides = [1, 1]} : vector<12x128xf32> to vector<12x32xf32>
    %243 = arith.addf %241, %242 : vector<12x32xf32>
    %244 = vector.extract_strided_slice %237 {offsets = [0, 96], sizes = [12, 32], strides = [1, 1]} : vector<12x128xf32> to vector<12x32xf32>
    %245 = arith.addf %243, %244 : vector<12x32xf32>
    %246 = vector.extract_strided_slice %238 {offsets = [0, 0], sizes = [12, 32], strides = [1, 1]} : vector<12x128xf32> to vector<12x32xf32>
    %247 = vector.extract_strided_slice %238 {offsets = [0, 32], sizes = [12, 32], strides = [1, 1]} : vector<12x128xf32> to vector<12x32xf32>
    %248 = arith.addf %246, %247 : vector<12x32xf32>
    %249 = vector.extract_strided_slice %238 {offsets = [0, 64], sizes = [12, 32], strides = [1, 1]} : vector<12x128xf32> to vector<12x32xf32>
    %250 = arith.addf %248, %249 : vector<12x32xf32>
    %251 = vector.extract_strided_slice %238 {offsets = [0, 96], sizes = [12, 32], strides = [1, 1]} : vector<12x128xf32> to vector<12x32xf32>
    %252 = arith.addf %250, %251 : vector<12x32xf32>
    %cst_86 = arith.constant 9.99999968E-21 : f32
    %253 = vector.broadcast %cst_86 : f32 to vector<12x32xf32>
    %254 = arith.addf %252, %253 : vector<12x32xf32>
    %255 = arith.divf %245, %254 : vector<12x32xf32>
    %256 = arith.addf %224, %255 : vector<12x32xf32>
    %cst_87 = arith.constant 0.000000e+00 : f32
    %257 = vector.broadcast %cst_87 : f32 to vector<12x32xf32>
    %258 = arith.maximumf %256, %257 : vector<12x32xf32>
    %259 = arith.addf %186, %258 : vector<12x32xf32>
    %c88 = arith.constant 88 : index
    %c0_88 = arith.constant 0 : index
    %260 = vector.load %arg3[%c88, %c0_88] : memref<1632x128xf32, #tpu.memory_space<vmem>>, vector<32x32xf32>
    %c120 = arith.constant 120 : index
    %c0_89 = arith.constant 0 : index
    %261 = vector.load %arg3[%c120, %c0_89] : memref<1632x128xf32, #tpu.memory_space<vmem>>, vector<32x32xf32>
    %c152 = arith.constant 152 : index
    %c0_90 = arith.constant 0 : index
    %262 = vector.load %arg3[%c152, %c0_90] : memref<1632x128xf32, #tpu.memory_space<vmem>>, vector<1x32xf32>
    %c160 = arith.constant 160 : index
    %c0_91 = arith.constant 0 : index
    %263 = vector.load %arg3[%c160, %c0_91] : memref<1632x128xf32, #tpu.memory_space<vmem>>, vector<1x32xf32>
    %c0_92 = arith.constant 0 : index
    %c0_93 = arith.constant 0 : index
    %264 = vector.load %arg2[%c0_92, %c0_93] : memref<10x12xf32, #tpu.memory_space<vmem>>, vector<3x12xf32>
    %c3 = arith.constant 3 : index
    %c0_94 = arith.constant 0 : index
    %265 = vector.load %arg2[%c3, %c0_94] : memref<10x12xf32, #tpu.memory_space<vmem>>, vector<4x12xf32>
    %c7 = arith.constant 7 : index
    %c0_95 = arith.constant 0 : index
    %266 = vector.load %arg2[%c7, %c0_95] : memref<10x12xf32, #tpu.memory_space<vmem>>, vector<3x12xf32>
    %cst_96 = arith.constant dense<0.000000e+00> : vector<3x32xf32>
    %267 = tpu.matmul %264, %259, %cst_96 {dimension_numbers = #tpu.dot_dimension_numbers<[1], [0], [0], [1], [0, 0, 1, 1], [], []>} : vector<3x12xf32>, vector<12x32xf32>, vector<3x32xf32> -> vector<3x32xf32>
    %cst_97 = arith.constant dense<0.000000e+00> : vector<3x32xf32>
    %268 = tpu.matmul %267, %260, %cst_97 {dimension_numbers = #tpu.dot_dimension_numbers<[1], [0], [0], [1], [0, 0, 1, 1], [], []>} : vector<3x32xf32>, vector<32x32xf32>, vector<3x32xf32> -> vector<3x32xf32>
    %cst_98 = arith.constant dense<0.000000e+00> : vector<4x32xf32>
    %269 = tpu.matmul %265, %259, %cst_98 {dimension_numbers = #tpu.dot_dimension_numbers<[1], [0], [0], [1], [0, 0, 1, 1], [], []>} : vector<4x12xf32>, vector<12x32xf32>, vector<4x32xf32> -> vector<4x32xf32>
    %cst_99 = arith.constant dense<0.000000e+00> : vector<4x32xf32>
    %270 = tpu.matmul %269, %261, %cst_99 {dimension_numbers = #tpu.dot_dimension_numbers<[1], [0], [0], [1], [0, 0, 1, 1], [], []>} : vector<4x32xf32>, vector<32x32xf32>, vector<4x32xf32> -> vector<4x32xf32>
    %cst_100 = arith.constant dense<0.000000e+00> : vector<3x32xf32>
    %271 = tpu.matmul %266, %259, %cst_100 {dimension_numbers = #tpu.dot_dimension_numbers<[1], [0], [0], [1], [0, 0, 1, 1], [], []>} : vector<3x12xf32>, vector<12x32xf32>, vector<3x32xf32> -> vector<3x32xf32>
    %cst_101 = arith.constant dense<0.000000e+00> : vector<3x32xf32>
    %272 = tpu.matmul %271, %261, %cst_101 {dimension_numbers = #tpu.dot_dimension_numbers<[1], [0], [0], [1], [0, 0, 1, 1], [], []>} : vector<3x32xf32>, vector<32x32xf32>, vector<3x32xf32> -> vector<3x32xf32>
    %273 = vector.shape_cast %268 : vector<3x32xf32> to vector<3x1x32xf32>
    %274 = vector.shape_cast %270 : vector<4x32xf32> to vector<1x4x32xf32>
    %275 = vector.broadcast %273 : vector<3x1x32xf32> to vector<3x4x32xf32>
    %276 = vector.broadcast %274 : vector<1x4x32xf32> to vector<3x4x32xf32>
    %277 = arith.addf %275, %276 : vector<3x4x32xf32>
    %278 = vector.shape_cast %262 : vector<1x32xf32> to vector<1x1x32xf32>
    %279 = vector.broadcast %278 : vector<1x1x32xf32> to vector<3x4x32xf32>
    %280 = arith.addf %277, %279 : vector<3x4x32xf32>
    %281 = arith.addf %268, %272 : vector<3x32xf32>
    %282 = vector.broadcast %262 : vector<1x32xf32> to vector<3x32xf32>
    %283 = arith.addf %281, %282 : vector<3x32xf32>
    %cst_102 = arith.constant 0.000000e+00 : f32
    %284 = vector.broadcast %cst_102 : f32 to vector<3x4x32xf32>
    %285 = arith.cmpf ogt, %280, %284 : vector<3x4x32xf32>
    %cst_103 = arith.constant 0.00999999977 : f32
    %286 = vector.broadcast %cst_103 : f32 to vector<3x4x32xf32>
    %287 = arith.mulf %286, %280 : vector<3x4x32xf32>
    %288 = arith.select %285, %280, %287 : vector<3x4x32xi1>, vector<3x4x32xf32>
    %cst_104 = arith.constant 0.000000e+00 : f32
    %289 = vector.broadcast %cst_104 : f32 to vector<3x32xf32>
    %290 = arith.cmpf ogt, %283, %289 : vector<3x32xf32>
    %cst_105 = arith.constant 0.00999999977 : f32
    %291 = vector.broadcast %cst_105 : f32 to vector<3x32xf32>
    %292 = arith.mulf %291, %283 : vector<3x32xf32>
    %293 = arith.select %290, %283, %292 : vector<3x32xi1>, vector<3x32xf32>
    %294 = vector.shape_cast %263 : vector<1x32xf32> to vector<1x1x32xf32>
    %295 = vector.broadcast %294 : vector<1x1x32xf32> to vector<3x4x32xf32>
    %296 = arith.mulf %288, %295 : vector<3x4x32xf32>
    %cst_106 = arith.constant dense<0.000000e+00> : vector<3x4xf32>
    %297 = vector.multi_reduction <add>, %296, %cst_106 [2] : vector<3x4x32xf32> to vector<3x4xf32>
    %298 = vector.broadcast %263 : vector<1x32xf32> to vector<3x32xf32>
    %299 = arith.mulf %293, %298 : vector<3x32xf32>
    %cst_107 = arith.constant dense<0.000000e+00> : vector<3xf32>
    %300 = vector.multi_reduction <add>, %299, %cst_107 [1] : vector<3x32xf32> to vector<3xf32>
    %301 = vector.shape_cast %300 : vector<3xf32> to vector<3x1xf32>
    %302 = tpu.concatenate %297, %301 in 1 : vector<3x4xf32>, vector<3x1xf32> -> vector<3x5xf32>
    %c0_108 = arith.constant 0 : index
    %c0_109 = arith.constant 0 : index
    %303 = vector.load %arg5[%c0_108, %c0_109] : memref<3x5xf32, #tpu.memory_space<vmem>>, vector<3x5xf32>
    tpu.vector_store %arg5[%c0_108, %c0_109], %302 {strides = array<i32>} : memref<3x5xf32, #tpu.memory_space<vmem>>, vector<3x5xf32>,
    %304 = math.tanh %302 : vector<3x5xf32>
    %cst_110 = arith.constant 1.000000e+01 : f32
    %305 = vector.broadcast %cst_110 : f32 to vector<3x5xf32>
    %306 = arith.mulf %305, %304 : vector<3x5xf32>
    %cst_111 = arith.constant dense<0xFF800000> : vector<3xf32>
    %307 = vector.multi_reduction <maximumf>, %306, %cst_111 [1] : vector<3x5xf32> to vector<3xf32>
    %308 = vector.shape_cast %307 : vector<3xf32> to vector<3x1xf32>
    %cst_112 = arith.constant dense<0xFF800000> : vector<1xf32>
    %309 = vector.multi_reduction <maximumf>, %308, %cst_112 [0] : vector<3x1xf32> to vector<1xf32>
    %310 = vector.shape_cast %309 : vector<1xf32> to vector<1x1xf32>
    %311 = vector.broadcast %310 : vector<1x1xf32> to vector<3x5xf32>
    %312 = arith.subf %306, %311 : vector<3x5xf32>
    %313 = math.exp %312 : vector<3x5xf32>
    %cst_113 = arith.constant dense<0.000000e+00> : vector<3xf32>
    %314 = vector.multi_reduction <add>, %313, %cst_113 [1] : vector<3x5xf32> to vector<3xf32>
    %315 = vector.shape_cast %314 : vector<3xf32> to vector<3x1xf32>
    %cst_114 = arith.constant dense<0.000000e+00> : vector<1xf32>
    %316 = vector.multi_reduction <add>, %315, %cst_114 [0] : vector<3x1xf32> to vector<1xf32>
    %317 = vector.shape_cast %316 : vector<1xf32> to vector<1x1xf32>
    %318 = vector.broadcast %317 : vector<1x1xf32> to vector<3x5xf32>
    %319 = arith.divf %313, %318 : vector<3x5xf32>
    %c0_115 = arith.constant 0 : index
    %c0_116 = arith.constant 0 : index
    %320 = vector.load %arg4[%c0_115, %c0_116] : memref<3x5xf32, #tpu.memory_space<vmem>>, vector<3x5xf32>
    tpu.vector_store %arg4[%c0_115, %c0_116], %319 {strides = array<i32>} : memref<3x5xf32, #tpu.memory_space<vmem>>, vector<3x5xf32>,
    %c0_117 = arith.constant 0 : index
    %c0_118 = arith.constant 0 : index
    %321 = vector.load %arg6[%c0_117, %c0_118] : memref<12x32xf32, #tpu.memory_space<vmem>>, vector<12x32xf32>
    tpu.vector_store %arg6[%c0_117, %c0_118], %259 {strides = array<i32>} : memref<12x32xf32, #tpu.memory_space<vmem>>, vector<12x32xf32>,
    return
  }
}

</mosaic_0001>

<bundles_post_ra>
// kernel: tpu_custom_call.1
= control target key start
LH: loop header
LB: loop body
LE: loop exit
PB: predicated region body
PF: predicated region fallthrough
CT: control target
= control target key end

     0   :  { %12 = vsyncpa [#allocation3], 0  ;;  %s8439_s0 = inlined_call_operand.hbm [shape: f32[12,8,20], index: 0, kind: input, shape index: {}]   ;;  %s8440_s1 = inlined_call_operand.hbm [shape: f32[12,30], index: 1, kind: input, shape index: {}]   ;;  %s8441_s2 = inlined_call_operand.hbm [shape: f32[10,12], index: 2, kind: input, shape index: {}]   ;;  %s8442_s3 = inlined_call_operand.hbm [shape: f32[1632,128], index: 3, kind: input, shape index: {}]   ;;  %s8443_s4 = inlined_call_operand.hbm [shape: f32[3,5], index: 4, kind: output, shape index: {0}]   ;;  %s8444_s5 = inlined_call_operand.hbm [shape: f32[3,5], index: 5, kind: output, shape index: {1}]   ;;  %s8445_s6 = inlined_call_operand.hbm [shape: f32[12,32], index: 6, kind: output, shape index: {2}]  }
   0x1   :  { %13 = vsyncpa [#allocation6], 0 }
   0x2   :  { %14 = vsyncpa [#allocation9], 0 }
   0x3   :  { %15 = vsyncpa [#allocation4], 0 }
   0x4   :  { %16 = vsyncpa [#allocation12], 0  ;;  %s34_s23 = sshll.u32 %s8440_s1, 4  ;;  %s5168_s24 = smov [#allocation5]   ;;  %s35_s23 = int_to_ptr.hbm [resolvable:$true] %s34_s23 }
   0x5   :  { %s36_s25 = sshll.u32 %s5168_s24, 4  ;;  %s21_s28 = sshll.u32 %s8439_s0, 4  ;;  %s37_s25 = int_to_ptr.vmem [resolvable:$true] %s36_s25  ;;  %s22_s28 = int_to_ptr.hbm [resolvable:$true] %s21_s28 }
   0x6   :  { %s5169_s29 = smov 128   ;;  %s5170_s30 = smov 8  }
   0x7   :  { %42 = dma.hbm_to_vmem [thread:$0]  %s35_s23, 256, %s37_s25, [#allocation6], %s5169_s29, %s5169_s29, %s5170_s30  }
   0x8   :  { %s5171_s7 = smov [#allocation2]   ;;  %s47_s1 = sshll.u32 %s8441_s2, 4  ;;  %s48_s1 = int_to_ptr.hbm [resolvable:$true] %s47_s1 }
   0x9   :  { %s23_s8 = sshll.u32 %s5171_s7, 4  ;;  %s60_s12 = sshll.u32 %s8442_s3, 4  ;;  %s24_s8 = int_to_ptr.vmem [resolvable:$true] %s23_s8  ;;  %s61_s12 = int_to_ptr.hbm [resolvable:$true] %s60_s12 }
   0xa   :  { %29 = dma.hbm_to_vmem [thread:$0]  %s22_s28, 1536, %s24_s8, [#allocation3], %s5169_s29, %s5169_s29, %s5170_s30  }
   0xb   :  { %s5172_s13 = smov [#allocation7]   ;;  %s5173_s15 = smov [#allocation8]  }
   0xc   :  { %s49_s14 = sshll.u32 %s5172_s13, 4  ;;  %s62_s2 = sshll.u32 %s5173_s15, 4  ;;  %s50_s14 = int_to_ptr.vmem [resolvable:$true] %s49_s14  ;;  %s63_s2 = int_to_ptr.vmem [resolvable:$true] %s62_s2 }
   0xd   :  { %55 = dma.hbm_to_vmem [thread:$0]  %s48_s1, 256, %s50_s14, [#allocation6], %s5169_s29, %s5169_s29, %s5170_s30  }
   0xe   :  { %68 = dma.hbm_to_vmem [thread:$0]  %s61_s12, 26112, %s63_s2, [#allocation9], %s5169_s29, %s5169_s29, %s5170_s30  }
   0xf   :  { %5158 = dma.done.wait [#allocation3], 1536  }
  0x10   :  { %5159 = vsyncadd [#allocation3], 4294965760 }
  0x11   :  { %5160 = dma.done.wait [#allocation6], 512  }
  0x12   :  { %5161 = vsyncadd [#allocation6], 4294966784 }
  0x13   :  { %5162 = dma.done.wait [#allocation9], 26112  }
  0x14   :  { %5163 = vsyncadd [#allocation9], 4294941184  ;;  %vm8460_vm0 = vcmask 1043456   ;;  %vm268_vm1 = vcmask 1045504   ;;  %v99_v0 = vld [vmem:[#allocation8 + $0x10] sm:$0xf]  ;;  %v295_v51 = vlaneseq }
  0x15   :  { %v260_v1 = vld [vmem:[#allocation8 + $0x50] sm:$0x3f]  ;;  %v98_v2 = vld [vmem:[#allocation8 + $0x8] sm:$0xff]  ;;  %4622 = vmatpush.msk.msra.mxu0 %vm8460_vm0, %v99_v0  ;;  %v97_v4 = vld [vmem:[#allocation8] sm:$0xff]  ;;  %vm102_vm2 = vcmask 162816   ;;  %vm261_vm3 = vcmask 244736  }
  0x16   :  { %4648 = vmatpush.msk.msra.mxu2 %vm268_vm1, %v260_v1  ;;  %v259_v3 = vld [vmem:[#allocation8 + $0x48] sm:$0xff]  ;;  %v258_v5 = vld [vmem:[#allocation8 + $0x40] sm:$0xff]  ;;  %v257_v7 = vld [vmem:[#allocation8 + $0x38] sm:$0xff]  ;;  %vm8461_vm4 = vcmask 261120   ;;  %v296_v55 = vshrl.u32 %v295_v51, 7  ;;  %v5284_v56 = vand.u32 127, %v295_v51 }
  0x17   :  { %157 = vmatpush.msra.mxu0 %v98_v2  ;;  %v85_v6 = vld [vmem:[#allocation2] sm:$0xff]  ;;  %v198_v9 = vld [vmem:[#allocation8 + $0x30] sm:$0xf]  ;;  %v197_v10 = vld [vmem:[#allocation8 + $0x28] sm:$0xff]  ;;  %v5174_v61 = vmov 0.0   ;;  %vm8459_vm6 = vcmask 97280  }
  0x18   :  { %285 = vmatpush.msra.mxu2 %v259_v3  ;;  %v255_v8 = vld [vmem:[#allocation5] sm:$0xff]  ;;  %4635 = vmatpush.msk.msra.mxu1 %vm8460_vm0, %v198_v9  ;;  %v86_v12 = vld [vmem:[#allocation2 + $0x8] sm:$0xff]  ;;  %v87_v14 = vld [vmem:[#allocation2 + $0x10] sm:$0xff]  ;;  %8517 = vst [vmem:[#allocation20_spill] sm:$0xff] %v5284_v56  ;;  %v299_v57 = vmul.u32 4, %v296_v55  ;;  %s5175_s3 = smov 32  }
  0x19   :  { %158 = vmatpush.msra.mxu0 %v97_v4  ;;  %v196_v11 = vld [vmem:[#allocation8 + $0x20] sm:$0xff]  ;;  %v256_v13 = vld [vmem:[#allocation5 + $0x8] sm:$0xf]  ;;  %v88_v15 = vld [vmem:[#allocation2 + $0x18] sm:$0xff]  ;;  %s5176_s16 = smov 64   ;;  %s5177_s17 = smov 96  }
  0x1a   :  { %286 = vmatpush.msra.mxu2 %v258_v5  ;;  %4623 = vmatmul.msk.f32.vlgmr.msra.gmra.mxu0 %vm102_vm2, %v85_v6  ;;  %v89_v16 = vld [vmem:[#allocation2 + $0x20] sm:$0xff]  ;;  %v90_v17 = vld [vmem:[#allocation2 + $0x28] sm:$0xff]  ;;  %v91_v18 = vld [vmem:[#allocation2 + $0x30] sm:$0xff]  ;;  %vm300_vm5 = vcmp.eq.s32.totalorder %v5284_v56, %v299_v57  ;;  %v303_v63 = vadd.s32 1, %v299_v57  ;;  %v307_v3 = vadd.s32 2, %v299_v57  ;;  %vm8452_vm10 = vcmask 523264  }
  0x1b   :  { %216 = vmatpush.msra.mxu1 %v197_v10  ;;  %v92_v19 = vld [vmem:[#allocation2 + $0x38] sm:$0xff]  ;;  %v330_v20 = vld [vmem:[#allocation8 + $0x120] sm:$0xff]  ;;  %v328_v22 = vld [vmem:[#allocation8 + $0x110] sm:$0xff]  ;;  %v5302_v62 = vsel %vm300_vm5, 1.0, %v5174_v61  ;;  %vm8451_vm11 = vcmask 785408   ;;  %s4588_s20 = sshll.u32 %s8444_s5, 4  ;;  %s4589_s20 = int_to_ptr.hbm [resolvable:$true] %s4588_s20 }
  0x1c   :  { %287 = vmatpush.msra.mxu2 %v257_v7  ;;  %v329_v21 = vld [vmem:[#allocation8 + $0x118] sm:$0xff]  ;;  %333 = vmatpush.msra.mxu3 %v330_v20  ;;  %v327_v23 = vld [vmem:[#allocation8 + $0x108] sm:$0xff]  ;;  %v93_v24 = vld [vmem:[#allocation2 + $0x40] sm:$0xff]  ;;  %8519 = vst [vmem:[#allocation22_spill] sm:$0xff] %v5302_v62  ;;  %vm304_vm7 = vcmp.eq.s32.totalorder %v5284_v56, %v303_v63  ;;  %vm308_vm8 = vcmp.eq.s32.totalorder %v5284_v56, %v307_v3  ;;  %v311_v7 = vadd.s32 3, %v299_v57  ;;  %s5178_s21 = smov [#allocation11]  }
  0x1d   :  { %4649 = vmatmul.msk.f32.vlgmr.msra.gmra.mxu2 %vm261_vm3, %v255_v8  ;;  %217 = vmatpush.msra.mxu1 %v196_v11  ;;  %v326_v25 = vld [vmem:[#allocation8 + $0x100] sm:$0xff]  ;;  %v325_v26 = vld [vmem:[#allocation8 + $0xf8] sm:$0xff]  ;;  %v324_v27 = vld [vmem:[#allocation8 + $0xf0] sm:$0xff]  ;;  %v5315_v2 = vsel %vm304_vm7, 1.0, %v5174_v61  ;;  %s4586_s22 = sshll.u32 %s5178_s21, 4  ;;  %s5179_s23 = smov [#allocation13]   ;;  %s4587_s22 = int_to_ptr.vmem [resolvable:$true] %s4586_s22 }
  0x1e   :  { %4636 = vmatmul.msk.f32.vlgmr.msra.gmra.mxu1 %vm102_vm2, %v85_v6  ;;  %334 = vmatpush.msra.mxu3 %v329_v21  ;;  %v323_v28 = vld [vmem:[#allocation8 + $0xe8] sm:$0xff]  ;;  %v322_v30 = vld [vmem:[#allocation8 + $0xe0] sm:$0xff]  ;;  %v321_v31 = vld [vmem:[#allocation8 + $0xd8] sm:$0xff]  ;;  %8520 = vst [vmem:[#allocation23_spill] sm:$0xff] %v5315_v2  ;;  %v5327_v6 = vsel %vm308_vm8, 1.0, %v5174_v61  ;;  %vm312_vm9 = vcmp.eq.s32.totalorder %v5284_v56, %v311_v7  ;;  %s4596_s24 = sshll.u32 %s5179_s23, 4  ;;  %s4597_s24 = int_to_ptr.vmem [resolvable:$true] %s4596_s24 }
  0x1f   :  { %v94_v29 = vld [vmem:[#allocation2 + $0x48] sm:$0xff]  ;;  %v320_v32 = vld [vmem:[#allocation8 + $0xd0] sm:$0xff]  ;;  %v318_v35 = vld [vmem:[#allocation8 + $0xc0] sm:$0xff]  ;;  %8521 = vst [vmem:[#allocation24_spill] sm:$0xff] %v5327_v6  ;;  %v5336_v10 = vsel %vm312_vm9, 1.0, %v5174_v61  ;;  %s4598_s27 = sshll.u32 %s8445_s6, 4  ;;  %s4599_s27 = int_to_ptr.hbm [resolvable:$true] %s4598_s27 }
  0x20   :  { %335 = vmatpush.msra.mxu3 %v328_v22  ;;  %v319_v33 = vld [vmem:[#allocation8 + $0xc8] sm:$0xff]  ;;  %v95_v34 = vld [vmem:[#allocation2 + $0x50] sm:$0xff]  ;;  %v317_v36 = vld [vmem:[#allocation8 + $0xb8] sm:$0xff]  ;;  %8522 = vst [vmem:[#allocation25_spill] sm:$0xff] %v5336_v10  ;;  %s5180_s5 = smov [#allocation10]  }
  0x21   :  { %v96_v37 = vld [vmem:[#allocation2 + $0x58] sm:$0xff]  ;;  %v316_v38 = vld [vmem:[#allocation8 + $0xb0] sm:$0xff]  ;;  %v315_v39 = vld [vmem:[#allocation8 + $0xa8] sm:$0xff]  ;;  %s4575_s6 = sshll.u32 %s5180_s5, 4  ;;  %s4576_s6 = int_to_ptr.vmem [resolvable:$true] %s4575_s6 }
  0x22   :  { %4624 = vmatmul.msk.f32.gmra.mxu0 %vm102_vm2, %v86_v12  ;;  %336 = vmatpush.msra.mxu3 %v327_v23  ;;  %v389_v40 = vld [vmem:[#allocation8 + $0x148] sm:$0xff]  ;;  %v625_v41 = vld [vmem:[#allocation8 + $0x280] sm:$0xff]  ;;  %v624_v43 = vld [vmem:[#allocation8 + $0x278] sm:$0xff] }
  0x23   :  { %411 = vmatpush.msrb.mxu2 %v389_v40  ;;  %640 = vmatpush.msrb.mxu1 %v625_v41  ;;  %v388_v42 = vld [vmem:[#allocation8 + $0x140] sm:$0xff]  ;;  %v387_v44 = vld [vmem:[#allocation8 + $0x138] sm:$0xff]  ;;  %v623_v45 = vld [vmem:[#allocation8 + $0x270] sm:$0xff] }
  0x24   :  { %337 = vmatpush.msra.mxu3 %v326_v25  ;;  %v386_v46 = vld [vmem:[#allocation8 + $0x130] sm:$0xff]  ;;  %v622_v47 = vld [vmem:[#allocation8 + $0x268] sm:$0xff]  ;;  %v5268_v48 = vld [vmem:[#allocation8 + $0x18] ss:$0 sm:$0xff] }
  0x25   :  { %4650 = vmatmul.msk.f32.gmra.mxu2 %vm261_vm3, %v256_v13  ;;  %641 = vmatpush.msrb.mxu1 %v624_v43  ;;  %v595_v40 = vld [vmem:[#allocation8 + $0x238] sm:$0xff]  ;;  %v556_v41 = vld [vmem:[#allocation8 + $0x1a8] sm:$0xff]  ;;  %v555_v43 = vld [vmem:[#allocation8 + $0x1a0] sm:$0xff] }
  0x26   :  { %4637 = vmatmul.msk.f32.gmra.mxu1 %vm102_vm2, %v86_v12  ;;  %338 = vmatpush.msra.mxu3 %v325_v26  ;;  %v590_v51 = vld [vmem:[#allocation8 + $0x210] sm:$0xff]  ;;  %v589_v55 = vld [vmem:[#allocation8 + $0x208] sm:$0xff]  ;;  %v550_v57 = vld [vmem:[#allocation8 + $0x178] sm:$0xff] }
  0x27   :  { %412 = vmatpush.msrb.mxu2 %v388_v42  ;;  %642 = vmatpush.msrb.mxu1 %v623_v45  ;;  %v594_v42 = vld [vmem:[#allocation8 + $0x230] sm:$0xff]  ;;  %v554_v45 = vld [vmem:[#allocation8 + $0x198] sm:$0xff]  ;;  %v585_v7 = vld [vmem:[#allocation8 + $0x1e8] sm:$0xff] }
  0x28   :  { %339 = vmatpush.msra.mxu3 %v324_v27  ;;  %v549_v61 = vld [vmem:[#allocation8 + $0x170] sm:$0xff]  ;;  %v587_v63 = vld [vmem:[#allocation8 + $0x1f8] sm:$0xff] }
  0x29   :  { %413 = vmatpush.msrb.mxu2 %v387_v44  ;;  %643 = vmatpush.msrb.mxu1 %v622_v47  ;;  %v593_v44 = vld [vmem:[#allocation8 + $0x228] sm:$0xff]  ;;  %v553_v47 = vld [vmem:[#allocation8 + $0x190] sm:$0xff] }
  0x2a   :  { %4625 = vmatmul.msk.f32.gmra.mxu0 %vm102_vm2, %v87_v14  ;;  %340 = vmatpush.msra.mxu3 %v323_v28  ;;  %v586_v3 = vld [vmem:[#allocation8 + $0x1f0] sm:$0xff] }
  0x2b   :  { %414 = vmatpush.msrb.mxu2 %v386_v46  ;;  %v592_v46 = vld [vmem:[#allocation8 + $0x220] sm:$0xff] }
  0x2c   :  { %341 = vmatpush.msra.mxu3 %v322_v30 }
  0x2e   :  { %4638 = vmatmul.msk.f32.gmra.mxu1 %vm102_vm2, %v87_v14  ;;  %342 = vmatpush.msra.mxu3 %v321_v31  ;;  %v561_v31 = vld [vmem:[#allocation8 + $0x1d0] sm:$0xff] }
  0x30   :  { %343 = vmatpush.msra.mxu3 %v320_v32  ;;  %v599_v32 = vld [vmem:[#allocation8 + $0x258] sm:$0xff] }
  0x31   :  { %602 = vmatpush.msrb.mxu0 %v599_v32 }
  0x32   :  { %4626 = vmatmul.msk.f32.gmra.mxu0 %vm102_vm2, %v88_v15  ;;  %344 = vmatpush.msra.mxu3 %v319_v33  ;;  %v560_v33 = vld [vmem:[#allocation8 + $0x1c8] sm:$0xff] }
  0x34   :  { %345 = vmatpush.msra.mxu3 %v318_v35  ;;  %v559_v35 = vld [vmem:[#allocation8 + $0x1c0] sm:$0xff] }
  0x36   :  { %4639 = vmatmul.msk.f32.gmra.mxu1 %vm102_vm2, %v88_v15  ;;  %346 = vmatpush.msra.mxu3 %v317_v36  ;;  %v597_v36 = vld [vmem:[#allocation8 + $0x248] sm:$0xff] }
  0x38   :  { %347 = vmatpush.msra.mxu3 %v316_v38  ;;  %v596_v38 = vld [vmem:[#allocation8 + $0x240] sm:$0xff] }
  0x3a   :  { %4627 = vmatmul.msk.f32.gmra.mxu0 %vm102_vm2, %v89_v16  ;;  %348 = vmatpush.msra.mxu3 %v315_v39  ;;  %v557_v39 = vld [vmem:[#allocation8 + $0x1b0] sm:$0xff] }
  0x3e   :  { %4640 = vmatmul.msk.f32.gmra.mxu1 %vm102_vm2, %v89_v16 }
  0x42   :  { %4628 = vmatmul.msk.f32.gmra.mxu0 %vm102_vm2, %v90_v17 }
  0x46   :  { %4641 = vmatmul.msk.f32.gmra.mxu1 %vm102_vm2, %v90_v17 }
  0x4a   :  { %4629 = vmatmul.msk.f32.gmra.mxu0 %vm102_vm2, %v91_v18 }
  0x4e   :  { %4642 = vmatmul.msk.f32.gmra.mxu1 %vm102_vm2, %v91_v18 }
  0x52   :  { %4630 = vmatmul.msk.f32.gmra.mxu0 %vm102_vm2, %v92_v19 }
  0x56   :  { %4643 = vmatmul.msk.f32.gmra.mxu1 %vm102_vm2, %v92_v19 }
  0x5a   :  { %4631 = vmatmul.msk.f32.gmra.mxu0 %vm102_vm2, %v93_v24 }
  0x5e   :  { %4644 = vmatmul.msk.f32.gmra.mxu1 %vm102_vm2, %v93_v24  ;;  %v5366_v24 = vld [vmem:[#allocation8 + $0x150] ss:$0 sm:$0xff] }
  0x62   :  { %4632 = vmatmul.msk.f32.gmra.mxu0 %vm102_vm2, %v94_v29 }
  0x66   :  { %4645 = vmatmul.msk.f32.gmra.mxu1 %vm102_vm2, %v94_v29 }
  0x6a   :  { %4633 = vmatmul.msk.f32.gmra.mxu0 %vm102_vm2, %v95_v34 }
  0x6e   :  { %4646 = vmatmul.msk.f32.gmra.mxu1 %vm102_vm2, %v95_v34  ;;  %v598_v34 = vld [vmem:[#allocation8 + $0x250] sm:$0xff] }
  0x6f   :  { %603 = vmatpush.msrb.mxu0 %v598_v34 }
  0x71   :  { %604 = vmatpush.msrb.mxu0 %v597_v36 }
  0x72   :  { %4634 = vmatmul.msk.f32.gmra.mxu0 %vm102_vm2, %v96_v37 }
  0x73   :  { %605 = vmatpush.msrb.mxu0 %v596_v38 }
  0x75   :  { %606 = vmatpush.msrb.mxu0 %v595_v40 }
  0x76   :  { %4647 = vmatmul.msk.f32.gmra.mxu1 %vm102_vm2, %v96_v37  ;;  %v558_v37 = vld [vmem:[#allocation8 + $0x1b8] sm:$0xff] }
  0x77   :  { %607 = vmatpush.msrb.mxu0 %v594_v42  ;;  %v1677_v42 = vld [vmem:[#allocation8 + $0x2c8] sm:$0xff] }
  0x79   :  { %608 = vmatpush.msrb.mxu0 %v593_v44 }
  0x7b   :  { %609 = vmatpush.msrb.mxu0 %v592_v46  ;;  %v1673_v46 = vld [vmem:[#allocation8 + $0x2a8] sm:$0xff] }
  0x97   :  { %v160_v49 = vpop.f32.mrf.mxu0 }
  0x98   :  { %v5271_v50 = vadd.f32 %v5268_v48, %v160_v49  ;;  %v552_v49 = vld [vmem:[#allocation8 + $0x188] sm:$0xff] }
  0x9a   :  { %349 = vmatmul.f32.vlgmr.msra.gmra.mxu3 %v5271_v50 }
  0x9f   :  { %v163_v52 = vpop.f32.mrf.mxu0 }
  0xa0   :  { %v5274_v53 = vpop.f32.mrf.mxu2  ;;  %v5277_v54 = vadd.f32 %v5268_v48, %v163_v52  ;;  %v551_v52 = vld [vmem:[#allocation8 + $0x180] sm:$0xff] }
  0xa1   :  { %8516 = vst [vmem:[#allocation19_spill] sm:$0xff] %v5274_v53  ;;  %4655 = vmatmul.msk.f32.vlgmr.msrb.gmra.mxu2 %vm8461_vm4, %v5274_v53  ;;  %4665 = vmatmul.msk.f32.vlgmr.msrb.gmra.mxu1 %vm8461_vm4, %v5274_v53 }
  0xa2   :  { %352 = vmatmul.f32.gmra.mxu3 %v5277_v54 }
  0xa7   :  { %v166_v58 = vpop.f32.mrf.mxu0 }
  0xa8   :  { %v5286_v59 = vpop.f32.mrf.mxu2  ;;  %v5289_v60 = vadd.f32 %v5268_v48, %v166_v58  ;;  %v588_v58 = vld [vmem:[#allocation8 + $0x200] sm:$0xff] }
  0xa9   :  { %8518 = vst [vmem:[#allocation21_spill] sm:$0xff] %v5286_v59  ;;  %4656 = vmatmul.msk.f32.gmra.mxu2 %vm8461_vm4, %v5286_v59  ;;  %4666 = vmatmul.msk.f32.gmra.mxu1 %vm8461_vm4, %v5286_v59 }
  0xaa   :  { %4657 = vmatpush.msk.msra.mxu2 %vm8460_vm0, %v5286_v59  ;;  %355 = vmatmul.f32.gmra.mxu3 %v5289_v60 }
  0xac   :  { %455 = vmatpush.msra.mxu2 %v5274_v53 }
  0xae   :  { %4659 = vmatpush.msk.msrb.mxu2 %vm8460_vm0, %v5286_v59 }
  0xaf   :  { %v169_v0 = vpop.f32.mrf.mxu0 }
  0xb0   :  { %478 = vmatpush.msrb.mxu2 %v5274_v53  ;;  %v5306_v1 = vadd.f32 %v5268_v48, %v169_v0  ;;  %v548_v0 = vld [vmem:[#allocation8 + $0x168] sm:$0xff] }
  0xb1   :  { %4658 = vmatmul.msk.f32.vlgmr.msra.gmra.mxu2 %vm8459_vm6, %v5302_v62 }
  0xb2   :  { %4661 = vmatpush.msk.msra.mxu2 %vm8460_vm0, %v5286_v59  ;;  %358 = vmatmul.f32.gmra.mxu3 %v5306_v1 }
  0xb4   :  { %501 = vmatpush.msra.mxu2 %v5274_v53 }
  0xb7   :  { %v172_v4 = vpop.f32.mrf.mxu0 }
  0xb8   :  { %v5318_v5 = vadd.f32 %v5268_v48, %v172_v4  ;;  %v547_v4 = vld [vmem:[#allocation8 + $0x160] sm:$0xff] }
  0xb9   :  { %4660 = vmatmul.msk.f32.vlgmr.msrb.gmra.mxu2 %vm8459_vm6, %v5315_v2 }
  0xba   :  { %4663 = vmatpush.msk.msrb.mxu2 %vm8460_vm0, %v5286_v59  ;;  %361 = vmatmul.f32.gmra.mxu3 %v5318_v5 }
  0xbc   :  { %524 = vmatpush.msrb.mxu2 %v5274_v53 }
  0xbf   :  { %v175_v8 = vpop.f32.mrf.mxu0 }
  0xc0   :  { %v5330_v9 = vadd.f32 %v5268_v48, %v175_v8  ;;  %v546_v8 = vld [vmem:[#allocation8 + $0x158] sm:$0xff] }
  0xc1   :  { %4662 = vmatmul.msk.f32.vlgmr.msra.gmra.mxu2 %vm8459_vm6, %v5327_v6 }
  0xc2   :  { %364 = vmatmul.f32.gmra.mxu3 %v5330_v9  ;;  %564 = vmatpush.msra.mxu2 %v561_v31 }
  0xc4   :  { %565 = vmatpush.msra.mxu2 %v560_v33 }
  0xc6   :  { %566 = vmatpush.msra.mxu2 %v559_v35 }
  0xc7   :  { %v178_v11 = vpop.f32.mrf.mxu0 }
  0xc8   :  { %v5339_v12 = vadd.f32 %v5268_v48, %v178_v11  ;;  %567 = vmatpush.msra.mxu2 %v558_v37  ;;  %v584_v11 = vld [vmem:[#allocation8 + $0x1e0] sm:$0xff] }
  0xc9   :  { %4664 = vmatmul.msk.f32.vlgmr.msrb.gmra.mxu2 %vm8459_vm6, %v5336_v10 }
  0xca   :  { %367 = vmatmul.f32.gmra.mxu3 %v5339_v12  ;;  %568 = vmatpush.msra.mxu2 %v557_v39 }
  0xcc   :  { %569 = vmatpush.msra.mxu2 %v556_v41 }
  0xce   :  { %570 = vmatpush.msra.mxu2 %v555_v43  ;;  %v1676_v43 = vld [vmem:[#allocation8 + $0x2c0] sm:$0xff] }
  0xcf   :  { %v181_v13 = vpop.f32.mrf.mxu0 }
  0xd0   :  { %v5345_v14 = vadd.f32 %v5268_v48, %v181_v13  ;;  %571 = vmatpush.msra.mxu2 %v554_v45  ;;  %v1685_v13 = vld [vmem:[#allocation8 + $0x308] sm:$0xff]  ;;  %v1675_v45 = vld [vmem:[#allocation8 + $0x2b8] sm:$0xff] }
  0xd2   :  { %370 = vmatmul.f32.gmra.mxu3 %v5345_v14  ;;  %572 = vmatpush.msra.mxu2 %v553_v47  ;;  %v1672_v47 = vld [vmem:[#allocation8 + $0x2a0] sm:$0xff] }
  0xd4   :  { %573 = vmatpush.msra.mxu2 %v552_v49 }
  0xd6   :  { %574 = vmatpush.msra.mxu2 %v551_v52  ;;  %v5380_v52 = vpop.f32.mrf.mxu1 }
  0xd7   :  { %v184_v15 = vpop.f32.mrf.mxu0  ;;  %8523 = vst [vmem:[#allocation26_spill] sm:$0xff] %v5380_v52 }
  0xd8   :  { %v5349_v16 = vadd.f32 %v5268_v48, %v184_v15  ;;  %575 = vmatpush.msra.mxu2 %v550_v57  ;;  %v1684_v15 = vld [vmem:[#allocation8 + $0x300] sm:$0xff] }
  0xda   :  { %373 = vmatmul.f32.gmra.mxu3 %v5349_v16  ;;  %576 = vmatpush.msra.mxu2 %v549_v61 }
  0xdc   :  { %577 = vmatpush.msra.mxu2 %v548_v0 }
  0xde   :  { %578 = vmatpush.msra.mxu2 %v547_v4  ;;  %v5382_v57 = vpop.f32.mrf.mxu1 }
  0xdf   :  { %v187_v17 = vpop.f32.mrf.mxu0  ;;  %8524 = vst [vmem:[#allocation27_spill] sm:$0xff] %v5382_v57 }
  0xe0   :  { %v5353_v18 = vadd.f32 %v5268_v48, %v187_v17  ;;  %579 = vmatpush.msra.mxu2 %v546_v8  ;;  %v1683_v17 = vld [vmem:[#allocation8 + $0x2f8] sm:$0xff] }
  0xe2   :  { %376 = vmatmul.f32.gmra.mxu3 %v5353_v18  ;;  %1688 = vmatpush.msrb.mxu2 %v1685_v13 }
  0xe4   :  { %1689 = vmatpush.msrb.mxu2 %v1684_v15 }
  0xe6   :  { %1690 = vmatpush.msrb.mxu2 %v1683_v17  ;;  %v5388_v8 = vpop.f32.mrf.mxu1 }
  0xe7   :  { %v190_v19 = vpop.f32.mrf.mxu0  ;;  %8525 = vst [vmem:[#allocation28_spill] sm:$0xff] %v5388_v8 }
  0xe8   :  { %v5357_v20 = vadd.f32 %v5268_v48, %v190_v19  ;;  %v1682_v19 = vld [vmem:[#allocation8 + $0x2f0] sm:$0xff] }
  0xe9   :  { %1691 = vmatpush.msrb.mxu2 %v1682_v19 }
  0xea   :  { %379 = vmatmul.f32.gmra.mxu3 %v5357_v20 }
  0xef   :  { %v193_v21 = vpop.f32.mrf.mxu0 }
  0xf0   :  { %v5361_v22 = vadd.f32 %v5268_v48, %v193_v21  ;;  %v591_v48 = vld [vmem:[#allocation8 + $0x218] sm:$0xff]  ;;  %v1681_v21 = vld [vmem:[#allocation8 + $0x2e8] sm:$0xff] }
  0xf1   :  { %610 = vmatpush.msrb.mxu0 %v591_v48  ;;  %1692 = vmatpush.msrb.mxu2 %v1681_v21  ;;  %v1671_v48 = vld [vmem:[#allocation8 + $0x298] sm:$0xff] }
  0xf2   :  { %382 = vmatmul.f32.gmra.mxu3 %v5361_v22 }
  0xf3   :  { %611 = vmatpush.msrb.mxu0 %v590_v51  ;;  %v1670_v51 = vld [vmem:[#allocation8 + $0x290] sm:$0xff] }
  0xf5   :  { %612 = vmatpush.msrb.mxu0 %v589_v55 }
  0xf7   :  { %613 = vmatpush.msrb.mxu0 %v588_v58 }
  0xf9   :  { %614 = vmatpush.msrb.mxu0 %v587_v63  ;;  %v5386_v63 = vld [vmem:[#allocation8 + $0x128] ss:$0 sm:$0xff] }
  0xfb   :  { %615 = vmatpush.msrb.mxu0 %v586_v3 }
  0xfd   :  { %616 = vmatpush.msrb.mxu0 %v585_v7 }
  0xff   :  { %617 = vmatpush.msrb.mxu0 %v584_v11 }
 0x11d   :  { %v350_v36 = vpop.f32.mrf.mxu3 }
 0x11e   :  { %v351_v19 = vadd.f32 %v5386_v63, %v350_v36 }
 0x124   :  { %v5364_v23 = vpop.f32.mrf.mxu2 }
 0x125   :  { %v353_v37 = vpop.f32.mrf.mxu3  ;;  %v417_v58 = vadd.f32 %v5366_v24, %v5364_v23 }
 0x126   :  { %v354_v11 = vadd.f32 %v5386_v63, %v353_v37 }
 0x127   :  { %v424_v61 = vrot.slane %v417_v58, 1  ;;  %v425_v3 = vrot.slane %v417_v58, 2  ;;  %v426_v4 = vrot.slane %v417_v58, 3  ;;  %v427_v7 = vrot.slane %v417_v58, 4 }
 0x128   :  { %v428_v15 = vrot.slane %v417_v58, 5  ;;  %v429_v17 = vrot.slane %v417_v58, 6 }
 0x129   :  { %v652_v13 = vperm.slane %v424_v61, 0 }
 0x12c   :  { %v419_v25 = vpop.f32.mrf.mxu2 }
 0x12d   :  { %v5369_v26 = vadd.f32 %v5366_v24, %v419_v25  ;;  %v1680_v25 = vld [vmem:[#allocation8 + $0x2e0] sm:$0xff]  ;;  %v356_v38 = vpop.f32.mrf.mxu3  ;;  %v4754_v24 = vld [vmem:[#allocation8 + $0x1d8] ss:$0 sm:$0xff] }
 0x12e   :  { %1693 = vmatpush.msrb.mxu2 %v1680_v25  ;;  %v357_v21 = vadd.f32 %v5386_v63, %v356_v38  ;;  %v651_v25 = vperm.slane %v417_v58, 0 }
 0x134   :  { %v5371_v27 = vpop.f32.mrf.mxu2 }
 0x135   :  { %v359_v39 = vpop.f32.mrf.mxu3 }
 0x136   :  { %v360_v23 = vadd.f32 %v5386_v63, %v359_v39  ;;  %v675_v39 = vadd.f32 %v651_v25, %v351_v19  ;;  %v5417_v19 = vpop.f32.mrf.mxu1 }
 0x137   :  { %8526 = vst [vmem:[#allocation29_spill] sm:$0xff] %v5417_v19 }
 0x13c   :  { %v480_v28 = vpop.f32.mrf.mxu2 }
 0x13d   :  { %530 = vrot.lane.b32.xlu0 %v480_v28, %s5175_s3  ;;  %v1679_v28 = vld [vmem:[#allocation8 + $0x2d8] sm:$0xff]  ;;  %v362_v40 = vpop.f32.mrf.mxu3 }
 0x13e   :  { %1694 = vmatpush.msrb.mxu2 %v1679_v28  ;;  %v363_v28 = vadd.f32 %v5386_v63, %v362_v40  ;;  %v659_v40 = vperm.slane %v5369_v26, 0 }
 0x144   :  { %v503_v29 = vpop.f32.mrf.mxu2 }
 0x145   :  { %534 = vrot.lane.b32.xlu0 %v503_v29, %s5176_s16  ;;  %v1678_v29 = vld [vmem:[#allocation8 + $0x2d0] sm:$0xff]  ;;  %v365_v41 = vpop.f32.mrf.mxu3 }
 0x146   :  { %1695 = vmatpush.msrb.mxu2 %v1678_v29  ;;  %v366_v29 = vadd.f32 %v5386_v63, %v365_v41  ;;  %v431_v41 = vrot.slane %v5369_v26, 1 }
 0x148   :  { %1696 = vmatpush.msrb.mxu2 %v1677_v42  ;;  %v657_v42 = vperm.slane %v429_v17, 0 }
 0x14a   :  { %1697 = vmatpush.msrb.mxu2 %v1676_v43 }
 0x14c   :  { %v526_v30 = vpop.f32.mrf.mxu2  ;;  %1698 = vmatpush.msrb.mxu2 %v1675_v45 }
 0x14d   :  { %538 = vrot.lane.b32.xlu1 %v526_v30, %s5177_s17  ;;  %v368_v44 = vpop.f32.mrf.mxu3 }
 0x14e   :  { %v369_v37 = vadd.f32 %v5386_v63, %v368_v44 }
 0x155   :  { %v371_v49 = vpop.f32.mrf.mxu3 }
 0x156   :  { %v372_v25 = vadd.f32 %v5386_v63, %v371_v49 }
 0x15d   :  { %v374_v55 = vpop.f32.mrf.mxu3 }
 0x15e   :  { %v375_v61 = vadd.f32 %v5386_v63, %v374_v55 }
 0x165   :  { %v377_v0 = vpop.f32.mrf.mxu3 }
 0x1af   :  { %v531_v30 = vpop.permute.xlu0 %530 }
 0x1b0   :  { %v541_v32 = vsel %vm8461_vm4, %v5371_v27, %v531_v30  ;;  %v1674_v27 = vld [vmem:[#allocation8 + $0x2b0] sm:$0xff]  ;;  %v653_v30 = vperm.slane %v425_v3, 0  ;;  %v380_v3 = vpop.f32.mrf.mxu3 }
 0x1b1   :  { %1699 = vmatpush.msrb.mxu2 %v1674_v27 }
 0x1b2   :  { %v677_v43 = vadd.f32 %v653_v30, %v357_v21  ;;  %v378_v21 = vadd.f32 %v5386_v63, %v377_v0  ;;  %v660_v30 = vperm.slane %v431_v41, 0 }
 0x1b3   :  { %1700 = vmatpush.msrb.mxu2 %v1673_v46 }
 0x1b5   :  { %1701 = vmatpush.msrb.mxu2 %v1672_v47 }
 0x1b7   :  { %v535_v31 = vpop.permute.xlu0 %534  ;;  %1702 = vmatpush.msrb.mxu2 %v1671_v48 }
 0x1b8   :  { %v543_v33 = vsel %vm8452_vm10, %v541_v32, %v535_v31  ;;  %v654_v31 = vperm.slane %v426_v4, 0  ;;  %v655_v32 = vperm.slane %v427_v7, 0  ;;  %v432_v4 = vrot.slane %v5369_v26, 2 }
 0x1b9   :  { %1703 = vmatpush.msrb.mxu2 %v1670_v51 }
 0x1ba   :  { %v678_v38 = vadd.f32 %v654_v31, %v360_v23  ;;  %v679_v27 = vadd.f32 %v655_v32, %v363_v28  ;;  %v381_v31 = vadd.f32 %v5386_v63, %v380_v3  ;;  %v683_v32 = vadd.f32 %v659_v40, %v375_v61  ;;  %v383_v40 = vpop.f32.mrf.mxu3 }
 0x1bf   :  { %v539_v34 = vpop.permute.xlu1 %538 }
 0x1c0   :  { %v545_v35 = vsel %vm8451_vm11, %v543_v33, %v539_v34  ;;  %v430_v33 = vrot.slane %v417_v58, 7  ;;  %v676_v34 = vadd.f32 %v652_v13, %v354_v11  ;;  %v681_v58 = vadd.f32 %v657_v42, %v369_v37 }
 0x1c1   :  { %580 = vmatmul.f32.vlgmr.msra.gmra.mxu2 %v545_v35  ;;  %618 = vmatmul.f32.vlgmr.msrb.gmra.mxu0 %v545_v35  ;;  %v656_v35 = vperm.slane %v428_v15, 0  ;;  %v661_v37 = vperm.slane %v432_v4, 0 }
 0x1c2   :  { %v658_v0 = vperm.slane %v430_v33, 0 }
 0x1c3   :  { %v680_v46 = vadd.f32 %v656_v35, %v366_v29  ;;  %v684_v35 = vadd.f32 %v660_v30, %v378_v21  ;;  %v5463_v21 = vadd.f32 %v5386_v63, %v383_v40 }
 0x244   :  { %v581_v36 = vpop.f32.mrf.mxu2 }
 0x245   :  { %v5397_v45 = vadd.f32 %v4754_v24, %v581_v36 }
 0x247   :  { %v687_v47 = vadd.f32 %v675_v39, %v5397_v45  ;;  %v688_v48 = vadd.f32 %v676_v34, %v5397_v45  ;;  %v5404_v51 = vadd.f32 %v677_v43, %v5397_v45  ;;  %v5407_v44 = vadd.f32 %v678_v38, %v5397_v45 }
 0x248   :  { %v5412_v7 = vadd.f32 %v679_v27, %v5397_v45  ;;  %v5415_v17 = vadd.f32 %v680_v46, %v5397_v45  ;;  %v5423_v24 = vadd.f32 %v681_v58, %v5397_v45  ;;  %v5435_v36 = vadd.f32 %v683_v32, %v5397_v45 }
 0x249   :  { %v4667_v11 = vmul.f32 -1.442695, %v687_v47  ;;  %v1646_v13 = vmax.f32 %v687_v47, 0.0  ;;  %v4668_v15 = vmul.f32 -1.442695, %v688_v48  ;;  %v1647_v42 = vmax.f32 %v688_v48, 0.0 }
 0x24a   :  { %v4669_v23 = vmul.f32 -1.442695, %v5404_v51  ;;  %v4670_v55 = vmul.f32 -1.442695, %v5407_v44  ;;  %v4671_v29 = vmul.f32 -1.442695, %v5412_v7  ;;  %v685_v43 = vadd.f32 %v661_v37, %v381_v31 }
 0x24b   :  { %4767 = vpow2.f32 %v4667_v11  ;;  %v5427_v28 = vadd.f32 %v1646_v13, %v5271_v50  ;;  %v4672_v34 = vmul.f32 -1.442695, %v5415_v17  ;;  %v4673_v49 = vmul.f32 -1.442695, %v5423_v24  ;;  %v5456_v11 = vpop.f32.mrf.mxu1 }
 0x24c   :  { %4769 = vpow2.f32 %v4668_v15  ;;  %v682_v50 = vadd.f32 %v658_v0, %v372_v25  ;;  %v5438_v33 = vadd.f32 %v684_v35, %v5397_v45  ;;  %v1648_v39 = vmax.f32 %v5404_v51, 0.0  ;;  %8529 = vst [vmem:[#allocation32_spill] sm:$0xff] %v5456_v11 }
 0x24d   :  { %8527 = vst [vmem:[#allocation30_spill] sm:$0xff] %v5427_v28  ;;  %1704 = vmatmul.f32.vlgmr.msrb.gmra.mxu2 %v5427_v28  ;;  %4771 = vpow2.f32 %v4669_v23  ;;  %v1649_v47 = vmax.f32 %v5407_v44, 0.0  ;;  %v5448_v48 = vadd.f32 %v685_v43, %v5397_v45  ;;  %v5453_v3 = vadd.f32 %v1647_v42, %v5277_v54 }
 0x24e   :  { %4773 = vpow2.f32 %v4670_v55  ;;  %v5442_v27 = vadd.f32 %v682_v50, %v5397_v45  ;;  %v1650_v51 = vmax.f32 %v5412_v7, 0.0  ;;  %v5472_v23 = vadd.f32 %v1648_v39, %v5289_v60 }
 0x24f   :  { %4775 = vpow2.f32 %v4671_v29  ;;  %8528 = vst [vmem:[#allocation31_spill] sm:$0xff] %v5453_v3  ;;  %v5475_v55 = vadd.f32 %v1649_v47, %v5306_v1  ;;  %v5489_v32 = vmul.f32 -1.442695, %v5435_v36 }
 0x250   :  { %4777 = vpow2.f32 %v4672_v34  ;;  %v4674_v7 = vmul.f32 -1.442695, %v5442_v27  ;;  %8530 = vst [vmem:[#allocation33_spill] sm:$0xff] %v5472_v23  ;;  %v5481_v29 = vadd.f32 %v1650_v51, %v5318_v5 }
 0x251   :  { %v4768_v38 = vpop.eup %4767  ;;  %4779 = vpow2.f32 %v4673_v49  ;;  %8531 = vst [vmem:[#allocation34_spill] sm:$0xff] %v5475_v55 }
 0x252   :  { %v4770_v46 = vpop.eup %4769  ;;  %v5444_v41 = vadd.f32 1.0, %v4768_v38  ;;  %8532 = vst [vmem:[#allocation35_spill] sm:$0xff] %v5481_v29 }
 0x253   :  { %v4772_v58 = vpop.eup %4771  ;;  %v5450_v61 = vadd.f32 1.0, %v4770_v46 }
 0x254   :  { %v4774_v4 = vpop.eup %4773  ;;  %4781 = vrcp.f32 %v5444_v41  ;;  %v5460_v44 = vadd.f32 1.0, %v4772_v58  ;;  %v756_v5 = vand.u32 2147483647, %v5444_v41  ;;  %vm752_vm13 = vweird.f32 %v5444_v41 }
 0x255   :  { %v4776_v15 = vpop.eup %4775  ;;  %4783 = vrcp.f32 %v5450_v61  ;;  %1707 = vmatmul.f32.gmra.mxu2 %v5453_v3  ;;  %v5467_v54 = vadd.f32 1.0, %v4774_v4  ;;  %v771_v1 = vand.u32 2147483647, %v5450_v61  ;;  %v773_v35 = vand.u32 2147483648, %v5450_v61 }
 0x256   :  { %4785 = vrcp.f32 %v5460_v44  ;;  %v5477_v25 = vadd.f32 1.0, %v4776_v15  ;;  %v4778_v63 = vpop.eup %4777  ;;  %v788_v60 = vand.u32 2147483648, %v5460_v44  ;;  %v786_v34 = vand.u32 2147483647, %v5460_v44 }
 0x257   :  { %4787 = vrcp.f32 %v5467_v54  ;;  %v803_v30 = vand.u32 2147483648, %v5467_v54  ;;  %v4780_v0 = vpop.eup %4779  ;;  %vm767_vm12 = vweird.f32 %v5450_v61  ;;  %v801_v49 = vand.u32 2147483647, %v5467_v54 }
 0x258   :  { %4789 = vrcp.f32 %v5477_v25  ;;  %v5498_v50 = vadd.f32 1.0, %v4778_v63  ;;  %vm782_vm14 = vweird.f32 %v5460_v44  ;;  %v5508_v39 = vadd.f32 1.0, %v4780_v0 }
 0x259   :  { %4791 = vpow2.f32 %v4674_v7  ;;  %v5504_v43 = vor.u32 1.1754944e-38, %v803_v30  ;;  %vm797_vm15 = vweird.f32 %v5467_v54  ;;  %v789_v47 = vor.u32 1.1754944e-38, %v788_v60 }
 0x25a   :  { %v5494_v37 = vpop.eup %4781  ;;  %vm5513_vm1 = vcmp.eq.f32.partialorder %v771_v1, 8.507059e+37  ;;  %4793 = vrcp.f32 %v5498_v50  ;;  %v758_v51 = vand.u32 2147483648, %v5444_v41  ;;  %vm5521_vm2 = vcmp.eq.f32.partialorder %v786_v34, 8.507059e+37  ;;  %v5531_v1 = vpop.f32.mrf.mxu1 }
 0x25b   :  { %v5501_v42 = vpop.eup %4783  ;;  %v748_v38 = vmul.f32 %v5494_v37, %v5444_v41  ;;  %v774_v63 = vor.u32 1.1754944e-38, %v773_v35  ;;  %vm5525_vm3 = vcmp.eq.f32.partialorder %v756_v5, 8.507059e+37  ;;  %8539 = vst [vmem:[#allocation36_spill] sm:$0xff] %v5531_v1  ;;  %vm5534_vm5 = vcmp.eq.f32.partialorder %v801_v49, 8.507059e+37 }
 0x25c   :  { %v4786_v46 = vpop.eup %4785  ;;  %v763_v40 = vmul.f32 %v5501_v42, %v5450_v61  ;;  %vm753_vm7 = vweird.f32 %v5494_v37  ;;  %4795 = vrcp.f32 %v5508_v39  ;;  %vm768_vm8 = vweird.f32 %v5501_v42 }
 0x25d   :  { %v4788_v4 = vpop.eup %4787  ;;  %v778_v15 = vmul.f32 %v4786_v46, %v5460_v44  ;;  %1710 = vmatmul.f32.gmra.mxu2 %v5472_v23  ;;  %v749_v30 = vsub.f32 1.0, %v748_v38  ;;  %vm783_vm9 = vweird.f32 %v4786_v46  ;;  %v759_v23 = vor.u32 1.1754944e-38, %v758_v51  ;;  %vm754_vm6 = vmor %vm752_vm13, %vm753_vm7 }
 0x25e   :  { %v5529_v60 = vpop.eup %4789  ;;  %v764_v13 = vsub.f32 1.0, %v763_v40  ;;  %v793_v31 = vmul.f32 %v4788_v4, %v5467_v54  ;;  %vm798_vm11 = vweird.f32 %v4788_v4  ;;  %vm827_vm10 = vweird.f32 %v5498_v50  ;;  %vm769_vm4 = vmor %vm767_vm12, %vm768_vm8 }
 0x25f   :  { %v5540_v34 = vpop.eup %4791  ;;  %v779_v35 = vsub.f32 1.0, %v778_v15  ;;  %v808_v5 = vmul.f32 %v5529_v60, %v5477_v25  ;;  %v750_v38 = vmul.f32 %v5494_v37, %v749_v30  ;;  %vm812_vm0 = vweird.f32 %v5477_v25  ;;  %vm784_vm13 = vmor %vm782_vm14, %vm783_vm9 }
 0x260   :  { %v765_v40 = vmul.f32 %v5501_v42, %v764_v13  ;;  %v794_v49 = vsub.f32 1.0, %v793_v31  ;;  %v4794_v15 = vpop.eup %4793  ;;  %v831_v13 = vand.u32 2147483647, %v5498_v50  ;;  %v833_v31 = vand.u32 2147483648, %v5498_v50  ;;  %vm799_vm12 = vmor %vm797_vm15, %vm798_vm11 }
 0x261   :  { %v780_v3 = vmul.f32 %v4786_v46, %v779_v35  ;;  %v809_v28 = vsub.f32 1.0, %v808_v5  ;;  %v751_v6 = vadd.f32 %v5494_v37, %v750_v38  ;;  %v823_v35 = vmul.f32 %v4794_v15, %v5498_v50 }
 0x262   :  { %v795_v2 = vmul.f32 %v4788_v4, %v794_v49  ;;  %v766_v10 = vadd.f32 %v5501_v42, %v765_v40  ;;  %v5564_v41 = vpop.eup %4795  ;;  %vm828_vm7 = vweird.f32 %v4794_v15  ;;  %v818_v50 = vand.u32 2147483648, %v5477_v25 }
 0x263   :  { %v810_v51 = vmul.f32 %v5529_v60, %v809_v28  ;;  %v781_v30 = vadd.f32 %v4786_v46, %v780_v3  ;;  %v755_v5 = vsel %vm754_vm6, %v5494_v37, %v751_v6  ;;  %v824_v61 = vsub.f32 1.0, %v823_v35  ;;  %vm829_vm11 = vmor %vm827_vm10, %vm828_vm7 }
 0x264   :  { %v796_v38 = vadd.f32 %v4788_v4, %v795_v2  ;;  %v770_v28 = vsel %vm769_vm4, %v5501_v42, %v766_v10  ;;  %v760_v3 = vsel %vm5525_vm3, %v759_v23, %v755_v5  ;;  %v838_v42 = vmul.f32 %v5564_v41, %v5508_v39 }
 0x265   :  { %1713 = vmatmul.f32.gmra.mxu2 %v5475_v55  ;;  %v785_v6 = vsel %vm784_vm13, %v4786_v46, %v781_v30  ;;  %v775_v2 = vsel %vm5513_vm1, %v774_v63, %v770_v28  ;;  %v5579_v44 = vmul.f32 %v760_v3, %v5380_v52  ;;  %v825_v58 = vmul.f32 %v4794_v15, %v824_v61 }
 0x266   :  { %v800_v37 = vsel %vm799_vm12, %v4788_v4, %v796_v38  ;;  %v790_v10 = vsel %vm5521_vm2, %v789_v47, %v785_v6  ;;  %v5584_v23 = vmul.f32 %v775_v2, %v5382_v57  ;;  %v5595_v4 = vpop.f32.mrf.mxu1  ;;  %v839_v0 = vsub.f32 1.0, %v838_v42 }
 0x267   :  { %v805_v54 = vsel %vm5534_vm5, %v5504_v43, %v800_v37  ;;  %v5592_v46 = vmul.f32 %v790_v10, %v5388_v8  ;;  %v1023_v63 = vrot.slane %v5579_v44, 4  ;;  %8542 = vst [vmem:[#allocation37_spill] sm:$0xff] %v5595_v4  ;;  %vm813_vm4 = vweird.f32 %v5529_v60 }
 0x268   :  { %v5598_v47 = vmul.f32 %v805_v54, %v5417_v19  ;;  %v1029_v7 = vrot.slane %v5584_v23, 4  ;;  %v826_v56 = vadd.f32 %v4794_v15, %v825_v58  ;;  %vm832_vm6 = vcmp.eq.f32.partialorder %v831_v13, 8.507059e+37  ;;  %vm5618_vm14 = vmor %vm812_vm0, %vm813_vm4 }
 0x269   :  { %v1035_v40 = vrot.slane %v5592_v46, 4  ;;  %v811_v43 = vadd.f32 %v5529_v60, %v810_v51  ;;  %v1024_v35 = vadd.f32 %v1023_v63, %v5579_v44  ;;  %v834_v5 = vor.u32 1.1754944e-38, %v833_v31 }
 0x26a   :  { %v1041_v49 = vrot.slane %v5598_v47, 4  ;;  %v1030_v30 = vadd.f32 %v1029_v7, %v5584_v23  ;;  %v840_v28 = vmul.f32 %v5564_v41, %v839_v0  ;;  %v830_v3 = vsel %vm829_vm11, %v4794_v15, %v826_v56 }
 0x26b   :  { %v1036_v38 = vadd.f32 %v1035_v40, %v5592_v46  ;;  %v816_v13 = vand.u32 2147483647, %v5477_v25  ;;  %v835_v2 = vsel %vm832_vm6, %v834_v5, %v830_v3  ;;  %v815_v37 = vsel %vm5618_vm14, %v5529_v60, %v811_v43 }
 0x26c   :  { %v1042_v51 = vadd.f32 %v1041_v49, %v5598_v47  ;;  %v1031_v6 = vrot.slane %v1030_v30, 2  ;;  %v5625_v15 = vmul.f32 %v835_v2, %v5531_v1  ;;  %v5631_v10 = vadd.f32 1.0, %v5540_v34 }
 0x26d   :  { %1716 = vmatmul.f32.gmra.mxu2 %v5481_v29  ;;  %v1037_v31 = vrot.slane %v1036_v38, 2  ;;  %v1025_v58 = vrot.slane %v1024_v35, 2  ;;  %v819_v63 = vor.u32 1.1754944e-38, %v818_v50  ;;  %vm817_vm0 = vcmp.eq.f32.partialorder %v816_v13, 8.507059e+37 }
 0x26e   :  { %v1043_v42 = vrot.slane %v1042_v51, 2  ;;  %v1032_v54 = vadd.f32 %v1031_v6, %v1030_v30  ;;  %v1053_v25 = vrot.slane %v5625_v15, 4  ;;  %4797 = vrcp.f32 %v5631_v10  ;;  %v5641_v30 = vpop.f32.mrf.mxu1 }
 0x26f   :  { %v1038_v7 = vadd.f32 %v1037_v31, %v1036_v38  ;;  %v820_v56 = vsel %vm817_vm0, %v819_v63, %v815_v37  ;;  %4799 = vpow2.f32 %v5489_v32  ;;  %v4676_v43 = vmul.f32 -1.442695, %v5438_v33  ;;  %8545 = vst [vmem:[#allocation38_spill] sm:$0xff] %v5641_v30 }
 0x270   :  { %v1044_v0 = vadd.f32 %v1043_v42, %v1042_v51  ;;  %v1033_v40 = vrot.slane %v1032_v54, 1  ;;  %v1054_v60 = vadd.f32 %v1053_v25, %v5625_v15  ;;  %v5638_v34 = vmul.f32 %v820_v56, %v5456_v11 }
 0x271   :  { %v1039_v49 = vrot.slane %v1038_v7, 1  ;;  %v8546_v3 = vmax.f32 %v5415_v17, 0.0  ;;  %vm842_vm10 = vweird.f32 %v5508_v39  ;;  %v1026_v51 = vadd.f32 %v1025_v58, %v1024_v35 }
 0x272   :  { %v1045_v5 = vrot.slane %v1044_v0, 1  ;;  %v5643_v38 = vadd.f32 %v1033_v40, %v1032_v54  ;;  %v1047_v6 = vrot.slane %v5638_v34, 4  ;;  %v841_v2 = vadd.f32 %v5564_v41, %v840_v28 }
 0x273   :  { %v5648_v13 = vadd.f32 %v8546_v3, %v5330_v9  ;;  %v5651_v32 = vadd.f32 %v1039_v49, %v1038_v7  ;;  %vm843_vm15 = vweird.f32 %v5564_v41  ;;  %v846_v17 = vand.u32 2147483647, %v5508_v39 }
 0x274   :  { %v5655_v61 = vadd.f32 %v1045_v5, %v1044_v0  ;;  %1265 = vrot.lane.b32.xlu1 %v5643_v38, %s5177_s17  ;;  %v848_v9 = vand.u32 2147483648, %v5508_v39  ;;  %v4798_v50 = vpop.eup %4797  ;;  %v1652_v35 = vmax.f32 %v5423_v24, 0.0  ;;  %v1055_v28 = vrot.slane %v1054_v60, 2  ;;  %vm844_vm1 = vmor %vm842_vm10, %vm843_vm15 }
 0x275   :  { %8547 = vst [vmem:[#allocation39_spill] sm:$0xff] %v5648_v13  ;;  %1267 = vrot.lane.b32.xlu2 %v5651_v32, %s5177_s17  ;;  %1719 = vmatmul.f32.gmra.mxu2 %v5648_v13  ;;  %v1048_v31 = vadd.f32 %v1047_v6, %v5638_v34  ;;  %4801 = vpow2.f32 %v4676_v43  ;;  %v4800_v37 = vpop.eup %4799  ;;  %v853_v42 = vmul.f32 %v4798_v50, %v5631_v10  ;;  %v8548_v63 = vrot.slane %v5369_v26, 3 }
 0x276   :  { %1269 = vrot.lane.b32.xlu0 %v5655_v61, %s5177_s17  ;;  %v845_v54 = vsel %vm844_vm1, %v5564_v41, %v841_v2  ;;  %v849_v58 = vor.u32 1.1754944e-38, %v848_v9  ;;  %v1027_v24 = vrot.slane %v1026_v51, 1  ;;  %vm847_vm2 = vcmp.eq.f32.partialorder %v846_v17, 8.507059e+37  ;;  %v5689_v9 = vpop.f32.mrf.mxu1 }
 0x277   :  { %v662_v7 = vperm.slane %v8548_v63, 0  ;;  %v1049_v25 = vrot.slane %v1048_v31, 2  ;;  %v854_v0 = vsub.f32 1.0, %v853_v42  ;;  %v4677_v39 = vmul.f32 -1.442695, %v5448_v48  ;;  %8550 = vst [vmem:[#allocation41_spill] sm:$0xff] %v5689_v9 }
 0x278   :  { %v850_v40 = vsel %vm847_vm2, %v849_v58, %v845_v54  ;;  %v5678_v49 = vadd.f32 %v1652_v35, %v5339_v12  ;;  %v1056_v43 = vadd.f32 %v1055_v28, %v1054_v60  ;;  %v5680_v5 = vadd.f32 1.0, %v4800_v37 }
 0x279   :  { %v686_v56 = vadd.f32 %v662_v7, %v5463_v21  ;;  %v855_v41 = vmul.f32 %v4798_v50, %v854_v0  ;;  %vm858_vm3 = vweird.f32 %v4798_v50  ;;  %v863_v26 = vand.u32 2147483648, %v5631_v10 }
 0x27a   :  { %8549 = vst [vmem:[#allocation40_spill] sm:$0xff] %v5678_v49  ;;  %4803 = vpow2.f32 %v4677_v39  ;;  %v5683_v6 = vadd.f32 %v1027_v24, %v1026_v51  ;;  %v1050_v2 = vadd.f32 %v1049_v25, %v1048_v31  ;;  %v5686_v17 = vmul.f32 %v850_v40, %v5595_v4 }
 0x27b   :  { %v4802_v3 = vpop.eup %4801  ;;  %v861_v21 = vand.u32 2147483647, %v5631_v10  ;;  %vm857_vm5 = vweird.f32 %v5631_v10  ;;  %v856_v60 = vadd.f32 %v4798_v50, %v855_v41  ;;  %v5697_v35 = vadd.f32 %v686_v56, %v5397_v45 }
 0x27c   :  { %1313 = vrot.lane.b32.xlu1 %v5643_v38, %s5176_s16  ;;  %v5694_v12 = vadd.f32 1.0, %v4802_v3  ;;  %v1653_v51 = vmax.f32 %v5442_v27, 0.0  ;;  %4805 = vrcp.f32 %v5680_v5  ;;  %vm859_vm8 = vmor %vm857_vm5, %vm858_vm3  ;;  %v1057_v10 = vrot.slane %v1056_v43, 1 }
 0x27d   :  { %1263 = vrot.lane.b32.xlu2 %v5683_v6, %s5177_s17  ;;  %1722 = vmatmul.f32.gmra.mxu2 %v5678_v49  ;;  %v860_v28 = vsel %vm859_vm8, %v4798_v50, %v856_v60  ;;  %v864_v45 = vor.u32 1.1754944e-38, %v863_v26  ;;  %v1051_v31 = vrot.slane %v1050_v2, 1  ;;  %v1059_v37 = vrot.slane %v5686_v17, 4 }
 0x27e   :  { %1315 = vrot.lane.b32.xlu0 %v5651_v32, %s5176_s16  ;;  %4807 = vrcp.f32 %v5694_v12  ;;  %vm862_vm9 = vcmp.eq.f32.partialorder %v861_v21, 8.507059e+37  ;;  %v4678_v42 = vmul.f32 -1.442695, %v5697_v35  ;;  %v5712_v63 = vadd.f32 %v1057_v10, %v1056_v43  ;;  %v5735_v39 = vpop.f32.mrf.mxu1 }
 0x27f   :  { %v865_v27 = vsel %vm862_vm9, %v864_v45, %v860_v28  ;;  %v5715_v7 = vadd.f32 %v1653_v51, %v5345_v14  ;;  %v5719_v50 = vadd.f32 %v1051_v31, %v1050_v2  ;;  %v1060_v25 = vadd.f32 %v1059_v37, %v5686_v17  ;;  %8552 = vst [vmem:[#allocation43_spill] sm:$0xff] %v5735_v39 }
 0x280   :  { %v4804_v54 = vpop.eup %4803  ;;  %4809 = vpow2.f32 %v4678_v42  ;;  %v5723_v0 = vmul.f32 %v865_v27, %v5641_v30  ;;  %v1654_v41 = vmax.f32 %v5435_v36, 0.0  ;;  %v1655_v51 = vmax.f32 %v5438_v33, 0.0 }
 0x281   :  { %v5710_v58 = vadd.f32 1.0, %v4804_v54  ;;  %8551 = vst [vmem:[#allocation42_spill] sm:$0xff] %v5715_v7  ;;  %v1061_v26 = vrot.slane %v1060_v25, 2  ;;  %vm872_vm13 = vweird.f32 %v5680_v5  ;;  %vm887_vm4 = vweird.f32 %v5694_v12 }
 0x282   :  { %v5717_v24 = vpop.eup %4805  ;;  %v1065_v3 = vrot.slane %v5723_v0, 4  ;;  %v5752_v45 = vadd.f32 %v1654_v41, %v5349_v16  ;;  %v5765_v16 = vadd.f32 %v1655_v51, %v5353_v18  ;;  %v893_v51 = vand.u32 2147483648, %v5694_v12 }
 0x283   :  { %4811 = vrcp.f32 %v5710_v58  ;;  %v868_v43 = vmul.f32 %v5717_v24, %v5680_v5  ;;  %v1062_v36 = vadd.f32 %v1061_v26, %v1060_v25  ;;  %v908_v26 = vand.u32 2147483648, %v5710_v58 }
 0x284   :  { %v5726_v40 = vpop.eup %4807  ;;  %1273 = vrot.lane.b32.xlu1 %v5712_v63, %s5177_s17  ;;  %8553 = vst [vmem:[#allocation44_spill] sm:$0xff] %v5752_v45  ;;  %v1066_v31 = vadd.f32 %v1065_v3, %v5723_v0  ;;  %vm873_vm12 = vweird.f32 %v5717_v24  ;;  %vm902_vm11 = vweird.f32 %v5710_v58 }
 0x285   :  { %1271 = vrot.lane.b32.xlu2 %v5719_v50, %s5177_s17  ;;  %1725 = vmatmul.f32.gmra.mxu2 %v5715_v7  ;;  %v883_v14 = vmul.f32 %v5726_v40, %v5694_v12  ;;  %v869_v28 = vsub.f32 1.0, %v868_v43  ;;  %8554 = vst [vmem:[#allocation45_spill] sm:$0xff] %v5765_v16  ;;  %v1063_v27 = vrot.slane %v1062_v36, 1  ;;  %vm888_vm6 = vweird.f32 %v5726_v40  ;;  %vm5819_vm3 = vmor %vm872_vm13, %vm873_vm12 }
 0x286   :  { %1317 = vrot.lane.b32.xlu0 %v5655_v61, %s5176_s16  ;;  %v4810_v56 = vpop.eup %4809  ;;  %v1067_v25 = vrot.slane %v1066_v31, 2  ;;  %v5770_v43 = vpop.f32.mrf.mxu1  ;;  %v909_v4 = vor.u32 1.1754944e-38, %v908_v26  ;;  %vm5799_vm0 = vmor %vm887_vm4, %vm888_vm6  ;;  %v876_v26 = vand.u32 2147483647, %v5680_v5 }
 0x287   :  { %v5743_v2 = vadd.f32 1.0, %v4810_v56  ;;  %v884_v60 = vsub.f32 1.0, %v883_v14  ;;  %v870_v54 = vmul.f32 %v5717_v24, %v869_v28  ;;  %v1656_v14 = vmax.f32 %v5448_v48, 0.0  ;;  %8555 = vst [vmem:[#allocation46_spill] sm:$0xff] %v5770_v43 }
 0x288   :  { %v906_v48 = vand.u32 2147483647, %v5710_v58  ;;  %v1068_v28 = vadd.f32 %v1067_v25, %v1066_v31  ;;  %v878_v31 = vand.u32 2147483648, %v5680_v5  ;;  %vm877_vm9 = vcmp.eq.f32.partialorder %v876_v26, 8.507059e+37 }
 0x289   :  { %v5745_v21 = vpop.eup %4811  ;;  %4813 = vrcp.f32 %v5743_v2  ;;  %v885_v33 = vmul.f32 %v5726_v40, %v884_v60  ;;  %v891_v60 = vand.u32 2147483647, %v5694_v12  ;;  %v923_v30 = vand.u32 2147483648, %v5743_v2 }
 0x28a   :  { %v898_v10 = vmul.f32 %v5745_v21, %v5710_v58  ;;  %vm903_vm7 = vweird.f32 %v5745_v21  ;;  %v921_v25 = vand.u32 2147483647, %v5743_v2  ;;  %vm907_vm15 = vcmp.eq.f32.partialorder %v906_v48, 8.507059e+37 }
 0x28b   :  { %v886_v3 = vadd.f32 %v5726_v40, %v885_v33  ;;  %vm5786_vm14 = vmor %vm902_vm11, %vm903_vm7  ;;  %v871_v33 = vadd.f32 %v5717_v24, %v870_v54  ;;  %vm892_vm1 = vcmp.eq.f32.partialorder %v891_v60, 8.507059e+37  ;;  %vm917_vm2 = vweird.f32 %v5743_v2 }
 0x28c   :  { %1361 = vrot.lane.b32.xlu1 %v5643_v38, %s5175_s3  ;;  %v899_v37 = vsub.f32 1.0, %v898_v10  ;;  %v5784_v10 = vadd.f32 %v1063_v27, %v1062_v36  ;;  %v4753_v27 = vld [vmem:[#allocation8 + $0x260] ss:$0 sm:$0xff]  ;;  %vm922_vm8 = vcmp.eq.f32.partialorder %v921_v25, 8.507059e+37  ;;  %v5831_v5 = vadd.f32 %v1656_v14, %v5357_v20 }
 0x28d   :  { %1311 = vrot.lane.b32.xlu2 %v5683_v6, %s5176_s16  ;;  %1728 = vmatmul.f32.gmra.mxu2 %v5752_v45  ;;  %v890_v12 = vsel %vm5799_vm0, %v5726_v40, %v886_v3  ;;  %v924_v3 = vor.u32 1.1754944e-38, %v923_v30  ;;  %v875_v60 = vsel %vm5819_vm3, %v5717_v24, %v871_v33 }
 0x28e   :  { %1319 = vrot.lane.b32.xlu0 %v5719_v50, %s5176_s16  ;;  %v900_v42 = vmul.f32 %v5745_v21, %v899_v37  ;;  %8563 = vst [vmem:[#allocation48_spill] sm:$0xff] %v5831_v5 }
 0x28f   :  { %v4814_v56 = vpop.eup %4813 }
 0x290   :  { %v901_v41 = vadd.f32 %v5745_v21, %v900_v42  ;;  %v913_v18 = vmul.f32 %v4814_v56, %v5743_v2  ;;  %vm918_vm10 = vweird.f32 %v4814_v56 }
 0x291   :  { %vm919_vm5 = vmor %vm917_vm2, %vm918_vm10 }
 0x292   :  { %v914_v37 = vsub.f32 1.0, %v913_v18  ;;  %v905_v58 = vsel %vm5786_vm14, %v5745_v21, %v901_v41  ;;  %v619_v21 = vpop.f32.mrf.mxu0  ;;  %v894_v41 = vor.u32 1.1754944e-38, %v893_v51  ;;  %v1069_v18 = vrot.slane %v1068_v28, 1 }
 0x293   :  { %v910_v42 = vsel %vm907_vm15, %v909_v4, %v905_v58  ;;  %v5826_v51 = vadd.f32 %v4753_v27, %v619_v21  ;;  %v879_v4 = vor.u32 1.1754944e-38, %v878_v31  ;;  %v5828_v58 = vpop.f32.mrf.mxu1 }
 0x294   :  { %1363 = vrot.lane.b32.xlu1 %v5651_v32, %s5175_s3  ;;  %v915_v54 = vmul.f32 %v4814_v56, %v914_v37  ;;  %v895_v48 = vsel %vm892_vm1, %v894_v41, %v890_v12  ;;  %8562 = vst [vmem:[#allocation47_spill] sm:$0xff] %v5828_v58  ;;  %v5834_v30 = vadd.f32 %v1069_v18, %v1068_v28  ;;  %v1657_v28 = vmax.f32 %v5697_v35, 0.0 }
 0x295   :  { %1275 = vrot.lane.b32.xlu2 %v5784_v10, %s5177_s17  ;;  %1731 = vmatmul.f32.gmra.mxu2 %v5765_v16  ;;  %v936_v24 = vmul.f32 %v895_v48, %v5735_v39  ;;  %v880_v33 = vsel %vm877_vm9, %v879_v4, %v875_v60 }
 0x296   :  { %1321 = vrot.lane.b32.xlu0 %v5712_v63, %s5176_s16  ;;  %v916_v37 = vadd.f32 %v4814_v56, %v915_v54  ;;  %v937_v54 = vmul.f32 %v910_v42, %v5770_v43  ;;  %v5860_v18 = vadd.f32 %v1657_v28, %v5361_v22 }
 0x297   :  { %v1077_v31 = vrot.slane %v936_v24, 4  ;;  %v5854_v41 = vmul.f32 %v936_v24, %v5826_v51 }
 0x298   :  { %v920_v2 = vsel %vm919_vm5, %v4814_v56, %v916_v37  ;;  %v1083_v14 = vrot.slane %v937_v54, 4  ;;  %v935_v56 = vmul.f32 %v880_v33, %v5689_v9  ;;  %v5851_v27 = vmul.f32 %v937_v54, %v5826_v51  ;;  %8564 = vst [vmem:[#allocation49_spill] sm:$0xff] %v5860_v18 }
 0x299   :  { %v925_v36 = vsel %vm922_vm8, %v924_v3, %v920_v2  ;;  %v1078_v37 = vadd.f32 %v1077_v31, %v936_v24  ;;  %v940_v31 = vmul.f32 %v5584_v23, %v5826_v51  ;;  %v942_v23 = vmul.f32 %v5598_v47, %v5826_v51 }
 0x29a   :  { %v938_v12 = vmul.f32 %v925_v36, %v5828_v58  ;;  %v1084_v21 = vadd.f32 %v1083_v14, %v937_v54  ;;  %v5857_v26 = vmul.f32 %v935_v56, %v5826_v51  ;;  %v1071_v3 = vrot.slane %v935_v56, 4 }
 0x29b   :  { %v1079_v40 = vrot.slane %v1078_v37, 2 }
 0x29c   :  { %1359 = vrot.lane.b32.xlu1 %v5683_v6, %s5175_s3  ;;  %v5844_v20 = vmul.f32 %v938_v12, %v5826_v51  ;;  %v1089_v25 = vrot.slane %v938_v12, 4  ;;  %v1085_v42 = vrot.slane %v1084_v21, 2  ;;  %v1072_v2 = vadd.f32 %v1071_v3, %v935_v56 }
 0x29d   :  { %1277 = vrot.lane.b32.xlu2 %v5834_v30, %s5177_s17  ;;  %1734 = vmatmul.f32.gmra.mxu2 %v5831_v5  ;;  %v1080_v22 = vadd.f32 %v1079_v40, %v1078_v37  ;;  %v941_v37 = vmul.f32 %v5592_v46, %v5826_v51  ;;  %v939_v46 = vmul.f32 %v5579_v44, %v5826_v51 }
 0x29e   :  { %1323 = vrot.lane.b32.xlu0 %v5784_v10, %s5176_s16  ;;  %v1090_v35 = vadd.f32 %v1089_v25, %v938_v12  ;;  %v1086_v60 = vadd.f32 %v1085_v42, %v1084_v21  ;;  %v1073_v12 = vrot.slane %v1072_v2, 2  ;;  %v957_v21 = vrot.slane %v940_v31, 4 }
 0x29f   :  { %v1081_v54 = vrot.slane %v1080_v22, 1  ;;  %v963_v40 = vrot.slane %v941_v37, 4 }
 0x2a0   :  { %v1091_v48 = vrot.slane %v1090_v35, 2  ;;  %v1087_v36 = vrot.slane %v1086_v60, 1  ;;  %v1074_v28 = vadd.f32 %v1073_v12, %v1072_v2  ;;  %v958_v42 = vadd.f32 %v957_v21, %v940_v31 }
 0x2a1   :  { %v5877_v14 = vadd.f32 %v1081_v54, %v1080_v22 }
 0x2a2   :  { %v1092_v4 = vadd.f32 %v1091_v48, %v1090_v35  ;;  %v5875_v33 = vadd.f32 %v1087_v36, %v1086_v60  ;;  %v1075_v25 = vrot.slane %v1074_v28, 1  ;;  %v959_v3 = vrot.slane %v958_v42, 2 }
 0x2a3   :  { %v969_v48 = vrot.slane %v942_v23, 4  ;;  %v964_v60 = vadd.f32 %v963_v40, %v941_v37 }
 0x2a4   :  { %1367 = vrot.lane.b32.xlu1 %v5719_v50, %s5175_s3  ;;  %v1093_v24 = vrot.slane %v1092_v4, 1  ;;  %v5891_v35 = vadd.f32 %v1075_v25, %v1074_v28  ;;  %v960_v22 = vadd.f32 %v959_v3, %v958_v42  ;;  %v943_v28 = vmul.f32 %v5638_v34, %v5826_v51 }
 0x2a5   :  { %1365 = vrot.lane.b32.xlu2 %v5655_v61, %s5175_s3  ;;  %1737 = vmatmul.f32.gmra.mxu2 %v5860_v18  ;;  %v970_v2 = vadd.f32 %v969_v48, %v942_v23  ;;  %v965_v47 = vrot.slane %v964_v60, 2 }
 0x2a6   :  { %1369 = vrot.lane.b32.xlu0 %v5712_v63, %s5175_s3  ;;  %v5879_v56 = vadd.f32 %v1093_v24, %v1092_v4  ;;  %v951_v4 = vrot.slane %v939_v46, 4  ;;  %v961_v36 = vrot.slane %v960_v22, 1  ;;  %v944_v24 = vmul.f32 %v5625_v15, %v5826_v51 }
 0x2a7   :  { %v971_v54 = vrot.slane %v970_v2, 2  ;;  %v966_v12 = vadd.f32 %v965_v47, %v964_v60  ;;  %v975_v23 = vrot.slane %v943_v28, 4 }
 0x2a8   :  { %v952_v44 = vadd.f32 %v951_v4, %v939_v46  ;;  %v5913_v31 = vadd.f32 %v961_v36, %v960_v22  ;;  %v981_v37 = vrot.slane %v944_v24, 4 }
 0x2a9   :  { %v972_v25 = vadd.f32 %v971_v54, %v970_v2  ;;  %v967_v21 = vrot.slane %v966_v12, 1  ;;  %v976_v60 = vadd.f32 %v975_v23, %v943_v28 }
 0x2aa   :  { %v953_v15 = vrot.slane %v952_v44, 2  ;;  %v982_v3 = vadd.f32 %v981_v37, %v944_v24  ;;  %v945_v24 = vmul.f32 %v5686_v17, %v5826_v51  ;;  %v946_v17 = vmul.f32 %v5723_v0, %v5826_v51 }
 0x2ab   :  { %v973_v40 = vrot.slane %v972_v25, 1  ;;  %v5923_v34 = vadd.f32 %v967_v21, %v966_v12  ;;  %v977_v4 = vrot.slane %v976_v60, 2 }
 0x2ac   :  { %1371 = vrot.lane.b32.xlu1 %v5784_v10, %s5175_s3  ;;  %v954_v48 = vadd.f32 %v953_v15, %v952_v44  ;;  %v983_v22 = vrot.slane %v982_v3, 2  ;;  %v987_v21 = vrot.slane %v945_v24, 4 }
 0x2ad   :  { %1325 = vrot.lane.b32.xlu2 %v5834_v30, %s5176_s16  ;;  %v5925_v46 = vadd.f32 %v973_v40, %v972_v25  ;;  %v978_v12 = vadd.f32 %v977_v4, %v976_v60  ;;  %v993_v60 = vrot.slane %v946_v17, 4 }
 0x2ae   :  { %1373 = vrot.lane.b32.xlu0 %v5834_v30, %s5175_s3  ;;  %v955_v47 = vrot.slane %v954_v48, 1  ;;  %v984_v36 = vadd.f32 %v983_v22, %v982_v3  ;;  %v988_v23 = vadd.f32 %v987_v21, %v945_v24 }
 0x2af   :  { %v979_v25 = vrot.slane %v978_v12, 1  ;;  %v994_v4 = vadd.f32 %v993_v60, %v946_v17 }
 0x2b0   :  { %v5935_v54 = vadd.f32 %v955_v47, %v954_v48  ;;  %v985_v44 = vrot.slane %v984_v36, 1  ;;  %v989_v48 = vrot.slane %v988_v23, 2 }
 0x2b1   :  { %v5949_v15 = vadd.f32 %v979_v25, %v978_v12  ;;  %v995_v12 = vrot.slane %v994_v4, 2 }
 0x2b2   :  { %v5947_v37 = vadd.f32 %v985_v44, %v984_v36  ;;  %v990_v47 = vadd.f32 %v989_v48, %v988_v23 }
 0x2b3   :  { %v996_v25 = vadd.f32 %v995_v12, %v994_v4  ;;  %v1011_v4 = vrot.slane %v5851_v27, 4  ;;  %v1005_v12 = vrot.slane %v5854_v41, 4 }
 0x2b4   :  { %1283 = vrot.lane.b32.xlu1 %v5875_v33, %s5177_s17  ;;  %8565 = vst [vmem:[#allocation50_spill] sm:$0xff] %v5947_v37  ;;  %v991_v36 = vrot.slane %v990_v47, 1 }
 0x2b5   :  { %1281 = vrot.lane.b32.xlu2 %v5877_v14, %s5177_s17  ;;  %v997_v17 = vrot.slane %v996_v25, 1  ;;  %v1006_v9 = vadd.f32 %v1005_v12, %v5854_v41 }
 0x2b6   :  { %1285 = vrot.lane.b32.xlu0 %v5879_v56, %s5177_s17  ;;  %v5977_v44 = vadd.f32 %v991_v36, %v990_v47 }
 0x2b7   :  { %v5991_v60 = vadd.f32 %v997_v17, %v996_v25  ;;  %v1017_v25 = vrot.slane %v5844_v20, 4  ;;  %v1012_v17 = vadd.f32 %v1011_v4, %v5851_v27  ;;  %v1007_v43 = vrot.slane %v1006_v9, 2 }
 0x2b8   :  { %8566 = vst [vmem:[#allocation51_spill] sm:$0xff] %v5977_v44  ;;  %v999_v27 = vrot.slane %v5857_v26, 4 }
 0x2b9   :  { %8567 = vst [vmem:[#allocation52_spill] sm:$0xff] %v5991_v60  ;;  %v1018_v5 = vadd.f32 %v1017_v25, %v5844_v20  ;;  %v1013_v16 = vrot.slane %v1012_v17, 2  ;;  %v1008_v7 = vadd.f32 %v1007_v43, %v1006_v9 }
 0x2ba   :  { %v1000_v20 = vadd.f32 %v999_v27, %v5857_v26 }
 0x2bb   :  { %v1019_v4 = vrot.slane %v1018_v5, 2  ;;  %v1014_v12 = vadd.f32 %v1013_v16, %v1012_v17  ;;  %v1009_v49 = vrot.slane %v1008_v7, 1 }
 0x2bc   :  { %1329 = vrot.lane.b32.xlu1 %v5877_v14, %s5176_s16  ;;  %v1001_v13 = vrot.slane %v1000_v20, 2 }
 0x2bd   :  { %1279 = vrot.lane.b32.xlu2 %v5891_v35, %s5177_s17  ;;  %v1020_v25 = vadd.f32 %v1019_v4, %v1018_v5  ;;  %v1015_v39 = vrot.slane %v1014_v12, 1  ;;  %v6037_v26 = vadd.f32 %v1009_v49, %v1008_v7 }
 0x2be   :  { %1327 = vrot.lane.b32.xlu0 %v5891_v35, %s5176_s16  ;;  %v1002_v5 = vadd.f32 %v1001_v13, %v1000_v20 }
 0x2bf   :  { %v1021_v9 = vrot.slane %v1020_v25, 1  ;;  %v6035_v43 = vadd.f32 %v1015_v39, %v1014_v12  ;;  %8569 = vst [vmem:[#allocation54_spill] sm:$0xff] %v6037_v26 }
 0x2c0   :  { %v1003_v29 = vrot.slane %v1002_v5, 1 }
 0x2c1   :  { %8568 = vst [vmem:[#allocation53_spill] sm:$0xff] %v6035_v43  ;;  %v6039_v17 = vadd.f32 %v1021_v9, %v1020_v25 }
 0x2c2   :  { %v6049_v12 = vadd.f32 %v1003_v29, %v1002_v5 }
 0x2c3   :  { %8570 = vst [vmem:[#allocation55_spill] sm:$0xff] %v6039_v17 }
 0x2c4   :  { %1333 = vrot.lane.b32.xlu1 %v5879_v56, %s5176_s16  ;;  %8571 = vst [vmem:[#allocation56_spill] sm:$0xff] %v6049_v12 }
 0x2c5   :  { %1331 = vrot.lane.b32.xlu2 %v5875_v33, %s5176_s16 }
 0x2c6   :  { %1379 = vrot.lane.b32.xlu0 %v5875_v33, %s5175_s3 }
 0x2cc   :  { %1375 = vrot.lane.b32.xlu1 %v5891_v35, %s5175_s3 }
 0x2cd   :  { %1377 = vrot.lane.b32.xlu2 %v5877_v14, %s5175_s3 }
 0x2ce   :  { %1109 = vrot.lane.b32.xlu0 %v5913_v31, %s5177_s17 }
 0x2cf   :  { %v5921_v42 = vpop.permute.xlu2 %1267 }
 0x2d4   :  { %1111 = vrot.lane.b32.xlu1 %v5923_v34, %s5177_s17 }
 0x2d5   :  { %1381 = vrot.lane.b32.xlu2 %v5879_v56, %s5175_s3 }
 0x2d6   :  { %1113 = vrot.lane.b32.xlu0 %v5925_v46, %s5177_s17 }
 0x2d7   :  { %v5933_v2 = vpop.permute.xlu2 %1263 }
 0x2dc   :  { %1157 = vrot.lane.b32.xlu1 %v5913_v31, %s5176_s16 }
 0x2dd   :  { %1107 = vrot.lane.b32.xlu2 %v5935_v54, %s5177_s17 }
 0x2de   :  { %1159 = vrot.lane.b32.xlu0 %v5923_v34, %s5176_s16 }
 0x2df   :  { %v5945_v28 = vpop.permute.xlu2 %1271 }
 0x2e4   :  { %1117 = vrot.lane.b32.xlu1 %v5947_v37, %s5177_s17 }
 0x2e5   :  { %1115 = vrot.lane.b32.xlu2 %v5949_v15, %s5177_s17 }
 0x2e6   :  { %1161 = vrot.lane.b32.xlu0 %v5925_v46, %s5176_s16  ;;  %v5959_v40 = vpop.permute.xlu1 %1265 }
 0x2e7   :  { %v5961_v3 = vpop.permute.xlu2 %1311  ;;  %v1300_v62 = vadd.f32 %v5959_v40, %v5643_v38  ;;  %v1299_v38 = vadd.f32 %v5933_v2, %v5683_v6  ;;  %v1303_v6 = vadd.f32 %v5945_v28, %v5719_v50 }
 0x2e8   :  { %v5963_v22 = vpop.permute.xlu0 %1269 }
 0x2ec   :  { %1205 = vrot.lane.b32.xlu1 %v5913_v31, %s5175_s3 }
 0x2ed   :  { %1155 = vrot.lane.b32.xlu2 %v5935_v54, %s5176_s16 }
 0x2ee   :  { %1163 = vrot.lane.b32.xlu0 %v5949_v15, %s5176_s16  ;;  %v5971_v0 = vpop.permute.xlu1 %1313 }
 0x2ef   :  { %v5973_v51 = vpop.permute.xlu2 %1275 }
 0x2f0   :  { %v5975_v24 = vpop.permute.xlu0 %1315 }
 0x2f4   :  { %1207 = vrot.lane.b32.xlu1 %v5923_v34, %s5175_s3 }
 0x2f5   :  { %1119 = vrot.lane.b32.xlu2 %v5977_v44, %s5177_s17 }
 0x2f6   :  { %1165 = vrot.lane.b32.xlu0 %v5947_v37, %s5176_s16  ;;  %v5985_v21 = vpop.permute.xlu1 %1273 }
 0x2f7   :  { %v5987_v23 = vpop.permute.xlu2 %1277  ;;  %v1304_v2 = vadd.f32 %v5985_v21, %v5712_v63 }
 0x2f8   :  { %v5989_v48 = vpop.permute.xlu0 %1317  ;;  %v1306_v63 = vadd.f32 %v5987_v23, %v5834_v30 }
 0x2fc   :  { %1203 = vrot.lane.b32.xlu1 %v5935_v54, %s5175_s3 }
 0x2fd   :  { %1121 = vrot.lane.b32.xlu2 %v5991_v60, %s5177_s17 }
 0x2fe   :  { %1167 = vrot.lane.b32.xlu0 %v5977_v44, %s5176_s16  ;;  %v5999_v47 = vpop.permute.xlu1 %1361 }
 0x2ff   :  { %v6002_v36 = vpop.permute.xlu2 %1365 }
 0x300   :  { %v6005_v18 = vpop.permute.xlu0 %1319 }
 0x304   :  { %1211 = vrot.lane.b32.xlu1 %v5949_v15, %s5175_s3 }
 0x305   :  { %1209 = vrot.lane.b32.xlu2 %v5925_v46, %s5175_s3 }
 0x306   :  { %1213 = vrot.lane.b32.xlu0 %v5947_v37, %s5175_s3  ;;  %v6017_v58 = vpop.permute.xlu1 %1363 }
 0x307   :  { %v6019_v45 = vpop.permute.xlu2 %1325 }
 0x308   :  { %v6022_v41 = vpop.permute.xlu0 %1321 }
 0x30c   :  { %1215 = vrot.lane.b32.xlu1 %v5977_v44, %s5175_s3 }
 0x30d   :  { %1169 = vrot.lane.b32.xlu2 %v5991_v60, %s5176_s16 }
 0x30e   :  { %1217 = vrot.lane.b32.xlu0 %v5991_v60, %s5175_s3  ;;  %v1360_v1 = vpop.permute.xlu1 %1359  ;;  %v1301_v60 = vadd.f32 %v5921_v42, %v5651_v32 }
 0x30f   :  { %v6031_v11 = vpop.permute.xlu2 %1281 }
 0x310   :  { %v6033_v16 = vpop.permute.xlu0 %1323  ;;  %v1349_v40 = vadd.f32 %v5975_v24, %v1301_v60  ;;  %v1352_v24 = vadd.f32 %v6022_v41, %v1304_v2 }
 0x314   :  { %1127 = vrot.lane.b32.xlu1 %v6035_v43, %s5177_s17 }
 0x315   :  { %1125 = vrot.lane.b32.xlu2 %v6037_v26, %s5177_s17 }
 0x316   :  { %1129 = vrot.lane.b32.xlu0 %v6039_v17, %s5177_s17  ;;  %v1368_v27 = vpop.permute.xlu1 %1367 }
 0x317   :  { %v6047_v4 = vpop.permute.xlu2 %1279 }
 0x318   :  { %v1370_v39 = vpop.permute.xlu0 %1369 }
 0x319   :  { %v1400_v28 = vadd.f32 %v1370_v39, %v1352_v24 }
 0x31b   :  { %v6152_v23 = vadd.f32 1e-20, %v1400_v28 }
 0x31c   :  { %1173 = vrot.lane.b32.xlu1 %v6037_v26, %s5176_s16 }
 0x31d   :  { %1123 = vrot.lane.b32.xlu2 %v6049_v12, %s5177_s17  ;;  %vm1499_vm9 = vweird.f32 %v6152_v23 }
 0x31e   :  { %1171 = vrot.lane.b32.xlu0 %v6049_v12, %s5176_s16  ;;  %v1372_v13 = vpop.permute.xlu1 %1371 }
 0x31f   :  { %v6057_v49 = vpop.permute.xlu2 %1331 }
 0x320   :  { %v1374_v7 = vpop.permute.xlu0 %1373 }
 0x324   :  { %1177 = vrot.lane.b32.xlu1 %v6039_v17, %s5176_s16 }
 0x325   :  { %1175 = vrot.lane.b32.xlu2 %v6035_v43, %s5176_s16 }
 0x326   :  { %1223 = vrot.lane.b32.xlu0 %v6035_v43, %s5175_s3  ;;  %v6065_v29 = vpop.permute.xlu1 %1283 }
 0x327   :  { %v6067_v20 = vpop.permute.xlu2 %1377 }
 0x328   :  { %v6069_v25 = vpop.permute.xlu0 %1285 }
 0x32c   :  { %1219 = vrot.lane.b32.xlu1 %v6049_v12, %s5175_s3  ;;  %v1302_v12 = vadd.f32 %v5963_v22, %v5655_v61  ;;  %v1347_v61 = vadd.f32 %v5961_v3, %v1299_v38 }
 0x32d   :  { %1221 = vrot.lane.b32.xlu2 %v6037_v26, %s5175_s3 }
 0x32e   :  { %v6075_v9 = vpop.permute.xlu1 %1329  ;;  %v1350_v26 = vadd.f32 %v5989_v48, %v1302_v12  ;;  %v1397_v48 = vadd.f32 %v6017_v58, %v1349_v40  ;;  %v1395_v42 = vadd.f32 %v1360_v1, %v1347_v61  ;;  %v1305_v1 = vadd.f32 %v5973_v51, %v5784_v10 }
 0x32f   :  { %v6077_v5 = vpop.permute.xlu2 %1381 }
 0x330   :  { %v6079_v19 = vpop.permute.xlu0 %1327  ;;  %v1398_v44 = vadd.f32 %v6002_v36, %v1350_v26  ;;  %v6127_v3 = vadd.f32 1e-20, %v1397_v48  ;;  %v6130_v58 = vadd.f32 1e-20, %v1395_v42  ;;  %v1354_v36 = vadd.f32 %v6019_v45, %v1306_v63 }
 0x332   :  { %v1402_v41 = vadd.f32 %v1374_v7, %v1354_v36  ;;  %vm1454_vm10 = vweird.f32 %v6127_v3  ;;  %vm1424_vm3 = vweird.f32 %v6130_v58 }
 0x334   :  { %v6168_v12 = vadd.f32 1e-20, %v1402_v41 }
 0x335   :  { %1225 = vrot.lane.b32.xlu2 %v6039_v17, %s5175_s3  ;;  %v1348_v17 = vadd.f32 %v5971_v0, %v1300_v62  ;;  %v6115_v0 = vadd.f32 1e-20, %v1398_v44 }
 0x336   :  { %v6083_v8 = vpop.permute.xlu1 %1333 }
 0x337   :  { %v6085_v57 = vpop.permute.xlu2 %1107  ;;  %v1396_v53 = vadd.f32 %v5999_v47, %v1348_v17  ;;  %v1475_v41 = vand.u32 2147483648, %v6115_v0  ;;  %vm1469_vm7 = vweird.f32 %v6115_v0 }
 0x338   :  { %v6087_v52 = vpop.permute.xlu0 %1379 }
 0x339   :  { %v6111_v22 = vadd.f32 1e-20, %v1396_v53  ;;  %v1351_v53 = vadd.f32 %v6005_v18, %v1303_v6  ;;  %v1353_v18 = vadd.f32 %v6033_v16, %v1305_v1  ;;  %v1308_v1 = vadd.f32 %v6031_v11, %v5877_v14 }
 0x33b   :  { %4815 = vrcp.f32 %v6111_v22  ;;  %v1399_v44 = vadd.f32 %v1368_v27, %v1351_v53  ;;  %v1401_v30 = vadd.f32 %v1372_v13, %v1353_v18  ;;  %v1443_v2 = vand.u32 2147483647, %v6111_v22 }
 0x33c   :  { %4817 = vrcp.f32 %v6115_v0  ;;  %v1307_v18 = vadd.f32 %v6047_v4, %v5891_v35  ;;  %v1356_v11 = vadd.f32 %v6075_v9, %v1308_v1  ;;  %vm1439_vm13 = vweird.f32 %v6111_v22 }
 0x33d   :  { %4819 = vrcp.f32 %v6127_v3  ;;  %v6150_v51 = vadd.f32 1e-20, %v1399_v44  ;;  %v6161_v45 = vadd.f32 1e-20, %v1401_v30  ;;  %v1445_v44 = vand.u32 2147483648, %v6111_v22 }
 0x33e   :  { %v6089_v55 = vpop.permute.xlu1 %1375  ;;  %4821 = vrcp.f32 %v6130_v58  ;;  %v1473_v30 = vand.u32 2147483647, %v6115_v0  ;;  %vm6215_vm4 = vcmp.eq.f32.partialorder %v1443_v2, 8.507059e+37  ;;  %v1460_v2 = vand.u32 2147483648, %v6127_v3 }
 0x33f   :  { %v6093_v59 = vpop.permute.xlu2 %1115  ;;  %4823 = vrcp.f32 %v6150_v51 }
 0x340   :  { %v6097_v43 = vpop.permute.xlu0 %1109  ;;  %4825 = vrcp.f32 %v6152_v23  ;;  %vm6224_vm11 = vcmp.eq.f32.partialorder %v1473_v30, 8.507059e+37  ;;  %v1430_v30 = vand.u32 2147483648, %v6130_v58 }
 0x341   :  { %v6144_v47 = vpop.eup %4815  ;;  %4827 = vrcp.f32 %v6161_v45 }
 0x342   :  { %v6148_v10 = vpop.eup %4817  ;;  %v1435_v26 = vmul.f32 %v6144_v47, %v6111_v22  ;;  %4829 = vrcp.f32 %v6168_v12  ;;  %vm1440_vm12 = vweird.f32 %v6144_v47 }
 0x343   :  { %v1465_v16 = vmul.f32 %v6148_v10, %v6115_v0  ;;  %v6158_v17 = vpop.eup %4819  ;;  %vm1470_vm6 = vweird.f32 %v6148_v10  ;;  %vm6242_vm14 = vmor %vm1439_vm13, %vm1440_vm12  ;;  %vm1484_vm13 = vweird.f32 %v6150_v51 }
 0x344   :  { %v6165_v39 = vpop.eup %4821  ;;  %v1436_v7 = vsub.f32 1.0, %v1435_v26  ;;  %v1450_v61 = vmul.f32 %v6158_v17, %v6127_v3  ;;  %vm6256_vm0 = vmor %vm1469_vm7, %vm1470_vm6  ;;  %vm1455_vm15 = vweird.f32 %v6158_v17 }
 0x345   :  { %v1466_v40 = vsub.f32 1.0, %v1465_v16  ;;  %v1420_v48 = vmul.f32 %v6165_v39, %v6130_v58  ;;  %v6180_v42 = vpop.eup %4823  ;;  %vm6296_vm2 = vmor %vm1454_vm10, %vm1455_vm15  ;;  %vm1425_vm8 = vweird.f32 %v6165_v39  ;;  %vm1529_vm15 = vweird.f32 %v6168_v12 }
 0x346   :  { %v6108_v37 = vpop.permute.xlu1 %1111  ;;  %v1437_v6 = vmul.f32 %v6144_v47, %v1436_v7  ;;  %v6184_v53 = vpop.eup %4825  ;;  %v1451_v24 = vsub.f32 1.0, %v1450_v61  ;;  %v6198_v26 = vmul.f32 %v6180_v42, %v6150_v51  ;;  %v1446_v61 = vor.u32 1.1754944e-38, %v1445_v44  ;;  %vm6341_vm7 = vmor %vm1424_vm3, %vm1425_vm8 }
 0x347   :  { %v6113_v62 = vpop.permute.xlu2 %1155  ;;  %v1467_v63 = vmul.f32 %v6148_v10, %v1466_v40  ;;  %v1421_v28 = vsub.f32 1.0, %v1420_v48  ;;  %v6205_v16 = vpop.eup %4827  ;;  %v6209_v35 = vmul.f32 %v6184_v53, %v6152_v23  ;;  %vm1485_vm6 = vweird.f32 %v6180_v42 }
 0x348   :  { %v6118_v32 = vpop.permute.xlu0 %1113  ;;  %v1438_v7 = vadd.f32 %v6144_v47, %v1437_v6  ;;  %v6219_v40 = vpop.eup %4829  ;;  %v1452_v1 = vmul.f32 %v6158_v17, %v1451_v24  ;;  %v1476_v6 = vor.u32 1.1754944e-38, %v1475_v41  ;;  %v6233_v44 = vmul.f32 %v6205_v16, %v6161_v45 }
 0x349   :  { %8577 = vst [vmem:[#allocation60_spill] sm:$0xff] %v6219_v40  ;;  %v1468_v48 = vadd.f32 %v6148_v10, %v1467_v63  ;;  %v1309_v63 = vadd.f32 %v6065_v29, %v5875_v33  ;;  %v1404_v24 = vadd.f32 %v6067_v20, %v1356_v11  ;;  %v1496_v41 = vsub.f32 1.0, %v6209_v35 }
 0x34a   :  { %v1442_v33 = vsel %vm6242_vm14, %v6144_v47, %v1438_v7  ;;  %v1453_v22 = vadd.f32 %v6158_v17, %v1452_v1  ;;  %v1428_v11 = vand.u32 2147483647, %v6130_v58  ;;  %v1310_v47 = vadd.f32 %v6069_v25, %v5879_v56  ;;  %vm6392_vm14 = vmor %vm1484_vm13, %vm1485_vm6 }
 0x34b   :  { %v1472_v20 = vsel %vm6256_vm0, %v6148_v10, %v1468_v48  ;;  %v1461_v35 = vor.u32 1.1754944e-38, %v1460_v2  ;;  %v1511_v10 = vsub.f32 1.0, %v6233_v44  ;;  %v6277_v48 = vadd.f32 1e-20, %v1404_v24 }
 0x34c   :  { %v1357_v1 = vadd.f32 %v6057_v49, %v1309_v63  ;;  %v1422_v29 = vmul.f32 %v6165_v39, %v1421_v28  ;;  %v6284_v56 = vsel %vm6215_vm4, %v1446_v61, %v1442_v33  ;;  %v6288_v25 = vsel %vm6224_vm11, %v1476_v6, %v1472_v20  ;;  %v1964_v20 = vld [vmem:[#allocation8 + $0x468] sm:$0xff] }
 0x34d   :  { %v1457_v9 = vsel %vm6296_vm2, %v6158_v17, %v1453_v22  ;;  %vm6308_vm5 = vcmp.eq.f32.partialorder %v1428_v11, 8.507059e+37  ;;  %v1431_v6 = vor.u32 1.1754944e-38, %v1430_v30  ;;  %v1505_v2 = vand.u32 2147483648, %v6152_v23  ;;  %v1743_v22 = vld [vmem:[#allocation8 + $0x328] sm:$0xff]  ;;  %1979 = vmatpush.msrb.mxu3 %v1964_v20 }
 0x34e   :  { %v6134_v50 = vpop.permute.xlu1 %1157  ;;  %4831 = vrcp.f32 %v6277_v48  ;;  %v1488_v63 = vand.u32 2147483647, %v6150_v51  ;;  %v1490_v17 = vand.u32 2147483648, %v6150_v51  ;;  %v1144_v33 = vadd.f32 %v6097_v43, %v5913_v31  ;;  %v1963_v31 = vld [vmem:[#allocation8 + $0x460] sm:$0xff] }
 0x34f   :  { %v6138_v21 = vpop.permute.xlu2 %1119  ;;  %v1143_v43 = vadd.f32 %v6085_v57, %v5935_v54  ;;  %v1145_v57 = vadd.f32 %v6108_v37, %v5923_v34  ;;  %1980 = vmatpush.msrb.mxu3 %v1963_v31  ;;  %vm1500_vm4 = vweird.f32 %v6184_v53  ;;  %v1741_v34 = vld [vmem:[#allocation8 + $0x318] sm:$0xff]  ;;  %v1961_v37 = vld [vmem:[#allocation8 + $0x450] sm:$0xff]  ;;  %v1533_v20 = vand.u32 2147483647, %v6168_v12 }
 0x350   :  { %8572 = vst [vmem:[#allocation57_spill] sm:$0xff] %v6138_v21  ;;  %v6142_v60 = vpop.permute.xlu0 %1159  ;;  %v1458_v21 = vand.u32 2147483647, %v6127_v3  ;;  %v6313_v3 = vadd.f32 %v6079_v19, %v1307_v18  ;;  %v1744_v18 = vld [vmem:[#allocation8 + $0x330] sm:$0xff]  ;;  %vm6353_vm12 = vcmp.eq.f32.partialorder %v1488_v63, 8.507059e+37  ;;  %vm1514_vm0 = vweird.f32 %v6161_v45  ;;  %vm6409_vm10 = vmor %vm1499_vm9, %vm1500_vm4 }
 0x351   :  { %1765 = vmatpush.msra.mxu0 %v1744_v18  ;;  %vm1515_vm2 = vweird.f32 %v6205_v16  ;;  %vm1615_vm3 = vcmask 1042434   ;;  %vm6453_vm9 = vcmp.eq.f32.partialorder %v1533_v20, 8.507059e+37  ;;  %vm8512_vm13 = vcmask 1043459  }
 0x352   :  { %vm6269_vm1 = vcmp.eq.f32.partialorder %v1458_v21, 8.507059e+37  ;;  %vm6445_vm8 = vmor %vm1514_vm0, %vm1515_vm2  ;;  %vm8510_vm6 = vcmask 1045509   ;;  %vm8615_vm0 = vcmask 261120  }
 0x353   :  { %v6326_v19 = vsel %vm6269_vm1, %v1461_v35, %v1457_v9  ;;  %v6346_v35 = vor.u32 1.1754944e-38, %v1505_v2  ;;  %1766 = vmatpush.msra.mxu0 %v1743_v22  ;;  %v1193_v2 = vadd.f32 %v6142_v60, %v1145_v57  ;;  %v1147_v60 = vadd.f32 %v6093_v59, %v5949_v15 }
 0x354   :  { %v1512_v59 = vmul.f32 %v6205_v16, %v1511_v10  ;;  %v1403_v15 = vadd.f32 %v6089_v55, %v6313_v3  ;;  %vm1612_vm1 = vcmask 1041409  }
 0x356   :  { %v6163_v27 = vpop.permute.xlu1 %1117 }
 0x357   :  { %v6170_v13 = vpop.permute.xlu2 %1121 }
 0x358   :  { %8573 = vst [vmem:[#allocation58_spill] sm:$0xff] %v6170_v13  ;;  %v6172_v38 = vpop.permute.xlu0 %1161  ;;  %v1405_v13 = vadd.f32 %v6087_v52, %v1357_v1  ;;  %v1423_v52 = vadd.f32 %v6165_v39, %v1422_v29  ;;  %v1742_v1 = vld [vmem:[#allocation8 + $0x320] sm:$0xff]  ;;  %v1962_v29 = vld [vmem:[#allocation8 + $0x458] sm:$0xff] }
 0x359   :  { %1767 = vmatpush.msra.mxu0 %v1742_v1  ;;  %1981 = vmatpush.msrb.mxu3 %v1962_v29  ;;  %v8603_v1 = vld [vmem:[#allocation51_spill] sm:$0xff]  ;;  %v8604_v29 = vld [vmem:[#allocation57_spill] sm:$0xff] }
 0x35a   :  { %v6329_v11 = vadd.f32 1e-20, %v1405_v13  ;;  %v1427_v54 = vsel %vm6341_vm7, %v6165_v39, %v1423_v52  ;;  %v6364_v39 = vpop.eup %4831  ;;  %v1149_v57 = vadd.f32 %v8604_v29, %v8603_v1  ;;  %vm8511_vm7 = vcmask 1044484  }
 0x35b   :  { %1768 = vmatpush.msra.mxu0 %v1741_v34  ;;  %1982 = vmatpush.msrb.mxu3 %v1961_v37  ;;  %vm1560_vm2 = vweird.f32 %v6364_v39 }
 0x35c   :  { %4833 = vrcp.f32 %v6329_v11 }
 0x35e   :  { %v6192_v36 = vpop.permute.xlu1 %1205 }
 0x35f   :  { %v6203_v14 = vpop.permute.xlu2 %1209 }
 0x360   :  { %8574 = vst [vmem:[#allocation59_spill] sm:$0xff] %v6203_v14  ;;  %v6211_v4 = vpop.permute.xlu0 %1163  ;;  %v1481_v14 = vsub.f32 1.0, %v6198_v26  ;;  %v6249_v26 = vmul.f32 %v6219_v40, %v6168_v12  ;;  %v1358_v40 = vadd.f32 %v6083_v8, %v1310_v47  ;;  %v1503_v47 = vand.u32 2147483647, %v6152_v23  ;;  %v8602_v23 = vld [vmem:[#allocation60_spill] sm:$0xff] }
 0x362   :  { %v1526_v8 = vsub.f32 1.0, %v6249_v26  ;;  %v1406_v24 = vadd.f32 %v6077_v5, %v1358_v40  ;;  %v1482_v30 = vmul.f32 %v6180_v42, %v1481_v14  ;;  %v1192_v5 = vadd.f32 %v6134_v50, %v1144_v33 }
 0x363   :  { %v1497_v14 = vmul.f32 %v6184_v53, %v1496_v41  ;;  %v1491_v50 = vor.u32 1.1754944e-38, %v1490_v17  ;;  %v1191_v41 = vadd.f32 %v6113_v62, %v1143_v43  ;;  %v1146_v62 = vadd.f32 %v6118_v32, %v5925_v46 }
 0x364   :  { %v6357_v49 = vadd.f32 1e-20, %v1406_v24  ;;  %v1240_v13 = vadd.f32 %v6192_v36, %v1192_v5  ;;  %v1483_v52 = vadd.f32 %v6180_v42, %v1482_v30  ;;  %v1432_v36 = vsel %vm6308_vm5, %v1431_v6, %v1427_v54 }
 0x365   :  { %v1498_v24 = vadd.f32 %v6184_v53, %v1497_v14  ;;  %vm6377_vm11 = vcmp.eq.f32.partialorder %v1503_v47, 8.507059e+37  ;;  %v1535_v46 = vand.u32 2147483648, %v6168_v12  ;;  %v1194_v32 = vadd.f32 %v6172_v38, %v1146_v62  ;;  %v8598_v38 = vld [vmem:[#allocation50_spill] sm:$0xff]  ;;  %v6424_v47 = vpop.eup %4833 }
 0x366   :  { %v6273_v7 = vpop.permute.xlu1 %1207  ;;  %v1448_v61 = vmul.f32 %v6284_v56, %v1240_v13  ;;  %v1195_v56 = vadd.f32 %v6211_v4, %v1147_v60  ;;  %v1487_v44 = vsel %vm6392_vm14, %v6180_v42, %v1483_v52  ;;  %v1527_v22 = vmul.f32 %v8602_v23, %v1526_v8  ;;  %v8608_v13 = vld [vmem:[#allocation58_spill] sm:$0xff] }
 0x367   :  { %v6300_v28 = vpop.permute.xlu2 %1169  ;;  %v1241_v18 = vadd.f32 %v6273_v7, %v1193_v2  ;;  %v1148_v7 = vadd.f32 %v6163_v27, %v8598_v38  ;;  %v8601_v55 = vld [vmem:[#allocation59_spill] sm:$0xff]  ;;  %v1502_v27 = vsel %vm6409_vm10, %v6184_v53, %v1498_v24  ;;  %v1492_v40 = vsel %vm6353_vm12, %v1491_v50, %v1487_v44  ;;  %vm8616_vm10 = vmmov %vm8615_vm0 }
 0x368   :  { %v6290_v21 = vpop.permute.xlu0 %1165  ;;  %v1242_v10 = vadd.f32 %v8601_v55, %v1194_v32  ;;  %v1611_v43 = vrot.slane %v1448_v61, 7  ;;  %v1513_v53 = vadd.f32 %v6205_v16, %v1512_v59  ;;  %v1518_v8 = vand.u32 2147483647, %v6161_v45  ;;  %v8621_v24 = vld [vmem:[#allocation55_spill] sm:$0xff] }
 0x369   :  { %v1196_v30 = vadd.f32 %v6290_v21, %v1148_v7  ;;  %v1463_v42 = vmul.f32 %v6326_v19, %v1241_v18  ;;  %v1520_v14 = vand.u32 2147483648, %v6161_v45  ;;  %vm1530_vm5 = vweird.f32 %v8602_v23 }
 0x36a   :  { %v1478_v21 = vmul.f32 %v6288_v25, %v1242_v10  ;;  %v1507_v58 = vsel %vm6377_vm11, %v6346_v35, %v1502_v27  ;;  %v1528_v50 = vadd.f32 %v8602_v23, %v1527_v22  ;;  %v8607_v25 = vld [vmem:[#allocation52_spill] sm:$0xff]  ;;  %v1517_v35 = vsel %vm6445_vm8, %v6205_v16, %v1513_v53  ;;  %vm6466_vm12 = vmor %vm1529_vm15, %vm1530_vm5 }
 0x36b   :  { %v1614_v54 = vrot.slane %v1463_v42, 6  ;;  %v1150_v34 = vadd.f32 %v8608_v13, %v8607_v25  ;;  %v1536_v33 = vor.u32 1.1754944e-38, %v1535_v46  ;;  %v1521_v60 = vor.u32 1.1754944e-38, %v1520_v14 }
 0x36c   :  { %vm1519_vm4 = vcmp.eq.f32.partialorder %v1518_v8, 8.507059e+37  ;;  %v6474_v32 = vadd.f32 1e-20, %v1403_v15  ;;  %4835 = vrcp.f32 %v6357_v49  ;;  %vm8509_vm11 = vcmask 1046534   ;;  %v645_v15 = vpop.f32.mrf.mxu1 }
 0x36d   :  { %v1198_v16 = vadd.f32 %v6300_v28, %v1150_v34  ;;  %v1522_v59 = vsel %vm1519_vm4, %v1521_v60, %v1517_v35  ;;  %vm8508_vm14 = vcmask 1047559   ;;  %v8617_v34 = vld [vmem:[#allocation54_spill] sm:$0xff]  ;;  %vm1559_vm15 = vweird.f32 %v6277_v48 }
 0x36e   :  { %v1204_v0 = vpop.permute.xlu1 %1203  ;;  %4837 = vrcp.f32 %v6474_v32  ;;  %v1580_v52 = vand.u32 2147483648, %v6329_v11  ;;  %vm1574_vm8 = vweird.f32 %v6329_v11  ;;  %vm6535_vm4 = vmor %vm1559_vm15, %vm1560_vm2 }
 0x36f   :  { %v1239_v63 = vadd.f32 %v1204_v0, %v1191_v41  ;;  %v6374_v17 = vpop.permute.xlu2 %1125 }
 0x370   :  { %v6361_v9 = vpop.permute.xlu0 %1167 }
 0x371   :  { %v1433_v3 = vmul.f32 %v1432_v36, %v1239_v63  ;;  %v1197_v45 = vadd.f32 %v6361_v9, %v1149_v57  ;;  %v1617_v63 = vrot.slane %v1478_v21, 5  ;;  %v1532_v9 = vsel %vm6466_vm12, %v8602_v23, %v1528_v50 }
 0x372   :  { %v1537_v28 = vsel %vm6453_vm9, %v1536_v33, %v1532_v9  ;;  %v1565_v50 = vand.u32 2147483648, %v6277_v48  ;;  %vm1575_vm9 = vweird.f32 %v6424_v47  ;;  %v1578_v9 = vand.u32 2147483647, %v6329_v11 }
 0x373   :  { %v1613_v19 = vsel %vm1612_vm1, %v1611_v43, %v1433_v3  ;;  %v1555_v43 = vmul.f32 %v6364_v39, %v6277_v48 }
 0x374   :  { %v1616_v62 = vsel %vm1615_vm3, %v1614_v54, %v1613_v19 }
 0x375   :  { %v1619_v12 = vsel %vm8512_vm13, %v1617_v63, %v1616_v62  ;;  %v1556_v14 = vsub.f32 1.0, %v1555_v43  ;;  %v1566_v63 = vor.u32 1.1754944e-38, %v1565_v50 }
 0x376   :  { %v1212_v4 = vpop.permute.xlu1 %1211 }
 0x377   :  { %v1243_v31 = vadd.f32 %v1212_v4, %v1195_v56  ;;  %v6451_v2 = vpop.permute.xlu2 %1123  ;;  %v6478_v56 = vld [vmem:[#allocation8 + $0x288] ss:$0 sm:$0xff]  ;;  %v1557_v25 = vmul.f32 %v6364_v39, %v1556_v14 }
 0x378   :  { %v1214_v5 = vpop.permute.xlu0 %1213  ;;  %v646_v27 = vadd.f32 %v6478_v56, %v645_v15 }
 0x379   :  { %v1244_v26 = vadd.f32 %v1214_v5, %v1196_v30  ;;  %v1493_v0 = vmul.f32 %v1492_v40, %v1243_v31  ;;  %v6488_v30 = vpop.eup %4835  ;;  %v1570_v40 = vmul.f32 %v6424_v47, %v6329_v11  ;;  %v1558_v60 = vadd.f32 %v6364_v39, %v1557_v25 }
 0x37a   :  { %v6492_v5 = vpop.eup %4837  ;;  %vm1590_vm12 = vweird.f32 %v6488_v30  ;;  %v1550_v11 = vand.u32 2147483648, %v6474_v32 }
 0x37b   :  { %v1508_v37 = vmul.f32 %v1507_v58, %v1244_v26  ;;  %v1620_v36 = vrot.slane %v1493_v0, 4  ;;  %v1585_v26 = vmul.f32 %v6488_v30, %v6357_v49  ;;  %v8613_v0 = vld [vmem:[#allocation19_spill] sm:$0xff]  ;;  %v1540_v21 = vmul.f32 %v6492_v5, %v6474_v32 }
 0x37c   :  { %v1571_v19 = vsub.f32 1.0, %v1570_v40  ;;  %v1563_v58 = vand.u32 2147483647, %v6277_v48  ;;  %v1562_v15 = vsel %vm6535_vm4, %v6364_v39, %v1558_v60  ;;  %vm1545_vm15 = vweird.f32 %v6492_v5  ;;  %v1933_v48 = vld [vmem:[#allocation8 + $0x418] sm:$0xff]  ;;  %v1932_v39 = vld [vmem:[#allocation8 + $0x410] sm:$0xff] }
 0x37d   :  { %v1623_v61 = vrot.slane %v1508_v37, 3  ;;  %v1622_v38 = vsel %vm8511_vm7, %v1620_v36, %v1619_v12  ;;  %v1586_v29 = vsub.f32 1.0, %v1585_v26  ;;  %v1541_v41 = vsub.f32 1.0, %v1540_v21 }
 0x37e   :  { %v1216_v18 = vpop.permute.xlu1 %1215  ;;  %v1572_v13 = vmul.f32 %v6424_v47, %v1571_v19  ;;  %v1152_v37 = vadd.f32 %v6374_v17, %v8617_v34  ;;  %vm6518_vm5 = vcmp.eq.f32.partialorder %v1563_v58, 8.507059e+37  ;;  %v648_v19 = vpop.f32.mrf.mxu1  ;;  %v8629_v34 = vld [vmem:[#allocation21_spill] sm:$0xff] }
 0x37f   :  { %v1245_v20 = vadd.f32 %v1216_v18, %v1197_v45  ;;  %v1625_v55 = vsel %vm8510_vm6, %v1623_v61, %v1622_v38  ;;  %v1176_v4 = vpop.permute.xlu2 %1175  ;;  %v1587_v35 = vmul.f32 %v6488_v30, %v1586_v29  ;;  %v8618_v45 = vld [vmem:[#allocation53_spill] sm:$0xff]  ;;  %v1542_v18 = vmul.f32 %v6492_v5, %v1541_v41 }
 0x380   :  { %v1218_v6 = vpop.permute.xlu0 %1217  ;;  %v1581_v61 = vor.u32 1.1754944e-38, %v1580_v52  ;;  %v8637_v52 = vld [vmem:[#allocation25_spill] sm:$0xff] }
 0x381   :  { %v1246_v46 = vadd.f32 %v1218_v6, %v1198_v16  ;;  %v1523_v7 = vmul.f32 %v1522_v59, %v1245_v20  ;;  %v1573_v16 = vadd.f32 %v6424_v47, %v1572_v13  ;;  %v1588_v12 = vadd.f32 %v6488_v30, %v1587_v35  ;;  %v8640_v35 = vld [vmem:[#allocation23_spill] sm:$0xff]  ;;  %v1898_v59 = vld [vmem:[#allocation8 + $0x3a8] sm:$0xff] }
 0x383   :  { %v1538_v51 = vmul.f32 %v1537_v28, %v1246_v46  ;;  %v1626_v44 = vrot.slane %v1523_v7, 2  ;;  %v1593_v7 = vand.u32 2147483647, %v6357_v49  ;;  %v1595_v28 = vand.u32 2147483648, %v6357_v49 }
 0x385   :  { %v1629_v10 = vrot.slane %v1538_v51, 1  ;;  %v1628_v3 = vsel %vm8509_vm11, %v1626_v44, %v1625_v55  ;;  %v1543_v44 = vadd.f32 %v6492_v5, %v1542_v18 }
 0x386   :  { %v1128_v23 = vpop.permute.xlu1 %1127 }
 0x387   :  { %v1631_v22 = vsel %vm8508_vm14, %v1629_v10, %v1628_v3  ;;  %v1222_v57 = vpop.permute.xlu2 %1221  ;;  %v1153_v62 = vadd.f32 %v1128_v23, %v8618_v45  ;;  %v8628_v3 = vld [vmem:[#allocation56_spill] sm:$0xff] }
 0x388   :  { %v1640_v42 = vadd.f32 %v1631_v22, %v646_v27  ;;  %v1130_v31 = vpop.permute.xlu0 %1129  ;;  %v1151_v27 = vadd.f32 %v6451_v2, %v8628_v3  ;;  %v1567_v22 = vsel %vm6518_vm5, %v1566_v63, %v1562_v15  ;;  %vm8630_vm5 = vcmask 261120   ;;  %v8642_v45 = vld [vmem:[#allocation24_spill] sm:$0xff] }
 0x389   :  { %v1154_v33 = vadd.f32 %v1130_v31, %v8621_v24  ;;  %v1201_v46 = vadd.f32 %v1176_v4, %v1153_v62  ;;  %v1705_v62 = vpop.f32.mrf.mxu2  ;;  %v1934_v15 = vld [vmem:[#allocation8 + $0x420] sm:$0xff] }
 0x38a   :  { %v1642_v53 = vmax.f32 %v1640_v42, 0.0  ;;  %v1596_v42 = vor.u32 1.1754944e-38, %v1595_v28  ;;  %v1896_v28 = vld [vmem:[#allocation8 + $0x398] sm:$0xff]  ;;  %v1893_v3 = vld [vmem:[#allocation8 + $0x380] sm:$0xff] }
 0x38c   :  { %v6499_v8 = vadd.f32 %v1642_v53, %v8613_v0 }
 0x38e   :  { %8614 = vst [vmem:[#allocation50_spill] sm:$0xff] %v6499_v8  ;;  %4679 = vmatmul.msk.f32.vlgmr.msra.gmra.mxu0 %vm8615_vm0, %v6499_v8  ;;  %4689 = vmatmul.msk.f32.vlgmr.msrb.gmra.mxu3 %vm8616_vm10, %v6499_v8  ;;  %v1174_v1 = vpop.permute.xlu1 %1173  ;;  %vm1589_vm0 = vweird.f32 %v6357_v49  ;;  %vm6549_vm10 = vmor %vm1574_vm8, %vm1575_vm9  ;;  %vm1544_vm8 = vweird.f32 %v6474_v32  ;;  %vm1579_vm9 = vcmp.eq.f32.partialorder %v1578_v9, 8.507059e+37  ;;  %v1900_v9 = vld [vmem:[#allocation8 + $0x3b8] sm:$0xff] }
 0x38f   :  { %v1200_v17 = vadd.f32 %v1174_v1, %v1152_v37  ;;  %v1226_v55 = vpop.permute.xlu2 %1225  ;;  %v1577_v49 = vsel %vm6549_vm10, %v6424_v47, %v1573_v16  ;;  %vm6560_vm2 = vmor %vm1589_vm0, %vm1590_vm12  ;;  %v1548_v47 = vand.u32 2147483647, %v6474_v32  ;;  %vm1594_vm12 = vcmp.eq.f32.partialorder %v1593_v7, 8.507059e+37  ;;  %v1935_v7 = vld [vmem:[#allocation8 + $0x428] sm:$0xff] }
 0x390   :  { %v1172_v54 = vpop.permute.xlu0 %1171  ;;  %v1592_v4 = vsel %vm6560_vm2, %v6488_v30, %v1588_v12  ;;  %vm1546_vm4 = vmor %vm1544_vm8, %vm1545_vm15  ;;  %v1582_v40 = vsel %vm1579_vm9, %v1581_v61, %v1577_v49  ;;  %v1551_v30 = vor.u32 1.1754944e-38, %v1550_v11  ;;  %vm8631_vm10 = vcmask 1043456   ;;  %v1899_v61 = vld [vmem:[#allocation8 + $0x3b0] sm:$0xff]  ;;  %v1894_v49 = vld [vmem:[#allocation8 + $0x388] sm:$0xff] }
 0x391   :  { %v1248_v51 = vadd.f32 %v1222_v57, %v1200_v17  ;;  %v1199_v31 = vadd.f32 %v1172_v54, %v1151_v27  ;;  %v1547_v2 = vsel %vm1546_vm4, %v6492_v5, %v1543_v44  ;;  %v1597_v26 = vsel %vm1594_vm12, %v1596_v42, %v1592_v4  ;;  %vm8632_vm15 = vmmov %vm8631_vm10  ;;  %v1708_v36 = vpop.f32.mrf.mxu2  ;;  %v4756_v44 = vld [vmem:[#allocation8 + $0x338] ss:$0 sm:$0xff]  ;;  %v1931_v27 = vld [vmem:[#allocation8 + $0x408] sm:$0xff] }
 0x392   :  { %vm1549_vm0 = vcmp.eq.f32.partialorder %v1548_v47, 8.507059e+37  ;;  %v649_v54 = vadd.f32 %v6478_v56, %v648_v19  ;;  %vm8633_vm2 = vmmov %vm8631_vm10  ;;  %v8635_v56 = vld [vmem:[#allocation22_spill] sm:$0xff]  ;;  %vm8636_vm9 = vcmask 97280   ;;  %v1930_v42 = vld [vmem:[#allocation8 + $0x400] sm:$0xff] }
 0x393   :  { %v1568_v43 = vmul.f32 %v1567_v22, %v1248_v51  ;;  %v1552_v21 = vsel %vm1549_vm0, %v1551_v30, %v1547_v2  ;;  %vm8634_vm8 = vmmov %vm8630_vm5  ;;  %v1895_v51 = vld [vmem:[#allocation8 + $0x390] sm:$0xff]  ;;  %v1892_v22 = vld [vmem:[#allocation8 + $0x378] sm:$0xff] }
 0x394   :  { %vm8638_vm12 = vmmov %vm8636_vm9 }
 0x395   :  { %v1632_v1 = vrot.slane %v1568_v43, 7  ;;  %vm8639_vm4 = vmmov %vm8633_vm2 }
 0x396   :  { %v1178_v20 = vpop.permute.xlu1 %1177  ;;  %vm8641_vm0 = vmmov %vm8636_vm9 }
 0x397   :  { %v1202_v6 = vadd.f32 %v1178_v20, %v1154_v33  ;;  %v1938_v20 = vld [vmem:[#allocation8 + $0x440] sm:$0xff] }
 0x398   :  { %v1224_v38 = vpop.permute.xlu0 %1223 }
 0x399   :  { %v1249_v10 = vadd.f32 %v1224_v38, %v1201_v46  ;;  %v1250_v23 = vadd.f32 %v1226_v55, %v1202_v6  ;;  %v1711_v63 = vpop.f32.mrf.mxu2  ;;  %v1937_v6 = vld [vmem:[#allocation8 + $0x438] sm:$0xff]  ;;  %v1936_v38 = vld [vmem:[#allocation8 + $0x430] sm:$0xff]  ;;  %v1897_v46 = vld [vmem:[#allocation8 + $0x3a0] sm:$0xff] }
 0x39a   :  { %v6610_v55 = vld [vmem:[#allocation8 + $0x310] ss:$0 sm:$0xff] }
 0x39b   :  { %v1583_v53 = vmul.f32 %v1582_v40, %v1249_v10  ;;  %v1598_v14 = vmul.f32 %v1597_v26, %v1250_v23  ;;  %v1706_v23 = vadd.f32 %v6610_v55, %v1705_v62  ;;  %v1709_v47 = vadd.f32 %v6610_v55, %v1708_v36 }
 0x39d   :  { %v1634_v57 = vrot.slane %v1583_v53, 6  ;;  %v1636_v58 = vrot.slane %v1598_v14, 5  ;;  %v1929_v14 = vld [vmem:[#allocation8 + $0x3f8] sm:$0xff] }
 0x39e   :  { %v1220_v0 = vpop.permute.xlu1 %1219 }
 0x39f   :  { %v1247_v32 = vadd.f32 %v1220_v0, %v1199_v31  ;;  %v1712_v31 = vadd.f32 %v6610_v55, %v1711_v63  ;;  %v1891_v0 = vld [vmem:[#allocation8 + $0x370] sm:$0xff]  ;;  %v1889_v63 = vld [vmem:[#allocation8 + $0x360] sm:$0xff] }
 0x3a1   :  { %v1553_v29 = vmul.f32 %v1552_v21, %v1247_v32  ;;  %v1714_v24 = vpop.f32.mrf.mxu2 }
 0x3a2   :  { %v1715_v43 = vadd.f32 %v6610_v55, %v1714_v24  ;;  %v1927_v24 = vld [vmem:[#allocation8 + $0x3e8] sm:$0xff] }
 0x3a3   :  { %v1633_v50 = vsel %vm1612_vm1, %v1632_v1, %v1553_v29  ;;  %v1890_v29 = vld [vmem:[#allocation8 + $0x368] sm:$0xff] }
 0x3a4   :  { %v1635_v41 = vsel %vm1615_vm3, %v1634_v57, %v1633_v50  ;;  %v1928_v57 = vld [vmem:[#allocation8 + $0x3f0] sm:$0xff] }
 0x3a5   :  { %v1637_v5 = vsel %vm8512_vm13, %v1636_v58, %v1635_v41 }
 0x3a6   :  { %v1641_v25 = vadd.f32 %v1637_v5, %v649_v54 }
 0x3a8   :  { %v1643_v13 = vmax.f32 %v1641_v25, 0.0 }
 0x3a9   :  { %v1717_v33 = vpop.f32.mrf.mxu2 }
 0x3aa   :  { %v6582_v37 = vadd.f32 %v1643_v13, %v8629_v34  ;;  %v1718_v40 = vadd.f32 %v6610_v55, %v1717_v33 }
 0x3ac   :  { %4680 = vmatmul.msk.f32.gmra.mxu0 %vm8630_vm5, %v6582_v37  ;;  %4681 = vmatpush.msk.msra.mxu1 %vm8631_vm10, %v6582_v37  ;;  %vm8643_vm5 = vmmov %vm8641_vm0 }
 0x3ad   :  { %4683 = vmatpush.msk.msrb.mxu0 %vm8632_vm15, %v6582_v37  ;;  %4687 = vmatpush.msk.msra.mxu2 %vm8633_vm2, %v6582_v37  ;;  %vm8644_vm10 = vmmov %vm8634_vm8  ;;  %vm8645_vm15 = vcmask 523264   ;;  %vm8646_vm2 = vcmask 785408  }
 0x3ae   :  { %4690 = vmatmul.msk.f32.gmra.mxu3 %vm8634_vm8, %v6582_v37  ;;  %1805 = vmatpush.msra.mxu1 %v6499_v8 }
 0x3af   :  { %1825 = vmatpush.msrb.mxu0 %v6499_v8  ;;  %1865 = vmatpush.msra.mxu2 %v6499_v8 }
 0x3b0   :  { %4682 = vmatmul.msk.f32.vlgmr.msra.gmra.mxu1 %vm8636_vm9, %v8635_v56  ;;  %4688 = vmatmul.msk.f32.vlgmr.msra.gmra.mxu2 %vm8638_vm12, %v8637_v52 }
 0x3b1   :  { %4685 = vmatpush.msk.msrb.mxu1 %vm8639_vm4, %v6582_v37  ;;  %v1720_v60 = vpop.f32.mrf.mxu2  ;;  %1903 = vmatpush.msra.mxu0 %v1900_v9 }
 0x3b2   :  { %v1721_v2 = vadd.f32 %v6610_v55, %v1720_v60 }
 0x3b3   :  { %1845 = vmatpush.msrb.mxu1 %v6499_v8  ;;  %1904 = vmatpush.msra.mxu0 %v1899_v61 }
 0x3b4   :  { %4684 = vmatmul.msk.f32.vlgmr.msrb.gmra.mxu0 %vm8641_vm0, %v8640_v35 }
 0x3b5   :  { %1941 = vmatpush.msra.mxu1 %v1938_v20  ;;  %1905 = vmatpush.msra.mxu0 %v1898_v59 }
 0x3b7   :  { %1942 = vmatpush.msra.mxu1 %v1937_v6  ;;  %1906 = vmatpush.msra.mxu0 %v1897_v46 }
 0x3b8   :  { %4686 = vmatmul.msk.f32.vlgmr.msrb.gmra.mxu1 %vm8643_vm5, %v8642_v45 }
 0x3b9   :  { %v1723_v17 = vpop.f32.mrf.mxu2  ;;  %1943 = vmatpush.msra.mxu1 %v1936_v38  ;;  %1907 = vmatpush.msra.mxu0 %v1896_v28  ;;  %v1926_v28 = vld [vmem:[#allocation8 + $0x3e0] sm:$0xff] }
 0x3ba   :  { %v1724_v53 = vadd.f32 %v6610_v55, %v1723_v17 }
 0x3bb   :  { %1944 = vmatpush.msra.mxu1 %v1935_v7  ;;  %1908 = vmatpush.msra.mxu0 %v1895_v51  ;;  %v1888_v7 = vld [vmem:[#allocation8 + $0x358] sm:$0xff] }
 0x3bd   :  { %1945 = vmatpush.msra.mxu1 %v1934_v15  ;;  %1909 = vmatpush.msra.mxu0 %v1894_v49 }
 0x3bf   :  { %1946 = vmatpush.msra.mxu1 %v1933_v48  ;;  %1910 = vmatpush.msra.mxu0 %v1893_v3 }
 0x3c1   :  { %v1726_v18 = vpop.f32.mrf.mxu2  ;;  %1947 = vmatpush.msra.mxu1 %v1932_v39  ;;  %1911 = vmatpush.msra.mxu0 %v1892_v22 }
 0x3c2   :  { %v1727_v26 = vadd.f32 %v6610_v55, %v1726_v18 }
 0x3c3   :  { %1948 = vmatpush.msra.mxu1 %v1931_v27  ;;  %1912 = vmatpush.msra.mxu0 %v1891_v0  ;;  %v3014_v0 = vld [vmem:[#allocation8 + $0x4d8] sm:$0xff] }
 0x3c5   :  { %1949 = vmatpush.msra.mxu1 %v1930_v42  ;;  %1913 = vmatpush.msra.mxu0 %v1890_v29  ;;  %v1925_v42 = vld [vmem:[#allocation8 + $0x3d8] sm:$0xff]  ;;  %v3008_v29 = vld [vmem:[#allocation8 + $0x4a8] sm:$0xff] }
 0x3c7   :  { %1950 = vmatpush.msra.mxu1 %v1929_v14  ;;  %1914 = vmatpush.msra.mxu0 %v1889_v63  ;;  %v3013_v14 = vld [vmem:[#allocation8 + $0x4d0] sm:$0xff]  ;;  %v3004_v63 = vld [vmem:[#allocation8 + $0x488] sm:$0xff] }
 0x3c9   :  { %v1729_v16 = vpop.f32.mrf.mxu2  ;;  %1951 = vmatpush.msra.mxu1 %v1928_v57  ;;  %1915 = vmatpush.msra.mxu0 %v1888_v7  ;;  %v3007_v57 = vld [vmem:[#allocation8 + $0x4a0] sm:$0xff] }
 0x3ca   :  { %v1730_v30 = vadd.f32 %v6610_v55, %v1729_v16 }
 0x3cb   :  { %1952 = vmatpush.msra.mxu1 %v1927_v24  ;;  %v3003_v24 = vld [vmem:[#allocation8 + $0x480] sm:$0xff] }
 0x3cd   :  { %1953 = vmatpush.msra.mxu1 %v1926_v28 }
 0x3cf   :  { %1954 = vmatpush.msra.mxu1 %v1925_v42  ;;  %v8648_v42 = vld [vmem:[#allocation31_spill] sm:$0xff] }
 0x3d1   :  { %v6608_v12 = vpop.f32.mrf.mxu2 }
 0x3d2   :  { %v1733_v6 = vadd.f32 %v6610_v55, %v6608_v12 }
 0x3d9   :  { %v6612_v11 = vpop.f32.mrf.mxu2 }
 0x3da   :  { %v1736_v12 = vadd.f32 %v6610_v55, %v6612_v11  ;;  %v1887_v11 = vld [vmem:[#allocation8 + $0x350] sm:$0xff] }
 0x3db   :  { %1916 = vmatpush.msra.mxu0 %v1887_v11 }
 0x3e1   :  { %v6627_v18 = vpop.f32.mrf.mxu2 }
 0x40b   :  { %v1770_v10 = vpop.f32.mrf.mxu0 }
 0x40c   :  { %v1771_v4 = vadd.f32 %v4756_v44, %v1770_v10 }
 0x40e   :  { %v1990_v32 = vperm.slane %v1771_v4, 0  ;;  %v1778_v21 = vrot.slane %v1771_v4, 1  ;;  %v1779_v19 = vrot.slane %v1771_v4, 2  ;;  %v1780_v1 = vrot.slane %v1771_v4, 3 }
 0x40f   :  { %v1781_v58 = vrot.slane %v1771_v4, 4  ;;  %v1782_v50 = vrot.slane %v1771_v4, 5  ;;  %v1783_v54 = vrot.slane %v1771_v4, 6  ;;  %v1784_v41 = vrot.slane %v1771_v4, 7 }
 0x410   :  { %v6623_v25 = vadd.f32 %v1990_v32, %v1706_v23  ;;  %v1991_v13 = vperm.slane %v1778_v21, 0  ;;  %v1992_v34 = vperm.slane %v1779_v19, 0  ;;  %v1993_v62 = vperm.slane %v1780_v1, 0  ;;  %v3012_v32 = vld [vmem:[#allocation8 + $0x4c8] sm:$0xff]  ;;  %v3011_v21 = vld [vmem:[#allocation8 + $0x4c0] sm:$0xff]  ;;  %v3010_v19 = vld [vmem:[#allocation8 + $0x4b8] sm:$0xff] }
 0x411   :  { %v1994_v33 = vperm.slane %v1781_v58, 0  ;;  %v1995_v60 = vperm.slane %v1782_v50, 0  ;;  %v1996_v17 = vperm.slane %v1783_v54, 0  ;;  %v1997_v61 = vperm.slane %v1784_v41, 0  ;;  %v3009_v1 = vld [vmem:[#allocation8 + $0x4b0] sm:$0xff] }
 0x412   :  { %v6629_v16 = vadd.f32 %v1991_v13, %v1709_v47  ;;  %v6631_v9 = vadd.f32 %v1992_v34, %v1712_v31  ;;  %v6633_v20 = vadd.f32 %v1993_v62, %v1715_v43  ;;  %v1886_v31 = vld [vmem:[#allocation8 + $0x348] sm:$0xff]  ;;  %v1924_v43 = vld [vmem:[#allocation8 + $0x3d0] sm:$0xff]  ;;  %v3006_v34 = vld [vmem:[#allocation8 + $0x498] sm:$0xff] }
 0x413   :  { %v6640_v51 = vadd.f32 %v1994_v33, %v1718_v40  ;;  %v6642_v48 = vadd.f32 %v1995_v60, %v1721_v2  ;;  %v6650_v3 = vadd.f32 %v1997_v61, %v1727_v26  ;;  %1917 = vmatpush.msra.mxu0 %v1886_v31  ;;  %1955 = vmatpush.msra.mxu1 %v1924_v43  ;;  %v1885_v40 = vld [vmem:[#allocation8 + $0x340] sm:$0xff]  ;;  %v1923_v2 = vld [vmem:[#allocation8 + $0x3c8] sm:$0xff]  ;;  %v3005_v62 = vld [vmem:[#allocation8 + $0x490] sm:$0xff] }
 0x414   :  { %v3016_v26 = vld [vmem:[#allocation8 + $0x4e8] sm:$0xff]  ;;  %v3002_v33 = vld [vmem:[#allocation8 + $0x478] sm:$0xff]  ;;  %v4758_v60 = vld [vmem:[#allocation8 + $0x3c0] ss:$0 sm:$0xff] }
 0x415   :  { %1918 = vmatpush.msra.mxu0 %v1885_v40  ;;  %1956 = vmatpush.msra.mxu1 %v1923_v2 }
 0x429   :  { %v1773_v5 = vpop.f32.mrf.mxu0 }
 0x42a   :  { %v6625_v36 = vadd.f32 %v4756_v44, %v1773_v5  ;;  %v6644_v44 = vadd.f32 %v1996_v17, %v1724_v53  ;;  %v3017_v53 = vld [vmem:[#allocation8 + $0x4f0] sm:$0xff] }
 0x42b   :  { %3020 = vmatpush.msra.mxu3 %v3017_v53 }
 0x42c   :  { %v1785_v59 = vrot.slane %v6625_v36, 1  ;;  %v1786_v38 = vrot.slane %v6625_v36, 2  ;;  %v1998_v46 = vperm.slane %v6625_v36, 0 }
 0x42d   :  { %v1807_v15 = vpop.f32.mrf.mxu1  ;;  %3021 = vmatpush.msra.mxu3 %v3016_v26 }
 0x42e   :  { %v1999_v10 = vperm.slane %v1785_v59, 0  ;;  %v2000_v49 = vperm.slane %v1786_v38, 0  ;;  %v6648_v39 = vadd.f32 %v1998_v46, %v1730_v30  ;;  %v3015_v30 = vld [vmem:[#allocation8 + $0x4e0] sm:$0xff] }
 0x42f   :  { %3022 = vmatpush.msra.mxu3 %v3015_v30 }
 0x430   :  { %v6652_v27 = vadd.f32 %v1999_v10, %v1733_v6  ;;  %v6654_v4 = vadd.f32 %v2000_v49, %v1736_v12 }
 0x431   :  { %v1827_v23 = vpop.f32.mrf.mxu0  ;;  %3023 = vmatpush.msra.mxu3 %v3014_v0 }
 0x432   :  { %1871 = vrot.lane.b32.xlu0 %v1827_v23, %s5175_s3 }
 0x433   :  { %v1867_v47 = vpop.f32.mrf.mxu2  ;;  %3024 = vmatpush.msra.mxu3 %v3013_v14 }
 0x434   :  { %1879 = vrot.lane.b32.xlu2 %v1867_v47, %s5177_s17 }
 0x435   :  { %v1847_v22 = vpop.f32.mrf.mxu1  ;;  %3025 = vmatpush.msra.mxu3 %v3012_v32 }
 0x436   :  { %1875 = vrot.lane.b32.xlu1 %v1847_v22, %s5176_s16 }
 0x437   :  { %3026 = vmatpush.msra.mxu3 %v3011_v21 }
 0x439   :  { %3027 = vmatpush.msra.mxu3 %v3010_v19  ;;  %v1787_v19 = vrot.slane %v6625_v36, 3 }
 0x43b   :  { %3028 = vmatpush.msra.mxu3 %v3009_v1  ;;  %v8649_v1 = vld [vmem:[#allocation33_spill] sm:$0xff] }
 0x43d   :  { %3029 = vmatpush.msra.mxu3 %v3008_v29 }
 0x43f   :  { %3030 = vmatpush.msra.mxu3 %v3007_v57 }
 0x441   :  { %3031 = vmatpush.msra.mxu3 %v3006_v34 }
 0x443   :  { %3032 = vmatpush.msra.mxu3 %v3005_v62 }
 0x445   :  { %3033 = vmatpush.msra.mxu3 %v3004_v63 }
 0x447   :  { %3034 = vmatpush.msra.mxu3 %v3003_v24 }
 0x449   :  { %3035 = vmatpush.msra.mxu3 %v3002_v33 }
 0x48e   :  { %v1880_v50 = vpop.permute.xlu2 %1879 }
 0x4a4   :  { %v1872_v58 = vpop.permute.xlu0 %1871 }
 0x4a5   :  { %v1882_v54 = vsel %vm8644_vm10, %v1807_v15, %v1872_v58 }
 0x4a8   :  { %v1876_v41 = vpop.permute.xlu1 %1875 }
 0x4a9   :  { %v1883_v5 = vsel %vm8645_vm15, %v1882_v54, %v1876_v41 }
 0x4aa   :  { %v1884_v13 = vsel %vm8646_vm2, %v1883_v5, %v1880_v50  ;;  %v8650_v50 = vld [vmem:[#allocation34_spill] sm:$0xff] }
 0x4ab   :  { %1919 = vmatmul.f32.vlgmr.msra.gmra.mxu0 %v1884_v13  ;;  %1957 = vmatmul.f32.vlgmr.msra.gmra.mxu1 %v1884_v13 }
 0x528   :  { %v1920_v17 = vpop.f32.mrf.mxu0 }
 0x529   :  { %v6662_v61 = vadd.f32 %v4758_v60, %v1920_v17 }
 0x52b   :  { %v2026_v6 = vadd.f32 %v6623_v25, %v6662_v61  ;;  %v2027_v59 = vadd.f32 %v6629_v16, %v6662_v61  ;;  %v2028_v38 = vadd.f32 %v6631_v9, %v6662_v61  ;;  %v2029_v46 = vadd.f32 %v6633_v20, %v6662_v61  ;;  %v8647_v25 = vld [vmem:[#allocation30_spill] sm:$0xff] }
 0x52c   :  { %v6674_v7 = vadd.f32 %v6640_v51, %v6662_v61  ;;  %v6705_v5 = vadd.f32 %v6642_v48, %v6662_v61 }
 0x52d   :  { %v4691_v28 = vmul.f32 -1.442695, %v2026_v6  ;;  %v2978_v15 = vmax.f32 %v2026_v6, 0.0  ;;  %v4692_v12 = vmul.f32 -1.442695, %v2027_v59  ;;  %v2979_v9 = vmax.f32 %v2027_v59, 0.0 }
 0x52e   :  { %v4693_v10 = vmul.f32 -1.442695, %v2028_v38  ;;  %v4694_v49 = vmul.f32 -1.442695, %v2029_v46  ;;  %v4695_v16 = vmul.f32 -1.442695, %v6674_v7 }
 0x52f   :  { %4839 = vpow2.f32 %v4691_v28  ;;  %v2990_v23 = vadd.f32 %v2978_v15, %v8647_v25  ;;  %v2991_v31 = vadd.f32 %v2979_v9, %v8648_v42  ;;  %v2980_v53 = vmax.f32 %v2028_v38, 0.0 }
 0x530   :  { %4841 = vpow2.f32 %v4692_v12  ;;  %v2981_v30 = vmax.f32 %v2029_v46, 0.0  ;;  %v2982_v41 = vmax.f32 %v6674_v7, 0.0  ;;  %v4696_v6 = vmul.f32 -1.442695, %v6705_v5 }
 0x531   :  { %3036 = vmatmul.f32.vlgmr.msra.gmra.mxu3 %v2990_v23  ;;  %4843 = vpow2.f32 %v4693_v10  ;;  %v2992_v29 = vadd.f32 %v2980_v53, %v8649_v1  ;;  %v6735_v42 = vadd.f32 %v6652_v27, %v6662_v61  ;;  %v6747_v1 = vadd.f32 %v6654_v4, %v6662_v61 }
 0x532   :  { %4845 = vpow2.f32 %v4694_v49  ;;  %v2993_v54 = vadd.f32 %v2981_v30, %v8650_v50 }
 0x533   :  { %4847 = vpow2.f32 %v4695_v16 }
 0x535   :  { %v4840_v20 = vpop.eup %4839 }
 0x536   :  { %v4842_v47 = vpop.eup %4841  ;;  %v6678_v51 = vadd.f32 1.0, %v4840_v20 }
 0x537   :  { %v4844_v22 = vpop.eup %4843  ;;  %v6680_v11 = vadd.f32 1.0, %v4842_v47 }
 0x538   :  { %v4846_v43 = vpop.eup %4845  ;;  %4849 = vrcp.f32 %v6678_v51  ;;  %v6684_v40 = vadd.f32 1.0, %v4844_v22  ;;  %v2095_v63 = vand.u32 2147483647, %v6678_v51  ;;  %v2097_v24 = vand.u32 2147483648, %v6678_v51 }
 0x539   :  { %v4848_v2 = vpop.eup %4847  ;;  %4851 = vrcp.f32 %v6680_v11  ;;  %3039 = vmatmul.f32.gmra.mxu3 %v2991_v31  ;;  %v6687_v26 = vadd.f32 1.0, %v4846_v43  ;;  %v2110_v32 = vand.u32 2147483647, %v6680_v11  ;;  %v2112_v21 = vand.u32 2147483648, %v6680_v11 }
 0x53a   :  { %4853 = vrcp.f32 %v6684_v40  ;;  %v6690_v0 = vadd.f32 1.0, %v4848_v2  ;;  %v2127_v14 = vand.u32 2147483648, %v6684_v40  ;;  %v2125_v57 = vand.u32 2147483647, %v6684_v40 }
 0x53b   :  { %4855 = vrcp.f32 %v6687_v26  ;;  %vm2106_vm8 = vweird.f32 %v6680_v11  ;;  %vm2121_vm9 = vweird.f32 %v6684_v40  ;;  %vm2136_vm12 = vweird.f32 %v6687_v26 }
 0x53c   :  { %4857 = vrcp.f32 %v6690_v0  ;;  %v2128_v34 = vor.u32 1.1754944e-38, %v2127_v14  ;;  %vm6713_vm4 = vcmp.eq.f32.partialorder %v2110_v32, 8.507059e+37  ;;  %v2113_v48 = vor.u32 1.1754944e-38, %v2112_v21 }
 0x53d   :  { %vm2091_vm0 = vweird.f32 %v6678_v51  ;;  %vm6720_vm5 = vcmp.eq.f32.partialorder %v2125_v57, 8.507059e+37  ;;  %v2140_v15 = vand.u32 2147483647, %v6687_v26  ;;  %v2142_v12 = vand.u32 2147483648, %v6687_v26 }
 0x53e   :  { %v4850_v58 = vpop.eup %4849  ;;  %4859 = vpow2.f32 %v4696_v6  ;;  %vm6729_vm15 = vcmp.eq.f32.partialorder %v2095_v63, 8.507059e+37  ;;  %v2098_v20 = vor.u32 1.1754944e-38, %v2097_v24  ;;  %v4700_v14 = vmul.f32 -1.442695, %v6735_v42 }
 0x53f   :  { %v4852_v13 = vpop.eup %4851  ;;  %v2087_v62 = vmul.f32 %v4850_v58, %v6678_v51  ;;  %vm2092_vm10 = vweird.f32 %v4850_v58  ;;  %v2143_v21 = vor.u32 1.1754944e-38, %v2142_v12 }
 0x540   :  { %v4854_v33 = vpop.eup %4853  ;;  %v2102_v60 = vmul.f32 %v4852_v13, %v6680_v11  ;;  %vm2107_vm2 = vweird.f32 %v4852_v13  ;;  %vm2093_vm11 = vmor %vm2091_vm0, %vm2092_vm10  ;;  %4861 = vpow2.f32 %v4700_v14  ;;  %v2983_v14 = vmax.f32 %v6705_v5, 0.0 }
 0x541   :  { %v4856_v59 = vpop.eup %4855  ;;  %v2117_v38 = vmul.f32 %v4854_v33, %v6684_v40  ;;  %3042 = vmatmul.f32.gmra.mxu3 %v2992_v29  ;;  %v2088_v28 = vsub.f32 1.0, %v2087_v62  ;;  %vm2122_vm14 = vweird.f32 %v4854_v33  ;;  %vm2108_vm7 = vmor %vm2106_vm8, %vm2107_vm2 }
 0x542   :  { %v6726_v10 = vpop.eup %4857  ;;  %v2103_v49 = vsub.f32 1.0, %v2102_v60  ;;  %v2132_v25 = vmul.f32 %v4856_v59, %v6687_v26  ;;  %vm2137_vm6 = vweird.f32 %v4856_v59  ;;  %vm2123_vm13 = vmor %vm2121_vm9, %vm2122_vm14  ;;  %v8659_v60 = vld [vmem:[#allocation28_spill] sm:$0xff] }
 0x543   :  { %v2118_v23 = vsub.f32 1.0, %v2117_v38  ;;  %v2089_v16 = vmul.f32 %v4850_v58, %v2088_v28  ;;  %v2147_v43 = vmul.f32 %v6726_v10, %v6690_v0  ;;  %v4701_v38 = vmul.f32 -1.442695, %v6747_v1  ;;  %v8660_v28 = vld [vmem:[#allocation29_spill] sm:$0xff] }
 0x544   :  { %v2104_v47 = vmul.f32 %v4852_v13, %v2103_v49  ;;  %v2133_v22 = vsub.f32 1.0, %v2132_v25  ;;  %v4860_v29 = vpop.eup %4859  ;;  %v8661_v25 = vld [vmem:[#allocation35_spill] sm:$0xff] }
 0x545   :  { %v2119_v31 = vmul.f32 %v4854_v33, %v2118_v23  ;;  %v2090_v2 = vadd.f32 %v4850_v58, %v2089_v16  ;;  %v6758_v4 = vadd.f32 1.0, %v4860_v29  ;;  %v2148_v26 = vsub.f32 1.0, %v2147_v43 }
 0x546   :  { %v2134_v53 = vmul.f32 %v4856_v59, %v2133_v22  ;;  %v2105_v30 = vadd.f32 %v4852_v13, %v2104_v47  ;;  %v4862_v49 = vpop.eup %4861  ;;  %v1739_v47 = vadd.f32 %v6610_v55, %v6627_v18 }
 0x547   :  { %v2120_v32 = vadd.f32 %v4854_v33, %v2119_v31  ;;  %v2094_v27 = vsel %vm2093_vm11, %v4850_v58, %v2090_v2  ;;  %v8657_v58 = vld [vmem:[#allocation26_spill] sm:$0xff]  ;;  %vm2138_vm11 = vmor %vm2136_vm12, %vm2137_vm6  ;;  %4863 = vrcp.f32 %v6758_v4  ;;  %v2149_v22 = vmul.f32 %v6726_v10, %v2148_v26 }
 0x548   :  { %v2109_v57 = vsel %vm2108_vm7, %v4852_v13, %v2105_v30  ;;  %v2099_v51 = vsel %vm6729_vm15, %v2098_v20, %v2094_v27  ;;  %v2135_v50 = vadd.f32 %v4856_v59, %v2134_v53  ;;  %v8658_v13 = vld [vmem:[#allocation27_spill] sm:$0xff]  ;;  %4865 = vpow2.f32 %v4701_v38 }
 0x549   :  { %3045 = vmatmul.f32.gmra.mxu3 %v2993_v54  ;;  %v2124_v62 = vsel %vm2123_vm13, %v4854_v33, %v2120_v32  ;;  %v2114_v11 = vsel %vm6713_vm4, %v2113_v48, %v2109_v57  ;;  %v6756_v63 = vmul.f32 %v2099_v51, %v8657_v58  ;;  %v6770_v33 = vadd.f32 %v6644_v44, %v6662_v61 }
 0x54a   :  { %v2129_v40 = vsel %vm6720_vm5, %v2128_v34, %v2124_v62  ;;  %v6766_v24 = vmul.f32 %v2114_v11, %v8658_v13  ;;  %v2139_v54 = vsel %vm2138_vm11, %v4856_v59, %v2135_v50  ;;  %vm2141_vm13 = vcmp.eq.f32.partialorder %v2140_v15, 8.507059e+37 }
 0x54b   :  { %v6773_v17 = vmul.f32 %v2129_v40, %v8659_v60  ;;  %v2362_v48 = vrot.slane %v6756_v63, 4  ;;  %v2144_v34 = vsel %vm2141_vm13, %v2143_v21, %v2139_v54  ;;  %v2001_v59 = vperm.slane %v1787_v19, 0  ;;  %v8662_v40 = vld [vmem:[#allocation39_spill] sm:$0xff] }
 0x54c   :  { %v2368_v6 = vrot.slane %v6766_v24, 4  ;;  %v6784_v12 = vmul.f32 %v2144_v34, %v8660_v28  ;;  %v2994_v15 = vadd.f32 %v2982_v41, %v8661_v25  ;;  %v4697_v16 = vmul.f32 -1.442695, %v6770_v33 }
 0x54d   :  { %v2374_v44 = vrot.slane %v6773_v17, 4  ;;  %v2363_v46 = vadd.f32 %v2362_v48, %v6756_v63  ;;  %v6793_v20 = vadd.f32 1.0, %v4862_v49  ;;  %v6798_v7 = vpop.eup %4863  ;;  %v2025_v55 = vadd.f32 %v2001_v59, %v1739_v47 }
 0x54e   :  { %v2369_v23 = vadd.f32 %v2368_v6, %v6766_v24  ;;  %v2380_v9 = vrot.slane %v6784_v12, 4  ;;  %v2162_v30 = vmul.f32 %v6798_v7, %v6758_v4  ;;  %v4866_v21 = vpop.eup %4865  ;;  %vm2151_vm7 = vweird.f32 %v6690_v0 }
 0x54f   :  { %v2375_v36 = vadd.f32 %v2374_v44, %v6773_v17  ;;  %v2364_v19 = vrot.slane %v2363_v46, 2  ;;  %4867 = vrcp.f32 %v6793_v20  ;;  %v6808_v51 = vadd.f32 %v6650_v3, %v6662_v61 }
 0x550   :  { %v2370_v31 = vrot.slane %v2369_v23, 2  ;;  %v2381_v2 = vadd.f32 %v2380_v9, %v6784_v12  ;;  %4869 = vpow2.f32 %v4697_v16  ;;  %v2163_v57 = vsub.f32 1.0, %v2162_v30 }
 0x551   :  { %3048 = vmatmul.f32.gmra.mxu3 %v2994_v15  ;;  %v2376_v41 = vrot.slane %v2375_v36, 2  ;;  %v2365_v43 = vadd.f32 %v2364_v19, %v2363_v46  ;;  %v2150_v11 = vadd.f32 %v6726_v10, %v2149_v22  ;;  %vm2152_vm6 = vweird.f32 %v6726_v10 }
 0x552   :  { %v2371_v53 = vadd.f32 %v2370_v31, %v2369_v23  ;;  %v2382_v27 = vrot.slane %v2381_v2, 2  ;;  %vm2166_vm14 = vweird.f32 %v6758_v4  ;;  %v2995_v54 = vadd.f32 %v2983_v14, %v8662_v40  ;;  %vm6830_vm8 = vmor %vm2151_vm7, %vm2152_vm6 }
 0x553   :  { %v2377_v18 = vadd.f32 %v2376_v41, %v2375_v36  ;;  %v2366_v32 = vrot.slane %v2365_v43, 1  ;;  %v2164_v3 = vmul.f32 %v6798_v7, %v2163_v57  ;;  %v2984_v34 = vmax.f32 %v6770_v33, 0.0 }
 0x554   :  { %v2372_v29 = vrot.slane %v2371_v53, 1  ;;  %v2383_v48 = vadd.f32 %v2382_v27, %v2381_v2  ;;  %v2155_v38 = vand.u32 2147483647, %v6690_v0  ;;  %v2157_v49 = vand.u32 2147483648, %v6690_v0  ;;  %v8666_v2 = vld [vmem:[#allocation32_spill] sm:$0xff] }
 0x555   :  { %v2378_v50 = vrot.slane %v2377_v18, 1  ;;  %v6810_v62 = vadd.f32 %v2366_v32, %v2365_v43  ;;  %v4868_v26 = vpop.eup %4867  ;;  %v6835_v25 = vadd.f32 1.0, %v4866_v21  ;;  %v6838_v33 = vadd.f32 %v2025_v55, %v6662_v61 }
 0x556   :  { %v6814_v5 = vadd.f32 %v2372_v29, %v2371_v53  ;;  %v4870_v59 = vpop.eup %4869  ;;  %v2222_v44 = vmul.f32 %v4868_v26, %v6793_v20  ;;  %v2230_v15 = vand.u32 2147483647, %v6793_v20  ;;  %v2232_v23 = vand.u32 2147483648, %v6793_v20 }
 0x557   :  { %v6818_v6 = vadd.f32 %v2378_v50, %v2377_v18  ;;  %2602 = vrot.lane.b32.xlu2 %v6810_v62, %s5177_s17  ;;  %v2154_v16 = vsel %vm6830_vm8, %v6726_v10, %v2150_v11  ;;  %v4698_v36 = vmul.f32 -1.442695, %v6808_v51  ;;  %v2384_v0 = vrot.slane %v2383_v48, 1  ;;  %v8665_v10 = vld [vmem:[#allocation40_spill] sm:$0xff] }
 0x558   :  { %2604 = vrot.lane.b32.xlu0 %v6814_v5, %s5177_s17  ;;  %v2223_v19 = vsub.f32 1.0, %v2222_v44  ;;  %v2158_v9 = vor.u32 1.1754944e-38, %v2157_v49  ;;  %4871 = vrcp.f32 %v6835_v25  ;;  %vm2227_vm9 = vweird.f32 %v4868_v26  ;;  %v8670_v49 = vld [vmem:[#allocation36_spill] sm:$0xff] }
 0x559   :  { %2606 = vrot.lane.b32.xlu1 %v6818_v6, %s5177_s17  ;;  %3051 = vmatmul.f32.gmra.mxu3 %v2995_v54  ;;  %v6849_v47 = vadd.f32 1.0, %v4870_v59  ;;  %vm2156_vm12 = vcmp.eq.f32.partialorder %v2155_v38, 8.507059e+37  ;;  %v2165_v22 = vadd.f32 %v6798_v7, %v2164_v3  ;;  %4873 = vpow2.f32 %v4698_v36  ;;  %v8669_v3 = vld [vmem:[#allocation43_spill] sm:$0xff] }
 0x55a   :  { %v2224_v31 = vmul.f32 %v4868_v26, %v2223_v19  ;;  %v2159_v41 = vsel %vm2156_vm12, %v2158_v9, %v2154_v16  ;;  %vm2167_vm4 = vweird.f32 %v6798_v7  ;;  %vm2226_vm0 = vweird.f32 %v6793_v20 }
 0x55b   :  { %v2996_v43 = vadd.f32 %v2984_v34, %v8665_v10  ;;  %v6856_v53 = vmul.f32 %v2159_v41, %v8666_v2  ;;  %v2170_v30 = vand.u32 2147483647, %v6758_v4  ;;  %v6859_v14 = vadd.f32 %v2384_v0, %v2383_v48  ;;  %vm6863_vm10 = vmor %vm2166_vm14, %vm2167_vm4  ;;  %v8671_v41 = vld [vmem:[#allocation42_spill] sm:$0xff] }
 0x55c   :  { %v2225_v55 = vadd.f32 %v4868_v26, %v2224_v31  ;;  %vm2231_vm5 = vcmp.eq.f32.partialorder %v2230_v15, 8.507059e+37  ;;  %v2172_v32 = vand.u32 2147483648, %v6758_v4  ;;  %vm2228_vm15 = vmor %vm2226_vm0, %vm2227_vm9  ;;  %v2233_v20 = vor.u32 1.1754944e-38, %v2232_v23 }
 0x55d   :  { %v2386_v27 = vrot.slane %v6856_v53, 4  ;;  %v2169_v21 = vsel %vm6863_vm10, %v6798_v7, %v2165_v22  ;;  %v4702_v29 = vmul.f32 -1.442695, %v6838_v33  ;;  %4875 = vrcp.f32 %v6849_v47 }
 0x55e   :  { %v4872_v57 = vpop.eup %4871  ;;  %v2229_v50 = vsel %vm2228_vm15, %v4868_v26, %v2225_v55  ;;  %v2173_v4 = vor.u32 1.1754944e-38, %v2172_v32  ;;  %v2034_v11 = vadd.f32 %v6648_v39, %v6662_v61  ;;  %vm2171_vm2 = vcmp.eq.f32.partialorder %v2170_v30, 8.507059e+37 }
 0x55f   :  { %2652 = vrot.lane.b32.xlu2 %v6814_v5, %s5176_s16  ;;  %v2234_v40 = vsel %vm2231_vm5, %v2233_v20, %v2229_v50  ;;  %v2387_v54 = vadd.f32 %v2386_v27, %v6856_v53  ;;  %v2237_v48 = vmul.f32 %v4872_v57, %v6835_v25  ;;  %v4874_v7 = vpop.eup %4873  ;;  %v2245_v38 = vand.u32 2147483647, %v6835_v25  ;;  %v8672_v50 = vld [vmem:[#allocation46_spill] sm:$0xff] }
 0x560   :  { %2608 = vrot.lane.b32.xlu0 %v6859_v14, %s5177_s17  ;;  %v6884_v34 = vmul.f32 %v2234_v40, %v8669_v3  ;;  %v2985_v26 = vmax.f32 %v6808_v51, 0.0  ;;  %v2174_v59 = vsel %vm2171_vm2, %v2173_v4, %v2169_v21  ;;  %4877 = vpow2.f32 %v4702_v29 }
 0x561   :  { %3054 = vmatmul.f32.gmra.mxu3 %v2996_v43  ;;  %v2388_v44 = vrot.slane %v2387_v54, 2  ;;  %v2238_v46 = vsub.f32 1.0, %v2237_v48  ;;  %v6889_v39 = vmul.f32 %v2174_v59, %v8670_v49  ;;  %vm2242_vm11 = vweird.f32 %v4872_v57 }
 0x562   :  { %v2416_v61 = vrot.slane %v6884_v34, 4  ;;  %v2247_v15 = vand.u32 2147483648, %v6835_v25  ;;  %v4699_v23 = vmul.f32 -1.442695, %v2034_v11  ;;  %v6893_v0 = vadd.f32 1.0, %v4874_v7 }
 0x563   :  { %v2389_v16 = vadd.f32 %v2388_v44, %v2387_v54  ;;  %v2239_v36 = vmul.f32 %v4872_v57, %v2238_v46  ;;  %v2392_v19 = vrot.slane %v6889_v39, 4  ;;  %v6896_v51 = vpop.eup %4875  ;;  %vm2241_vm13 = vweird.f32 %v6835_v25 }
 0x564   :  { %v2417_v9 = vadd.f32 %v2416_v61, %v6884_v34  ;;  %4879 = vpow2.f32 %v4699_v23  ;;  %v2997_v10 = vadd.f32 %v2985_v26, %v8671_v41  ;;  %vm2243_vm7 = vmor %vm2241_vm13, %vm2242_vm11  ;;  %vm2246_vm6 = vcmp.eq.f32.partialorder %v2245_v38, 8.507059e+37 }
 0x565   :  { %v2390_v22 = vrot.slane %v2389_v16, 1  ;;  %v2240_v31 = vadd.f32 %v4872_v57, %v2239_v36  ;;  %v2393_v43 = vadd.f32 %v2392_v19, %v6889_v39  ;;  %v2248_v55 = vor.u32 1.1754944e-38, %v2247_v15  ;;  %v8673_v15 = vld [vmem:[#allocation44_spill] sm:$0xff] }
 0x566   :  { %v2418_v30 = vrot.slane %v2417_v9, 2  ;;  %v4878_v18 = vpop.eup %4877  ;;  %4881 = vrcp.f32 %v6893_v0  ;;  %v2986_v54 = vmax.f32 %v2034_v11, 0.0  ;;  %vm2182_vm8 = vweird.f32 %v6896_v51 }
 0x567   :  { %2654 = vrot.lane.b32.xlu2 %v6818_v6, %s5176_s16  ;;  %v6905_v32 = vadd.f32 %v2390_v22, %v2389_v16  ;;  %v2244_v20 = vsel %vm2243_vm7, %v4872_v57, %v2240_v31  ;;  %v2394_v25 = vrot.slane %v2393_v43, 2  ;;  %v2085_v29 = vadd.f32 1.0, %v4878_v18 }
 0x568   :  { %v2419_v27 = vadd.f32 %v2418_v30, %v2417_v9  ;;  %v2249_v21 = vsel %vm2246_vm6, %v2248_v55, %v2244_v20  ;;  %v2177_v57 = vmul.f32 %v6896_v51, %v6849_v47  ;;  %v2998_v23 = vadd.f32 %v2986_v54, %v8673_v15 }
 0x569   :  { %3057 = vmatmul.f32.gmra.mxu3 %v2997_v10  ;;  %2610 = vrot.lane.b32.xlu0 %v6905_v32, %s5177_s17  ;;  %v6911_v4 = vmul.f32 %v2249_v21, %v8672_v50  ;;  %v2395_v40 = vadd.f32 %v2394_v25, %v2393_v43  ;;  %4883 = vrcp.f32 %v2085_v29  ;;  %v2987_v22 = vmax.f32 %v6735_v42, 0.0 }
 0x56a   :  { %v4880_v48 = vpop.eup %4879  ;;  %v2420_v7 = vrot.slane %v2419_v27, 1  ;;  %v2178_v11 = vsub.f32 1.0, %v2177_v57  ;;  %v2260_v20 = vand.u32 2147483647, %v2085_v29  ;;  %v2262_v25 = vand.u32 2147483648, %v2085_v29 }
 0x56b   :  { %v2422_v38 = vrot.slane %v6911_v4, 4  ;;  %v2396_v26 = vrot.slane %v2395_v40, 1  ;;  %v2082_v44 = vadd.f32 1.0, %v4880_v48  ;;  %vm2256_vm9 = vweird.f32 %v2085_v29 }
 0x56c   :  { %v6916_v59 = vadd.f32 %v2420_v7, %v2419_v27  ;;  %v6918_v46 = vpop.eup %4881  ;;  %v2179_v10 = vmul.f32 %v6896_v51, %v2178_v11  ;;  %v8674_v27 = vld [vmem:[#allocation45_spill] sm:$0xff]  ;;  %vm2261_vm4 = vcmp.eq.f32.partialorder %v2260_v20, 8.507059e+37  ;;  %vm2181_vm5 = vweird.f32 %v6849_v47 }
 0x56d   :  { %v2423_v61 = vadd.f32 %v2422_v38, %v6911_v4  ;;  %4885 = vrcp.f32 %v2082_v44  ;;  %v6924_v36 = vadd.f32 %v2396_v26, %v2395_v40  ;;  %v2192_v9 = vmul.f32 %v6918_v46, %v6893_v0  ;;  %vm6950_vm15 = vmor %vm2181_vm5, %vm2182_vm8 }
 0x56e   :  { %2620 = vrot.lane.b32.xlu1 %v6916_v59, %s5177_s17  ;;  %v2999_v21 = vadd.f32 %v2987_v22, %v8674_v27  ;;  %v2180_v48 = vadd.f32 %v6896_v51, %v2179_v10  ;;  %v2988_v38 = vmax.f32 %v6747_v1, 0.0  ;;  %v2217_v15 = vand.u32 2147483648, %v2082_v44  ;;  %v8675_v22 = vld [vmem:[#allocation47_spill] sm:$0xff] }
 0x56f   :  { %v2424_v16 = vrot.slane %v2423_v61, 2  ;;  %v4884_v19 = vpop.eup %4883  ;;  %v2193_v18 = vsub.f32 1.0, %v2192_v9  ;;  %v2187_v9 = vand.u32 2147483648, %v6849_v47  ;;  %vm2211_vm10 = vweird.f32 %v2082_v44 }
 0x570   :  { %v2252_v41 = vmul.f32 %v4884_v19, %v2085_v29  ;;  %vm2257_vm14 = vweird.f32 %v4884_v19  ;;  %v2218_v10 = vor.u32 1.1754944e-38, %v2217_v15  ;;  %vm2197_vm13 = vweird.f32 %v6918_v46 }
 0x571   :  { %3060 = vmatmul.f32.gmra.mxu3 %v2998_v23  ;;  %v2425_v31 = vadd.f32 %v2424_v16, %v2423_v61  ;;  %2612 = vrot.lane.b32.xlu0 %v6924_v36, %s5177_s17  ;;  %v2194_v26 = vmul.f32 %v6918_v46, %v2193_v18  ;;  %vm2258_vm12 = vmor %vm2256_vm9, %vm2257_vm14  ;;  %v2263_v61 = vor.u32 1.1754944e-38, %v2262_v25  ;;  %v2215_v16 = vand.u32 2147483647, %v2082_v44 }
 0x572   :  { %v2253_v30 = vsub.f32 1.0, %v2252_v41  ;;  %v2185_v41 = vand.u32 2147483647, %v6849_v47  ;;  %vm2196_vm7 = vweird.f32 %v6893_v0  ;;  %v2188_v47 = vor.u32 1.1754944e-38, %v2187_v9 }
 0x573   :  { %v2426_v43 = vrot.slane %v2425_v31, 1  ;;  %v4886_v55 = vpop.eup %4885  ;;  %v2195_v20 = vadd.f32 %v6918_v46, %v2194_v26  ;;  %vm2216_vm11 = vcmp.eq.f32.partialorder %v2215_v16, 8.507059e+37  ;;  %vm2198_vm14 = vmor %vm2196_vm7, %vm2197_vm13  ;;  %v2989_v26 = vmax.f32 %v6838_v33, 0.0 }
 0x574   :  { %v2254_v54 = vmul.f32 %v4884_v19, %v2253_v30  ;;  %v2207_v42 = vmul.f32 %v4886_v55, %v2082_v44  ;;  %vm2212_vm0 = vweird.f32 %v4886_v55  ;;  %v8678_v30 = vld [vmem:[#allocation48_spill] sm:$0xff]  ;;  %vm2186_vm6 = vcmp.eq.f32.partialorder %v2185_v41, 8.507059e+37  ;;  %v8681_v41 = vld [vmem:[#allocation49_spill] sm:$0xff] }
 0x575   :  { %v6933_v40 = vadd.f32 %v2426_v43, %v2425_v31  ;;  %vm2213_vm2 = vmor %vm2211_vm10, %vm2212_vm0  ;;  %v2184_v43 = vsel %vm6950_vm15, %v6896_v51, %v2180_v48  ;;  %v3000_v18 = vadd.f32 %v2988_v38, %v8678_v30  ;;  %v2200_v48 = vand.u32 2147483647, %v6893_v0 }
 0x576   :  { %v2255_v7 = vadd.f32 %v4884_v19, %v2254_v54  ;;  %v2208_v57 = vsub.f32 1.0, %v2207_v42  ;;  %v8679_v42 = vld [vmem:[#allocation41_spill] sm:$0xff]  ;;  %v2199_v38 = vsel %vm2198_vm14, %v6918_v46, %v2195_v20 }
 0x577   :  { %2622 = vrot.lane.b32.xlu1 %v6933_v40, %s5177_s17  ;;  %vm2201_vm8 = vcmp.eq.f32.partialorder %v2200_v48, 8.507059e+37 }
 0x578   :  { %v2259_v23 = vsel %vm2258_vm12, %v4884_v19, %v2255_v7  ;;  %v2209_v11 = vmul.f32 %v4886_v55, %v2208_v57  ;;  %v2189_v7 = vsel %vm2186_vm6, %v2188_v47, %v2184_v43 }
 0x579   :  { %3063 = vmatmul.f32.gmra.mxu3 %v2999_v21  ;;  %2650 = vrot.lane.b32.xlu0 %v6810_v62, %s5176_s16  ;;  %v2264_v29 = vsel %vm2261_vm4, %v2263_v61, %v2259_v23  ;;  %v2202_v21 = vand.u32 2147483648, %v6893_v0  ;;  %v4759_v61 = vld [vmem:[#allocation8 + $0x448] ss:$0 sm:$0xff]  ;;  %v1958_v23 = vpop.f32.mrf.mxu1 }
 0x57a   :  { %v6946_v1 = vmul.f32 %v2264_v29, %v8675_v22  ;;  %v2210_v31 = vadd.f32 %v4886_v55, %v2209_v11  ;;  %v8680_v29 = vld [vmem:[#allocation37_spill] sm:$0xff]  ;;  %v6977_v43 = vadd.f32 %v4759_v61, %v1958_v23 }
 0x57b   :  { %v2203_v15 = vor.u32 1.1754944e-38, %v2202_v21  ;;  %v2272_v0 = vmul.f32 %v2189_v7, %v8680_v29 }
 0x57c   :  { %v2428_v44 = vrot.slane %v6946_v1, 4  ;;  %v2214_v25 = vsel %vm2213_vm2, %v4886_v55, %v2210_v31 }
 0x57d   :  { %v2219_v27 = vsel %vm2216_vm11, %v2218_v10, %v2214_v25  ;;  %v2204_v9 = vsel %vm2201_vm8, %v2203_v15, %v2199_v38  ;;  %v3001_v10 = vadd.f32 %v2989_v26, %v8681_v41  ;;  %v2398_v33 = vrot.slane %v2272_v0, 4 }
 0x57e   :  { %v2429_v54 = vadd.f32 %v2428_v44, %v6946_v1  ;;  %v6966_v51 = vmul.f32 %v2219_v27, %v8679_v42  ;;  %v6987_v25 = vmul.f32 %v2272_v0, %v6977_v43  ;;  %v7135_v42 = vld [vmem:[#allocation8 + $0x4f8] ss:$0 sm:$0xff] }
 0x57f   :  { %v2399_v47 = vadd.f32 %v2398_v33, %v2272_v0  ;;  %v2282_v33 = vmul.f32 %v6856_v53, %v6977_v43  ;;  %8691 = vst [vmem:[#allocation53_spill] sm:$0xff] %v7135_v42 }
 0x580   :  { %v2430_v55 = vrot.slane %v2429_v54, 2  ;;  %v2410_v57 = vrot.slane %v6966_v51, 4  ;;  %v2326_v22 = vrot.slane %v6987_v25, 4 }
 0x581   :  { %3066 = vmatmul.f32.gmra.mxu3 %v3000_v18  ;;  %2700 = vrot.lane.b32.xlu0 %v6814_v5, %s5175_s3  ;;  %v8682_v18 = vld [vmem:[#allocation38_spill] sm:$0xff]  ;;  %v2400_v48 = vrot.slane %v2399_v47, 2 }
 0x582   :  { %v2431_v11 = vadd.f32 %v2430_v55, %v2429_v54  ;;  %v2411_v16 = vadd.f32 %v2410_v57, %v6966_v51  ;;  %v2273_v20 = vmul.f32 %v2204_v9, %v8682_v18  ;;  %v2327_v2 = vadd.f32 %v2326_v22, %v6987_v25 }
 0x583   :  { %v2401_v55 = vadd.f32 %v2400_v48, %v2399_v47  ;;  %v2314_v47 = vrot.slane %v2282_v33, 4 }
 0x584   :  { %v2432_v31 = vrot.slane %v2431_v11, 1  ;;  %v2412_v19 = vrot.slane %v2411_v16, 2  ;;  %v2404_v21 = vrot.slane %v2273_v20, 4  ;;  %v6994_v54 = vmul.f32 %v2273_v20, %v6977_v43 }
 0x585   :  { %v2402_v38 = vrot.slane %v2401_v55, 1  ;;  %v2328_v28 = vrot.slane %v2327_v2, 2 }
 0x586   :  { %v6979_v30 = vadd.f32 %v2432_v31, %v2431_v11  ;;  %v2413_v46 = vadd.f32 %v2412_v19, %v2411_v16  ;;  %v2405_v7 = vadd.f32 %v2404_v21, %v2273_v20  ;;  %v2279_v11 = vmul.f32 %v6766_v24, %v6977_v43  ;;  %v7018_v16 = vpop.f32.mrf.mxu3 }
 0x587   :  { %v7006_v61 = vadd.f32 %v2402_v38, %v2401_v55  ;;  %8683 = vst [vmem:[#allocation59_spill] sm:$0xff] %v7018_v16  ;;  %v2281_v31 = vmul.f32 %v6784_v12, %v6977_v43  ;;  %v2278_v21 = vmul.f32 %v6756_v63, %v6977_v43  ;;  %v2283_v55 = vmul.f32 %v6889_v39, %v6977_v43 }
 0x588   :  { %2624 = vrot.lane.b32.xlu2 %v6979_v30, %s5177_s17  ;;  %v2414_v44 = vrot.slane %v2413_v46, 1  ;;  %v2406_v57 = vrot.slane %v2405_v7, 2  ;;  %v2296_v0 = vrot.slane %v2279_v11, 4  ;;  %v2280_v38 = vmul.f32 %v6773_v17, %v6977_v43 }
 0x589   :  { %3069 = vmatmul.f32.gmra.mxu3 %v3001_v10  ;;  %2670 = vrot.lane.b32.xlu0 %v6933_v40, %s5176_s16  ;;  %v2308_v41 = vrot.slane %v2281_v31, 4  ;;  %v2329_v25 = vadd.f32 %v2328_v28, %v2327_v2 }
 0x58a   :  { %v6989_v27 = vadd.f32 %v2414_v44, %v2413_v46  ;;  %v2407_v26 = vadd.f32 %v2406_v57, %v2405_v7  ;;  %v2297_v9 = vadd.f32 %v2296_v0, %v2279_v11  ;;  %v2315_v7 = vadd.f32 %v2314_v47, %v2282_v33 }
 0x58b   :  { %v2309_v46 = vadd.f32 %v2308_v41, %v2281_v31  ;;  %v2290_v57 = vrot.slane %v2278_v21, 4  ;;  %v2320_v11 = vrot.slane %v2283_v55, 4  ;;  %v2302_v39 = vrot.slane %v2280_v38, 4 }
 0x58c   :  { %2618 = vrot.lane.b32.xlu1 %v6989_v27, %s5177_s17  ;;  %v2408_v15 = vrot.slane %v2407_v26, 1  ;;  %v2298_v19 = vrot.slane %v2297_v9, 2 }
 0x58d   :  { %v2310_v44 = vrot.slane %v2309_v46, 2  ;;  %v2291_v0 = vadd.f32 %v2290_v57, %v2278_v21  ;;  %v2303_v41 = vadd.f32 %v2302_v39, %v2280_v38 }
 0x58e   :  { %v7010_v23 = vadd.f32 %v2408_v15, %v2407_v26  ;;  %v7028_v24 = vpop.f32.mrf.mxu3  ;;  %v2299_v10 = vadd.f32 %v2298_v19, %v2297_v9  ;;  %v2316_v15 = vrot.slane %v2315_v7, 2  ;;  %v2321_v19 = vadd.f32 %v2320_v11, %v2283_v55 }
 0x58f   :  { %v2311_v53 = vadd.f32 %v2310_v44, %v2309_v46  ;;  %v2292_v17 = vrot.slane %v2291_v0, 2  ;;  %v2287_v46 = vmul.f32 %v6884_v34, %v6977_v43  ;;  %v2304_v21 = vrot.slane %v2303_v41, 2 }
 0x590   :  { %2668 = vrot.lane.b32.xlu2 %v6916_v59, %s5176_s16  ;;  %v2300_v20 = vrot.slane %v2299_v10, 1  ;;  %v2317_v31 = vadd.f32 %v2316_v15, %v2315_v7  ;;  %v2288_v11 = vmul.f32 %v6911_v4, %v6977_v43 }
 0x591   :  { %2660 = vrot.lane.b32.xlu0 %v6924_v36, %s5176_s16  ;;  %v2312_v63 = vrot.slane %v2311_v53, 1  ;;  %v2293_v47 = vadd.f32 %v2292_v17, %v2291_v0  ;;  %v2305_v38 = vadd.f32 %v2304_v21, %v2303_v41  ;;  %v2289_v41 = vmul.f32 %v6946_v1, %v6977_v43 }
 0x592   :  { %v7044_v48 = vadd.f32 %v2300_v20, %v2299_v10  ;;  %v2318_v33 = vrot.slane %v2317_v31, 1  ;;  %v2322_v20 = vrot.slane %v2321_v19, 2 }
 0x593   :  { %v7058_v9 = vadd.f32 %v2312_v63, %v2311_v53  ;;  %v2344_v53 = vrot.slane %v2287_v46, 4  ;;  %v2294_v34 = vrot.slane %v2293_v47, 1 }
 0x594   :  { %2656 = vrot.lane.b32.xlu1 %v6859_v14, %s5176_s16  ;;  %v7072_v7 = vadd.f32 %v2318_v33, %v2317_v31  ;;  %v2323_v55 = vadd.f32 %v2322_v20, %v2321_v19  ;;  %v2306_v31 = vrot.slane %v2305_v38, 1  ;;  %v2350_v33 = vrot.slane %v2288_v11, 4 }
 0x595   :  { %v2345_v15 = vadd.f32 %v2344_v53, %v2287_v46  ;;  %v7086_v39 = vadd.f32 %v2294_v34, %v2293_v47  ;;  %v2356_v34 = vrot.slane %v2289_v41, 4 }
 0x596   :  { %v2324_v0 = vrot.slane %v2323_v55, 1  ;;  %v7100_v46 = vadd.f32 %v2306_v31, %v2305_v38  ;;  %v2351_v53 = vadd.f32 %v2350_v33, %v2288_v11 }
 0x597   :  { %v2346_v17 = vrot.slane %v2345_v15, 2  ;;  %v2357_v18 = vadd.f32 %v2356_v34, %v2289_v41 }
 0x598   :  { %2658 = vrot.lane.b32.xlu2 %v6905_v32, %s5176_s16  ;;  %v7090_v20 = vadd.f32 %v2324_v0, %v2323_v55  ;;  %v2286_v55 = vmul.f32 %v6966_v51, %v6977_v43  ;;  %v2352_v0 = vrot.slane %v2351_v53, 2 }
 0x599   :  { %2698 = vrot.lane.b32.xlu0 %v6810_v62, %s5175_s3  ;;  %v2347_v21 = vadd.f32 %v2346_v17, %v2345_v15  ;;  %v2358_v43 = vrot.slane %v2357_v18, 2 }
 0x59a   :  { %v2338_v29 = vrot.slane %v2286_v55, 4  ;;  %v2353_v51 = vadd.f32 %v2352_v0, %v2351_v53 }
 0x59b   :  { %v2348_v1 = vrot.slane %v2347_v21, 1  ;;  %v2359_v41 = vadd.f32 %v2358_v43, %v2357_v18 }
 0x59c   :  { %2614 = vrot.lane.b32.xlu1 %v7006_v61, %s5177_s17  ;;  %v2339_v31 = vadd.f32 %v2338_v29, %v2286_v55  ;;  %v2354_v33 = vrot.slane %v2353_v51, 1 }
 0x59d   :  { %v7116_v11 = vadd.f32 %v2348_v1, %v2347_v21  ;;  %v2360_v55 = vrot.slane %v2359_v41, 1 }
 0x59e   :  { %v2340_v34 = vrot.slane %v2339_v31, 2  ;;  %v7128_v53 = vadd.f32 %v2354_v33, %v2353_v51 }
 0x59f   :  { %v7132_v18 = vadd.f32 %v2360_v55, %v2359_v41  ;;  %v2332_v41 = vrot.slane %v6994_v54, 4 }
 0x5a0   :  { %2616 = vrot.lane.b32.xlu2 %v7010_v23, %s5177_s17  ;;  %v2341_v1 = vadd.f32 %v2340_v34, %v2339_v31 }
 0x5a1   :  { %2662 = vrot.lane.b32.xlu0 %v7006_v61, %s5176_s16  ;;  %v2333_v3 = vadd.f32 %v2332_v41, %v6994_v54  ;;  %v2330_v54 = vrot.slane %v2329_v25, 1 }
 0x5a2   :  { %v2342_v43 = vrot.slane %v2341_v1, 1 }
 0x5a3   :  { %v7167_v28 = vadd.f32 %v2330_v54, %v2329_v25 }
 0x5a4   :  { %2702 = vrot.lane.b32.xlu1 %v6818_v6, %s5175_s3  ;;  %v7141_v31 = vadd.f32 %v2342_v43, %v2341_v1  ;;  %v2334_v1 = vrot.slane %v2333_v3, 2 }
 0x5a6   :  { %v2335_v41 = vadd.f32 %v2334_v1, %v2333_v3 }
 0x5a8   :  { %2672 = vrot.lane.b32.xlu2 %v6979_v30, %s5176_s16 }
 0x5a9   :  { %2664 = vrot.lane.b32.xlu0 %v7010_v23, %s5176_s16 }
 0x5ac   :  { %2666 = vrot.lane.b32.xlu1 %v6989_v27, %s5176_s16 }
 0x5b0   :  { %2716 = vrot.lane.b32.xlu2 %v6916_v59, %s5175_s3 }
 0x5b1   :  { %2720 = vrot.lane.b32.xlu0 %v6979_v30, %s5175_s3  ;;  %v7070_v44 = vpop.permute.xlu2 %2602 }
 0x5b4   :  { %v7038_v12 = vpop.f32.mrf.mxu3  ;;  %2704 = vrot.lane.b32.xlu1 %v6859_v14, %s5175_s3 }
 0x5b5   :  { %8684 = vst [vmem:[#allocation60_spill] sm:$0xff] %v7038_v12 }
 0x5b8   :  { %2718 = vrot.lane.b32.xlu2 %v6933_v40, %s5175_s3 }
 0x5b9   :  { %2448 = vrot.lane.b32.xlu0 %v7044_v48, %s5177_s17  ;;  %v7088_v19 = vpop.permute.xlu2 %2652 }
 0x5bc   :  { %v7054_v26 = vpop.f32.mrf.mxu3  ;;  %2706 = vrot.lane.b32.xlu1 %v6905_v32, %s5175_s3 }
 0x5bd   :  { %8685 = vst [vmem:[#allocation51_spill] sm:$0xff] %v7054_v26 }
 0x5c0   :  { %2714 = vrot.lane.b32.xlu2 %v6989_v27, %s5175_s3 }
 0x5c1   :  { %2452 = vrot.lane.b32.xlu0 %v7058_v9, %s5177_s17  ;;  %v7110_v38 = vpop.permute.xlu2 %2654 }
 0x5c4   :  { %v7064_v10 = vpop.f32.mrf.mxu3  ;;  %2708 = vrot.lane.b32.xlu1 %v6924_v36, %s5175_s3 }
 0x5c5   :  { %8686 = vst [vmem:[#allocation57_spill] sm:$0xff] %v7064_v10 }
 0x5c8   :  { %2712 = vrot.lane.b32.xlu2 %v7010_v23, %s5175_s3 }
 0x5c9   :  { %2454 = vrot.lane.b32.xlu0 %v7072_v7, %s5177_s17 }
 0x5ca   :  { %v7074_v57 = vpop.permute.xlu0 %2604 }
 0x5cb   :  { %v7120_v49 = vpop.permute.xlu1 %2606 }
 0x5cc   :  { %v7080_v63 = vpop.f32.mrf.mxu3  ;;  %2710 = vrot.lane.b32.xlu1 %v7006_v61, %s5175_s3 }
 0x5cd   :  { %8687 = vst [vmem:[#allocation52_spill] sm:$0xff] %v7080_v63 }
 0x5d0   :  { %2446 = vrot.lane.b32.xlu2 %v7086_v39, %s5177_s17 }
 0x5d1   :  { %2456 = vrot.lane.b32.xlu0 %v7090_v20, %s5177_s17 }
 0x5d2   :  { %v7098_v4 = vpop.permute.xlu0 %2608 }
 0x5d4   :  { %v7102_v47 = vpop.f32.mrf.mxu3  ;;  %2450 = vrot.lane.b32.xlu1 %v7100_v46, %s5177_s17 }
 0x5d5   :  { %8688 = vst [vmem:[#allocation58_spill] sm:$0xff] %v7102_v47 }
 0x5d8   :  { %2496 = vrot.lane.b32.xlu2 %v7044_v48, %s5176_s16 }
 0x5d9   :  { %2494 = vrot.lane.b32.xlu0 %v7086_v39, %s5176_s16 }
 0x5db   :  { %v2611_v17 = vpop.permute.xlu0 %2610 }
 0x5dc   :  { %v7114_v15 = vpop.f32.mrf.mxu3  ;;  %2464 = vrot.lane.b32.xlu1 %v7116_v11, %s5177_s17  ;;  %v2642_v13 = vadd.f32 %v2611_v17, %v6905_v32  ;;  %v2336_v17 = vrot.slane %v2335_v41, 1 }
 0x5dd   :  { %8689 = vst [vmem:[#allocation19_spill] sm:$0xff] %v7114_v15 }
 0x5de   :  { %v7171_v47 = vadd.f32 %v2336_v17, %v2335_v41 }
 0x5e0   :  { %2498 = vrot.lane.b32.xlu2 %v7100_v46, %s5176_s16  ;;  %v2621_v51 = vpop.permute.xlu1 %2620 }
 0x5e1   :  { %2544 = vrot.lane.b32.xlu0 %v7044_v48, %s5175_s3  ;;  %v2647_v54 = vadd.f32 %v2621_v51, %v6916_v59 }
 0x5e2   :  { %v2625_v29 = vpop.permute.xlu2 %2624 }
 0x5e3   :  { %v2613_v0 = vpop.permute.xlu0 %2612 }
 0x5e4   :  { %v7126_v21 = vpop.f32.mrf.mxu3  ;;  %2466 = vrot.lane.b32.xlu1 %v7128_v53, %s5177_s17 }
 0x5e5   :  { %8690 = vst [vmem:[#allocation54_spill] sm:$0xff] %v7126_v21 }
 0x5e8   :  { %2468 = vrot.lane.b32.xlu2 %v7132_v18, %s5177_s17 }
 0x5e9   :  { %2514 = vrot.lane.b32.xlu0 %v7128_v53, %s5176_s16  ;;  %v2623_v60 = vpop.permute.xlu1 %2622 }
 0x5ea   :  { %v2669_v34 = vpop.permute.xlu2 %2668  ;;  %v2648_v32 = vadd.f32 %v2623_v60, %v6933_v40  ;;  %v2649_v60 = vadd.f32 %v2625_v29, %v6979_v30  ;;  %v2643_v40 = vadd.f32 %v2613_v0, %v6924_v36  ;;  %v2638_v36 = vadd.f32 %v7070_v44, %v6810_v62 }
 0x5eb   :  { %v2651_v55 = vpop.permute.xlu0 %2650  ;;  %v2695_v17 = vadd.f32 %v2669_v34, %v2647_v54  ;;  %v2640_v34 = vadd.f32 %v7120_v49, %v6818_v6 }
 0x5ec   :  { %v3058_v33 = vpop.f32.mrf.mxu3  ;;  %2462 = vrot.lane.b32.xlu1 %v7141_v31, %s5177_s17  ;;  %v2686_v0 = vadd.f32 %v2651_v55, %v2638_v36 }
 0x5ed   :  { %v7146_v50 = vadd.f32 %v7135_v42, %v3058_v33  ;;  %v2688_v62 = vadd.f32 %v7110_v38, %v2640_v34 }
 0x5ef   :  { %8692 = vst [vmem:[#allocation55_spill] sm:$0xff] %v7146_v50 }
 0x5f0   :  { %2512 = vrot.lane.b32.xlu2 %v7116_v11, %s5176_s16 }
 0x5f1   :  { %2504 = vrot.lane.b32.xlu0 %v7090_v20, %s5176_s16 }
 0x5f2   :  { %v2659_v22 = vpop.permute.xlu2 %2658 }
 0x5f3   :  { %v7156_v43 = vpop.permute.xlu0 %2700  ;;  %v7158_v33 = vadd.f32 %v2659_v22, %v2642_v13 }
 0x5f4   :  { %2500 = vrot.lane.b32.xlu1 %v7058_v9, %s5176_s16 }
 0x5f8   :  { %2502 = vrot.lane.b32.xlu2 %v7072_v7, %s5176_s16 }
 0x5f9   :  { %2542 = vrot.lane.b32.xlu0 %v7086_v39, %s5175_s3 }
 0x5fa   :  { %v2617_v2 = vpop.permute.xlu2 %2616 }
 0x5fb   :  { %v2671_v13 = vpop.permute.xlu0 %2670  ;;  %v2645_v49 = vadd.f32 %v2617_v2, %v7010_v23 }
 0x5fc   :  { %v2696_v22 = vadd.f32 %v2671_v13, %v2648_v32  ;;  %2458 = vrot.lane.b32.xlu1 %v7167_v28, %s5177_s17 }
 0x5fe   :  { %v2619_v58 = vpop.permute.xlu1 %2618 }
 0x5ff   :  { %v2646_v6 = vadd.f32 %v2619_v58, %v6989_v27 }
 0x600   :  { %2460 = vrot.lane.b32.xlu2 %v7171_v47, %s5177_s17 }
 0x601   :  { %2506 = vrot.lane.b32.xlu0 %v7167_v28, %s5176_s16 }
 0x602   :  { %v2673_v3 = vpop.permute.xlu2 %2672 }
 0x603   :  { %v2697_v25 = vadd.f32 %v2673_v3, %v2649_v60  ;;  %v2661_v1 = vpop.permute.xlu0 %2660 }
 0x604   :  { %2546 = vrot.lane.b32.xlu1 %v7100_v46, %s5175_s3  ;;  %v2691_v41 = vadd.f32 %v2661_v1, %v2643_v40 }
 0x606   :  { %v2657_v32 = vpop.permute.xlu1 %2656 }
 0x608   :  { %2516 = vrot.lane.b32.xlu2 %v7132_v18, %s5176_s16 }
 0x609   :  { %2508 = vrot.lane.b32.xlu0 %v7171_v47, %s5176_s16 }
 0x60a   :  { %v2717_v30 = vpop.permute.xlu2 %2716 }
 0x60b   :  { %v7186_v29 = vadd.f32 %v2717_v30, %v2695_v17  ;;  %v2699_v51 = vpop.permute.xlu0 %2698 }
 0x60c   :  { %2510 = vrot.lane.b32.xlu1 %v7141_v31, %s5176_s16  ;;  %v7194_v13 = vadd.f32 %v2699_v51, %v2686_v0 }
 0x60e   :  { %v2615_v59 = vpop.permute.xlu1 %2614 }
 0x60f   :  { %v2644_v44 = vadd.f32 %v2615_v59, %v7006_v61  ;;  %v2641_v59 = vadd.f32 %v7098_v4, %v6859_v14  ;;  %v2639_v4 = vadd.f32 %v7074_v57, %v6814_v5 }
 0x610   :  { %2560 = vrot.lane.b32.xlu2 %v7116_v11, %s5175_s3 }
 0x611   :  { %2564 = vrot.lane.b32.xlu0 %v7132_v18, %s5175_s3  ;;  %v2689_v58 = vadd.f32 %v2657_v32, %v2641_v59 }
 0x612   :  { %v2719_v60 = vpop.permute.xlu2 %2718 }
 0x613   :  { %v7200_v3 = vadd.f32 %v2719_v60, %v2696_v22  ;;  %v2663_v1 = vpop.permute.xlu0 %2662 }
 0x614   :  { %2548 = vrot.lane.b32.xlu1 %v7058_v9, %s5175_s3  ;;  %v2692_v54 = vadd.f32 %v2663_v1, %v2644_v44 }
 0x616   :  { %v2703_v55 = vpop.permute.xlu1 %2702 }
 0x617   :  { %v7206_v40 = vadd.f32 %v2703_v55, %v2688_v62  ;;  %v2687_v55 = vadd.f32 %v7088_v19, %v2639_v4 }
 0x618   :  { %2562 = vrot.lane.b32.xlu2 %v7128_v53, %s5175_s3 }
 0x619   :  { %v2735_v1 = vadd.f32 %v7156_v43, %v2687_v55 }
 0x61a   :  { %v2715_v17 = vpop.permute.xlu2 %2714 }
 0x61b   :  { %v2665_v30 = vpop.permute.xlu0 %2664 }
 0x61c   :  { %2550 = vrot.lane.b32.xlu1 %v7072_v7, %s5175_s3  ;;  %v2693_v61 = vadd.f32 %v2665_v30, %v2645_v49  ;;  %v2747_v49 = vadd.f32 1e-20, %v2735_v1 }
 0x61e   :  { %v2667_v22 = vpop.permute.xlu1 %2666  ;;  %4887 = vrcp.f32 %v2747_v49  ;;  %vm2778_vm12 = vweird.f32 %v2747_v49 }
 0x61f   :  { %v2694_v38 = vadd.f32 %v2667_v22, %v2646_v6 }
 0x620   :  { %2558 = vrot.lane.b32.xlu2 %v7141_v31, %s5175_s3 }
 0x621   :  { %v7216_v36 = vadd.f32 %v2715_v17, %v2694_v38 }
 0x622   :  { %v2713_v0 = vpop.permute.xlu2 %2712 }
 0x623   :  { %v7220_v51 = vadd.f32 %v2713_v0, %v2693_v61  ;;  %v2721_v2 = vpop.permute.xlu0 %2720 }
 0x624   :  { %2552 = vrot.lane.b32.xlu1 %v7090_v20, %s5175_s3  ;;  %v7228_v34 = vadd.f32 %v2721_v2, %v2697_v25 }
 0x626   :  { %v2705_v27 = vpop.permute.xlu1 %2704 }
 0x627   :  { %v7224_v23 = vadd.f32 %v2705_v27, %v2689_v58 }
 0x628   :  { %2556 = vrot.lane.b32.xlu2 %v7171_v47, %s5175_s3 }
 0x62a   :  { %v2447_v60 = vpop.permute.xlu2 %2446 }
 0x62b   :  { %v2449_v32 = vpop.permute.xlu0 %2448 }
 0x62c   :  { %2554 = vrot.lane.b32.xlu1 %v7167_v28, %s5175_s3  ;;  %v2483_v19 = vadd.f32 %v2449_v32, %v7044_v48  ;;  %v7263_v48 = vadd.f32 1e-20, %v7194_v13 }
 0x62e   :  { %v2707_v14 = vpop.permute.xlu1 %2706  ;;  %4889 = vrcp.f32 %v7263_v48  ;;  %v2769_v26 = vand.u32 2147483648, %v7263_v48  ;;  %vm2763_vm10 = vweird.f32 %v7263_v48 }
 0x62f   :  { %v7235_v62 = vadd.f32 %v2707_v14, %v7158_v33  ;;  %v4888_v33 = vpop.eup %4887 }
 0x630   :  { %v2774_v61 = vmul.f32 %v4888_v33, %v2747_v49  ;;  %vm2779_vm9 = vweird.f32 %v4888_v33  ;;  %v2770_v45 = vor.u32 1.1754944e-38, %v2769_v26 }
 0x631   :  { %vm2780_vm4 = vmor %vm2778_vm12, %vm2779_vm9  ;;  %v7348_v35 = vadd.f32 1e-20, %v7235_v62 }
 0x632   :  { %v2497_v44 = vpop.permute.xlu2 %2496  ;;  %v2775_v59 = vsub.f32 1.0, %v2774_v61 }
 0x633   :  { %v7241_v6 = vpop.permute.xlu0 %2452 }
 0x634   :  { %v2776_v14 = vmul.f32 %v4888_v33, %v2775_v59 }
 0x636   :  { %v2709_v17 = vpop.permute.xlu1 %2708 }
 0x637   :  { %v7239_v25 = vadd.f32 %v2709_v17, %v2691_v41  ;;  %v2531_v41 = vadd.f32 %v2497_v44, %v2483_v19  ;;  %v2777_v44 = vadd.f32 %v4888_v33, %v2776_v14  ;;  %v2784_v17 = vand.u32 2147483648, %v2747_v49 }
 0x63a   :  { %v2499_v22 = vpop.permute.xlu2 %2498 }
 0x63b   :  { %v7245_v5 = vpop.permute.xlu0 %2454 }
 0x63e   :  { %v2711_v38 = vpop.permute.xlu1 %2710 }
 0x63f   :  { %v7243_v30 = vadd.f32 %v2711_v38, %v2692_v54  ;;  %v2482_v54 = vadd.f32 %v2447_v60, %v7086_v39  ;;  %v2781_v60 = vsel %vm2780_vm4, %v4888_v33, %v2777_v44  ;;  %v2785_v38 = vor.u32 1.1754944e-38, %v2784_v17 }
 0x640   :  { %v7282_v33 = vadd.f32 1e-20, %v7200_v3 }
 0x642   :  { %v7247_v57 = vpop.permute.xlu2 %2468  ;;  %v2917_v21 = vand.u32 2147483647, %v7282_v33  ;;  %vm2913_vm8 = vweird.f32 %v7282_v33 }
 0x643   :  { %v7250_v0 = vpop.permute.xlu0 %2456 }
 0x644   :  { %vm7389_vm12 = vcmp.eq.f32.partialorder %v2917_v21, 8.507059e+37 }
 0x646   :  { %v2451_v43 = vpop.permute.xlu1 %2450 }
 0x647   :  { %v2484_v27 = vadd.f32 %v2451_v43, %v7100_v46  ;;  %v2782_v46 = vand.u32 2147483647, %v2747_v49  ;;  %v7278_v49 = vadd.f32 1e-20, %v7186_v29  ;;  %v7294_v29 = vadd.f32 1e-20, %v7216_v36 }
 0x649   :  { %v7260_v1 = vadd.f32 %v2499_v22, %v2484_v27  ;;  %v7271_v22 = vadd.f32 1e-20, %v7206_v40  ;;  %vm2783_vm0 = vcmp.eq.f32.partialorder %v2782_v46, 8.507059e+37  ;;  %v4890_v27 = vpop.eup %4889  ;;  %v2904_v10 = vand.u32 2147483648, %v7278_v49 }
 0x64a   :  { %v7252_v58 = vpop.permute.xlu2 %2512  ;;  %v2786_v61 = vsel %vm2783_vm0, %v2785_v38, %v2781_v60  ;;  %vm2764_vm5 = vweird.f32 %v4890_v27  ;;  %vm2898_vm2 = vweird.f32 %v7278_v49 }
 0x64b   :  { %v2495_v4 = vpop.permute.xlu0 %2494  ;;  %4891 = vrcp.f32 %v7271_v22  ;;  %vm7331_vm15 = vmor %vm2763_vm10, %vm2764_vm5  ;;  %vm2793_vm13 = vweird.f32 %v7271_v22  ;;  %v2797_v62 = vand.u32 2147483647, %v7271_v22 }
 0x64c   :  { %v7258_v55 = vadd.f32 %v2495_v4, %v2482_v54  ;;  %v2759_v54 = vmul.f32 %v4890_v27, %v7263_v48  ;;  %4893 = vrcp.f32 %v7278_v49 }
 0x64d   :  { %4895 = vrcp.f32 %v7282_v33  ;;  %vm2798_vm5 = vcmp.eq.f32.partialorder %v2797_v62, 8.507059e+37 }
 0x64e   :  { %v7256_v2 = vpop.permute.xlu1 %2464  ;;  %v2760_v4 = vsub.f32 1.0, %v2759_v54  ;;  %4897 = vrcp.f32 %v7294_v29  ;;  %v7315_v54 = vadd.f32 1e-20, %v7228_v34  ;;  %v2767_v34 = vand.u32 2147483647, %v7263_v48 }
 0x650   :  { %v2761_v60 = vmul.f32 %v4890_v27, %v2760_v4  ;;  %vm2768_vm7 = vcmp.eq.f32.partialorder %v2767_v34, 8.507059e+37 }
 0x651   :  { %v7291_v14 = vpop.eup %4891 }
 0x652   :  { %v7265_v32 = vpop.permute.xlu2 %2502  ;;  %v7298_v3 = vpop.eup %4893  ;;  %v2789_v17 = vmul.f32 %v7291_v14, %v7271_v22  ;;  %v2762_v4 = vadd.f32 %v4890_v27, %v2761_v60  ;;  %vm2794_vm6 = vweird.f32 %v7291_v14 }
 0x653   :  { %v2545_v19 = vpop.permute.xlu0 %2544  ;;  %v7305_v38 = vpop.eup %4895  ;;  %v2894_v36 = vmul.f32 %v7298_v3, %v7278_v49  ;;  %vm2899_vm11 = vweird.f32 %v7298_v3  ;;  %vm7377_vm9 = vmor %vm2793_vm13, %vm2794_vm6 }
 0x654   :  { %v2579_v13 = vadd.f32 %v2545_v19, %v2531_v41  ;;  %v2909_v63 = vmul.f32 %v7305_v38, %v7282_v33  ;;  %v7321_v12 = vpop.eup %4897  ;;  %v2766_v48 = vsel %vm7331_vm15, %v4890_v27, %v2762_v4  ;;  %vm2914_vm4 = vweird.f32 %v7305_v38  ;;  %vm7406_vm0 = vmor %vm2898_vm2, %vm2899_vm11 }
 0x655   :  { %v2895_v50 = vsub.f32 1.0, %v2894_v36  ;;  %v7337_v36 = vor.u32 1.1754944e-38, %v2904_v10  ;;  %v2879_v52 = vmul.f32 %v7321_v12, %v7294_v29  ;;  %v2771_v4 = vsel %vm2768_vm7, %v2770_v45, %v2766_v48  ;;  %vm7425_vm10 = vmor %vm2913_vm8, %vm2914_vm4 }
 0x656   :  { %v7268_v39 = vpop.permute.xlu1 %2466  ;;  %v7275_v59 = vmul.f32 %v2786_v61, %v2579_v13  ;;  %v7312_v13 = vadd.f32 1e-20, %v7224_v23  ;;  %v2790_v61 = vsub.f32 1.0, %v2789_v17  ;;  %v2902_v17 = vand.u32 2147483647, %v7278_v49 }
 0x657   :  { %v2910_v42 = vsub.f32 1.0, %v2909_v63  ;;  %v2896_v10 = vmul.f32 %v7298_v3, %v2895_v50  ;;  %v2880_v34 = vsub.f32 1.0, %v2879_v52  ;;  %v2919_v45 = vand.u32 2147483648, %v7282_v33 }
 0x658   :  { %4899 = vrcp.f32 %v7312_v13  ;;  %v2791_v60 = vmul.f32 %v7291_v14, %v2790_v61  ;;  %v2799_v61 = vand.u32 2147483648, %v7271_v22  ;;  %v2950_v26 = vrot.slane %v7275_v59, 7 }
 0x659   :  { %4901 = vrcp.f32 %v7315_v54  ;;  %v2911_v16 = vmul.f32 %v7305_v38, %v2910_v42  ;;  %vm7365_vm14 = vcmp.eq.f32.partialorder %v2902_v17, 8.507059e+37  ;;  %v2897_v42 = vadd.f32 %v7298_v3, %v2896_v10 }
 0x65a   :  { %v7273_v43 = vpop.permute.xlu2 %2460  ;;  %v2792_v27 = vadd.f32 %v7291_v14, %v2791_v60  ;;  %4903 = vrcp.f32 %v7348_v35  ;;  %v2800_v52 = vor.u32 1.1754944e-38, %v2799_v61  ;;  %v7385_v17 = vadd.f32 1e-20, %v7239_v25 }
 0x65b   :  { %v7288_v41 = vpop.permute.xlu0 %2514  ;;  %v2491_v48 = vadd.f32 %v7256_v2, %v7116_v11  ;;  %v2492_v61 = vadd.f32 %v7268_v39, %v7128_v53  ;;  %v2912_v25 = vadd.f32 %v7305_v38, %v2911_v16  ;;  %v2881_v53 = vmul.f32 %v7321_v12, %v2880_v34 }
 0x65c   :  { %v2796_v22 = vsel %vm7377_vm9, %v7291_v14, %v2792_v27  ;;  %v2920_v14 = vor.u32 1.1754944e-38, %v2919_v45  ;;  %v2901_v16 = vsel %vm7406_vm0, %v7298_v3, %v2897_v42  ;;  %v2887_v49 = vand.u32 2147483647, %v7294_v29 }
 0x65d   :  { %v2540_v27 = vadd.f32 %v7288_v41, %v2492_v61  ;;  %4905 = vrcp.f32 %v7385_v17  ;;  %v2539_v62 = vadd.f32 %v7252_v58, %v2491_v48  ;;  %v2916_v45 = vsel %vm7425_vm10, %v7305_v38, %v2912_v25 }
 0x65e   :  { %v7285_v40 = vpop.permute.xlu1 %2462  ;;  %v7355_v8 = vpop.eup %4899  ;;  %v2889_v58 = vand.u32 2147483648, %v7294_v29  ;;  %v2882_v33 = vadd.f32 %v7321_v12, %v2881_v53  ;;  %vm2884_vm15 = vweird.f32 %v7321_v12  ;;  %vm2883_vm2 = vweird.f32 %v7294_v29 }
 0x65f   :  { %v7360_v50 = vpop.eup %4901  ;;  %v2804_v59 = vmul.f32 %v7355_v8, %v7312_v13  ;;  %vm7443_vm11 = vcmp.eq.f32.partialorder %v2887_v49, 8.507059e+37  ;;  %vm7457_vm13 = vmor %vm2883_vm2, %vm2884_vm15  ;;  %vm2808_vm7 = vweird.f32 %v7312_v13  ;;  %vm2809_vm6 = vweird.f32 %v7355_v8 }
 0x660   :  { %v7429_v3 = vpop.eup %4903  ;;  %v2890_v60 = vor.u32 1.1754944e-38, %v2889_v58  ;;  %vm7493_vm8 = vmor %vm2808_vm7, %vm2809_vm6  ;;  %vm2928_vm9 = vweird.f32 %v7315_v54  ;;  %v2932_v58 = vand.u32 2147483647, %v7315_v54  ;;  %v2486_v48 = vadd.f32 %v7245_v5, %v7072_v7 }
 0x661   :  { %v2819_v38 = vmul.f32 %v7429_v3, %v7348_v35  ;;  %v2829_v7 = vand.u32 2147483648, %v7348_v35  ;;  %vm2823_vm10 = vweird.f32 %v7348_v35  ;;  %vm8716_vm2 = vcmask 1043459  }
 0x662   :  { %v7296_v44 = vpop.permute.xlu2 %2516  ;;  %vm2933_vm0 = vcmp.eq.f32.partialorder %v2932_v58, 8.507059e+37  ;;  %vm2838_vm6 = vweird.f32 %v7385_v17 }
 0x663   :  { %v7307_v19 = vpop.permute.xlu0 %2504 }
 0x666   :  { %v7303_v46 = vpop.permute.xlu1 %2500 }
 0x66a   :  { %v7324_v23 = vpop.permute.xlu2 %2560 }
 0x66b   :  { %v2543_v63 = vpop.permute.xlu0 %2542  ;;  %v2587_v42 = vadd.f32 %v7324_v23, %v2539_v62  ;;  %v2490_v23 = vadd.f32 %v7285_v40, %v7141_v31  ;;  %v7466_v31 = vadd.f32 1e-20, %v7243_v30  ;;  %v2814_v30 = vand.u32 2147483648, %v7312_v13 }
 0x66c   :  { %v2578_v56 = vadd.f32 %v2543_v63, %v7258_v55  ;;  %v7363_v55 = vadd.f32 1e-20, %v7220_v51 }
 0x66e   :  { %v7339_v15 = vpop.permute.xlu1 %2458  ;;  %4907 = vrcp.f32 %v7363_v55 }
 0x66f   :  { %8695 = vst [vmem:[#allocation56_spill] sm:$0xff] %v7339_v15  ;;  %v2772_v15 = vmul.f32 %v2771_v4, %v2578_v56  ;;  %v2801_v4 = vsel %vm2798_vm5, %v2800_v52, %v2796_v22  ;;  %v2906_v52 = vsel %vm7365_vm14, %v7337_v36, %v2901_v16  ;;  %v2921_v36 = vsel %vm7389_vm12, %v2920_v14, %v2916_v45 }
 0x670   :  { %v2907_v40 = vmul.f32 %v2906_v52, %v2587_v42  ;;  %v2485_v14 = vadd.f32 %v7241_v6, %v7058_v9  ;;  %v2812_v16 = vand.u32 2147483647, %v7312_v13  ;;  %vm2929_vm14 = vweird.f32 %v7360_v50 }
 0x671   :  { %v2951_v51 = vsel %vm1612_vm1, %v2950_v26, %v2772_v15  ;;  %v2924_v15 = vmul.f32 %v7360_v50, %v7315_v54  ;;  %v2805_v26 = vsub.f32 1.0, %v2804_v59  ;;  %4909 = vrcp.f32 %v7466_v31  ;;  %vm7505_vm12 = vmor %vm2928_vm9, %vm2929_vm14 }
 0x672   :  { %v2563_v10 = vpop.permute.xlu2 %2562  ;;  %v2964_v6 = vrot.slane %v2907_v40, 7  ;;  %v2533_v42 = vadd.f32 %v7303_v46, %v2485_v14  ;;  %v2815_v52 = vor.u32 1.1754944e-38, %v2814_v30  ;;  %vm2813_vm4 = vcmp.eq.f32.partialorder %v2812_v16, 8.507059e+37  ;;  %v3075_v14 = vld [vmem:[#allocation8 + $0x510] sm:$0xff] }
 0x673   :  { %v7412_v39 = vpop.permute.xlu0 %2506  ;;  %v2925_v41 = vsub.f32 1.0, %v2924_v15  ;;  %v2588_v59 = vadd.f32 %v2563_v10, %v2540_v27  ;;  %v2806_v15 = vmul.f32 %v7355_v8, %v2805_v26  ;;  %v7463_v10 = vpop.eup %4905  ;;  %v2820_v27 = vsub.f32 1.0, %v2819_v38 }
 0x674   :  { %v7473_v2 = vpop.eup %4907  ;;  %vm2824_vm5 = vweird.f32 %v7429_v3  ;;  %vm2839_vm7 = vweird.f32 %v7463_v10  ;;  %vm8721_vm9 = vcmask 1043456  }
 0x675   :  { %v2926_v25 = vmul.f32 %v7360_v50, %v2925_v41  ;;  %v2807_v49 = vadd.f32 %v7355_v8, %v2806_v15  ;;  %vm7529_vm15 = vmor %vm2823_vm10, %vm2824_vm5  ;;  %vm2868_vm10 = vweird.f32 %v7363_v55 }
 0x676   :  { %v2547_v11 = vpop.permute.xlu1 %2546  ;;  %vm7549_vm14 = vmor %vm2838_vm6, %vm2839_vm7 }
 0x677   :  { %v2580_v21 = vadd.f32 %v2547_v11, %v7260_v1  ;;  %v2927_v9 = vadd.f32 %v7360_v50, %v2926_v25  ;;  %v2934_v1 = vand.u32 2147483648, %v7315_v54  ;;  %v7520_v25 = vld [vmem:[#allocation8 + $0x470] ss:$0 sm:$0xff] }
 0x679   :  { %v2802_v34 = vmul.f32 %v2801_v4, %v2580_v21  ;;  %v2922_v21 = vmul.f32 %v2921_v36, %v2588_v59  ;;  %v2931_v46 = vsel %vm7505_vm12, %v7360_v50, %v2927_v9  ;;  %vm8722_vm12 = vmmov %vm8721_vm9 }
 0x67a   :  { %v2559_v53 = vpop.permute.xlu2 %2558 }
 0x67b   :  { %v2952_v56 = vrot.slane %v2802_v34, 6  ;;  %v7471_v11 = vpop.permute.xlu0 %2508  ;;  %v2493_v34 = vadd.f32 %v7247_v57, %v7132_v18  ;;  %v2966_v41 = vrot.slane %v2922_v21, 6  ;;  %v2821_v18 = vmul.f32 %v7429_v3, %v2820_v27 }
 0x67c   :  { %v1988_v21 = vadd.f32 %v7520_v25, %v7028_v24  ;;  %v2842_v57 = vand.u32 2147483647, %v7385_v17 }
 0x67d   :  { %v7452_v22 = vsel %vm1615_vm3, %v2952_v56, %v2951_v51  ;;  %v2886_v51 = vsel %vm7457_vm13, %v7321_v12, %v2882_v33  ;;  %v2834_v12 = vmul.f32 %v7463_v10, %v7385_v17  ;;  %v2811_v33 = vsel %vm7493_vm8, %v7355_v8, %v2807_v49 }
 0x67e   :  { %v2511_v61 = vpop.permute.xlu1 %2510  ;;  %v2891_v26 = vsel %vm7443_vm11, %v2890_v60, %v2886_v51  ;;  %v2541_v13 = vadd.f32 %v7296_v44, %v2493_v34  ;;  %v2816_v36 = vsel %vm2813_vm4, %v2815_v52, %v2811_v33  ;;  %v7516_v44 = vpop.eup %4909  ;;  %v2827_v51 = vand.u32 2147483647, %v7348_v35  ;;  %vm8717_vm11 = vmmov %vm8716_vm2  ;;  %v3073_v34 = vld [vmem:[#allocation8 + $0x500] sm:$0xff] }
 0x67f   :  { %v2538_v63 = vadd.f32 %v2511_v61, %v2490_v23  ;;  %v2935_v23 = vor.u32 1.1754944e-38, %v2934_v1  ;;  %v2835_v15 = vsub.f32 1.0, %v2834_v12  ;;  %v2822_v61 = vadd.f32 %v7429_v3, %v2821_v18  ;;  %v3074_v12 = vld [vmem:[#allocation8 + $0x508] sm:$0xff]  ;;  %v3226_v18 = vld [vmem:[#allocation8 + $0x570] sm:$0xff] }
 0x680   :  { %v2534_v35 = vadd.f32 %v7265_v32, %v2486_v48  ;;  %vm2828_vm13 = vcmp.eq.f32.partialorder %v2827_v51, 8.507059e+37  ;;  %vm8720_vm8 = vcmask 1044484   ;;  %vm2843_vm4 = vcmp.eq.f32.partialorder %v2842_v57, 8.507059e+37  ;;  %v3264_v57 = vld [vmem:[#allocation8 + $0x5f8] sm:$0xff] }
 0x681   :  { %v2586_v4 = vadd.f32 %v2559_v53, %v2538_v63  ;;  %v2936_v50 = vsel %vm2933_vm0, %v2935_v23, %v2931_v46  ;;  %v3076_v63 = vld [vmem:[#allocation8 + $0x518] sm:$0xff]  ;;  %v2864_v53 = vmul.f32 %v7473_v2, %v7363_v55  ;;  %v2836_v30 = vmul.f32 %v7463_v10, %v2835_v15 }
 0x682   :  { %3097 = vmatpush.msrb.mxu0 %v3076_v63  ;;  %v2826_v24 = vsel %vm7529_vm15, %v7429_v3, %v2822_v61  ;;  %vm2869_vm0 = vweird.f32 %v7473_v2  ;;  %vm2854_vm5 = vweird.f32 %v7516_v44  ;;  %v2857_v61 = vand.u32 2147483647, %v7466_v31 }
 0x683   :  { %v2892_v62 = vmul.f32 %v2891_v26, %v2586_v4  ;;  %v2565_v38 = vpop.permute.xlu0 %2564  ;;  %v2849_v4 = vmul.f32 %v7516_v44, %v7466_v31  ;;  %v2830_v26 = vor.u32 1.1754944e-38, %v2829_v7  ;;  %v2837_v32 = vadd.f32 %v7463_v10, %v2836_v30  ;;  %vm2870_vm15 = vmor %vm2868_vm10, %vm2869_vm0 }
 0x684   :  { %v2589_v29 = vadd.f32 %v2565_v38, %v2541_v13  ;;  %3098 = vmatpush.msrb.mxu0 %v3075_v14  ;;  %v2874_v38 = vand.u32 2147483648, %v7363_v55  ;;  %vm2858_vm6 = vcmp.eq.f32.partialorder %v2857_v61, 8.507059e+37 }
 0x685   :  { %v2965_v56 = vsel %vm1612_vm1, %v2964_v6, %v2892_v62  ;;  %v2831_v45 = vsel %vm2828_vm13, %v2830_v26, %v2826_v24  ;;  %vm8724_vm13 = vcmask 1045509   ;;  %v8728_v24 = vld [vmem:[#allocation50_spill] sm:$0xff] }
 0x686   :  { %v2549_v59 = vpop.permute.xlu1 %2548  ;;  %v2967_v54 = vsel %vm1615_vm3, %v2966_v41, %v2965_v56  ;;  %v2937_v5 = vmul.f32 %v2936_v50, %v2589_v29  ;;  %v2865_v41 = vsub.f32 1.0, %v2864_v53  ;;  %3099 = vmatpush.msrb.mxu0 %v3074_v12  ;;  %v2487_v56 = vadd.f32 %v7250_v0, %v7090_v20  ;;  %v2557_v29 = vpop.permute.xlu2 %2556  ;;  %v8730_v26 = vld [vmem:[#allocation22_spill] sm:$0xff] }
 0x687   :  { %v2581_v8 = vadd.f32 %v2549_v59, %v2533_v42  ;;  %v2844_v42 = vand.u32 2147483648, %v7385_v17  ;;  %v2841_v59 = vsel %vm7549_vm14, %v7463_v10, %v2837_v32  ;;  %vm8726_vm14 = vcmask 1046534   ;;  %v3268_v32 = vld [vmem:[#allocation8 + $0x618] sm:$0xff] }
 0x688   :  { %v2968_v27 = vrot.slane %v2937_v5, 5  ;;  %3100 = vmatpush.msrb.mxu0 %v3073_v34  ;;  %v2866_v52 = vmul.f32 %v7473_v2, %v2865_v41  ;;  %v2535_v46 = vadd.f32 %v7307_v19, %v2487_v56  ;;  %v3231_v34 = vld [vmem:[#allocation8 + $0x598] sm:$0xff]  ;;  %v3269_v41 = vld [vmem:[#allocation8 + $0x620] sm:$0xff] }
 0x689   :  { %v2817_v60 = vmul.f32 %v2816_v36, %v2581_v8  ;;  %v2845_v17 = vor.u32 1.1754944e-38, %v2844_v42  ;;  %v3266_v42 = vld [vmem:[#allocation8 + $0x608] sm:$0xff]  ;;  %v3227_v56 = vld [vmem:[#allocation8 + $0x578] sm:$0xff] }
 0x68a   :  { %v2969_v6 = vsel %vm8717_vm11, %v2968_v27, %v2967_v54  ;;  %v2867_v19 = vadd.f32 %v7473_v2, %v2866_v52  ;;  %v7614_v52 = vld [vmem:[#allocation8 + $0x520] ss:$0 sm:$0xff] }
 0x68b   :  { %v2954_v40 = vrot.slane %v2817_v60, 5  ;;  %v2973_v1 = vadd.f32 %v2969_v6, %v1988_v21  ;;  %v2846_v8 = vsel %vm2843_vm4, %v2845_v17, %v2841_v59  ;;  %vm8732_vm4 = vcmask 1043456   ;;  %v8739_v6 = vld [vmem:[#allocation25_spill] sm:$0xff] }
 0x68c   :  { %v2871_v7 = vsel %vm2870_vm15, %v7473_v2, %v2867_v19  ;;  %v8725_v2 = vld [vmem:[#allocation59_spill] sm:$0xff]  ;;  %vm8733_vm0 = vmmov %vm8732_vm4  ;;  %v3225_v59 = vld [vmem:[#allocation8 + $0x568] sm:$0xff] }
 0x68d   :  { %v2955_v49 = vsel %vm8716_vm2, %v2954_v40, %v7452_v22  ;;  %v2850_v22 = vsub.f32 1.0, %v2849_v4  ;;  %v2975_v3 = vmax.f32 %v2973_v1, 0.0  ;;  %vm2853_vm2 = vweird.f32 %v7466_v31  ;;  %v3270_v1 = vld [vmem:[#allocation8 + $0x628] sm:$0xff] }
 0x68e   :  { %v2551_v9 = vpop.permute.xlu1 %2550  ;;  %vm2855_vm11 = vmor %vm2853_vm2, %vm2854_vm5  ;;  %v2875_v40 = vor.u32 1.1754944e-38, %v2874_v38  ;;  %v1985_v4 = vadd.f32 %v7520_v25, %v8725_v2  ;;  %v8735_v25 = vld [vmem:[#allocation23_spill] sm:$0xff] }
 0x68f   :  { %v2582_v62 = vadd.f32 %v2551_v9, %v2534_v35  ;;  %v7555_v13 = vadd.f32 %v2975_v3, %v6582_v37  ;;  %v2851_v0 = vmul.f32 %v7516_v44, %v2850_v22  ;;  %v2489_v37 = vadd.f32 %v7273_v43, %v7171_v47  ;;  %v8737_v9 = vld [vmem:[#allocation24_spill] sm:$0xff]  ;;  %v3229_v22 = vld [vmem:[#allocation8 + $0x588] sm:$0xff]  ;;  %v3256_v2 = vld [vmem:[#allocation8 + $0x5b8] sm:$0xff] }
 0x690   :  { %v2872_v47 = vand.u32 2147483647, %v7363_v55  ;;  %v2859_v43 = vand.u32 2147483648, %v7466_v31  ;;  %v3228_v3 = vld [vmem:[#allocation8 + $0x580] sm:$0xff] }
 0x691   :  { %v2832_v58 = vmul.f32 %v2831_v45, %v2582_v62  ;;  %4705 = vmatpush.msk.msrb.mxu1 %vm8721_vm9, %v7555_v13  ;;  %4709 = vmatpush.msk.msra.mxu0 %vm8722_vm12, %v7555_v13  ;;  %v2537_v10 = vadd.f32 %v7471_v11, %v2489_v37  ;;  %v2852_v15 = vadd.f32 %v7516_v44, %v2851_v0  ;;  %v8723_v11 = vld [vmem:[#allocation56_spill] sm:$0xff]  ;;  %vm8729_vm9 = vcmask 261120   ;;  %v3230_v45 = vld [vmem:[#allocation8 + $0x590] sm:$0xff]  ;;  %v3262_v37 = vld [vmem:[#allocation8 + $0x5e8] sm:$0xff] }
 0x692   :  { %v2488_v36 = vadd.f32 %v8723_v11, %v7167_v28  ;;  %vm2873_vm7 = vcmp.eq.f32.partialorder %v2872_v47, 8.507059e+37  ;;  %v2860_v28 = vor.u32 1.1754944e-38, %v2859_v43  ;;  %vm8731_vm12 = vcmask 97280   ;;  %vm8734_vm5 = vmmov %vm8729_vm9  ;;  %v3232_v62 = vld [vmem:[#allocation8 + $0x5a0] sm:$0xff]  ;;  %v8742_v47 = vld [vmem:[#allocation53_spill] sm:$0xff] }
 0x693   :  { %v2956_v33 = vrot.slane %v2832_v58, 4  ;;  %v2585_v50 = vadd.f32 %v2557_v29, %v2537_v10  ;;  %v2856_v51 = vsel %vm2855_vm11, %v7516_v44, %v2852_v15  ;;  %v2876_v14 = vsel %vm2873_vm7, %v2875_v40, %v2871_v7  ;;  %vm8736_vm10 = vmmov %vm8731_vm12  ;;  %v3267_v58 = vld [vmem:[#allocation8 + $0x610] sm:$0xff]  ;;  %v3224_v0 = vld [vmem:[#allocation8 + $0x560] sm:$0xff] }
 0x694   :  { %v2536_v5 = vadd.f32 %v7412_v39, %v2488_v36  ;;  %v2861_v16 = vsel %vm2858_vm6, %v2860_v28, %v2856_v51  ;;  %vm8738_vm15 = vmmov %vm8736_vm10  ;;  %v3261_v10 = vld [vmem:[#allocation8 + $0x5e0] sm:$0xff]  ;;  %v8741_v15 = vld [vmem:[#allocation19_spill] sm:$0xff]  ;;  %vm8747_vm7 = vcmask 785408  }
 0x695   :  { %v2957_v20 = vsel %vm8720_vm8, %v2956_v33, %v2955_v49  ;;  %v2877_v53 = vmul.f32 %v2876_v14, %v2585_v50  ;;  %vm8727_vm8 = vcmask 1047559   ;;  %vm8740_vm2 = vmmov %vm8736_vm10  ;;  %v3265_v33 = vld [vmem:[#allocation8 + $0x600] sm:$0xff]  ;;  %v3053_v43 = vadd.f32 %v8742_v47, %v8741_v15  ;;  %v3260_v11 = vld [vmem:[#allocation8 + $0x5d8] sm:$0xff] }
 0x696   :  { %v2553_v54 = vpop.permute.xlu1 %2552  ;;  %v8743_v36 = vld [vmem:[#allocation54_spill] sm:$0xff]  ;;  %vm8745_vm11 = vmmov %vm8734_vm5 }
 0x697   :  { %v2583_v48 = vadd.f32 %v2553_v54, %v2535_v46  ;;  %v2962_v27 = vrot.slane %v2877_v53, 1  ;;  %v3263_v46 = vld [vmem:[#allocation8 + $0x5f0] sm:$0xff]  ;;  %v3056_v29 = vadd.f32 %v8742_v47, %v8743_v36  ;;  %v3221_v53 = vld [vmem:[#allocation8 + $0x548] sm:$0xff]  ;;  %vm8748_vm6 = vmmov %vm8734_vm5 }
 0x698   :  { %v3259_v7 = vld [vmem:[#allocation8 + $0x5d0] sm:$0xff] }
 0x699   :  { %v2847_v23 = vmul.f32 %v2846_v8, %v2583_v48  ;;  %v3223_v48 = vld [vmem:[#allocation8 + $0x558] sm:$0xff] }
 0x69b   :  { %v2958_v60 = vrot.slane %v2847_v23, 3  ;;  %v3222_v23 = vld [vmem:[#allocation8 + $0x550] sm:$0xff] }
 0x69d   :  { %v2959_v55 = vsel %vm8724_vm13, %v2958_v60, %v2957_v20  ;;  %vm8746_vm13 = vcmask 523264  }
 0x69e   :  { %v2555_v63 = vpop.permute.xlu1 %2554 }
 0x69f   :  { %v2584_v21 = vadd.f32 %v2555_v63, %v2536_v5 }
 0x6a1   :  { %v2862_v31 = vmul.f32 %v2861_v16, %v2584_v21  ;;  %v3220_v16 = vld [vmem:[#allocation8 + $0x540] sm:$0xff] }
 0x6a3   :  { %v2960_v30 = vrot.slane %v2862_v31, 2  ;;  %v3258_v31 = vld [vmem:[#allocation8 + $0x5c8] sm:$0xff] }
 0x6a5   :  { %v2961_v39 = vsel %vm8726_vm14, %v2960_v30, %v2959_v55  ;;  %v8744_v55 = vld [vmem:[#allocation55_spill] sm:$0xff]  ;;  %v3257_v30 = vld [vmem:[#allocation8 + $0x5c0] sm:$0xff]  ;;  %vm8749_vm14 = vmmov %vm8734_vm5 }
 0x6a6   :  { %v2963_v35 = vsel %vm8727_vm8, %v2962_v27, %v2961_v39  ;;  %v3219_v27 = vld [vmem:[#allocation8 + $0x538] sm:$0xff]  ;;  %v3217_v39 = vld [vmem:[#allocation8 + $0x528] sm:$0xff] }
 0x6a7   :  { %v2972_v49 = vadd.f32 %v2963_v35, %v1985_v4  ;;  %v3218_v4 = vld [vmem:[#allocation8 + $0x530] sm:$0xff] }
 0x6a8   :  { %v3255_v35 = vld [vmem:[#allocation8 + $0x5b0] sm:$0xff] }
 0x6a9   :  { %v2974_v44 = vmax.f32 %v2972_v49, 0.0  ;;  %v3296_v49 = vld [vmem:[#allocation8 + $0x650] sm:$0xff] }
 0x6ab   :  { %v7592_v12 = vadd.f32 %v2974_v44, %v8728_v24  ;;  %v3295_v44 = vld [vmem:[#allocation8 + $0x648] sm:$0xff]  ;;  %v3294_v24 = vld [vmem:[#allocation8 + $0x640] sm:$0xff] }
 0x6ad   :  { %4703 = vmatmul.msk.f32.vlgmr.msrb.gmra.mxu0 %vm8729_vm9, %v7592_v12  ;;  %3137 = vmatpush.msrb.mxu1 %v7592_v12 }
 0x6ae   :  { %3177 = vmatpush.msra.mxu0 %v7592_v12  ;;  %4706 = vmatmul.msk.f32.vlgmr.msrb.gmra.mxu1 %vm8731_vm12, %v8730_v26  ;;  %v3293_v26 = vld [vmem:[#allocation8 + $0x638] sm:$0xff] }
 0x6af   :  { %4707 = vmatpush.msk.msra.mxu1 %vm8732_vm4, %v7555_v13 }
 0x6b0   :  { %3235 = vmatpush.msrb.mxu0 %v3232_v62 }
 0x6b1   :  { %3157 = vmatpush.msra.mxu1 %v7592_v12 }
 0x6b2   :  { %3236 = vmatpush.msrb.mxu0 %v3231_v34 }
 0x6b3   :  { %4711 = vmatpush.msk.msrb.mxu1 %vm8733_vm0, %v7555_v13 }
 0x6b4   :  { %3237 = vmatpush.msrb.mxu0 %v3230_v45 }
 0x6b5   :  { %3197 = vmatpush.msrb.mxu1 %v7592_v12  ;;  %4704 = vmatmul.msk.f32.gmra.mxu0 %vm8734_vm5, %v7555_v13 }
 0x6b6   :  { %4708 = vmatmul.msk.f32.vlgmr.msra.gmra.mxu1 %vm8736_vm10, %v8735_v25  ;;  %3238 = vmatpush.msrb.mxu0 %v3229_v22 }
 0x6b7   :  { %3273 = vmatpush.msra.mxu1 %v3270_v1 }
 0x6b8   :  { %3239 = vmatpush.msrb.mxu0 %v3228_v3  ;;  %v4989_v3 = vld [vmem:[#allocation8 + $0x4f8] ss:$0 sm:$0xff] }
 0x6b9   :  { %3274 = vmatpush.msra.mxu1 %v3269_v41  ;;  %v3061_v41 = vpop.f32.mrf.mxu3 }
 0x6ba   :  { %3240 = vmatpush.msrb.mxu0 %v3227_v56 }
 0x6bb   :  { %3275 = vmatpush.msra.mxu1 %v3268_v32 }
 0x6bc   :  { %3241 = vmatpush.msrb.mxu0 %v3226_v18 }
 0x6bd   :  { %4710 = vmatmul.msk.f32.vlgmr.msra.gmra.mxu0 %vm8738_vm15, %v8737_v9  ;;  %3276 = vmatpush.msra.mxu1 %v3267_v58  ;;  %v4762_v58 = vld [vmem:[#allocation8 + $0x5a8] ss:$0 sm:$0xff] }
 0x6be   :  { %4712 = vmatmul.msk.f32.vlgmr.msrb.gmra.mxu1 %vm8740_vm2, %v8739_v6  ;;  %3242 = vmatpush.msrb.mxu0 %v3225_v59 }
 0x6bf   :  { %3277 = vmatpush.msra.mxu1 %v3266_v42  ;;  %v8750_v42 = vld [vmem:[#allocation60_spill] sm:$0xff] }
 0x6c0   :  { %3243 = vmatpush.msrb.mxu0 %v3224_v0  ;;  %v3038_v56 = vadd.f32 %v4989_v3, %v8750_v42 }
 0x6c1   :  { %3278 = vmatpush.msra.mxu1 %v3265_v33  ;;  %v3064_v45 = vpop.f32.mrf.mxu3 }
 0x6c2   :  { %3244 = vmatpush.msrb.mxu0 %v3223_v48 }
 0x6c3   :  { %3279 = vmatpush.msra.mxu1 %v3264_v57 }
 0x6c4   :  { %3245 = vmatpush.msrb.mxu0 %v3222_v23  ;;  %v8751_v23 = vld [vmem:[#allocation51_spill] sm:$0xff] }
 0x6c5   :  { %3280 = vmatpush.msra.mxu1 %v3263_v46  ;;  %v3041_v15 = vadd.f32 %v4989_v3, %v8751_v23 }
 0x6c6   :  { %3246 = vmatpush.msrb.mxu0 %v3221_v53  ;;  %v8754_v53 = vld [vmem:[#allocation58_spill] sm:$0xff] }
 0x6c7   :  { %3281 = vmatpush.msra.mxu1 %v3262_v37 }
 0x6c8   :  { %3247 = vmatpush.msrb.mxu0 %v3220_v16  ;;  %v3050_v16 = vadd.f32 %v4989_v3, %v8754_v53 }
 0x6c9   :  { %3282 = vmatpush.msra.mxu1 %v3261_v10  ;;  %v3067_v18 = vpop.f32.mrf.mxu3 }
 0x6ca   :  { %3248 = vmatpush.msrb.mxu0 %v3219_v27 }
 0x6cb   :  { %3283 = vmatpush.msra.mxu1 %v3260_v11  ;;  %v8752_v11 = vld [vmem:[#allocation57_spill] sm:$0xff] }
 0x6cc   :  { %3249 = vmatpush.msrb.mxu0 %v3218_v4  ;;  %v3044_v36 = vadd.f32 %v4989_v3, %v8752_v11 }
 0x6cd   :  { %3284 = vmatpush.msra.mxu1 %v3259_v7 }
 0x6ce   :  { %3250 = vmatpush.msrb.mxu0 %v3217_v39 }
 0x6cf   :  { %3285 = vmatpush.msra.mxu1 %v3258_v31  ;;  %v3062_v31 = vadd.f32 %v4989_v3, %v3061_v41 }
 0x6d0   :  { %3311 = vmatpush.msra.mxu0 %v3296_v49 }
 0x6d1   :  { %3286 = vmatpush.msra.mxu1 %v3257_v30  ;;  %v3070_v27 = vpop.f32.mrf.mxu3 }
 0x6d2   :  { %3312 = vmatpush.msra.mxu0 %v3295_v44 }
 0x6d3   :  { %3287 = vmatpush.msra.mxu1 %v3256_v2 }
 0x6d4   :  { %3313 = vmatpush.msra.mxu0 %v3294_v24 }
 0x6d5   :  { %3288 = vmatpush.msra.mxu1 %v3255_v35 }
 0x6d6   :  { %3314 = vmatpush.msra.mxu0 %v3293_v26 }
 0x72a   :  { %v3102_v20 = vpop.f32.mrf.mxu0 }
 0x72b   :  { %v7617_v17 = vadd.f32 %v7614_v52, %v3102_v20  ;;  %v3139_v54 = vpop.f32.mrf.mxu1 }
 0x72d   :  { %v3114_v19 = vrot.slane %v7617_v17, 5  ;;  %v3115_v8 = vrot.slane %v7617_v17, 6  ;;  %v3116_v38 = vrot.slane %v7617_v17, 7  ;;  %v3322_v22 = vperm.slane %v7617_v17, 0 }
 0x72e   :  { %v3110_v33 = vrot.slane %v7617_v17, 1  ;;  %v3111_v57 = vrot.slane %v7617_v17, 2  ;;  %v3112_v59 = vrot.slane %v7617_v17, 3 }
 0x72f   :  { %v3327_v60 = vperm.slane %v3114_v19, 0  ;;  %v3328_v61 = vperm.slane %v3115_v8, 0  ;;  %v3329_v50 = vperm.slane %v3116_v38, 0  ;;  %v3346_v0 = vadd.f32 %v3322_v22, %v3038_v56 }
 0x730   :  { %v3323_v48 = vperm.slane %v3110_v33, 0  ;;  %v3324_v19 = vperm.slane %v3111_v57, 0  ;;  %v3325_v8 = vperm.slane %v3112_v59, 0 }
 0x731   :  { %v7626_v5 = vadd.f32 %v3327_v60, %v3053_v43  ;;  %v7628_v40 = vadd.f32 %v3328_v61, %v3056_v29  ;;  %v7631_v51 = vadd.f32 %v3329_v50, %v8744_v55  ;;  %v8753_v29 = vld [vmem:[#allocation52_spill] sm:$0xff]  ;;  %v3065_v61 = vadd.f32 %v4989_v3, %v3064_v45 }
 0x732   :  { %v3105_v28 = vpop.f32.mrf.mxu0  ;;  %v3047_v60 = vadd.f32 %v4989_v3, %v8753_v29  ;;  %v3068_v50 = vadd.f32 %v4989_v3, %v3067_v18  ;;  %v3347_v55 = vadd.f32 %v3323_v48, %v3041_v15 }
 0x733   :  { %v3159_v63 = vpop.f32.mrf.mxu1  ;;  %v3106_v32 = vadd.f32 %v7614_v52, %v3105_v28  ;;  %v3113_v52 = vrot.slane %v7617_v17, 4  ;;  %v3348_v17 = vadd.f32 %v3324_v19, %v3044_v36 }
 0x734   :  { %3203 = vrot.lane.b32.xlu0 %v3159_v63, %s5175_s3  ;;  %v3349_v63 = vadd.f32 %v3325_v8, %v3047_v60 }
 0x735   :  { %v3117_v46 = vrot.slane %v3106_v32, 1  ;;  %v3118_v37 = vrot.slane %v3106_v32, 2  ;;  %v3326_v7 = vperm.slane %v3113_v52, 0  ;;  %v3119_v28 = vrot.slane %v3106_v32, 3 }
 0x737   :  { %v3331_v38 = vperm.slane %v3117_v46, 0  ;;  %v3332_v47 = vperm.slane %v3118_v37, 0  ;;  %v3350_v49 = vadd.f32 %v3326_v7, %v3050_v16  ;;  %v3333_v44 = vperm.slane %v3119_v28, 0 }
 0x739   :  { %v3356_v30 = vadd.f32 %v3332_v47, %v3068_v50 }
 0x73a   :  { %v3179_v14 = vpop.f32.mrf.mxu0 }
 0x73b   :  { %3207 = vrot.lane.b32.xlu1 %v3179_v14, %s5176_s16  ;;  %v3199_v21 = vpop.f32.mrf.mxu1  ;;  %v3330_v14 = vperm.slane %v3106_v32, 0 }
 0x73c   :  { %3211 = vrot.lane.b32.xlu2 %v3199_v21, %s5177_s17  ;;  %v3355_v21 = vadd.f32 %v3331_v38, %v3065_v61 }
 0x73d   :  { %v3354_v26 = vadd.f32 %v3330_v14, %v3062_v31 }
 0x796   :  { %v3212_v9 = vpop.permute.xlu2 %3211 }
 0x7a6   :  { %v3204_v25 = vpop.permute.xlu0 %3203 }
 0x7a7   :  { %v3214_v6 = vsel %vm8745_vm11, %v3139_v54, %v3204_v25 }
 0x7ad   :  { %v3208_v62 = vpop.permute.xlu1 %3207 }
 0x7ae   :  { %v3215_v1 = vsel %vm8746_vm13, %v3214_v6, %v3208_v62  ;;  %v3071_v62 = vadd.f32 %v4989_v3, %v3070_v27 }
 0x7af   :  { %v3216_v34 = vsel %vm8747_vm7, %v3215_v1, %v3212_v9 }
 0x7b0   :  { %3251 = vmatmul.f32.vlgmr.msrb.gmra.mxu0 %v3216_v34  ;;  %3289 = vmatmul.f32.vlgmr.msra.gmra.mxu1 %v3216_v34  ;;  %v3357_v22 = vadd.f32 %v3333_v44, %v3071_v62 }
 0x7b8   :  { %4713 = vmatmul.msk.f32.vlgmr.msra.gmra.mxu0 %vm8748_vm6, %v7592_v12 }
 0x7c0   :  { %4714 = vmatmul.msk.f32.gmra.mxu0 %vm8749_vm14, %v7555_v13 }
 0x82d   :  { %v3252_v20 = vpop.f32.mrf.mxu0 }
 0x82e   :  { %v7649_v54 = vadd.f32 %v4762_v58, %v3252_v20 }
 0x830   :  { %v3358_v10 = vadd.f32 %v3346_v0, %v7649_v54  ;;  %v3360_v2 = vadd.f32 %v3348_v17, %v7649_v54  ;;  %v3359_v4 = vadd.f32 %v3347_v55, %v7649_v54  ;;  %v3367_v39 = vadd.f32 %v3355_v21, %v7649_v54 }
 0x831   :  { %v3361_v35 = vadd.f32 %v3349_v63, %v7649_v54  ;;  %v3368_v24 = vadd.f32 %v3356_v30, %v7649_v54  ;;  %v3362_v34 = vadd.f32 %v3350_v49, %v7649_v54  ;;  %v3366_v32 = vadd.f32 %v3354_v26, %v7649_v54  ;;  %v8761_v26 = vld [vmem:[#allocation26_spill] sm:$0xff] }
 0x832   :  { %v4715_v43 = vmul.f32 -1.442695, %v3358_v10  ;;  %v4717_v25 = vmul.f32 -1.442695, %v3360_v2  ;;  %v4716_v9 = vmul.f32 -1.442695, %v3359_v4  ;;  %v3369_v56 = vadd.f32 %v3357_v22, %v7649_v54 }
 0x833   :  { %v4724_v1 = vmul.f32 -1.442695, %v3367_v39  ;;  %v4718_v45 = vmul.f32 -1.442695, %v3361_v35  ;;  %v4725_v58 = vmul.f32 -1.442695, %v3368_v24 }
 0x834   :  { %4911 = vpow2.f32 %v4715_v43  ;;  %v4719_v42 = vmul.f32 -1.442695, %v3362_v34  ;;  %v4723_v33 = vmul.f32 -1.442695, %v3366_v32  ;;  %v4726_v59 = vmul.f32 -1.442695, %v3369_v56 }
 0x835   :  { %4913 = vpow2.f32 %v4717_v25 }
 0x836   :  { %4915 = vpow2.f32 %v4716_v9 }
 0x83a   :  { %v4912_v6 = vpop.eup %4911 }
 0x83b   :  { %v3406_v41 = vadd.f32 1.0, %v4912_v6  ;;  %v4914_v3 = vpop.eup %4913 }
 0x83c   :  { %v4916_v18 = vpop.eup %4915  ;;  %v7665_v57 = vadd.f32 1.0, %v4914_v3 }
 0x83d   :  { %4917 = vrcp.f32 %v3406_v41  ;;  %v7667_v20 = vadd.f32 1.0, %v4916_v18  ;;  %v3427_v48 = vand.u32 2147483647, %v3406_v41  ;;  %v3429_v10 = vand.u32 2147483648, %v3406_v41 }
 0x83e   :  { %4919 = vpow2.f32 %v4724_v1  ;;  %vm3423_vm8 = vweird.f32 %v3406_v41  ;;  %v3457_v23 = vand.u32 2147483647, %v7665_v57  ;;  %v3459_v15 = vand.u32 2147483648, %v7665_v57 }
 0x83f   :  { %4921 = vpow2.f32 %v4718_v45  ;;  %v3442_v36 = vand.u32 2147483647, %v7667_v20  ;;  %v3444_v29 = vand.u32 2147483648, %v7667_v20  ;;  %vm7680_vm12 = vcmp.eq.f32.partialorder %v3427_v48, 8.507059e+37 }
 0x840   :  { %4923 = vpow2.f32 %v4725_v58  ;;  %v3430_v50 = vor.u32 1.1754944e-38, %v3429_v10  ;;  %vm3453_vm4 = vweird.f32 %v7665_v57  ;;  %vm3438_vm0 = vweird.f32 %v7667_v20 }
 0x841   :  { %4925 = vpow2.f32 %v4719_v42  ;;  %vm7693_vm10 = vcmp.eq.f32.partialorder %v3457_v23, 8.507059e+37  ;;  %v3460_v53 = vor.u32 1.1754944e-38, %v3459_v15  ;;  %vm7702_vm15 = vcmp.eq.f32.partialorder %v3442_v36, 8.507059e+37 }
 0x842   :  { %4927 = vpow2.f32 %v4723_v33  ;;  %v3445_v39 = vor.u32 1.1754944e-38, %v3444_v29 }
 0x843   :  { %v4918_v46 = vpop.eup %4917  ;;  %4929 = vrcp.f32 %v7665_v57 }
 0x844   :  { %v4920_v0 = vpop.eup %4919  ;;  %v3419_v37 = vmul.f32 %v4918_v46, %v3406_v41  ;;  %4931 = vrcp.f32 %v7667_v20  ;;  %vm3424_vm9 = vweird.f32 %v4918_v46 }
 0x845   :  { %v4922_v52 = vpop.eup %4921  ;;  %v7671_v38 = vadd.f32 1.0, %v4920_v0  ;;  %4933 = vpow2.f32 %v4726_v59  ;;  %vm3425_vm5 = vmor %vm3423_vm8, %vm3424_vm9 }
 0x846   :  { %v4924_v19 = vpop.eup %4923  ;;  %v3420_v8 = vsub.f32 1.0, %v3419_v37  ;;  %v7675_v47 = vadd.f32 1.0, %v4922_v52 }
 0x847   :  { %v4926_v43 = vpop.eup %4925  ;;  %4935 = vrcp.f32 %v7671_v38  ;;  %v7685_v7 = vadd.f32 1.0, %v4924_v19  ;;  %v3564_v17 = vand.u32 2147483648, %v7671_v38  ;;  %v3562_v16 = vand.u32 2147483647, %v7671_v38 }
 0x848   :  { %v3421_v11 = vmul.f32 %v4918_v46, %v3420_v8  ;;  %v4928_v60 = vpop.eup %4927  ;;  %4937 = vrcp.f32 %v7675_v47  ;;  %v3474_v31 = vand.u32 2147483648, %v7675_v47  ;;  %v3472_v35 = vand.u32 2147483647, %v7675_v47 }
 0x849   :  { %v4930_v55 = vpop.eup %4929  ;;  %vm3558_vm2 = vweird.f32 %v7671_v38  ;;  %4939 = vrcp.f32 %v7685_v7  ;;  %v3565_v6 = vor.u32 1.1754944e-38, %v3564_v17  ;;  %vm3468_vm13 = vweird.f32 %v7675_v47 }
 0x84a   :  { %v3422_v28 = vadd.f32 %v4918_v46, %v3421_v11  ;;  %v4932_v63 = vpop.eup %4931  ;;  %v3449_v14 = vmul.f32 %v4930_v55, %v7665_v57  ;;  %vm3454_vm11 = vweird.f32 %v4930_v55  ;;  %vm7716_vm6 = vcmp.eq.f32.partialorder %v3562_v16, 8.507059e+37  ;;  %v8766_v11 = vld [vmem:[#allocation28_spill] sm:$0xff] }
 0x84b   :  { %v7699_v30 = vpop.eup %4933  ;;  %v3434_v2 = vmul.f32 %v4932_v63, %v7667_v20  ;;  %vm3439_vm7 = vweird.f32 %v4932_v63  ;;  %v3475_v45 = vor.u32 1.1754944e-38, %v3474_v31  ;;  %vm7722_vm14 = vcmp.eq.f32.partialorder %v3472_v35, 8.507059e+37  ;;  %vm3455_vm9 = vmor %vm3453_vm4, %vm3454_vm11  ;;  %v8768_v31 = vld [vmem:[#allocation43_spill] sm:$0xff]  ;;  %v8769_v35 = vld [vmem:[#allocation29_spill] sm:$0xff] }
 0x84c   :  { %v3426_v27 = vsel %vm3425_vm5, %v4918_v46, %v3422_v28  ;;  %v3450_v44 = vsub.f32 1.0, %v3449_v14  ;;  %v3577_v56 = vand.u32 2147483647, %v7685_v7  ;;  %v3579_v18 = vand.u32 2147483648, %v7685_v7  ;;  %vm3440_vm5 = vmor %vm3438_vm0, %vm3439_vm7 }
 0x84d   :  { %v3431_v49 = vsel %vm7680_vm12, %v3430_v50, %v3426_v27  ;;  %v4936_v24 = vpop.eup %4935  ;;  %v3435_v9 = vsub.f32 1.0, %v3434_v2  ;;  %v7735_v10 = vadd.f32 1.0, %v4926_v43  ;;  %v7737_v19 = vadd.f32 1.0, %v4928_v60  ;;  %v8767_v43 = vld [vmem:[#allocation27_spill] sm:$0xff] }
 0x84e   :  { %v7712_v25 = vmul.f32 %v3431_v49, %v8761_v26  ;;  %v4938_v62 = vpop.eup %4937  ;;  %v3451_v1 = vmul.f32 %v4930_v55, %v3450_v44  ;;  %v3554_v34 = vmul.f32 %v4936_v24, %v7671_v38  ;;  %vm3559_vm8 = vweird.f32 %v4936_v24 }
 0x84f   :  { %v3436_v22 = vmul.f32 %v4932_v63, %v3435_v9  ;;  %v3464_v58 = vmul.f32 %v4938_v62, %v7675_v47  ;;  %vm3469_vm12 = vweird.f32 %v4938_v62  ;;  %v4940_v37 = vpop.eup %4939  ;;  %vm3560_vm4 = vmor %vm3558_vm2, %vm3559_vm8  ;;  %4941 = vrcp.f32 %v7735_v10 }
 0x850   :  { %v3694_v32 = vrot.slane %v7712_v25, 4  ;;  %v3452_v33 = vadd.f32 %v4930_v55, %v3451_v1  ;;  %v3555_v3 = vsub.f32 1.0, %v3554_v34  ;;  %v3569_v20 = vmul.f32 %v4940_v37, %v7685_v7 }
 0x851   :  { %v3437_v46 = vadd.f32 %v4932_v63, %v3436_v22  ;;  %v3465_v0 = vsub.f32 1.0, %v3464_v58  ;;  %vm3574_vm0 = vweird.f32 %v4940_v37  ;;  %v3363_v44 = vadd.f32 %v7626_v5, %v7649_v54 }
 0x852   :  { %v3695_v59 = vadd.f32 %v3694_v32, %v7712_v25  ;;  %v3456_v52 = vsel %vm3455_vm9, %v4930_v55, %v3452_v33  ;;  %v3556_v48 = vmul.f32 %v4936_v24, %v3555_v3  ;;  %v3580_v1 = vor.u32 1.1754944e-38, %v3579_v18  ;;  %v8770_v3 = vld [vmem:[#allocation46_spill] sm:$0xff] }
 0x853   :  { %v3461_v23 = vsel %vm7693_vm10, %v3460_v53, %v3456_v52  ;;  %v3441_v57 = vsel %vm3440_vm5, %v4932_v63, %v3437_v46  ;;  %v3466_v15 = vmul.f32 %v4938_v62, %v3465_v0  ;;  %vm3470_vm10 = vmor %vm3468_vm13, %vm3469_vm12  ;;  %v3570_v63 = vsub.f32 1.0, %v3569_v20 }
 0x854   :  { %v3696_v8 = vrot.slane %v3695_v59, 2  ;;  %v7742_v36 = vmul.f32 %v3461_v23, %v8766_v11  ;;  %v3446_v29 = vsel %vm7702_vm15, %v3445_v39, %v3441_v57  ;;  %v3557_v61 = vadd.f32 %v4936_v24, %v3556_v48 }
 0x855   :  { %v7748_v55 = vmul.f32 %v3446_v29, %v8767_v43  ;;  %v3467_v60 = vadd.f32 %v4938_v62, %v3466_v15  ;;  %v3571_v47 = vmul.f32 %v4940_v37, %v3570_v63  ;;  %vm3573_vm15 = vweird.f32 %v7685_v7  ;;  %v4942_v34 = vpop.eup %4941 }
 0x856   :  { %v3697_v50 = vadd.f32 %v3696_v8, %v3695_v59  ;;  %v3706_v28 = vrot.slane %v7742_v36, 4  ;;  %v3561_v17 = vsel %vm3560_vm4, %v4936_v24, %v3557_v61  ;;  %vm3575_vm2 = vmor %vm3573_vm15, %vm3574_vm0  ;;  %4943 = vrcp.f32 %v7737_v19 }
 0x857   :  { %v3700_v21 = vrot.slane %v7748_v55, 4  ;;  %v3566_v53 = vsel %vm7716_vm6, %v3565_v6, %v3561_v17  ;;  %v3471_v38 = vsel %vm3470_vm10, %v4938_v62, %v3467_v60  ;;  %v3572_v9 = vadd.f32 %v4940_v37, %v3571_v47 }
 0x858   :  { %v3698_v14 = vrot.slane %v3697_v50, 1  ;;  %v3707_v16 = vadd.f32 %v3706_v28, %v7742_v36  ;;  %v7763_v27 = vmul.f32 %v3566_v53, %v8768_v31  ;;  %v3476_v2 = vsel %vm7722_vm14, %v3475_v45, %v3471_v38  ;;  %v8771_v31 = vld [vmem:[#allocation32_spill] sm:$0xff] }
 0x859   :  { %v3701_v39 = vadd.f32 %v3700_v21, %v7748_v55  ;;  %v7771_v49 = vmul.f32 %v3476_v2, %v8769_v35  ;;  %v3576_v45 = vsel %vm3575_vm2, %v4940_v37, %v3572_v9  ;;  %vm3578_vm11 = vcmp.eq.f32.partialorder %v3577_v56, 8.507059e+37 }
 0x85a   :  { %v7767_v4 = vadd.f32 %v3698_v14, %v3697_v50  ;;  %v3708_v24 = vrot.slane %v3707_v16, 2  ;;  %v3748_v26 = vrot.slane %v7763_v27, 4  ;;  %v3581_v22 = vsel %vm3578_vm11, %v3580_v1, %v3576_v45 }
 0x85b   :  { %v3702_v6 = vrot.slane %v3701_v39, 2  ;;  %v3712_v62 = vrot.slane %v7771_v49, 4  ;;  %v3479_v58 = vmul.f32 %v4942_v34, %v7735_v10  ;;  %v7786_v59 = vmul.f32 %v3581_v22, %v8770_v3 }
 0x85c   :  { %3934 = vrot.lane.b32.xlu2 %v7767_v4, %s5177_s17  ;;  %v3709_v41 = vadd.f32 %v3708_v24, %v3707_v16  ;;  %v3749_v5 = vadd.f32 %v3748_v26, %v7763_v27  ;;  %v7789_v18 = vadd.f32 1.0, %v7699_v30  ;;  %v3489_v37 = vand.u32 2147483648, %v7735_v10  ;;  %v4944_v57 = vpop.eup %4943 }
 0x85d   :  { %v3703_v32 = vadd.f32 %v3702_v6, %v3701_v39  ;;  %v3713_v7 = vadd.f32 %v3712_v62, %v7771_v49  ;;  %v3480_v52 = vsub.f32 1.0, %v3479_v58  ;;  %v3754_v8 = vrot.slane %v7786_v59, 4 }
 0x85e   :  { %v3710_v42 = vrot.slane %v3709_v41, 1  ;;  %v3750_v33 = vrot.slane %v3749_v5, 2  ;;  %v3487_v23 = vand.u32 2147483647, %v7735_v10  ;;  %vm3484_vm13 = vweird.f32 %v4942_v34 }
 0x85f   :  { %v3704_v46 = vrot.slane %v3703_v32, 1  ;;  %v3714_v0 = vrot.slane %v3713_v7, 2  ;;  %v3481_v29 = vmul.f32 %v4942_v34, %v3480_v52  ;;  %v3755_v30 = vadd.f32 %v3754_v8, %v7786_v59 }
 0x860   :  { %v7792_v56 = vadd.f32 %v3710_v42, %v3709_v41  ;;  %v3751_v48 = vadd.f32 %v3750_v33, %v3749_v5  ;;  %v3539_v61 = vmul.f32 %v4944_v57, %v7737_v19  ;;  %vm3483_vm7 = vweird.f32 %v7735_v10  ;;  %v8772_v41 = vld [vmem:[#allocation41_spill] sm:$0xff] }
 0x861   :  { %v7796_v15 = vadd.f32 %v3704_v46, %v3703_v32  ;;  %v3715_v11 = vadd.f32 %v3714_v0, %v3713_v7  ;;  %v3482_v20 = vadd.f32 %v4942_v34, %v3481_v29  ;;  %v3490_v50 = vor.u32 1.1754944e-38, %v3489_v37  ;;  %vm3485_vm6 = vmor %vm3483_vm7, %vm3484_vm13 }
 0x862   :  { %3938 = vrot.lane.b32.xlu1 %v7792_v56, %s5177_s17  ;;  %v4720_v43 = vmul.f32 -1.442695, %v3363_v44  ;;  %v3752_v60 = vrot.slane %v3751_v48, 1  ;;  %v3756_v28 = vrot.slane %v3755_v30, 2  ;;  %v3540_v17 = vsub.f32 1.0, %v3539_v61 }
 0x863   :  { %3936 = vrot.lane.b32.xlu0 %v7796_v15, %s5177_s17  ;;  %4945 = vrcp.f32 %v7789_v18  ;;  %v3716_v63 = vrot.slane %v3715_v11, 1  ;;  %v3486_v14 = vsel %vm3485_vm6, %v4942_v34, %v3482_v20  ;;  %vm3488_vm14 = vcmp.eq.f32.partialorder %v3487_v23, 8.507059e+37 }
 0x864   :  { %3984 = vrot.lane.b32.xlu2 %v7796_v15, %s5176_s16  ;;  %v3549_v21 = vand.u32 2147483648, %v7737_v19  ;;  %v3491_v53 = vsel %vm3488_vm14, %v3490_v50, %v3486_v14  ;;  %v3541_v38 = vmul.f32 %v4944_v57, %v3540_v17  ;;  %vm3544_vm8 = vweird.f32 %v4944_v57 }
 0x865   :  { %v3547_v16 = vand.u32 2147483647, %v7737_v19  ;;  %v7811_v10 = vmul.f32 %v3491_v53, %v8771_v31  ;;  %vm3543_vm9 = vweird.f32 %v7737_v19  ;;  %4947 = vpow2.f32 %v4720_v43 }
 0x866   :  { %v3364_v2 = vadd.f32 %v7628_v40, %v7649_v54  ;;  %v7816_v47 = vadd.f32 %v3752_v60, %v3751_v48  ;;  %v3757_v39 = vadd.f32 %v3756_v28, %v3755_v30  ;;  %v3542_v35 = vadd.f32 %v4944_v57, %v3541_v38  ;;  %vm3545_vm12 = vmor %vm3543_vm9, %vm3544_vm8 }
 0x867   :  { %v3365_v44 = vadd.f32 %v7631_v51, %v7649_v54  ;;  %v7820_v24 = vadd.f32 %v3716_v63, %v3715_v11  ;;  %v3718_v26 = vrot.slane %v7811_v10, 4  ;;  %v3550_v9 = vor.u32 1.1754944e-38, %v3549_v21 }
 0x868   :  { %v4721_v6 = vmul.f32 -1.442695, %v3364_v2  ;;  %v3546_v19 = vsel %vm3545_vm12, %v4944_v57, %v3542_v35  ;;  %vm3548_vm5 = vcmp.eq.f32.partialorder %v3547_v16, 8.507059e+37  ;;  %v3758_v34 = vrot.slane %v3757_v39, 1 }
 0x869   :  { %v4946_v62 = vpop.eup %4945  ;;  %v4722_v40 = vmul.f32 -1.442695, %v3365_v44  ;;  %v3719_v51 = vadd.f32 %v3718_v26, %v7811_v10  ;;  %v3551_v54 = vsel %vm3548_vm5, %v3550_v9, %v3546_v19  ;;  %v3594_v58 = vand.u32 2147483648, %v7789_v18 }
 0x86a   :  { %3952 = vrot.lane.b32.xlu1 %v7816_v47, %s5177_s17  ;;  %v3584_v1 = vmul.f32 %v4946_v62, %v7789_v18  ;;  %v7832_v5 = vmul.f32 %v3551_v54, %v8772_v41  ;;  %4949 = vpow2.f32 %v4721_v6  ;;  %vm3589_vm4 = vweird.f32 %v4946_v62 }
 0x86b   :  { %3940 = vrot.lane.b32.xlu0 %v7820_v24, %s5177_s17  ;;  %v4948_v45 = vpop.eup %4947  ;;  %v3720_v32 = vrot.slane %v3719_v51, 2  ;;  %4951 = vpow2.f32 %v4722_v40  ;;  %v3592_v46 = vand.u32 2147483647, %v7789_v18  ;;  %v7837_v0 = vadd.f32 %v3758_v34, %v3757_v39 }
 0x86c   :  { %3986 = vrot.lane.b32.xlu2 %v7792_v56, %s5176_s16  ;;  %v3585_v7 = vsub.f32 1.0, %v3584_v1  ;;  %v3742_v22 = vrot.slane %v7832_v5, 4  ;;  %v3411_v42 = vadd.f32 1.0, %v4948_v45  ;;  %vm3588_vm0 = vweird.f32 %v7789_v18  ;;  %v8773_v18 = vld [vmem:[#allocation47_spill] sm:$0xff] }
 0x86d   :  { %v3721_v33 = vadd.f32 %v3720_v32, %v3719_v51  ;;  %vm3590_vm10 = vmor %vm3588_vm0, %vm3589_vm4  ;;  %v3595_v57 = vor.u32 1.1754944e-38, %v3594_v58  ;;  %vm3593_vm15 = vcmp.eq.f32.partialorder %v3592_v46, 8.507059e+37 }
 0x86e   :  { %v3586_v3 = vmul.f32 %v4946_v62, %v3585_v7  ;;  %v3743_v52 = vadd.f32 %v3742_v22, %v7832_v5  ;;  %4953 = vrcp.f32 %v3411_v42  ;;  %v3502_v16 = vand.u32 2147483647, %v3411_v42 }
 0x86f   :  { %v3722_v37 = vrot.slane %v3721_v33, 1  ;;  %v3504_v31 = vand.u32 2147483648, %v3411_v42  ;;  %vm3498_vm11 = vweird.f32 %v3411_v42 }
 0x870   :  { %v3587_v48 = vadd.f32 %v4946_v62, %v3586_v3  ;;  %v4950_v8 = vpop.eup %4949  ;;  %v3744_v23 = vrot.slane %v3743_v52, 2  ;;  %vm3503_vm13 = vcmp.eq.f32.partialorder %v3502_v16, 8.507059e+37 }
 0x871   :  { %v4952_v11 = vpop.eup %4951  ;;  %v7843_v29 = vadd.f32 %v3722_v37, %v3721_v33  ;;  %v3412_v61 = vadd.f32 1.0, %v4950_v8  ;;  %v3505_v19 = vor.u32 1.1754944e-38, %v3504_v31 }
 0x872   :  { %3954 = vrot.lane.b32.xlu1 %v7837_v0, %s5177_s17  ;;  %v3591_v30 = vsel %vm3590_vm10, %v4946_v62, %v3587_v48  ;;  %v3745_v20 = vadd.f32 %v3744_v23, %v3743_v52  ;;  %v3413_v43 = vadd.f32 1.0, %v4952_v11 }
 0x873   :  { %v3596_v50 = vsel %vm3593_vm15, %v3595_v57, %v3591_v30  ;;  %3942 = vrot.lane.b32.xlu0 %v7843_v29, %s5177_s17  ;;  %4955 = vrcp.f32 %v3412_v61  ;;  %v3517_v51 = vand.u32 2147483647, %v3412_v61  ;;  %v3519_v54 = vand.u32 2147483648, %v3412_v61 }
 0x874   :  { %v7848_v60 = vmul.f32 %v3596_v50, %v8773_v18  ;;  %v4954_v28 = vpop.eup %4953  ;;  %v3746_v17 = vrot.slane %v3745_v20, 1  ;;  %4957 = vrcp.f32 %v3413_v43  ;;  %v3532_v45 = vand.u32 2147483647, %v3413_v43 }
 0x875   :  { %v3494_v14 = vmul.f32 %v4954_v28, %v3411_v42  ;;  %vm3499_vm2 = vweird.f32 %v4954_v28  ;;  %v3534_v22 = vand.u32 2147483648, %v3413_v43  ;;  %v8774_v42 = vld [vmem:[#allocation36_spill] sm:$0xff]  ;;  %vm3513_vm8 = vweird.f32 %v3412_v61 }
 0x876   :  { %v3760_v63 = vrot.slane %v7848_v60, 4  ;;  %v7851_v21 = vadd.f32 %v3746_v17, %v3745_v20  ;;  %vm3500_vm7 = vmor %vm3498_vm11, %vm3499_vm2  ;;  %v3520_v37 = vor.u32 1.1754944e-38, %v3519_v54  ;;  %vm3528_vm12 = vweird.f32 %v3413_v43  ;;  %v8775_v20 = vld [vmem:[#allocation37_spill] sm:$0xff] }
 0x877   :  { %v3495_v38 = vsub.f32 1.0, %v3494_v14  ;;  %vm3518_vm5 = vcmp.eq.f32.partialorder %v3517_v51, 8.507059e+37  ;;  %v3535_v23 = vor.u32 1.1754944e-38, %v3534_v22  ;;  %vm3533_vm0 = vcmp.eq.f32.partialorder %v3532_v45, 8.507059e+37 }
 0x878   :  { %v3761_v53 = vadd.f32 %v3760_v63, %v7848_v60 }
 0x879   :  { %v4956_v2 = vpop.eup %4955  ;;  %v3496_v35 = vmul.f32 %v4954_v28, %v3495_v38 }
 0x87a   :  { %3950 = vrot.lane.b32.xlu1 %v7851_v21, %s5177_s17  ;;  %v3762_v39 = vrot.slane %v3761_v53, 2  ;;  %v4958_v44 = vpop.eup %4957  ;;  %v3509_v26 = vmul.f32 %v4956_v2, %v3412_v61  ;;  %vm3514_vm6 = vweird.f32 %v4956_v2 }
 0x87b   :  { %v3497_v6 = vadd.f32 %v4954_v28, %v3496_v35  ;;  %v3524_v62 = vmul.f32 %v4958_v44, %v3413_v43  ;;  %vm3529_vm14 = vweird.f32 %v4958_v44  ;;  %vm3515_vm9 = vmor %vm3513_vm8, %vm3514_vm6 }
 0x87c   :  { %v3763_v9 = vadd.f32 %v3762_v39, %v3761_v53  ;;  %v3510_v40 = vsub.f32 1.0, %v3509_v26  ;;  %vm3530_vm4 = vmor %vm3528_vm12, %vm3529_vm14 }
 0x87d   :  { %v3501_v34 = vsel %vm3500_vm7, %v4954_v28, %v3497_v6  ;;  %v3525_v41 = vsub.f32 1.0, %v3524_v62  ;;  %v8776_v28 = vld [vmem:[#allocation38_spill] sm:$0xff] }
 0x87e   :  { %v3764_v1 = vrot.slane %v3763_v9, 1  ;;  %v3506_v32 = vsel %vm3503_vm13, %v3505_v19, %v3501_v34  ;;  %v3511_v7 = vmul.f32 %v4956_v2, %v3510_v40  ;;  %v4763_v19 = vld [vmem:[#allocation8 + $0x630] ss:$0 sm:$0xff]  ;;  %v3290_v40 = vpop.f32.mrf.mxu1 }
 0x87f   :  { %v7859_v33 = vmul.f32 %v3506_v32, %v8774_v42  ;;  %v3526_v3 = vmul.f32 %v4958_v44, %v3525_v41  ;;  %v7909_v51 = vadd.f32 %v4763_v19, %v3290_v40 }
 0x880   :  { %v7856_v58 = vadd.f32 %v3764_v1, %v3763_v9  ;;  %v3512_v46 = vadd.f32 %v4956_v2, %v3511_v7 }
 0x881   :  { %v3724_v52 = vrot.slane %v7859_v33, 4  ;;  %v3527_v48 = vadd.f32 %v4958_v44, %v3526_v3  ;;  %v3610_v54 = vmul.f32 %v7712_v25, %v7909_v51  ;;  %v3612_v1 = vmul.f32 %v7742_v36, %v7909_v51 }
 0x882   :  { %3988 = vrot.lane.b32.xlu1 %v7820_v24, %s5176_s16  ;;  %3956 = vrot.lane.b32.xlu2 %v7856_v58, %s5177_s17  ;;  %v3516_v8 = vsel %vm3515_vm9, %v4956_v2, %v3512_v46  ;;  %v3611_v32 = vmul.f32 %v7748_v55, %v7909_v51  ;;  %v3619_v25 = vmul.f32 %v7763_v27, %v7909_v51 }
 0x883   :  { %v3725_v57 = vadd.f32 %v3724_v52, %v7859_v33  ;;  %v3521_v11 = vsel %vm3518_vm5, %v3520_v37, %v3516_v8  ;;  %v3531_v30 = vsel %vm3530_vm4, %v4958_v44, %v3527_v48  ;;  %v3622_v34 = vrot.slane %v3610_v54, 4 }
 0x884   :  { %v7868_v61 = vmul.f32 %v3521_v11, %v8775_v20  ;;  %v3536_v50 = vsel %vm3533_vm0, %v3535_v23, %v3531_v30  ;;  %v3634_v41 = vrot.slane %v3612_v1, 4  ;;  %v3628_v22 = vrot.slane %v3611_v32, 4 }
 0x885   :  { %v3726_v18 = vrot.slane %v3725_v57, 2  ;;  %v7871_v17 = vmul.f32 %v3536_v50, %v8776_v28  ;;  %v3623_v45 = vadd.f32 %v3622_v34, %v3610_v54  ;;  %v3676_v3 = vrot.slane %v3619_v25, 4 }
 0x886   :  { %v3730_v63 = vrot.slane %v7868_v61, 4  ;;  %v3635_v7 = vadd.f32 %v3634_v41, %v3612_v1  ;;  %v3629_v52 = vadd.f32 %v3628_v22, %v3611_v32  ;;  %v3620_v27 = vmul.f32 %v7786_v59, %v7909_v51 }
 0x887   :  { %v3727_v43 = vadd.f32 %v3726_v18, %v3725_v57  ;;  %v3736_v14 = vrot.slane %v7871_v17, 4  ;;  %v3624_v36 = vrot.slane %v3623_v45, 2  ;;  %v3677_v48 = vadd.f32 %v3676_v3, %v3619_v25 }
 0x888   :  { %v3731_v53 = vadd.f32 %v3730_v63, %v7868_v61  ;;  %v3636_v42 = vrot.slane %v3635_v7, 2  ;;  %v3630_v23 = vrot.slane %v3629_v52, 2  ;;  %v3613_v57 = vmul.f32 %v7771_v49, %v7909_v51 }
 0x889   :  { %v3728_v38 = vrot.slane %v3727_v43, 1  ;;  %v3737_v16 = vadd.f32 %v3736_v14, %v7871_v17  ;;  %v3625_v55 = vadd.f32 %v3624_v36, %v3623_v45  ;;  %v3678_v30 = vrot.slane %v3677_v48, 2 }
 0x88a   :  { %4000 = vrot.lane.b32.xlu2 %v7816_v47, %s5176_s16  ;;  %v3732_v31 = vrot.slane %v3731_v53, 2  ;;  %v3637_v37 = vadd.f32 %v3636_v42, %v3635_v7  ;;  %v3682_v20 = vrot.slane %v3620_v27, 4  ;;  %v3631_v59 = vadd.f32 %v3630_v23, %v3629_v52 }
 0x88b   :  { %v7879_v2 = vadd.f32 %v3728_v38, %v3727_v43  ;;  %v3738_v39 = vrot.slane %v3737_v16, 2  ;;  %v3626_v8 = vrot.slane %v3625_v55, 1  ;;  %v3640_v28 = vrot.slane %v3613_v57, 4 }
 0x88c   :  { %v3733_v35 = vadd.f32 %v3732_v31, %v3731_v53  ;;  %v3638_v11 = vrot.slane %v3637_v37, 1  ;;  %v3621_v63 = vmul.f32 %v7848_v60, %v7909_v51  ;;  %v3679_v14 = vadd.f32 %v3678_v30, %v3677_v48 }
 0x88d   :  { %3944 = vrot.lane.b32.xlu0 %v7879_v2, %s5177_s17  ;;  %v3739_v26 = vadd.f32 %v3738_v39, %v3737_v16  ;;  %v7945_v50 = vadd.f32 %v3626_v8, %v3625_v55  ;;  %v3683_v53 = vadd.f32 %v3682_v20, %v3620_v27  ;;  %v3618_v49 = vmul.f32 %v7832_v5, %v7909_v51 }
 0x88e   :  { %v3734_v44 = vrot.slane %v3733_v35, 1  ;;  %v7951_v43 = vadd.f32 %v3638_v11, %v3637_v37  ;;  %v3632_v38 = vrot.slane %v3631_v59, 1  ;;  %v3641_v16 = vadd.f32 %v3640_v28, %v3613_v57 }
 0x88f   :  { %v3740_v6 = vrot.slane %v3739_v26, 1  ;;  %v3614_v31 = vmul.f32 %v7811_v10, %v7909_v51  ;;  %v3688_v39 = vrot.slane %v3621_v63, 4  ;;  %v3680_v60 = vrot.slane %v3679_v14, 1 }
 0x890   :  { %v7883_v9 = vadd.f32 %v3734_v44, %v3733_v35  ;;  %v3684_v35 = vrot.slane %v3683_v53, 2  ;;  %v3670_v44 = vrot.slane %v3618_v49, 4  ;;  %v3642_v5 = vrot.slane %v3641_v16, 2 }
 0x891   :  { %v7891_v62 = vadd.f32 %v3740_v6, %v3739_v26  ;;  %v7963_v26 = vadd.f32 %v3632_v38, %v3631_v59  ;;  %v3646_v6 = vrot.slane %v3614_v31, 4  ;;  %v3689_v19 = vadd.f32 %v3688_v39, %v3621_v63 }
 0x892   :  { %3990 = vrot.lane.b32.xlu2 %v7843_v29, %s5176_s16  ;;  %3946 = vrot.lane.b32.xlu1 %v7883_v9, %s5177_s17  ;;  %v7965_v40 = vadd.f32 %v3680_v60, %v3679_v14  ;;  %v3685_v54 = vadd.f32 %v3684_v35, %v3683_v53  ;;  %v3671_v1 = vadd.f32 %v3670_v44, %v3618_v49 }
 0x893   :  { %v3643_v41 = vadd.f32 %v3642_v5, %v3641_v16  ;;  %v3647_v45 = vadd.f32 %v3646_v6, %v3614_v31  ;;  %v3690_v32 = vrot.slane %v3689_v19, 2  ;;  %v3615_v7 = vmul.f32 %v7859_v33, %v7909_v51 }
 0x894   :  { %v3686_v25 = vrot.slane %v3685_v54, 1  ;;  %v3672_v36 = vrot.slane %v3671_v1, 2  ;;  %v3616_v48 = vmul.f32 %v7868_v61, %v7909_v51  ;;  %v3617_v63 = vmul.f32 %v7871_v17, %v7909_v51 }
 0x895   :  { %3982 = vrot.lane.b32.xlu0 %v7767_v4, %s5176_s16  ;;  %v3644_v22 = vrot.slane %v3643_v41, 1  ;;  %v3648_v42 = vrot.slane %v3647_v45, 2  ;;  %v3691_v3 = vadd.f32 %v3690_v32, %v3689_v19  ;;  %v3652_v55 = vrot.slane %v3615_v7, 4 }
 0x896   :  { %v7975_v52 = vadd.f32 %v3686_v25, %v3685_v54  ;;  %v3673_v37 = vadd.f32 %v3672_v36, %v3671_v1  ;;  %v3658_v20 = vrot.slane %v3616_v48, 4  ;;  %v3664_v35 = vrot.slane %v3617_v63, 4 }
 0x897   :  { %v7983_v27 = vadd.f32 %v3644_v22, %v3643_v41  ;;  %v3649_v8 = vadd.f32 %v3648_v42, %v3647_v45  ;;  %v3692_v57 = vrot.slane %v3691_v3, 1  ;;  %v3653_v11 = vadd.f32 %v3652_v55, %v3615_v7 }
 0x898   :  { %v3674_v30 = vrot.slane %v3673_v37, 1  ;;  %v3659_v49 = vadd.f32 %v3658_v20, %v3616_v48  ;;  %v3665_v44 = vadd.f32 %v3664_v35, %v3617_v63 }
 0x899   :  { %v3650_v59 = vrot.slane %v3649_v8, 1  ;;  %v7987_v61 = vadd.f32 %v3692_v57, %v3691_v3  ;;  %v3654_v28 = vrot.slane %v3653_v11, 2 }
 0x89a   :  { %3948 = vrot.lane.b32.xlu2 %v7891_v62, %s5177_s17  ;;  %4034 = vrot.lane.b32.xlu1 %v7792_v56, %s5175_s3  ;;  %v7991_v14 = vadd.f32 %v3674_v30, %v3673_v37  ;;  %v3660_v51 = vrot.slane %v3659_v49, 2  ;;  %v3666_v32 = vrot.slane %v3665_v44, 2 }
 0x89b   :  { %v8000_v31 = vadd.f32 %v3650_v59, %v3649_v8  ;;  %v3655_v39 = vadd.f32 %v3654_v28, %v3653_v11 }
 0x89c   :  { %v3661_v5 = vadd.f32 %v3660_v51, %v3659_v49  ;;  %v3667_v25 = vadd.f32 %v3666_v32, %v3665_v44 }
 0x89d   :  { %4032 = vrot.lane.b32.xlu0 %v7796_v15, %s5175_s3 }
 0x89e   :  { %v3662_v7 = vrot.slane %v3661_v5, 1 }
 0x8a0   :  { %v8015_v42 = vadd.f32 %v3662_v7, %v3661_v5 }
 0x8a2   :  { %4004 = vrot.lane.b32.xlu2 %v7856_v58, %s5176_s16  ;;  %3998 = vrot.lane.b32.xlu1 %v7851_v21, %s5176_s16 }
 0x8a5   :  { %4002 = vrot.lane.b32.xlu0 %v7837_v0, %s5176_s16 }
 0x8aa   :  { %4048 = vrot.lane.b32.xlu2 %v7816_v47, %s5175_s3  ;;  %4036 = vrot.lane.b32.xlu1 %v7820_v24, %s5175_s3 }
 0x8ad   :  { %3992 = vrot.lane.b32.xlu0 %v7879_v2, %s5176_s16 }
 0x8b2   :  { %4050 = vrot.lane.b32.xlu2 %v7837_v0, %s5175_s3  ;;  %4038 = vrot.lane.b32.xlu1 %v7843_v29, %s5175_s3 }
 0x8b5   :  { %4030 = vrot.lane.b32.xlu0 %v7767_v4, %s5175_s3 }
 0x8b6   :  { %v7933_v46 = vpop.permute.xlu2 %3934 }
 0x8ba   :  { %4046 = vrot.lane.b32.xlu2 %v7851_v21, %s5175_s3  ;;  %4040 = vrot.lane.b32.xlu1 %v7879_v2, %s5175_s3 }
 0x8bd   :  { %3994 = vrot.lane.b32.xlu0 %v7883_v9, %s5176_s16 }
 0x8be   :  { %v7947_v18 = vpop.permute.xlu2 %3984 }
 0x8c2   :  { %4044 = vrot.lane.b32.xlu2 %v7891_v62, %s5175_s3  ;;  %4042 = vrot.lane.b32.xlu1 %v7883_v9, %s5175_s3 }
 0x8c5   :  { %3996 = vrot.lane.b32.xlu0 %v7891_v62, %s5176_s16 }
 0x8c6   :  { %v3987_v10 = vpop.permute.xlu2 %3986 }
 0x8ca   :  { %3778 = vrot.lane.b32.xlu2 %v7945_v50, %s5177_s17  ;;  %3782 = vrot.lane.b32.xlu1 %v7951_v43, %s5177_s17 }
 0x8cd   :  { %4052 = vrot.lane.b32.xlu0 %v7856_v58, %s5175_s3 }
 0x8d2   :  { %3828 = vrot.lane.b32.xlu2 %v7963_v26, %s5176_s16  ;;  %3796 = vrot.lane.b32.xlu1 %v7965_v40, %s5177_s17 }
 0x8d4   :  { %v3939_v34 = vpop.permute.xlu1 %3938 }
 0x8d5   :  { %3780 = vrot.lane.b32.xlu0 %v7963_v26, %s5177_s17  ;;  %v3937_v38 = vpop.permute.xlu0 %3936  ;;  %v3972_v19 = vadd.f32 %v3939_v34, %v7792_v56  ;;  %v3668_v34 = vrot.slane %v3667_v25, 1 }
 0x8d6   :  { %v3971_v54 = vadd.f32 %v3937_v38, %v7796_v15 }
 0x8d7   :  { %v4020_v22 = vadd.f32 %v3987_v10, %v3972_v19  ;;  %v8026_v10 = vadd.f32 %v3668_v34, %v3667_v25 }
 0x8d8   :  { %v4019_v36 = vadd.f32 %v7947_v18, %v3971_v54 }
 0x8da   :  { %3830 = vrot.lane.b32.xlu2 %v7951_v43, %s5176_s16  ;;  %3798 = vrot.lane.b32.xlu1 %v7975_v52, %s5177_s17 }
 0x8dc   :  { %v3953_v33 = vpop.permute.xlu1 %3952  ;;  %v3957_v23 = vpop.permute.xlu2 %3956 }
 0x8dd   :  { %3784 = vrot.lane.b32.xlu0 %v7983_v27, %s5177_s17  ;;  %v3979_v53 = vadd.f32 %v3953_v33, %v7816_v47  ;;  %v3656_v47 = vrot.slane %v3655_v39, 1  ;;  %v3941_v41 = vpop.permute.xlu0 %3940 }
 0x8de   :  { %v3973_v3 = vadd.f32 %v3941_v41, %v7820_v24  ;;  %v3981_v24 = vadd.f32 %v3957_v23, %v7856_v58 }
 0x8df   :  { %v8010_v1 = vadd.f32 %v3656_v47, %v3655_v39 }
 0x8e2   :  { %3800 = vrot.lane.b32.xlu2 %v7987_v61, %s5177_s17  ;;  %3794 = vrot.lane.b32.xlu1 %v7991_v14, %s5177_s17 }
 0x8e4   :  { %v7998_v16 = vpop.permute.xlu1 %3954  ;;  %v4001_v60 = vpop.permute.xlu2 %4000 }
 0x8e5   :  { %v4027_v17 = vadd.f32 %v4001_v60, %v3979_v53  ;;  %3786 = vrot.lane.b32.xlu0 %v8000_v31, %s5177_s17  ;;  %v3943_v18 = vpop.permute.xlu0 %3942  ;;  %v3980_v60 = vadd.f32 %v7998_v16, %v7837_v0 }
 0x8e6   :  { %v3974_v37 = vadd.f32 %v3943_v18, %v7843_v29  ;;  %v3970_v29 = vadd.f32 %v7933_v46, %v7767_v4 }
 0x8ea   :  { %3844 = vrot.lane.b32.xlu2 %v7965_v40, %s5176_s16  ;;  %3832 = vrot.lane.b32.xlu1 %v7983_v27, %s5176_s16 }
 0x8ec   :  { %v3951_v6 = vpop.permute.xlu1 %3950  ;;  %v3991_v45 = vpop.permute.xlu2 %3990 }
 0x8ed   :  { %3788 = vrot.lane.b32.xlu0 %v8010_v1, %s5177_s17  ;;  %v4022_v57 = vadd.f32 %v3991_v45, %v3974_v37  ;;  %v3978_v4 = vadd.f32 %v3951_v6, %v7851_v21 }
 0x8f2   :  { %3834 = vrot.lane.b32.xlu2 %v8000_v31, %s5176_s16  ;;  %3790 = vrot.lane.b32.xlu1 %v8015_v42, %s5177_s17 }
 0x8f4   :  { %v3989_v56 = vpop.permute.xlu1 %3988  ;;  %v8022_v15 = vpop.permute.xlu2 %3948 }
 0x8f5   :  { %v4021_v55 = vadd.f32 %v3989_v56, %v3973_v3  ;;  %3826 = vrot.lane.b32.xlu0 %v7945_v50, %s5176_s16  ;;  %v3977_v18 = vadd.f32 %v8022_v15, %v7891_v62 }
 0x8fa   :  { %3792 = vrot.lane.b32.xlu2 %v8026_v10, %s5177_s17  ;;  %3878 = vrot.lane.b32.xlu1 %v7951_v43, %s5175_s3 }
 0x8fc   :  { %v4005_v48 = vpop.permute.xlu2 %4004 }
 0x8fd   :  { %v8034_v33 = vadd.f32 %v4005_v48, %v3981_v24  ;;  %3876 = vrot.lane.b32.xlu0 %v7963_v26, %s5175_s3 }
 0x8ff   :  { %v3945_v8 = vpop.permute.xlu0 %3944 }
 0x900   :  { %v3975_v6 = vadd.f32 %v3945_v8, %v7879_v2 }
 0x902   :  { %3848 = vrot.lane.b32.xlu2 %v7987_v61, %s5176_s16  ;;  %3842 = vrot.lane.b32.xlu1 %v7991_v14, %s5176_s16 }
 0x904   :  { %v4049_v58 = vpop.permute.xlu2 %4048  ;;  %v3947_v23 = vpop.permute.xlu1 %3946 }
 0x905   :  { %v4075_v11 = vadd.f32 %v4049_v58, %v4027_v17  ;;  %3846 = vrot.lane.b32.xlu0 %v7975_v52, %s5176_s16 }
 0x907   :  { %v3983_v30 = vpop.permute.xlu0 %3982 }
 0x908   :  { %v4018_v20 = vadd.f32 %v3983_v30, %v3970_v29  ;;  %v4087_v30 = vadd.f32 1e-20, %v4075_v11 }
 0x90a   :  { %3892 = vrot.lane.b32.xlu2 %v7965_v40, %s5175_s3  ;;  %3880 = vrot.lane.b32.xlu1 %v7983_v27, %s5175_s3  ;;  %4959 = vrcp.f32 %v4087_v30  ;;  %vm4230_vm15 = vweird.f32 %v4087_v30 }
 0x90c   :  { %v4051_v59 = vpop.permute.xlu2 %4050  ;;  %v4035_v28 = vpop.permute.xlu1 %4034 }
 0x90d   :  { %3836 = vrot.lane.b32.xlu0 %v8010_v1, %s5176_s16  ;;  %v4068_v63 = vadd.f32 %v4035_v28, %v4020_v22 }
 0x90f   :  { %v4033_v53 = vpop.permute.xlu0 %4032 }
 0x910   :  { %v4067_v49 = vadd.f32 %v4033_v53, %v4019_v36  ;;  %v3976_v36 = vadd.f32 %v3947_v23, %v7883_v9 }
 0x912   :  { %3894 = vrot.lane.b32.xlu2 %v7975_v52, %s5175_s3  ;;  %3882 = vrot.lane.b32.xlu1 %v8000_v31, %s5175_s3 }
 0x914   :  { %v4047_v46 = vpop.permute.xlu2 %4046  ;;  %v3999_v38 = vpop.permute.xlu1 %3998 }
 0x915   :  { %3874 = vrot.lane.b32.xlu0 %v7945_v50, %s5175_s3  ;;  %v4026_v39 = vadd.f32 %v3999_v38, %v3978_v4  ;;  %v8104_v4 = vadd.f32 1e-20, %v4068_v63 }
 0x917   :  { %v4003_v35 = vpop.permute.xlu0 %4002  ;;  %v4074_v17 = vadd.f32 %v4047_v46, %v4026_v39  ;;  %v4960_v46 = vpop.eup %4959  ;;  %4961 = vrcp.f32 %v8104_v4  ;;  %vm4125_vm6 = vweird.f32 %v8104_v4 }
 0x918   :  { %v4028_v51 = vadd.f32 %v4003_v35, %v3980_v60  ;;  %v4226_v39 = vmul.f32 %v4960_v46, %v4087_v30  ;;  %vm4231_vm10 = vweird.f32 %v4960_v46 }
 0x919   :  { %v8118_v35 = vadd.f32 1e-20, %v4074_v17  ;;  %vm4232_vm2 = vmor %vm4230_vm15, %vm4231_vm10 }
 0x91a   :  { %3890 = vrot.lane.b32.xlu2 %v7991_v14, %s5175_s3  ;;  %v4076_v47 = vadd.f32 %v4051_v59, %v4028_v51  ;;  %3884 = vrot.lane.b32.xlu1 %v8010_v1, %s5175_s3  ;;  %v4227_v60 = vsub.f32 1.0, %v4226_v39 }
 0x91c   :  { %v4045_v21 = vpop.permute.xlu2 %4044  ;;  %v4037_v44 = vpop.permute.xlu1 %4036  ;;  %v8124_v51 = vadd.f32 1e-20, %v4076_v47 }
 0x91d   :  { %3838 = vrot.lane.b32.xlu0 %v8015_v42, %s5176_s16  ;;  %v4069_v5 = vadd.f32 %v4037_v44, %v4021_v55  ;;  %v4228_v44 = vmul.f32 %v4960_v46, %v4227_v60 }
 0x91e   :  { %vm4245_vm10 = vweird.f32 %v8124_v51 }
 0x91f   :  { %v3993_v19 = vpop.permute.xlu0 %3992 }
 0x920   :  { %v4023_v0 = vadd.f32 %v3993_v19, %v3975_v6 }
 0x922   :  { %3888 = vrot.lane.b32.xlu2 %v8026_v10, %s5175_s3  ;;  %3886 = vrot.lane.b32.xlu1 %v8015_v42, %s5175_s3 }
 0x924   :  { %v8072_v16 = vpop.permute.xlu2 %3778  ;;  %v4039_v54 = vpop.permute.xlu1 %4038 }
 0x925   :  { %3840 = vrot.lane.b32.xlu0 %v8026_v10, %s5176_s16  ;;  %v8076_v41 = vadd.f32 %v4039_v54, %v4022_v57  ;;  %v8138_v54 = vadd.f32 1e-20, %v4069_v5 }
 0x927   :  { %v4031_v45 = vpop.permute.xlu0 %4030 }
 0x928   :  { %v8078_v32 = vadd.f32 %v4031_v45, %v4018_v20  ;;  %v4229_v45 = vadd.f32 %v4960_v46, %v4228_v44 }
 0x92c   :  { %v3829_v2 = vpop.permute.xlu2 %3828  ;;  %v4041_v7 = vpop.permute.xlu1 %4040 }
 0x92d   :  { %3896 = vrot.lane.b32.xlu0 %v7987_v61, %s5175_s3  ;;  %v8082_v25 = vadd.f32 %v4041_v7, %v4023_v0 }
 0x92f   :  { %v3995_v22 = vpop.permute.xlu0 %3994 }
 0x930   :  { %v4024_v3 = vadd.f32 %v3995_v22, %v3976_v36  ;;  %v4236_v36 = vand.u32 2147483648, %v4087_v30 }
 0x934   :  { %v3831_v56 = vpop.permute.xlu2 %3830  ;;  %v4043_v34 = vpop.permute.xlu1 %4042 }
 0x935   :  { %v8085_v55 = vadd.f32 %v4043_v34, %v4024_v3  ;;  %v4234_v3 = vand.u32 2147483647, %v4087_v30 }
 0x937   :  { %v3997_v24 = vpop.permute.xlu0 %3996  ;;  %vm4235_vm11 = vcmp.eq.f32.partialorder %v4234_v3, 8.507059e+37 }
 0x938   :  { %v4025_v37 = vadd.f32 %v3997_v24, %v3977_v18  ;;  %v4233_v18 = vsel %vm4232_vm2, %v4960_v46, %v4229_v45  ;;  %v4237_v24 = vor.u32 1.1754944e-38, %v4236_v36  ;;  %vm4215_vm2 = vweird.f32 %v8118_v35 }
 0x93a   :  { %v8089_v48 = vadd.f32 %v4045_v21, %v4025_v37 }
 0x93c   :  { %v8091_v8 = vpop.permute.xlu2 %3800  ;;  %v3783_v57 = vpop.permute.xlu1 %3782 }
 0x93d   :  { %v3816_v62 = vadd.f32 %v3783_v57, %v7951_v43 }
 0x93f   :  { %v4053_v58 = vpop.permute.xlu0 %4052  ;;  %v8110_v11 = vadd.f32 %v3831_v56, %v3816_v62 }
 0x940   :  { %v8094_v29 = vadd.f32 %v4053_v58, %v8034_v33  ;;  %v8106_v33 = vadd.f32 1e-20, %v4067_v49  ;;  %v8122_v49 = vpop.eup %4961 }
 0x941   :  { %v4121_v6 = vmul.f32 %v8122_v49, %v8104_v4  ;;  %vm4126_vm7 = vweird.f32 %v8122_v49 }
 0x942   :  { %4963 = vrcp.f32 %v8106_v33  ;;  %v4116_v39 = vand.u32 2147483648, %v8106_v33  ;;  %vm4110_vm14 = vweird.f32 %v8106_v33  ;;  %v4114_v36 = vand.u32 2147483647, %v8106_v33  ;;  %vm8179_vm8 = vmor %vm4125_vm6, %vm4126_vm7 }
 0x943   :  { %4965 = vrcp.f32 %v8118_v35  ;;  %vm4140_vm6 = vweird.f32 %v8138_v54 }
 0x944   :  { %v3845_v9 = vpop.permute.xlu2 %3844  ;;  %v3797_v23 = vpop.permute.xlu1 %3796  ;;  %4967 = vrcp.f32 %v8124_v51  ;;  %vm4115_vm5 = vcmp.eq.f32.partialorder %v4114_v36, 8.507059e+37 }
 0x945   :  { %v3823_v47 = vadd.f32 %v3797_v23, %v7965_v40  ;;  %4969 = vrcp.f32 %v8138_v54 }
 0x947   :  { %v3781_v20 = vpop.permute.xlu0 %3780  ;;  %v3871_v5 = vadd.f32 %v3845_v9, %v3823_v47  ;;  %v8157_v9 = vadd.f32 1e-20, %v8076_v41  ;;  %v4131_v47 = vand.u32 2147483648, %v8104_v4 }
 0x948   :  { %v3815_v59 = vadd.f32 %v3781_v20, %v7963_v26  ;;  %v8126_v21 = vpop.eup %4963 }
 0x949   :  { %v4106_v17 = vmul.f32 %v8126_v21, %v8106_v33  ;;  %v8143_v56 = vpop.eup %4965  ;;  %vm4111_vm13 = vweird.f32 %v8126_v21  ;;  %4971 = vrcp.f32 %v8157_v9 }
 0x94a   :  { %v8097_v28 = vadd.f32 %v3829_v2, %v3815_v59  ;;  %v4122_v2 = vsub.f32 1.0, %v4121_v6  ;;  %v8145_v34 = vpop.eup %4967  ;;  %v4211_v20 = vmul.f32 %v8143_v56, %v8118_v35  ;;  %v4238_v59 = vsel %vm4235_vm11, %v4237_v24, %v4233_v18  ;;  %vm8187_vm9 = vmor %vm4110_vm14, %vm4111_vm13 }
 0x94b   :  { %v4107_v22 = vsub.f32 1.0, %v4106_v17  ;;  %v4241_v30 = vmul.f32 %v8145_v34, %v8124_v51  ;;  %v8167_v44 = vpop.eup %4969  ;;  %v8170_v6 = vadd.f32 1e-20, %v8078_v32  ;;  %v4129_v17 = vand.u32 2147483647, %v8104_v4 }
 0x94c   :  { %v8100_v15 = vpop.permute.xlu2 %3834  ;;  %v8102_v53 = vpop.permute.xlu1 %3798  ;;  %v4123_v37 = vmul.f32 %v8122_v49, %v4122_v2  ;;  %v4212_v2 = vsub.f32 1.0, %v4211_v20  ;;  %v4136_v32 = vmul.f32 %v8167_v44, %v8138_v54  ;;  %v4117_v4 = vor.u32 1.1754944e-38, %v4116_v39 }
 0x94d   :  { %v4108_v23 = vmul.f32 %v8126_v21, %v4107_v22  ;;  %v4242_v45 = vsub.f32 1.0, %v4241_v30  ;;  %4973 = vrcp.f32 %v8170_v6  ;;  %vm4130_vm12 = vcmp.eq.f32.partialorder %v4129_v17, 8.507059e+37 }
 0x94e   :  { %v4124_v60 = vadd.f32 %v8122_v49, %v4123_v37  ;;  %v4132_v24 = vor.u32 1.1754944e-38, %v4131_v47  ;;  %v8199_v37 = vadd.f32 1e-20, %v8082_v25  ;;  %v4213_v30 = vmul.f32 %v8143_v56, %v4212_v2 }
 0x94f   :  { %v8108_v38 = vpop.permute.xlu0 %3784  ;;  %v4109_v41 = vadd.f32 %v8126_v21, %v4108_v23  ;;  %v4243_v23 = vmul.f32 %v8145_v34, %v4242_v45  ;;  %v4249_v20 = vand.u32 2147483647, %v8124_v51  ;;  %v8208_v17 = vpop.eup %4971  ;;  %vm4246_vm4 = vweird.f32 %v8145_v34 }
 0x950   :  { %v4221_v47 = vand.u32 2147483648, %v8118_v35  ;;  %4975 = vrcp.f32 %v8199_v37  ;;  %v4214_v2 = vadd.f32 %v8143_v56, %v4213_v30  ;;  %vm4216_vm0 = vweird.f32 %v8143_v56  ;;  %vm8227_vm15 = vmor %vm4245_vm10, %vm4246_vm4 }
 0x951   :  { %v4113_v33 = vsel %vm8187_vm9, %v8126_v21, %v4109_v41  ;;  %v4251_v41 = vand.u32 2147483648, %v8124_v51  ;;  %v4244_v45 = vadd.f32 %v8145_v34, %v4243_v23  ;;  %vm8233_vm11 = vcmp.eq.f32.partialorder %v4249_v20, 8.507059e+37  ;;  %vm8237_vm13 = vmor %vm4215_vm2, %vm4216_vm0 }
 0x952   :  { %v4118_v39 = vsel %vm4115_vm5, %v4117_v4, %v4113_v33  ;;  %v4218_v23 = vsel %vm8237_vm13, %v8143_v56, %v4214_v2  ;;  %v8254_v30 = vadd.f32 1e-20, %v8085_v55  ;;  %vm4141_vm14 = vweird.f32 %v8167_v44 }
 0x953   :  { %v8218_v36 = vpop.eup %4973  ;;  %v4252_v33 = vor.u32 1.1754944e-38, %v4251_v41  ;;  %vm4155_vm4 = vweird.f32 %v8157_v9  ;;  %vm4095_vm0 = vweird.f32 %v8170_v6 }
 0x954   :  { %v8114_v26 = vpop.permute.xlu2 %3792  ;;  %v8116_v43 = vpop.permute.xlu1 %3794  ;;  %4977 = vrcp.f32 %v8254_v30  ;;  %vm4096_vm5 = vweird.f32 %v8218_v36 }
 0x957   :  { %v8120_v63 = vpop.permute.xlu0 %3786 }
 0x95c   :  { %v8131_v19 = vpop.permute.xlu2 %3848  ;;  %v8136_v0 = vpop.permute.xlu1 %3832 }
 0x95f   :  { %v8141_v7 = vpop.permute.xlu0 %3788 }
 0x964   :  { %v3893_v40 = vpop.permute.xlu2 %3892  ;;  %v8149_v57 = vpop.permute.xlu1 %3790 }
 0x965   :  { %v3919_v58 = vadd.f32 %v3893_v40, %v3871_v5  ;;  %v4128_v5 = vsel %vm8179_vm8, %v8122_v49, %v4124_v60  ;;  %vm4142_vm8 = vmor %vm4140_vm6, %vm4141_vm14 }
 0x966   :  { %v4133_v49 = vsel %vm4130_vm12, %v4132_v24, %v4128_v5  ;;  %v4248_v24 = vsel %vm8227_vm15, %v8145_v34, %v4244_v45  ;;  %vm4156_vm12 = vweird.f32 %v8208_v17  ;;  %vm8325_vm15 = vmor %vm4095_vm0, %vm4096_vm5  ;;  %vm4185_vm5 = vweird.f32 %v8254_v30 }
 0x967   :  { %v8159_v62 = vmul.f32 %v4238_v59, %v3919_v58  ;;  %v8161_v46 = vpop.permute.xlu0 %3826  ;;  %v4137_v59 = vsub.f32 1.0, %v4136_v32  ;;  %v3822_v32 = vadd.f32 %v8116_v43, %v7991_v14  ;;  %v4222_v43 = vor.u32 1.1754944e-38, %v4221_v47  ;;  %vm8307_vm10 = vmor %vm4155_vm4, %vm4156_vm12 }
 0x968   :  { %v4253_v55 = vsel %vm8233_vm11, %v4252_v33, %v4248_v24  ;;  %v3817_v47 = vadd.f32 %v8108_v38, %v7983_v27  ;;  %vm8797_vm0 = vcmask 1045509  }
 0x969   :  { %v4138_v4 = vmul.f32 %v8167_v44, %v4137_v59  ;;  %v4144_v59 = vand.u32 2147483647, %v8138_v54  ;;  %v4296_v45 = vrot.slane %v8159_v62, 7 }
 0x96b   :  { %vm4145_vm9 = vcmp.eq.f32.partialorder %v4144_v59, 8.507059e+37  ;;  %v4191_v59 = vand.u32 2147483648, %v8254_v30 }
 0x96c   :  { %v3879_v18 = vpop.permute.xlu1 %3878  ;;  %v3895_v40 = vpop.permute.xlu2 %3894 }
 0x96d   :  { %v3912_v58 = vadd.f32 %v3879_v18, %v8110_v11  ;;  %v4219_v11 = vand.u32 2147483647, %v8118_v35  ;;  %v4091_v35 = vmul.f32 %v8218_v36, %v8170_v6 }
 0x96f   :  { %v3877_v21 = vpop.permute.xlu0 %3876  ;;  %v8205_v60 = vmul.f32 %v4133_v49, %v3912_v58  ;;  %vm8241_vm7 = vcmp.eq.f32.partialorder %v4219_v11, 8.507059e+37  ;;  %v3824_v49 = vadd.f32 %v8102_v53, %v7975_v52  ;;  %v4146_v53 = vand.u32 2147483648, %v8138_v54 }
 0x970   :  { %v3911_v25 = vadd.f32 %v3877_v21, %v8097_v28  ;;  %v4151_v28 = vmul.f32 %v8208_v17, %v8157_v9  ;;  %v4223_v52 = vsel %vm8241_vm7, %v4222_v43, %v4218_v23  ;;  %v4092_v11 = vsub.f32 1.0, %v4091_v35 }
 0x971   :  { %v4161_v23 = vand.u32 2147483648, %v8157_v9  ;;  %vm4170_vm7 = vweird.f32 %v8199_v37 }
 0x972   :  { %v8220_v22 = vmul.f32 %v4118_v39, %v3911_v25  ;;  %v8260_v39 = vpop.eup %4975  ;;  %v4152_v21 = vsub.f32 1.0, %v4151_v28  ;;  %v4139_v25 = vadd.f32 %v8167_v44, %v4138_v4  ;;  %v3865_v4 = vadd.f32 %v8136_v0, %v3817_v47 }
 0x973   :  { %v4166_v28 = vmul.f32 %v8260_v39, %v8199_v37  ;;  %v3818_v0 = vadd.f32 %v8120_v63, %v8000_v31  ;;  %v8292_v24 = vpop.eup %4977  ;;  %v4159_v63 = vand.u32 2147483647, %v8157_v9  ;;  %vm4171_vm11 = vweird.f32 %v8260_v39 }
 0x974   :  { %v3843_v51 = vpop.permute.xlu1 %3842  ;;  %v3891_v20 = vpop.permute.xlu2 %3890  ;;  %v4143_v27 = vsel %vm4142_vm8, %v8167_v44, %v4139_v25  ;;  %v4153_v38 = vmul.f32 %v8208_v17, %v4152_v21  ;;  %vm8342_vm6 = vmor %vm4170_vm7, %vm4171_vm11  ;;  %vm8795_vm8 = vcmask 1043459   ;;  %vm4186_vm12 = vweird.f32 %v8292_v24 }
 0x975   :  { %v3870_v58 = vadd.f32 %v3843_v51, %v3822_v32  ;;  %v8275_v32 = vadd.f32 1e-20, %v8089_v48  ;;  %v4147_v51 = vor.u32 1.1754944e-38, %v4146_v53  ;;  %v4093_v48 = vmul.f32 %v8218_v36, %v4092_v11  ;;  %vm4187_vm4 = vmor %vm4185_vm5, %vm4186_vm12 }
 0x976   :  { %v4167_v14 = vsub.f32 1.0, %v4166_v28  ;;  %v4154_v44 = vadd.f32 %v8208_v17, %v4153_v38  ;;  %v4162_v53 = vor.u32 1.1754944e-38, %v4161_v23  ;;  %vm4160_vm2 = vcmp.eq.f32.partialorder %v4159_v63, 8.507059e+37 }
 0x977   :  { %v3847_v34 = vpop.permute.xlu0 %3846  ;;  %v3918_v41 = vadd.f32 %v3891_v20, %v3870_v58  ;;  %4979 = vrcp.f32 %v8275_v32  ;;  %v4094_v31 = vadd.f32 %v8218_v36, %v4093_v48  ;;  %v4099_v20 = vand.u32 2147483647, %v8170_v6 }
 0x978   :  { %v3872_v56 = vadd.f32 %v3847_v34, %v3824_v49  ;;  %v8300_v49 = vadd.f32 1e-20, %v8094_v29  ;;  %v4168_v21 = vmul.f32 %v8260_v39, %v4167_v14  ;;  %v4181_v29 = vmul.f32 %v8292_v24, %v8254_v30 }
 0x979   :  { %v4224_v2 = vmul.f32 %v4223_v52, %v3918_v41  ;;  %v4101_v34 = vand.u32 2147483648, %v8170_v6  ;;  %v3866_v41 = vadd.f32 %v8100_v15, %v3818_v0  ;;  %v4158_v9 = vsel %vm8307_vm10, %v8208_v17, %v4154_v44 }
 0x97a   :  { %v3920_v3 = vadd.f32 %v3895_v40, %v3872_v56  ;;  %v4148_v40 = vsel %vm4145_vm9, %v4147_v51, %v4143_v27  ;;  %4981 = vrcp.f32 %v8300_v49  ;;  %v4098_v15 = vsel %vm8325_vm15, %v8218_v36, %v4094_v31 }
 0x97b   :  { %v4297_v5 = vsel %vm1612_vm1, %v4296_v45, %v4224_v2  ;;  %v4163_v11 = vsel %vm4160_vm2, %v4162_v53, %v4158_v9  ;;  %vm4100_vm13 = vcmp.eq.f32.partialorder %v4099_v20, 8.507059e+37  ;;  %v4102_v47 = vor.u32 1.1754944e-38, %v4101_v34 }
 0x97c   :  { %v4254_v62 = vmul.f32 %v4253_v55, %v3920_v3  ;;  %v3881_v33 = vpop.permute.xlu1 %3880  ;;  %v3814_v55 = vadd.f32 %v8072_v16, %v7945_v50  ;;  %v4169_v50 = vadd.f32 %v8260_v39, %v4168_v21  ;;  %v4182_v16 = vsub.f32 1.0, %v4181_v29 }
 0x97d   :  { %v3913_v18 = vadd.f32 %v3881_v33, %v3865_v4  ;;  %v8319_v25 = vpop.eup %4979  ;;  %v4176_v36 = vand.u32 2147483648, %v8199_v37  ;;  %v4103_v4 = vsel %vm4100_vm13, %v4102_v47, %v4098_v15  ;;  %v4174_v27 = vand.u32 2147483647, %v8199_v37  ;;  %v3316_v47 = vpop.f32.mrf.mxu0 }
 0x97e   :  { %v4298_v54 = vrot.slane %v4254_v62, 6  ;;  %v3862_v17 = vadd.f32 %v8161_v46, %v3814_v55  ;;  %v4196_v28 = vmul.f32 %v8319_v25, %v8275_v32  ;;  %v3819_v46 = vadd.f32 %v8141_v7, %v8010_v1 }
 0x97f   :  { %v3837_v43 = vpop.permute.xlu0 %3836  ;;  %v8288_v35 = vmul.f32 %v4148_v40, %v3913_v18  ;;  %v4282_v38 = vrot.slane %v8220_v22, 7  ;;  %v4173_v51 = vsel %vm8342_vm6, %v8260_v39, %v4169_v50  ;;  %v4284_v1 = vrot.slane %v8205_v60, 6 }
 0x980   :  { %v8295_v58 = vsel %vm1615_vm3, %v4298_v54, %v4297_v5  ;;  %v8352_v18 = vpop.eup %4981  ;;  %v3867_v7 = vadd.f32 %v3837_v43, %v3819_v46  ;;  %v4183_v14 = vmul.f32 %v8292_v24, %v4182_v16  ;;  %v4197_v54 = vsub.f32 1.0, %v4196_v28  ;;  %v4313_v28 = vld [vmem:[#allocation8 + $0x70] sm:$0xff]  ;;  %v4764_v5 = vld [vmem:[#allocation8 + $0x658] ss:$0 sm:$0xff] }
 0x981   :  { %v4286_v62 = vrot.slane %v8288_v35, 5  ;;  %v4177_v22 = vor.u32 1.1754944e-38, %v4176_v36  ;;  %vm4175_vm14 = vcmp.eq.f32.partialorder %v4174_v27, 8.507059e+37  ;;  %v4256_v39 = vmul.f32 %v8352_v18, %v8300_v49  ;;  %4364 = vmatpush.msrb.mxu2 %v4313_v28 }
 0x982   :  { %vm8796_vm9 = vcmask 1044484   ;;  %v4184_v63 = vadd.f32 %v8292_v24, %v4183_v14  ;;  %v4198_v20 = vmul.f32 %v8319_v25, %v4197_v54  ;;  %v3820_v21 = vadd.f32 %v8149_v57, %v8015_v42 }
 0x983   :  { %v4178_v23 = vsel %vm4175_vm14, %v4177_v22, %v4173_v51  ;;  %v4189_v34 = vand.u32 2147483647, %v8254_v30  ;;  %vm4201_vm10 = vweird.f32 %v8319_v25  ;;  %v4192_v15 = vor.u32 1.1754944e-38, %v4191_v59  ;;  %v4315_v59 = vld [vmem:[#allocation8 + $0x80] sm:$0xff] }
 0x984   :  { %v3883_v52 = vpop.permute.xlu1 %3882  ;;  %v4188_v56 = vsel %vm4187_vm4, %v8292_v24, %v4184_v63  ;;  %vm4200_vm15 = vweird.f32 %v8275_v32  ;;  %v4206_v42 = vand.u32 2147483648, %v8275_v32  ;;  %v3821_v30 = vadd.f32 %v8114_v26, %v8026_v10  ;;  %v3889_v10 = vpop.permute.xlu2 %3888  ;;  %v4322_v63 = vld [vmem:[#allocation7 + $0x7] sm:$0x7] }
 0x985   :  { %v3914_v6 = vadd.f32 %v3883_v52, %v3866_v41  ;;  %v4257_v41 = vsub.f32 1.0, %v4256_v39  ;;  %v4199_v52 = vadd.f32 %v8319_v25, %v4198_v20  ;;  %vm4190_vm2 = vcmp.eq.f32.partialorder %v4189_v34, 8.507059e+37  ;;  %vm8380_vm11 = vmor %vm4200_vm15, %vm4201_vm10  ;;  %v4316_v20 = vld [vmem:[#allocation8 + $0x88] sm:$0xff] }
 0x986   :  { %v4207_v26 = vor.u32 1.1754944e-38, %v4206_v42  ;;  %vm4261_vm7 = vweird.f32 %v8352_v18  ;;  %vm8800_vm6 = vcmask 1046534   ;;  %vm4260_vm14 = vweird.f32 %v8300_v49 }
 0x987   :  { %v3875_v45 = vpop.permute.xlu0 %3874  ;;  %v4164_v2 = vmul.f32 %v4163_v11, %v3914_v6  ;;  %v4204_v6 = vand.u32 2147483647, %v8275_v32  ;;  %v4258_v24 = vmul.f32 %v8352_v18, %v4257_v41  ;;  %v4264_v51 = vand.u32 2147483647, %v8300_v49 }
 0x988   :  { %v3910_v3 = vadd.f32 %v3875_v45, %v3862_v17  ;;  %v4193_v17 = vsel %vm4190_vm2, %v4192_v15, %v4188_v56  ;;  %v4203_v45 = vsel %vm8380_vm11, %v8319_v25, %v4199_v52  ;;  %v4266_v25 = vand.u32 2147483648, %v8300_v49 }
 0x989   :  { %v4288_v48 = vrot.slane %v4164_v2, 4  ;;  %vm4205_vm13 = vcmp.eq.f32.partialorder %v4204_v6, 8.507059e+37  ;;  %v4259_v46 = vadd.f32 %v8352_v18, %v4258_v24  ;;  %v3317_v14 = vadd.f32 %v4764_v5, %v3316_v47 }
 0x98a   :  { %v4104_v33 = vmul.f32 %v4103_v4, %v3910_v3  ;;  %v4312_v3 = vld [vmem:[#allocation8 + $0x68] sm:$0xff]  ;;  %v4311_v4 = vld [vmem:[#allocation8 + $0x60] sm:$0xff]  ;;  %v4208_v27 = vsel %vm4205_vm13, %v4207_v26, %v4203_v45  ;;  %v4267_v54 = vor.u32 1.1754944e-38, %v4266_v25  ;;  %vm4265_vm12 = vcmp.eq.f32.partialorder %v4264_v51, 8.507059e+37 }
 0x98b   :  { %4365 = vmatpush.msrb.mxu2 %v4312_v3  ;;  %vm8802_vm5 = vcmask 1043459   ;;  %vm8803_vm4 = vcmask 261120   ;;  %vm8806_vm15 = vcmask 97280   ;;  %vm4498_vm13 = vcmask 257024  }
 0x98c   :  { %v4283_v37 = vsel %vm1612_vm1, %v4282_v38, %v4104_v33  ;;  %v3885_v40 = vpop.permute.xlu1 %3884  ;;  %vm8807_vm2 = vmmov %vm8806_vm15 }
 0x98d   :  { %v4285_v0 = vsel %vm1615_vm3, %v4284_v1, %v4283_v37  ;;  %v3915_v35 = vadd.f32 %v3885_v40, %v3867_v7  ;;  %4366 = vmatpush.msrb.mxu2 %v4311_v4 }
 0x98e   :  { %v4287_v44 = vsel %vm8795_vm8, %v4286_v62, %v4285_v0  ;;  %v3825_v62 = vadd.f32 %v8091_v8, %v7987_v61  ;;  %vm4262_vm8 = vmor %vm4260_vm14, %vm4261_vm7  ;;  %v3319_v0 = vpop.f32.mrf.mxu0 }
 0x98f   :  { %v4289_v60 = vsel %vm8796_vm9, %v4288_v48, %v4287_v44  ;;  %v3839_v43 = vpop.permute.xlu0 %3838  ;;  %v4179_v31 = vmul.f32 %v4178_v23, %v3915_v35  ;;  %v4263_v48 = vsel %vm4262_vm8, %v8352_v18, %v4259_v46  ;;  %vm8801_vm9 = vcmask 1047559   ;;  %vm8809_vm7 = vmmov %vm8807_vm2 }
 0x990   :  { %v3868_v9 = vadd.f32 %v3839_v43, %v3820_v21  ;;  %v3873_v1 = vadd.f32 %v8131_v19, %v3825_v62  ;;  %v4268_v61 = vsel %vm4265_vm12, %v4267_v54, %v4263_v48  ;;  %v3320_v44 = vadd.f32 %v4764_v5, %v3319_v0  ;;  %v4314_v21 = vld [vmem:[#allocation8 + $0x78] sm:$0xff]  ;;  %vm8811_vm14 = vmmov %vm8803_vm4 }
 0x991   :  { %v4290_v29 = vrot.slane %v4179_v31, 3  ;;  %v4320_v31 = vld [vmem:[#allocation7] sm:$0x7]  ;;  %vm8812_vm8 = vmmov %vm8803_vm4 }
 0x993   :  { %v4291_v55 = vsel %vm8797_vm0, %v4290_v29, %v4289_v60  ;;  %vm8804_vm0 = vcmask 1043456  }
 0x994   :  { %v3887_v53 = vpop.permute.xlu1 %3886  ;;  %vm8805_vm10 = vmmov %vm8804_vm0 }
 0x995   :  { %v3916_v57 = vadd.f32 %v3887_v53, %v3868_v9  ;;  %vm8808_vm11 = vmmov %vm8804_vm0 }
 0x997   :  { %v3841_v50 = vpop.permute.xlu0 %3840  ;;  %v4194_v16 = vmul.f32 %v4193_v17, %v3916_v57  ;;  %v4765_v57 = vld [vmem:[#allocation8 + $0x98] ss:$0 sm:$0xff] }
 0x998   :  { %v3869_v2 = vadd.f32 %v3841_v50, %v3821_v30 }
 0x999   :  { %v4292_v32 = vrot.slane %v4194_v16, 2 }
 0x99a   :  { %v3917_v36 = vadd.f32 %v3889_v10, %v3869_v2  ;;  %v4766_v10 = vld [vmem:[#allocation8 + $0xa0] ss:$0 sm:$0xff] }
 0x99b   :  { %v4293_v38 = vsel %vm8800_vm6, %v4292_v32, %v4291_v55  ;;  %vm8810_vm6 = vmmov %vm8803_vm4 }
 0x99c   :  { %v4209_v33 = vmul.f32 %v4208_v27, %v3917_v36 }
 0x99e   :  { %v4294_v7 = vrot.slane %v4209_v33, 1 }
 0x99f   :  { %v3897_v37 = vpop.permute.xlu0 %3896 }
 0x9a0   :  { %v4295_v40 = vsel %vm8801_vm9, %v4294_v7, %v4293_v38  ;;  %v3921_v22 = vadd.f32 %v3897_v37, %v3873_v1 }
 0x9a1   :  { %v4304_v8 = vadd.f32 %v4295_v40, %v3317_v14  ;;  %v8813_v14 = vld [vmem:[#allocation20_spill] sm:$0xff] }
 0x9a2   :  { %v4269_v35 = vmul.f32 %v4268_v61, %v3921_v22 }
 0x9a3   :  { %v4306_v39 = vmax.f32 %v4304_v8, 0.0 }
 0x9a4   :  { %v4300_v49 = vrot.slane %v4269_v35, 5 }
 0x9a5   :  { %v4308_v23 = vadd.f32 %v4306_v39, %v7592_v12  ;;  %v4321_v12 = vld [vmem:[#allocation7 + $0x3] sm:$0xf] }
 0x9a6   :  { %v4301_v19 = vsel %vm8802_vm5, %v4300_v49, %v8295_v58  ;;  %v4317_v58 = vld [vmem:[#allocation8 + $0x90] sm:$0xff] }
 0x9a7   :  { %v4305_v18 = vadd.f32 %v4301_v19, %v3320_v44  ;;  %4568 = vst.msk [vmem:[#allocation13] sm:$0xff] %vm8803_vm4, %v4308_v23 }
 0x9a9   :  { %v4307_v60 = vmax.f32 %v4305_v18, 0.0 }
 0x9ab   :  { %v4309_v43 = vadd.f32 %v4307_v60, %v7555_v13  ;;  %v4310_v13 = vld [vmem:[#allocation8 + $0x58] sm:$0xff] }
 0x9ac   :  { %4367 = vmatpush.msrb.mxu2 %v4310_v13 }
 0x9ad   :  { %4727 = vmatpush.msk.msrb.mxu1 %vm8804_vm0, %v4309_v43  ;;  %4733 = vmatpush.msk.msrb.mxu0 %vm8805_vm10, %v4309_v43  ;;  %4569 = vst.msk [vmem:[#allocation13 + $0x8] sm:$0xf] %vm4498_vm13, %v4309_v43  ;;  %vm4509_vm0 = vcmask 256000   ;;  %vm4522_vm10 = vcmask 31744  }
 0x9ae   :  { %4410 = vmatpush.msra.mxu2 %v4317_v58 }
 0x9af   :  { %4344 = vmatpush.msrb.mxu1 %v4308_v23  ;;  %4436 = vmatpush.msrb.mxu0 %v4308_v23 }
 0x9b0   :  { %4728 = vmatmul.msk.f32.vlgmr.msrb.gmra.mxu1 %vm8806_vm15, %v4320_v31  ;;  %4734 = vmatmul.msk.f32.vlgmr.msrb.gmra.mxu0 %vm8807_vm2, %v4322_v63  ;;  %vm4524_vm15 = vcmask 34816   ;;  %vm4531_vm2 = vcmask 1042432  }
 0x9b1   :  { %4730 = vmatpush.msk.msra.mxu1 %vm8808_vm11, %v4309_v43  ;;  %4411 = vmatpush.msra.mxu2 %v4316_v20 }
 0x9b3   :  { %4390 = vmatpush.msra.mxu1 %v4308_v23  ;;  %4412 = vmatpush.msra.mxu2 %v4315_v59 }
 0x9b5   :  { %4456 = vmatpush.msrb.mxu1 %v4317_v58  ;;  %4413 = vmatpush.msra.mxu2 %v4314_v21 }
 0x9b7   :  { %4457 = vmatpush.msrb.mxu1 %v4316_v20 }
 0x9b8   :  { %4731 = vmatmul.msk.f32.vlgmr.msra.gmra.mxu1 %vm8809_vm7, %v4321_v12 }
 0x9b9   :  { %4458 = vmatpush.msrb.mxu1 %v4315_v59 }
 0x9bb   :  { %4459 = vmatpush.msrb.mxu1 %v4314_v21 }
 0xa2d   :  { %v4346_v29 = vpop.f32.mrf.mxu1  ;;  %v4438_v34 = vpop.f32.mrf.mxu0 }
 0xa2e   :  { %4729 = vmatmul.msk.f32.vlgmr.msrb.gmra.mxu2 %vm8810_vm6, %v4346_v29  ;;  %4735 = vmatmul.msk.f32.vlgmr.msrb.gmra.mxu1 %vm8811_vm14, %v4438_v34 }
 0xa35   :  { %v4392_v41 = vpop.f32.mrf.mxu1 }
 0xa36   :  { %4732 = vmatmul.msk.f32.vlgmr.msra.gmra.mxu2 %vm8812_vm8, %v4392_v41 }
 0xaab   :  { %v4461_v52 = vpop.f32.mrf.mxu1 }
 0xab1   :  { %v4369_v9 = vpop.f32.mrf.mxu2 }
 0xab2   :  { %v4465_v55 = vrot.slane %v4369_v9, 1  ;;  %v4466_v56 = vrot.slane %v4369_v9, 2  ;;  %v4467_v53 = vperm.slane %v4369_v9, 0  ;;  %v4480_v30 = vadd.f32 %v4461_v52, %v4369_v9 }
 0xab4   :  { %v4468_v15 = vperm.slane %v4465_v55, 0  ;;  %v4469_v42 = vperm.slane %v4466_v56, 0  ;;  %v4481_v45 = vadd.f32 %v4765_v57, %v4480_v30 }
 0xab6   :  { %v4492_v26 = vmul.f32 0.01, %v4481_v45  ;;  %vm4491_vm4 = vcmp.gt.f32.partialorder %v4481_v45, 0.0 }
 0xab8   :  { %v4493_v33 = vsel %vm4491_vm4, %v4481_v45, %v4492_v26 }
 0xab9   :  { %v4415_v6 = vpop.f32.mrf.mxu2  ;;  %v4508_v51 = vmul.f32 %v4766_v10, %v4493_v33 }
 0xaba   :  { %v4473_v17 = vadd.f32 %v4467_v53, %v4415_v6  ;;  %v4474_v24 = vadd.f32 %v4468_v15, %v4415_v6  ;;  %v4475_v11 = vadd.f32 %v4469_v42, %v4415_v6 }
 0xabb   :  { %v4510_v1 = vsel %vm4509_vm0, %v4508_v51, 0.0 }
 0xabc   :  { %v4477_v50 = vadd.f32 %v4765_v57, %v4473_v17  ;;  %v4478_v16 = vadd.f32 %v4765_v57, %v4474_v24  ;;  %v4479_v47 = vadd.f32 %v4765_v57, %v4475_v11 }
 0xabe   :  { %v4485_v2 = vmul.f32 0.01, %v4477_v50  ;;  %v4486_v28 = vmul.f32 0.01, %v4478_v16  ;;  %v4487_v3 = vmul.f32 0.01, %v4479_v47 }
 0xabf   :  { %vm4484_vm9 = vcmp.gt.f32.partialorder %v4479_v47, 0.0  ;;  %vm4483_vm12 = vcmp.gt.f32.partialorder %v4478_v16, 0.0  ;;  %vm4482_vm5 = vcmp.gt.f32.partialorder %v4477_v50, 0.0 }
 0xac0   :  { %v4490_v32 = vsel %vm4484_vm9, %v4479_v47, %v4487_v3  ;;  %v4489_v36 = vsel %vm4483_vm12, %v4478_v16, %v4486_v28  ;;  %v4488_v46 = vsel %vm4482_vm5, %v4477_v50, %v4485_v2 }
 0xac1   :  { %v4497_v4 = vmul.f32 %v4766_v10, %v4490_v32  ;;  %v4496_v5 = vmul.f32 %v4766_v10, %v4489_v36  ;;  %v4495_v27 = vmul.f32 %v4766_v10, %v4488_v46 }
 0xac3   :  { %v4505_v38 = vsel %vm4498_vm13, %v4497_v4, 0.0  ;;  %v4502_v25 = vsel %vm4498_vm13, %v4496_v5, 0.0  ;;  %v4499_v62 = vsel %vm4498_vm13, %v4495_v27, 0.0 }
 0xac4   :  { %4506 = vadd.xlane.f32.xlu2 %v4505_v38  ;;  %4503 = vadd.xlane.f32.xlu1 %v4502_v25 }
 0xac5   :  { %4500 = vadd.xlane.f32.xlu0 %v4499_v62 }
 0xacc   :  { %4511 = vadd.xlane.f32.xlu2 %v4510_v1 }
 0xb37   :  { %v4507_v7 = vpop.xlane.xlu2 %4506  ;;  %v4504_v48 = vpop.xlane.xlu1 %4503 }
 0xb38   :  { %v4517_v54 = vperm.slane %v4504_v48, %v8813_v14  ;;  %v4501_v37 = vpop.xlane.xlu0 %4500  ;;  %v4518_v22 = vperm.slane %v4507_v7, %v8813_v14 }
 0xb39   :  { %v4516_v40 = vperm.slane %v4501_v37, %v8813_v14 }
 0xb3b   :  { %v4519_v61 = vsel %vm1612_vm1, %v4517_v54, %v4516_v40 }
 0xb3c   :  { %v4520_v0 = vsel %vm1615_vm3, %v4518_v22, %v4519_v61 }
 0xb3f   :  { %v4512_v8 = vpop.xlane.xlu2 %4511 }
 0xb40   :  { %v4523_v35 = vsel %vm4522_vm10, %v4520_v0, %v4512_v8 }
 0xb41   :  { %4983 = vtanh.f32 %v4523_v35  ;;  %4525 = vst.msk [vmem:[#allocation11] sm:$0x7] %vm4524_vm15, %v4523_v35 }
 0xb42   :  { %4591 = dma.vmem_to_hbm [thread:$0]  %s4587_s22, 64, %s4589_s20, [#allocation12]  }
 0xb43   :  { %4604 = dma.vmem_to_hbm [thread:$0]  %s4597_s24, 256, %s4599_s27, [#allocation12], %s5169_s29, %s5169_s29, %s5170_s30  }
 0xb44   :  { %s4577_s30 = sshll.u32 %s8443_s4, 4  ;;  %s4578_s30 = int_to_ptr.hbm [resolvable:$true] %s4577_s30 }
 0xb47   :  { %v4984_v39 = vpop.eup %4983 }
 0xb48   :  { %v4527_v49 = vmul.f32 10.0, %v4984_v39 }
 0xb4a   :  { %v4528_v44 = vsel %vm4524_vm15, %v4527_v49, -inf }
 0xb4b   :  { %4529 = vmax.xlane.f32.xlu0 %v4528_v44 }
 0xbbe   :  { %v4530_v23 = vpop.xlane.xlu0 %4529 }
 0xbbf   :  { %v4532_v19 = vsel %vm4531_vm2, %v4530_v23, -inf }
 0xbc0   :  { %v4533_v18 = vrot.slane %v4532_v19, 4 }
 0xbc2   :  { %v4534_v60 = vmax.f32 %v4532_v19, %v4533_v18 }
 0xbc4   :  { %v4535_v43 = vrot.slane %v4534_v60, 2 }
 0xbc6   :  { %v4536_v31 = vmax.f32 %v4534_v60, %v4535_v43 }
 0xbc8   :  { %v4537_v63 = vrot.slane %v4536_v31, 1 }
 0xbca   :  { %v4538_v12 = vmax.f32 %v4536_v31, %v4537_v63 }
 0xbcc   :  { %v4539_v13 = vsub.f32 %v4527_v49, %v4538_v12 }
 0xbce   :  { %v4540_v58 = vmul.f32 1.442695, %v4539_v13 }
 0xbd0   :  { %4985 = vpow2.f32 %v4540_v58 }
 0xbd6   :  { %v4986_v20 = vpop.eup %4985 }
 0xbd7   :  { %v4542_v59 = vsel %vm4524_vm15, %v4986_v20, 0.0 }
 0xbd8   :  { %4543 = vadd.xlane.f32.xlu1 %v4542_v59 }
 0xc4b   :  { %v4544_v21 = vpop.xlane.xlu1 %4543 }
 0xc4c   :  { %v4545_v29 = vsel %vm4531_vm2, %v4544_v21, 0.0 }
 0xc4d   :  { %v4546_v34 = vrot.slane %v4545_v29, 4 }
 0xc4f   :  { %v4547_v41 = vadd.f32 %v4546_v34, %v4545_v29 }
 0xc51   :  { %v4548_v9 = vrot.slane %v4547_v41, 2 }
 0xc53   :  { %v4549_v55 = vadd.f32 %v4548_v9, %v4547_v41 }
 0xc55   :  { %v4550_v56 = vrot.slane %v4549_v55, 1 }
 0xc57   :  { %v4551_v52 = vadd.f32 %v4550_v56, %v4549_v55 }
 0xc59   :  { %4987 = vrcp.f32 %v4551_v52  ;;  %v4563_v57 = vand.u32 2147483648, %v4551_v52  ;;  %v4561_v6 = vand.u32 2147483647, %v4551_v52  ;;  %vm4557_vm3 = vweird.f32 %v4551_v52 }
 0xc5b   :  { %v4564_v24 = vor.u32 1.1754944e-38, %v4563_v57  ;;  %vm4562_vm13 = vcmp.eq.f32.partialorder %v4561_v6, 8.507059e+37 }
 0xc5f   :  { %v4988_v53 = vpop.eup %4987 }
 0xc60   :  { %v4553_v15 = vmul.f32 %v4988_v53, %v4551_v52  ;;  %vm4558_vm1 = vweird.f32 %v4988_v53 }
 0xc61   :  { %vm4559_vm11 = vmor %vm4557_vm3, %vm4558_vm1 }
 0xc62   :  { %v4554_v42 = vsub.f32 1.0, %v4553_v15 }
 0xc64   :  { %v4555_v30 = vmul.f32 %v4988_v53, %v4554_v42 }
 0xc66   :  { %v4556_v17 = vadd.f32 %v4988_v53, %v4555_v30 }
 0xc68   :  { %v4560_v11 = vsel %vm4559_vm11, %v4988_v53, %v4556_v17 }
 0xc69   :  { %v4565_v50 = vsel %vm4562_vm13, %v4564_v24, %v4560_v11 }
 0xc6a   :  { %v4566_v16 = vmul.f32 %v4986_v20, %v4565_v50 }
 0xc6c   :  { %4567 = vst.msk [vmem:[#allocation10] sm:$0x7] %vm4524_vm15, %v4566_v16 }
 0xc6d   :  { %4580 = dma.vmem_to_hbm [thread:$0]  %s4576_s6, 64, %s4578_s30, [#allocation4]  }
 0xc6e   :  { %5164 = dma.done.wait [#allocation4], 64  }
 0xc6f   :  { %5165 = vsyncadd [#allocation4], 4294967232 }
 0xc70   :  { %5166 = dma.done.wait [#allocation12], 320  }
 0xc71   :  { %5167 = vsyncadd [#allocation12], 4294966976 }
 0xc72   :  { %4617 = vsyncpa [#allocation3], 1 }
 0xc73   :  { %4618 = vsyncpa [#allocation6], 1 }
 0xc74   :  { %4619 = vsyncpa [#allocation9], 1 }
 0xc75   :  { %4620 = vsyncpa [#allocation4], 1 }
 0xc76   :  { %4621 = vsyncpa [#allocation12], 1 }

</bundles_post_ra>
